<compile_context>
chip_gen: v7x
topology: tpu7x:2x2x1
jax: 0.10.0
libtpu: 0.0.40
codegen_flags: <defaults>
</compile_context>

<pallas_src>
import functools

import jax
import jax.numpy as jnp
from jax.experimental import pallas as pl
from jax.experimental.pallas import tpu as pltpu


# ---------------------------------------------------------------------------
# Tiling helpers (generation-aware M tile)
# ---------------------------------------------------------------------------
def _round_up(x, m):
    return (x + m - 1) // m * m


def _pick_tile_m():
    """M-tile upper bound per TPU generation (per review guidance)."""
    try:
        kind = jax.devices()[0].device_kind.lower()
    except Exception:
        return 512
    if "v6" in kind:
        return 1024    # 128 MiB VMEM, 1 TC: bigger tiles amortize per-step overhead
    if "v5" in kind:
        return 512     # 16 MiB default scoped VMEM: keep double-buffered blocks small
    return 512         # v7x (64 MiB VMEM, 2 TCs): small tiles + "parallel" grid axis


_TILE_M = _pick_tile_m()


def _tile_rows(M, tile):
    """Balanced, sublane-aligned row tiling: returns (tile_m, padded_M)."""
    n = max(1, -(-M // tile))            # number of grid steps
    tm = _round_up(-(-M // n), 8)        # per-step rows, multiple of 8 sublanes
    return tm, tm * n


# ---------------------------------------------------------------------------
# Pallas kernels
# ---------------------------------------------------------------------------
def _mm_bias_act_kernel(a_ref, w_ref, b_ref, o_ref, *, relu):
    # a: (TM, K) bf16, w: (K, N) bf16, b: (1, N) f32 -> o: (TM, N)
    acc = jnp.dot(a_ref[...], w_ref[...], preferred_element_type=jnp.float32)
    acc = acc + b_ref[...]
    if relu:
        acc = jnp.maximum(acc, 0.0)
    o_ref[...] = acc.astype(o_ref.dtype)


def matmul_bias_act(a, w, b, *, relu, out_dtype=jnp.bfloat16):
    """Fused (A @ W + b) [+ ReLU], gridded over rows of A (M dimension)."""
    M, K = a.shape
    K2, N = w.shape
    assert K == K2
    tm, Mp = _tile_rows(M, _TILE_M)
    if Mp != M:
        a = jnp.pad(a, ((0, Mp - M), (0, 0)))
    grid = (Mp // tm,)
    out = pl.pallas_call(
        functools.partial(_mm_bias_act_kernel, relu=relu),
        out_shape=jax.ShapeDtypeStruct((Mp, N), out_dtype),
        grid=grid,
        in_specs=[
            pl.BlockSpec((tm, K), lambda i: (i, 0)),   # row tile of A
            pl.BlockSpec((K, N), lambda i: (0, 0)),    # full weight, resident
            pl.BlockSpec((1, N), lambda i: (0, 0)),    # full bias
        ],
        out_specs=pl.BlockSpec((tm, N), lambda i: (i, 0)),
        compiler_params=pltpu.CompilerParams(dimension_semantics=("parallel",)),
    )(a.astype(jnp.bfloat16), w, b)
    return out[:M] if Mp != M else out


def _tail_kernel(f_ref, w5_ref, b5_ref, wl_ref, bl_ref, eps_ref,
                 mu_ref, lv_ref, z_ref):
    # Fused conv5 (as matmul) + ReLU + [lin1|lin2] + reparameterization.
    # f: (TB, 3136) bf16; w5: (3136, 80) bf16; b5: (1, 80) f32
    # wl: (80, 40) bf16 (= [lw1.T | lw2.T]); bl: (1, 40) f32; eps: (TB, 20) f32
    h = jnp.dot(f_ref[...], w5_ref[...], preferred_element_type=jnp.float32)
    h = jnp.maximum(h + b5_ref[...], 0.0)                       # conv5 + ReLU -> (TB, 80)
    ml = jnp.dot(h.astype(jnp.bfloat16), wl_ref[...],
                 preferred_element_type=jnp.float32) + bl_ref[...]   # (TB, 40)
    mu = ml[:, :20]
    logvar = ml[:, 20:]
    mu_ref[...] = mu
    lv_ref[...] = logvar
    z_ref[...] = mu + eps_ref[...] * jnp.exp(0.5 * logvar)


def conv5_linear_reparam(feat, w5, b5, wl, bl, eps):
    """conv5 + lin1 + lin2 + reparameterize in a single Pallas call."""
    B, K = feat.shape
    tb, Bp = _tile_rows(B, _TILE_M)
    if Bp != B:
        feat = jnp.pad(feat, ((0, Bp - B), (0, 0)))
        eps = jnp.pad(eps, ((0, Bp - B), (0, 0)))
    grid = (Bp // tb,)
    out_shape = tuple(jax.ShapeDtypeStruct((Bp, 20), jnp.float32) for _ in range(3))
    mu, logvar, z = pl.pallas_call(
        _tail_kernel,
        out_shape=out_shape,
        grid=grid,
        in_specs=[
            pl.BlockSpec((tb, K), lambda i: (i, 0)),
            pl.BlockSpec((K, 80), lambda i: (0, 0)),
            pl.BlockSpec((1, 80), lambda i: (0, 0)),
            pl.BlockSpec((80, 40), lambda i: (0, 0)),
            pl.BlockSpec((1, 40), lambda i: (0, 0)),
            pl.BlockSpec((tb, 20), lambda i: (i, 0)),
        ],
        out_specs=tuple(pl.BlockSpec((tb, 20), lambda i: (i, 0)) for _ in range(3)),
        compiler_params=pltpu.CompilerParams(dimension_semantics=("parallel",)),
    )(feat.astype(jnp.bfloat16), w5, b5, wl, bl, eps)
    return mu[:B], logvar[:B], z[:B]


# ---------------------------------------------------------------------------
# Conv = im2col (wrapper glue, bf16) + gridded Pallas matmul
# ---------------------------------------------------------------------------
# TODO(synk): patch extraction / padding stay as XLA-level glue; folding the
# im2col into the kernel (halo DMA + strided VMEM reads) is the remaining
# HBM-traffic optimization not done here.
def _extract_patches(x, k, stride):
    # x: (B, H, W, C) -> (B*Ho*Wo, k*k*C); patch column order = (kh, kw, cin)
    B, H, W, C = x.shape
    Ho = (H - k) // stride + 1
    Wo = (W - k) // stride + 1
    pieces = []
    for di in range(k):
        for dj in range(k):
            pieces.append(
                x[:, di:di + stride * (Ho - 1) + 1:stride,
                     dj:dj + stride * (Wo - 1) + 1:stride, :])
    p = jnp.stack(pieces, axis=3)                       # (B, Ho, Wo, k*k, C)
    return p.reshape(B * Ho * Wo, k * k * C), (B, Ho, Wo)


def conv2d(x, w_mat, b, *, k, stride=1, padding=0, relu=True):
    """PyTorch-semantics Conv2d in NHWC using a preprocessed (k*k*Cin, Cout)
    weight matrix, symmetric zero padding and fused bias+ReLU."""
    if padding:
        x = jnp.pad(x, ((0, 0), (padding, padding), (padding, padding), (0, 0)))
    patches, (B, Ho, Wo) = _extract_patches(x, k, stride)
    cout = w_mat.shape[1]
    out = matmul_bias_act(patches, w_mat, b, relu=relu)
    return out.reshape(B, Ho, Wo, cout)


# ---------------------------------------------------------------------------
# Encoder parameters (PyTorch layouts) + one-time preprocessing + forward
# ---------------------------------------------------------------------------
def init_params(key):
    def uinit(key, shape, fan_in):
        bound = 1.0 / jnp.sqrt(fan_in)
        return jax.random.uniform(key, shape, jnp.float32, -bound, bound)

    ks = jax.random.split(key, 14)
    p = {}
    # conv weights in PyTorch OIHW layout
    p['w1'] = uinit(ks[0], (32, 11, 5, 5), 11 * 25); p['b1'] = uinit(ks[1], (32,), 11 * 25)
    p['w2'] = uinit(ks[2], (32, 32, 5, 5), 32 * 25); p['b2'] = uinit(ks[3], (32,), 32 * 25)
    p['w3'] = uinit(ks[4], (64, 32, 5, 5), 32 * 25); p['b3'] = uinit(ks[5], (64,), 32 * 25)
    p['w4'] = uinit(ks[6], (64, 64, 5, 5), 64 * 25); p['b4'] = uinit(ks[7], (64,), 64 * 25)
    p['w5'] = uinit(ks[8], (80, 64, 7, 7), 64 * 49); p['b5'] = uinit(ks[9], (80,), 64 * 49)
    # linear weights in PyTorch (out, in) layout
    p['lw1'] = uinit(ks[10], (20, 80), 80); p['lb1'] = uinit(ks[11], (20,), 80)
    p['lw2'] = uinit(ks[12], (20, 80), 80); p['lb2'] = uinit(ks[13], (20,), 80)
    return p


def preprocess_params(p):
    """One-time layout conversion (hoisted out of the forward pass):
    OIHW -> (KH*KW*Cin[_padded], Cout) bf16 matmul weights; biases -> (1, N)
    f32; lin1/lin2 weights concatenated into a single (80, 40) bf16 matrix."""
    def conv_w(w, cin_pad=None):
        o, i, kh, kw = w.shape
        if cin_pad is not None and cin_pad > i:
            w = jnp.pad(w, ((0, 0), (0, cin_pad - i), (0, 0), (0, 0)))
            i = cin_pad
        # (O, I, KH, KW) -> (KH, KW, I, O) -> (KH*KW*I, O): matches patch order
        return jnp.transpose(w, (2, 3, 1, 0)).reshape(kh * kw * i, o).astype(jnp.bfloat16)

    q = {}
    q['w1'] = conv_w(p['w1'], cin_pad=16)   # 11 -> 16 input ch (K = 400, mult of 8)
    q['w2'] = conv_w(p['w2'])
    q['w3'] = conv_w(p['w3'])
    q['w4'] = conv_w(p['w4'])
    q['w5'] = conv_w(p['w5'])
    for n in range(1, 6):
        q[f'b{n}'] = p[f'b{n}'].reshape(1, -1).astype(jnp.float32)
    q['wl'] = jnp.concatenate([p['lw1'].T, p['lw2'].T], axis=1).astype(jnp.bfloat16)  # (80, 40)
    q['bl'] = jnp.concatenate([p['lb1'], p['lb2']]).reshape(1, -1).astype(jnp.float32)  # (1, 40)
    return q


def encoder_forward(q, x_nchw, y, eps):
    """q: preprocessed params; x_nchw: (B,1,28,28) f32; y: (B,10) f32 (one-hot);
    eps: (B,20) f32. Returns (mu, logvar, z), each (B, 20) f32."""
    B, _, H, W = x_nchw.shape
    x = jnp.transpose(x_nchw, (0, 2, 3, 1)).astype(jnp.bfloat16)          # NHWC (B,H,W,1)
    # y.view(-1,10,1,1) * ones(B,10,H,W) == broadcast y over spatial dims
    y_b = jnp.broadcast_to(y.reshape(B, 1, 1, 10), (B, H, W, 10)).astype(jnp.bfloat16)
    pad_c = jnp.zeros((B, H, W, 5), jnp.bfloat16)                          # 11 -> 16 channels
    x = jnp.concatenate([x, y_b, pad_c], axis=-1)                          # (B,H,W,16)

    x = conv2d(x, q['w1'], q['b1'], k=5, stride=1, padding=2, relu=True)   # (B,28,28,32)
    x = jnp.pad(x, ((0, 0), (0, 3), (0, 3), (0, 0)))                       # F.pad (0,3,0,3)
    x = conv2d(x, q['w2'], q['b2'], k=5, stride=2, padding=0, relu=True)   # (B,14,14,32)
    x = conv2d(x, q['w3'], q['b3'], k=5, stride=1, padding=2, relu=True)   # (B,14,14,64)
    x = jnp.pad(x, ((0, 0), (0, 3), (0, 3), (0, 0)))                       # F.pad (0,3,0,3)
    x = conv2d(x, q['w4'], q['b4'], k=5, stride=2, padding=0, relu=True)   # (B,7,7,64)

    # conv5 is 7x7 'valid' on a 7x7 map -> its im2col is a pure reshape
    # (NHWC flatten matches the (kh, kw, cin) weight-row order), zero redundancy.
    feat = x.reshape(B, 7 * 7 * 64)                                        # (B, 3136)

    # TODO(synk): torch.randn_like(std) is replaced by an explicit eps drawn
    # from jax.random (deterministic PRNGKey) passed into the fused kernel.
    mu, logvar, z = conv5_linear_reparam(feat, q['w5'], q['b5'], q['wl'], q['bl'], eps)
    return mu, logvar, z


if __name__ == "__main__":
    key = jax.random.PRNGKey(0)
    kp, kx, ky, ke = jax.random.split(key, 4)

    params = init_params(kp)
    prepped = preprocess_params(params)   # one-time weight layout conversion

    # Architecture requires 28x28 spatial input (MNIST-like); B=2 kept small.
    B = 2
    x = jax.random.normal(kx, (B, 1, 28, 28), dtype=jnp.float32)
    labels = jax.random.randint(ky, (B,), 0, 10)
    y = jax.nn.one_hot(labels, 10, dtype=jnp.float32)
    eps = jax.random.normal(ke, (B, 20), dtype=jnp.float32)

    fwd = jax.jit(encoder_forward)
    mu, logvar, z = fwd(prepped, x, y, eps)
    jax.block_until_ready((mu, logvar, z))

    assert mu.shape == (B, 20) and logvar.shape == (B, 20) and z.shape == (B, 20)
    assert bool(jnp.all(jnp.isfinite(mu))) and bool(jnp.all(jnp.isfinite(z)))
    print("KERNEL_OK")
</pallas_src>

<mosaic_0001>
module attributes {stable_mosaic.version = 11 : i64} {
  func.func @_mm_bias_act_kernel(%arg0: i32, %arg1: memref<392x400xbf16, #tpu.memory_space<vmem>>, %arg2: memref<400x32xbf16, #tpu.memory_space<vmem>>, %arg3: memref<1x32xf32, #tpu.memory_space<vmem>>, %arg4: memref<392x32xbf16, #tpu.memory_space<vmem>>) attributes {dimension_semantics = [#tpu.dimension_semantics<parallel>], iteration_bounds = array<i64: 4>, scalar_prefetch = 0 : i64, scratch_operands = 0 : i64, tpu.core_type = #tpu.core_type<tc>, window_params = [{transform_indices = @transform_0, window_bounds = array<i64: 392, 400>}, {pipeline_mode = #tpu.pipeline_mode<synchronous>, transform_indices = @transform_1, window_bounds = array<i64: 400, 32>}, {pipeline_mode = #tpu.pipeline_mode<synchronous>, transform_indices = @transform_2, window_bounds = array<i64: 1, 32>}, {transform_indices = @transform_3, window_bounds = array<i64: 392, 32>}]} {
    %c0 = arith.constant 0 : index
    %c0_0 = arith.constant 0 : index
    %0 = vector.load %arg1[%c0, %c0_0] : memref<392x400xbf16, #tpu.memory_space<vmem>>, vector<392x400xbf16>
    %c0_1 = arith.constant 0 : index
    %c0_2 = arith.constant 0 : index
    %1 = vector.load %arg2[%c0_1, %c0_2] : memref<400x32xbf16, #tpu.memory_space<vmem>>, vector<400x32xbf16>
    %cst = arith.constant dense<0.000000e+00> : vector<392x32xf32>
    %2 = tpu.matmul %0, %1, %cst {dimension_numbers = #tpu.dot_dimension_numbers<[1], [0], [0], [1], [0, 0, 1, 1], [], []>} : vector<392x400xbf16>, vector<400x32xbf16>, vector<392x32xf32> -> vector<392x32xf32>
    %c0_3 = arith.constant 0 : index
    %c0_4 = arith.constant 0 : index
    %3 = vector.load %arg3[%c0_3, %c0_4] : memref<1x32xf32, #tpu.memory_space<vmem>>, vector<1x32xf32>
    %4 = vector.broadcast %3 : vector<1x32xf32> to vector<392x32xf32>
    %5 = arith.addf %2, %4 : vector<392x32xf32>
    %cst_5 = arith.constant 0.000000e+00 : f32
    %6 = vector.broadcast %cst_5 : f32 to vector<392x32xf32>
    %7 = arith.maximumf %5, %6 : vector<392x32xf32>
    %8 = arith.truncf %7 : vector<392x32xf32> to vector<392x32xbf16>
    %c0_6 = arith.constant 0 : index
    %c0_7 = arith.constant 0 : index
    %9 = vector.load %arg4[%c0_6, %c0_7] : memref<392x32xbf16, #tpu.memory_space<vmem>>, vector<392x32xbf16>
    tpu.vector_store %arg4[%c0_6, %c0_7], %8 {strides = array<i32>} : memref<392x32xbf16, #tpu.memory_space<vmem>>, vector<392x32xbf16>,
    return
  }
  func.func @transform_0(%arg0: i32) -> (i32, i32) {
    %c0_i32 = arith.constant 0 : i32
    %c0_i32_0 = arith.constant 0 : i32
    return %arg0, %c0_i32 : i32, i32
  }
  func.func @transform_1(%arg0: i32) -> (i32, i32) {
    %c0_i32 = arith.constant 0 : i32
    %c0_i32_0 = arith.constant 0 : i32
    %c0_i32_1 = arith.constant 0 : i32
    return %c0_i32, %c0_i32_0 : i32, i32
  }
  func.func @transform_2(%arg0: i32) -> (i32, i32) {
    %c0_i32 = arith.constant 0 : i32
    %c0_i32_0 = arith.constant 0 : i32
    %c0_i32_1 = arith.constant 0 : i32
    return %c0_i32, %c0_i32_0 : i32, i32
  }
  func.func @transform_3(%arg0: i32) -> (i32, i32) {
    %c0_i32 = arith.constant 0 : i32
    %c0_i32_0 = arith.constant 0 : i32
    return %arg0, %c0_i32 : i32, i32
  }
}

module attributes {stable_mosaic.version = 11 : i64} {
  func.func @_mm_bias_act_kernel(%arg0: i32, %arg1: memref<392x800xbf16, #tpu.memory_space<vmem>>, %arg2: memref<800x32xbf16, #tpu.memory_space<vmem>>, %arg3: memref<1x32xf32, #tpu.memory_space<vmem>>, %arg4: memref<392x32xbf16, #tpu.memory_space<vmem>>) attributes {dimension_semantics = [#tpu.dimension_semantics<parallel>], iteration_bounds = array<i64: 1>, scalar_prefetch = 0 : i64, scratch_operands = 0 : i64, tpu.core_type = #tpu.core_type<tc>, window_params = [{transform_indices = @transform_0, window_bounds = array<i64: 392, 800>}, {pipeline_mode = #tpu.pipeline_mode<synchronous>, transform_indices = @transform_1, window_bounds = array<i64: 800, 32>}, {pipeline_mode = #tpu.pipeline_mode<synchronous>, transform_indices = @transform_2, window_bounds = array<i64: 1, 32>}, {transform_indices = @transform_3, window_bounds = array<i64: 392, 32>}]} {
    %c0 = arith.constant 0 : index
    %c0_0 = arith.constant 0 : index
    %0 = vector.load %arg1[%c0, %c0_0] : memref<392x800xbf16, #tpu.memory_space<vmem>>, vector<392x800xbf16>
    %c0_1 = arith.constant 0 : index
    %c0_2 = arith.constant 0 : index
    %1 = vector.load %arg2[%c0_1, %c0_2] : memref<800x32xbf16, #tpu.memory_space<vmem>>, vector<800x32xbf16>
    %cst = arith.constant dense<0.000000e+00> : vector<392x32xf32>
    %2 = tpu.matmul %0, %1, %cst {dimension_numbers = #tpu.dot_dimension_numbers<[1], [0], [0], [1], [0, 0, 1, 1], [], []>} : vector<392x800xbf16>, vector<800x32xbf16>, vector<392x32xf32> -> vector<392x32xf32>
    %c0_3 = arith.constant 0 : index
    %c0_4 = arith.constant 0 : index
    %3 = vector.load %arg3[%c0_3, %c0_4] : memref<1x32xf32, #tpu.memory_space<vmem>>, vector<1x32xf32>
    %4 = vector.broadcast %3 : vector<1x32xf32> to vector<392x32xf32>
    %5 = arith.addf %2, %4 : vector<392x32xf32>
    %cst_5 = arith.constant 0.000000e+00 : f32
    %6 = vector.broadcast %cst_5 : f32 to vector<392x32xf32>
    %7 = arith.maximumf %5, %6 : vector<392x32xf32>
    %8 = arith.truncf %7 : vector<392x32xf32> to vector<392x32xbf16>
    %c0_6 = arith.constant 0 : index
    %c0_7 = arith.constant 0 : index
    %9 = vector.load %arg4[%c0_6, %c0_7] : memref<392x32xbf16, #tpu.memory_space<vmem>>, vector<392x32xbf16>
    tpu.vector_store %arg4[%c0_6, %c0_7], %8 {strides = array<i32>} : memref<392x32xbf16, #tpu.memory_space<vmem>>, vector<392x32xbf16>,
    return
  }
  func.func @transform_0(%arg0: i32) -> (i32, i32) {
    %c0_i32 = arith.constant 0 : i32
    %c0_i32_0 = arith.constant 0 : i32
    return %arg0, %c0_i32 : i32, i32
  }
  func.func @transform_1(%arg0: i32) -> (i32, i32) {
    %c0_i32 = arith.constant 0 : i32
    %c0_i32_0 = arith.constant 0 : i32
    %c0_i32_1 = arith.constant 0 : i32
    return %c0_i32, %c0_i32_0 : i32, i32
  }
  func.func @transform_2(%arg0: i32) -> (i32, i32) {
    %c0_i32 = arith.constant 0 : i32
    %c0_i32_0 = arith.constant 0 : i32
    %c0_i32_1 = arith.constant 0 : i32
    return %c0_i32, %c0_i32_0 : i32, i32
  }
  func.func @transform_3(%arg0: i32) -> (i32, i32) {
    %c0_i32 = arith.constant 0 : i32
    %c0_i32_0 = arith.constant 0 : i32
    return %arg0, %c0_i32 : i32, i32
  }
}

module attributes {stable_mosaic.version = 11 : i64} {
  func.func @_mm_bias_act_kernel(%arg0: i32, %arg1: memref<392x800xbf16, #tpu.memory_space<vmem>>, %arg2: memref<800x64xbf16, #tpu.memory_space<vmem>>, %arg3: memref<1x64xf32, #tpu.memory_space<vmem>>, %arg4: memref<392x64xbf16, #tpu.memory_space<vmem>>) attributes {dimension_semantics = [#tpu.dimension_semantics<parallel>], iteration_bounds = array<i64: 1>, scalar_prefetch = 0 : i64, scratch_operands = 0 : i64, tpu.core_type = #tpu.core_type<tc>, window_params = [{transform_indices = @transform_0, window_bounds = array<i64: 392, 800>}, {pipeline_mode = #tpu.pipeline_mode<synchronous>, transform_indices = @transform_1, window_bounds = array<i64: 800, 64>}, {pipeline_mode = #tpu.pipeline_mode<synchronous>, transform_indices = @transform_2, window_bounds = array<i64: 1, 64>}, {transform_indices = @transform_3, window_bounds = array<i64: 392, 64>}]} {
    %c0 = arith.constant 0 : index
    %c0_0 = arith.constant 0 : index
    %0 = vector.load %arg1[%c0, %c0_0] : memref<392x800xbf16, #tpu.memory_space<vmem>>, vector<392x800xbf16>
    %c0_1 = arith.constant 0 : index
    %c0_2 = arith.constant 0 : index
    %1 = vector.load %arg2[%c0_1, %c0_2] : memref<800x64xbf16, #tpu.memory_space<vmem>>, vector<800x64xbf16>
    %cst = arith.constant dense<0.000000e+00> : vector<392x64xf32>
    %2 = tpu.matmul %0, %1, %cst {dimension_numbers = #tpu.dot_dimension_numbers<[1], [0], [0], [1], [0, 0, 1, 1], [], []>} : vector<392x800xbf16>, vector<800x64xbf16>, vector<392x64xf32> -> vector<392x64xf32>
    %c0_3 = arith.constant 0 : index
    %c0_4 = arith.constant 0 : index
    %3 = vector.load %arg3[%c0_3, %c0_4] : memref<1x64xf32, #tpu.memory_space<vmem>>, vector<1x64xf32>
    %4 = vector.broadcast %3 : vector<1x64xf32> to vector<392x64xf32>
    %5 = arith.addf %2, %4 : vector<392x64xf32>
    %cst_5 = arith.constant 0.000000e+00 : f32
    %6 = vector.broadcast %cst_5 : f32 to vector<392x64xf32>
    %7 = arith.maximumf %5, %6 : vector<392x64xf32>
    %8 = arith.truncf %7 : vector<392x64xf32> to vector<392x64xbf16>
    %c0_6 = arith.constant 0 : index
    %c0_7 = arith.constant 0 : index
    %9 = vector.load %arg4[%c0_6, %c0_7] : memref<392x64xbf16, #tpu.memory_space<vmem>>, vector<392x64xbf16>
    tpu.vector_store %arg4[%c0_6, %c0_7], %8 {strides = array<i32>} : memref<392x64xbf16, #tpu.memory_space<vmem>>, vector<392x64xbf16>,
    return
  }
  func.func @transform_0(%arg0: i32) -> (i32, i32) {
    %c0_i32 = arith.constant 0 : i32
    %c0_i32_0 = arith.constant 0 : i32
    return %arg0, %c0_i32 : i32, i32
  }
  func.func @transform_1(%arg0: i32) -> (i32, i32) {
    %c0_i32 = arith.constant 0 : i32
    %c0_i32_0 = arith.constant 0 : i32
    %c0_i32_1 = arith.constant 0 : i32
    return %c0_i32, %c0_i32_0 : i32, i32
  }
  func.func @transform_2(%arg0: i32) -> (i32, i32) {
    %c0_i32 = arith.constant 0 : i32
    %c0_i32_0 = arith.constant 0 : i32
    %c0_i32_1 = arith.constant 0 : i32
    return %c0_i32, %c0_i32_0 : i32, i32
  }
  func.func @transform_3(%arg0: i32) -> (i32, i32) {
    %c0_i32 = arith.constant 0 : i32
    %c0_i32_0 = arith.constant 0 : i32
    return %arg0, %c0_i32 : i32, i32
  }
}

module attributes {stable_mosaic.version = 11 : i64} {
  func.func @_mm_bias_act_kernel(%arg0: i32, %arg1: memref<104x1600xbf16, #tpu.memory_space<vmem>>, %arg2: memref<1600x64xbf16, #tpu.memory_space<vmem>>, %arg3: memref<1x64xf32, #tpu.memory_space<vmem>>, %arg4: memref<104x64xbf16, #tpu.memory_space<vmem>>) attributes {dimension_semantics = [#tpu.dimension_semantics<parallel>], iteration_bounds = array<i64: 1>, scalar_prefetch = 0 : i64, scratch_operands = 0 : i64, tpu.core_type = #tpu.core_type<tc>, window_params = [{transform_indices = @transform_0, window_bounds = array<i64: 104, 1600>}, {pipeline_mode = #tpu.pipeline_mode<synchronous>, transform_indices = @transform_1, window_bounds = array<i64: 1600, 64>}, {pipeline_mode = #tpu.pipeline_mode<synchronous>, transform_indices = @transform_2, window_bounds = array<i64: 1, 64>}, {transform_indices = @transform_3, window_bounds = array<i64: 104, 64>}]} {
    %c0 = arith.constant 0 : index
    %c0_0 = arith.constant 0 : index
    %0 = vector.load %arg1[%c0, %c0_0] : memref<104x1600xbf16, #tpu.memory_space<vmem>>, vector<104x1600xbf16>
    %c0_1 = arith.constant 0 : index
    %c0_2 = arith.constant 0 : index
    %1 = vector.load %arg2[%c0_1, %c0_2] : memref<1600x64xbf16, #tpu.memory_space<vmem>>, vector<1600x64xbf16>
    %cst = arith.constant dense<0.000000e+00> : vector<104x64xf32>
    %2 = tpu.matmul %0, %1, %cst {dimension_numbers = #tpu.dot_dimension_numbers<[1], [0], [0], [1], [0, 0, 1, 1], [], []>} : vector<104x1600xbf16>, vector<1600x64xbf16>, vector<104x64xf32> -> vector<104x64xf32>
    %c0_3 = arith.constant 0 : index
    %c0_4 = arith.constant 0 : index
    %3 = vector.load %arg3[%c0_3, %c0_4] : memref<1x64xf32, #tpu.memory_space<vmem>>, vector<1x64xf32>
    %4 = vector.broadcast %3 : vector<1x64xf32> to vector<104x64xf32>
    %5 = arith.addf %2, %4 : vector<104x64xf32>
    %cst_5 = arith.constant 0.000000e+00 : f32
    %6 = vector.broadcast %cst_5 : f32 to vector<104x64xf32>
    %7 = arith.maximumf %5, %6 : vector<104x64xf32>
    %8 = arith.truncf %7 : vector<104x64xf32> to vector<104x64xbf16>
    %c0_6 = arith.constant 0 : index
    %c0_7 = arith.constant 0 : index
    %9 = vector.load %arg4[%c0_6, %c0_7] : memref<104x64xbf16, #tpu.memory_space<vmem>>, vector<104x64xbf16>
    tpu.vector_store %arg4[%c0_6, %c0_7], %8 {strides = array<i32>} : memref<104x64xbf16, #tpu.memory_space<vmem>>, vector<104x64xbf16>,
    return
  }
  func.func @transform_0(%arg0: i32) -> (i32, i32) {
    %c0_i32 = arith.constant 0 : i32
    %c0_i32_0 = arith.constant 0 : i32
    return %arg0, %c0_i32 : i32, i32
  }
  func.func @transform_1(%arg0: i32) -> (i32, i32) {
    %c0_i32 = arith.constant 0 : i32
    %c0_i32_0 = arith.constant 0 : i32
    %c0_i32_1 = arith.constant 0 : i32
    return %c0_i32, %c0_i32_0 : i32, i32
  }
  func.func @transform_2(%arg0: i32) -> (i32, i32) {
    %c0_i32 = arith.constant 0 : i32
    %c0_i32_0 = arith.constant 0 : i32
    %c0_i32_1 = arith.constant 0 : i32
    return %c0_i32, %c0_i32_0 : i32, i32
  }
  func.func @transform_3(%arg0: i32) -> (i32, i32) {
    %c0_i32 = arith.constant 0 : i32
    %c0_i32_0 = arith.constant 0 : i32
    return %arg0, %c0_i32 : i32, i32
  }
}

module attributes {stable_mosaic.version = 11 : i64} {
  func.func @_tail_kernel(%arg0: i32, %arg1: memref<8x3136xbf16, #tpu.memory_space<vmem>>, %arg2: memref<3136x80xbf16, #tpu.memory_space<vmem>>, %arg3: memref<1x80xf32, #tpu.memory_space<vmem>>, %arg4: memref<80x40xbf16, #tpu.memory_space<vmem>>, %arg5: memref<1x40xf32, #tpu.memory_space<vmem>>, %arg6: memref<8x20xf32, #tpu.memory_space<vmem>>, %arg7: memref<8x20xf32, #tpu.memory_space<vmem>>, %arg8: memref<8x20xf32, #tpu.memory_space<vmem>>, %arg9: memref<8x20xf32, #tpu.memory_space<vmem>>) attributes {dimension_semantics = [#tpu.dimension_semantics<parallel>], iteration_bounds = array<i64: 1>, scalar_prefetch = 0 : i64, scratch_operands = 0 : i64, tpu.core_type = #tpu.core_type<tc>, window_params = [{transform_indices = @transform_0, window_bounds = array<i64: 8, 3136>}, {pipeline_mode = #tpu.pipeline_mode<synchronous>, transform_indices = @transform_1, window_bounds = array<i64: 3136, 80>}, {pipeline_mode = #tpu.pipeline_mode<synchronous>, transform_indices = @transform_2, window_bounds = array<i64: 1, 80>}, {pipeline_mode = #tpu.pipeline_mode<synchronous>, transform_indices = @transform_3, window_bounds = array<i64: 80, 40>}, {pipeline_mode = #tpu.pipeline_mode<synchronous>, transform_indices = @transform_4, window_bounds = array<i64: 1, 40>}, {transform_indices = @transform_5, window_bounds = array<i64: 8, 20>}, {transform_indices = @transform_6, window_bounds = array<i64: 8, 20>}, {transform_indices = @transform_7, window_bounds = array<i64: 8, 20>}, {transform_indices = @transform_8, window_bounds = array<i64: 8, 20>}]} {
    %c0 = arith.constant 0 : index
    %c0_0 = arith.constant 0 : index
    %0 = vector.load %arg1[%c0, %c0_0] : memref<8x3136xbf16, #tpu.memory_space<vmem>>, vector<8x3136xbf16>
    %c0_1 = arith.constant 0 : index
    %c0_2 = arith.constant 0 : index
    %1 = vector.load %arg2[%c0_1, %c0_2] : memref<3136x80xbf16, #tpu.memory_space<vmem>>, vector<3136x80xbf16>
    %cst = arith.constant dense<0.000000e+00> : vector<8x80xf32>
    %2 = tpu.matmul %0, %1, %cst {dimension_numbers = #tpu.dot_dimension_numbers<[1], [0], [0], [1], [0, 0, 1, 1], [], []>} : vector<8x3136xbf16>, vector<3136x80xbf16>, vector<8x80xf32> -> vector<8x80xf32>
    %c0_3 = arith.constant 0 : index
    %c0_4 = arith.constant 0 : index
    %3 = vector.load %arg3[%c0_3, %c0_4] : memref<1x80xf32, #tpu.memory_space<vmem>>, vector<1x80xf32>
    %4 = vector.broadcast %3 : vector<1x80xf32> to vector<8x80xf32>
    %5 = arith.addf %2, %4 : vector<8x80xf32>
    %cst_5 = arith.constant 0.000000e+00 : f32
    %6 = vector.broadcast %cst_5 : f32 to vector<8x80xf32>
    %7 = arith.maximumf %5, %6 : vector<8x80xf32>
    %8 = arith.truncf %7 : vector<8x80xf32> to vector<8x80xbf16>
    %c0_6 = arith.constant 0 : index
    %c0_7 = arith.constant 0 : index
    %9 = vector.load %arg4[%c0_6, %c0_7] : memref<80x40xbf16, #tpu.memory_space<vmem>>, vector<80x40xbf16>
    %cst_8 = arith.constant dense<0.000000e+00> : vector<8x40xf32>
    %10 = tpu.matmul %8, %9, %cst_8 {dimension_numbers = #tpu.dot_dimension_numbers<[1], [0], [0], [1], [0, 0, 1, 1], [], []>} : vector<8x80xbf16>, vector<80x40xbf16>, vector<8x40xf32> -> vector<8x40xf32>
    %c0_9 = arith.constant 0 : index
    %c0_10 = arith.constant 0 : index
    %11 = vector.load %arg5[%c0_9, %c0_10] : memref<1x40xf32, #tpu.memory_space<vmem>>, vector<1x40xf32>
    %12 = vector.broadcast %11 : vector<1x40xf32> to vector<8x40xf32>
    %13 = arith.addf %10, %12 : vector<8x40xf32>
    %14 = vector.extract_strided_slice %13 {offsets = [0, 0], sizes = [8, 20], strides = [1, 1]} : vector<8x40xf32> to vector<8x20xf32>
    %15 = vector.extract_strided_slice %13 {offsets = [0, 20], sizes = [8, 20], strides = [1, 1]} : vector<8x40xf32> to vector<8x20xf32>
    %c0_11 = arith.constant 0 : index
    %c0_12 = arith.constant 0 : index
    %16 = vector.load %arg7[%c0_11, %c0_12] : memref<8x20xf32, #tpu.memory_space<vmem>>, vector<8x20xf32>
    tpu.vector_store %arg7[%c0_11, %c0_12], %14 {strides = array<i32>} : memref<8x20xf32, #tpu.memory_space<vmem>>, vector<8x20xf32>,
    %c0_13 = arith.constant 0 : index
    %c0_14 = arith.constant 0 : index
    %17 = vector.load %arg8[%c0_13, %c0_14] : memref<8x20xf32, #tpu.memory_space<vmem>>, vector<8x20xf32>
    tpu.vector_store %arg8[%c0_13, %c0_14], %15 {strides = array<i32>} : memref<8x20xf32, #tpu.memory_space<vmem>>, vector<8x20xf32>,
    %c0_15 = arith.constant 0 : index
    %c0_16 = arith.constant 0 : index
    %18 = vector.load %arg6[%c0_15, %c0_16] : memref<8x20xf32, #tpu.memory_space<vmem>>, vector<8x20xf32>
    %cst_17 = arith.constant 5.000000e-01 : f32
    %19 = vector.broadcast %cst_17 : f32 to vector<8x20xf32>
    %20 = arith.mulf %19, %15 : vector<8x20xf32>
    %21 = math.exp %20 : vector<8x20xf32>
    %22 = arith.mulf %18, %21 : vector<8x20xf32>
    %23 = arith.addf %14, %22 : vector<8x20xf32>
    %c0_18 = arith.constant 0 : index
    %c0_19 = arith.constant 0 : index
    %24 = vector.load %arg9[%c0_18, %c0_19] : memref<8x20xf32, #tpu.memory_space<vmem>>, vector<8x20xf32>
    tpu.vector_store %arg9[%c0_18, %c0_19], %23 {strides = array<i32>} : memref<8x20xf32, #tpu.memory_space<vmem>>, vector<8x20xf32>,
    return
  }
  func.func @transform_0(%arg0: i32) -> (i32, i32) {
    %c0_i32 = arith.constant 0 : i32
    %c0_i32_0 = arith.constant 0 : i32
    return %arg0, %c0_i32 : i32, i32
  }
  func.func @transform_1(%arg0: i32) -> (i32, i32) {
    %c0_i32 = arith.constant 0 : i32
    %c0_i32_0 = arith.constant 0 : i32
    %c0_i32_1 = arith.constant 0 : i32
    return %c0_i32, %c0_i32_0 : i32, i32
  }
  func.func @transform_2(%arg0: i32) -> (i32, i32) {
    %c0_i32 = arith.constant 0 : i32
    %c0_i32_0 = arith.constant 0 : i32
    %c0_i32_1 = arith.constant 0 : i32
    return %c0_i32, %c0_i32_0 : i32, i32
  }
  func.func @transform_3(%arg0: i32) -> (i32, i32) {
    %c0_i32 = arith.constant 0 : i32
    %c0_i32_0 = arith.constant 0 : i32
    %c0_i32_1 = arith.constant 0 : i32
    return %c0_i32, %c0_i32_0 : i32, i32
  }
  func.func @transform_4(%arg0: i32) -> (i32, i32) {
    %c0_i32 = arith.constant 0 : i32
    %c0_i32_0 = arith.constant 0 : i32
    %c0_i32_1 = arith.constant 0 : i32
    return %c0_i32, %c0_i32_0 : i32, i32
  }
  func.func @transform_5(%arg0: i32) -> (i32, i32) {
    %c0_i32 = arith.constant 0 : i32
    %c0_i32_0 = arith.constant 0 : i32
    return %arg0, %c0_i32 : i32, i32
  }
  func.func @transform_6(%arg0: i32) -> (i32, i32) {
    %c0_i32 = arith.constant 0 : i32
    %c0_i32_0 = arith.constant 0 : i32
    return %arg0, %c0_i32 : i32, i32
  }
  func.func @transform_7(%arg0: i32) -> (i32, i32) {
    %c0_i32 = arith.constant 0 : i32
    %c0_i32_0 = arith.constant 0 : i32
    return %arg0, %c0_i32 : i32, i32
  }
  func.func @transform_8(%arg0: i32) -> (i32, i32) {
    %c0_i32 = arith.constant 0 : i32
    %c0_i32_0 = arith.constant 0 : i32
    return %arg0, %c0_i32 : i32, i32
  }
}

</mosaic_0001>

<bundles_post_ra>
// kernel: encoder_forward.5
= control target key start
LH: loop header
LB: loop body
LE: loop exit
PB: predicated region body
PF: predicated region fallthrough
CT: control target
= control target key end

     0   :  { %s2413_s12 = smov 0   ;;  %s2813_s0 = inlined_call_operand.vmem [shape: bf16[1568,400], index: 0, kind: input, shape index: {}]   ;;  %s2814_s1 = inlined_call_operand.vmem [shape: bf16[400,32], index: 1, kind: input, shape index: {}]   ;;  %s2815_s2 = inlined_call_operand.vmem [shape: f32[1,32], index: 2, kind: input, shape index: {}]   ;;  %s2816_s3 = inlined_call_operand.vmem [shape: bf16[1568,32], index: 3, kind: output, shape index: {}]  }
   0x1 LB: > { %s1844_s13 = sadd.s32 4294967295, %s2390_s12   ;;  %p1848_p0 = scmp.ge.s32.totalorder %s2390_s12, 1  ;;  %s2390_s12 = sphi %s2413_s12, %s13_s12  }
   0x2   : > { %p139_p1 = scmp.lt.s32.totalorder %s2390_s12, 5 }
   0x4   : > { %p140_p2 = pnand %p1848_p0, %p139_p1 }
   0x5   : > { %v2211_v0 = vld [vmem:[%s2814_s1] sm:$0xff] (!%p140_p2)   ;;  %v2392_v1 = vmov (!%p140_p2), 0   ;;  %v2212_v2 = vld [vmem:[%s2814_s1 + $0x8] sm:$0xff] (!%p140_p2)   ;;  %v2213_v3 = vld [vmem:[%s2814_s1 + $0x10] sm:$0xff] (!%p140_p2)   ;;  %s164_s22 = smul.u32 (!%p140_p2), 49, %s1844_s13  ;;  %vm952_vm0 = vcmask (!%p140_p2), 130048  }
   0x6   : > { %143 = sbr.rel (%p140_p2) target bundleno = 483 (0x1e3), region = 32  ;;  %1028 = vmatprep.subr.bf16.mxu1 (!%p140_p2), %v2392_v1  ;;  %1260 = vmatprep.subr.bf16.mxu0 (!%p140_p2), %v2392_v1  ;;  %v2218_v4 = vld [vmem:[%s2814_s1 + $0x80] sm:$0xff] (!%p140_p2)   ;;  %v2220_v5 = vld [vmem:[%s2814_s1 + $0x88] sm:$0xff] (!%p140_p2)   ;;  %v2214_v6 = vld [vmem:[%s2814_s1 + $0x18] sm:$0xff] (!%p140_p2)   ;;  %vm1738_vm1 = vcmask (!%p140_p2), 257024  }
   0x7   : > { %1029 = vmatpush1.bf16.msra.mxu1 (!%p140_p2), %v2211_v0  ;;  %1261 = vmatpush1.bf16.msra.mxu0 (!%p140_p2), %v2218_v4  ;;  %p165_p3 = scmp.lt.s32.totalorder (!%p140_p2), %s164_s22, 195  ;;  %v2222_v7 = vld [vmem:[%s2814_s1 + $0x90] sm:$0xff] (!%p140_p2)   ;;  %v2215_v8 = vld [vmem:[%s2814_s1 + $0x20] sm:$0xff] (!%p140_p2)   ;;  %v2224_v9 = vld [vmem:[%s2814_s1 + $0x98] sm:$0xff] (!%p140_p2)  }
   0x8   : > { %1030 = vmatprep.subr.bf16.mxu1 (!%p140_p2), %v2392_v1  ;;  %1262 = vmatprep.subr.bf16.mxu0 (!%p140_p2), %v2392_v1  ;;  %v2216_v10 = vld [vmem:[%s2814_s1 + $0x28] sm:$0xff] (!%p140_p2)   ;;  %v2226_v11 = vld [vmem:[%s2814_s1 + $0xa0] sm:$0xff] (!%p140_p2)   ;;  %v2217_v12 = vld [vmem:[%s2814_s1 + $0x30] sm:$0xff] (!%p140_p2)  }
   0x9   : > { %v2219_v13 = vld [vmem:[%s2814_s1 + $0x38] sm:$0xff] (!%p140_p2)   ;;  %v2228_v14 = vld [vmem:[%s2814_s1 + $0xa8] sm:$0xff] (!%p140_p2)   ;;  %v2230_v17 = vld [vmem:[%s2814_s1 + $0xb0] sm:$0xff] (!%p140_p2)  }
   0xa   : > { %v2221_v18 = vld [vmem:[%s2814_s1 + $0x40] sm:$0xff] (!%p140_p2)   ;;  %v2232_v19 = vld [vmem:[%s2814_s1 + $0xb8] sm:$0xff] (!%p140_p2)   ;;  %v2223_v20 = vld [vmem:[%s2814_s1 + $0x48] sm:$0xff] (!%p140_p2)  }
   0xb   : > { %1031 = vmatpush1.bf16.msra.mxu1 (!%p140_p2), %v2212_v2  ;;  %1263 = vmatpush1.bf16.msra.mxu0 (!%p140_p2), %v2220_v5  ;;  %v2234_v21 = vld [vmem:[%s2814_s1 + $0xc0] sm:$0xff] (!%p140_p2)   ;;  %v2225_v22 = vld [vmem:[%s2814_s1 + $0x50] sm:$0xff] (!%p140_p2)   ;;  %v2227_v25 = vld [vmem:[%s2814_s1 + $0x58] sm:$0xff] (!%p140_p2)  }
   0xc   : > { %1032 = vmatprep.subr.bf16.mxu1 (!%p140_p2), %v2392_v1  ;;  %1264 = vmatprep.subr.bf16.mxu0 (!%p140_p2), %v2392_v1  ;;  %v2229_v26 = vld [vmem:[%s2814_s1 + $0x60] sm:$0xff] (!%p140_p2)   ;;  %v2231_v29 = vld [vmem:[%s2814_s1 + $0x68] sm:$0xff] (!%p140_p2)   ;;  %v2233_v30 = vld [vmem:[%s2814_s1 + $0x70] sm:$0xff] (!%p140_p2)  }
   0xd   : > { %s2818_s22 = smov (!%p165_p3, %s164_s22), 195  ;;  %v2235_v33 = vld [vmem:[%s2814_s1 + $0x78] sm:$0xff]  }
   0xe   : > { %s2054_s8 = sshll.u32 %s2818_s22, 4 }
   0xf   : > { %1033 = vmatpush1.bf16.msra.mxu1 %v2213_v3  ;;  %1265 = vmatpush1.bf16.msra.mxu0 %v2222_v7  ;;  %s2475_s16 = scalar_lea.vmem %s2813_s0, %s2054_s8 }
  0x10   : > { %1034 = vmatprep.subr.bf16.mxu1 %v2392_v1  ;;  %1266 = vmatprep.subr.bf16.mxu0 %v2392_v1  ;;  %v2238_v15 = vld [vmem:[%s2475_s16 + $0xc] ss:$16 sps:$4 sm:$0xff]   ;;  %v2241_v16 = vld [vmem:[%s2475_s16 + $0x4] ss:$16 sps:$4 sm:$0xff]   ;;  %v2236_v23 = vld [vmem:[%s2475_s16 + $0x8] ss:$16 sps:$4 sm:$0xff]  }
  0x11   : > { %1978 = vmatprep.mubr.msk.bf16.mxu0 %vm952_vm0, %v2238_v15  ;;  %1060 = vmatprep.mubr.bf16.mxu1 %v2241_v16  ;;  %v2242_v24 = vld [vmem:[%s2475_s16 + $0x2c] ss:$16 sps:$4 sm:$0xff]   ;;  %v2246_v27 = vld [vmem:[%s2475_s16 + $0x28] ss:$16 sps:$4 sm:$0xff]   ;;  %v2239_v34 = vld [vmem:[%s2475_s16] ss:$16 sps:$4 sm:$0xff]  }
  0x12   : > { %v2248_v28 = vld [vmem:[%s2475_s16 + $0x4c] ss:$16 sps:$4 sm:$0xff]   ;;  %v2252_v31 = vld [vmem:[%s2475_s16 + $0x48] ss:$16 sps:$4 sm:$0xff]   ;;  %v2244_v35 = vld [vmem:[%s2475_s16 + $0x24] ss:$16 sps:$4 sm:$0xff]  }
  0x13   : > { %1035 = vmatpush1.bf16.msra.mxu1 %v2214_v6  ;;  %1267 = vmatpush1.bf16.msra.mxu0 %v2224_v9  ;;  %v2254_v32 = vld [vmem:[%s2475_s16 + $0x6c] ss:$16 sps:$4 sm:$0xff]   ;;  %v2258_v36 = vld [vmem:[%s2475_s16 + $0x68] ss:$16 sps:$4 sm:$0xff]   ;;  %v2247_v38 = vld [vmem:[%s2475_s16 + $0x20] ss:$16 sps:$4 sm:$0xff]  }
  0x14   : > { %1036 = vmatprep.subr.bf16.mxu1 %v2392_v1  ;;  %1268 = vmatprep.subr.bf16.mxu0 %v2392_v1  ;;  %v2260_v37 = vld [vmem:[%s2475_s16 + $0x8c] ss:$16 sps:$4 sm:$0xff]   ;;  %v2250_v39 = vld [vmem:[%s2475_s16 + $0x44] ss:$16 sps:$4 sm:$0xff]   ;;  %v2264_v40 = vld [vmem:[%s2475_s16 + $0x88] ss:$16 sps:$4 sm:$0xff]  }
  0x15   : > { %v2266_v41 = vld [vmem:[%s2475_s16 + $0xac] ss:$16 sps:$4 sm:$0xff]   ;;  %v2253_v42 = vld [vmem:[%s2475_s16 + $0x40] ss:$16 sps:$4 sm:$0xff]   ;;  %v2256_v43 = vld [vmem:[%s2475_s16 + $0x64] ss:$16 sps:$4 sm:$0xff]  }
  0x16   : > { %v2270_v44 = vld [vmem:[%s2475_s16 + $0xa8] ss:$16 sps:$4 sm:$0xff]   ;;  %v2272_v45 = vld [vmem:[%s2475_s16 + $0xcc] ss:$16 sps:$4 sm:$0xff]   ;;  %v2259_v46 = vld [vmem:[%s2475_s16 + $0x60] ss:$16 sps:$4 sm:$0xff]  }
  0x17   : > { %1037 = vmatpush1.bf16.msra.mxu1 %v2215_v8  ;;  %1269 = vmatpush1.bf16.msra.mxu0 %v2226_v11  ;;  %v2262_v47 = vld [vmem:[%s2475_s16 + $0x84] ss:$16 sps:$4 sm:$0xff]   ;;  %v2276_v48 = vld [vmem:[%s2475_s16 + $0xc8] ss:$16 sps:$4 sm:$0xff]   ;;  %v2278_v49 = vld [vmem:[%s2475_s16 + $0xec] ss:$16 sps:$4 sm:$0xff]  }
  0x18   : > { %1038 = vmatprep.subr.bf16.mxu1 %v2392_v1  ;;  %1270 = vmatprep.subr.bf16.mxu0 %v2392_v1  ;;  %v2265_v50 = vld [vmem:[%s2475_s16 + $0x80] ss:$16 sps:$4 sm:$0xff]   ;;  %v2268_v51 = vld [vmem:[%s2475_s16 + $0xa4] ss:$16 sps:$4 sm:$0xff]   ;;  %v2282_v52 = vld [vmem:[%s2475_s16 + $0xe8] ss:$16 sps:$4 sm:$0xff]  }
  0x19   : > { %v2284_v53 = vld [vmem:[%s2475_s16 + $0x10c] ss:$16 sps:$4 sm:$0xff]   ;;  %v2271_v54 = vld [vmem:[%s2475_s16 + $0xa0] ss:$16 sps:$4 sm:$0xff]   ;;  %v2274_v55 = vld [vmem:[%s2475_s16 + $0xc4] ss:$16 sps:$4 sm:$0xff]  }
  0x1a   : > { %v2288_v56 = vld [vmem:[%s2475_s16 + $0x108] ss:$16 sps:$4 sm:$0xff]   ;;  %v2290_v57 = vld [vmem:[%s2475_s16 + $0x12c] ss:$16 sps:$4 sm:$0xff]   ;;  %v2277_v58 = vld [vmem:[%s2475_s16 + $0xc0] ss:$16 sps:$4 sm:$0xff]  }
  0x1b   : > { %1039 = vmatpush1.bf16.msra.mxu1 %v2216_v10  ;;  %1271 = vmatpush1.bf16.msra.mxu0 %v2228_v14  ;;  %v2280_v59 = vld [vmem:[%s2475_s16 + $0xe4] ss:$16 sps:$4 sm:$0xff]   ;;  %v2294_v60 = vld [vmem:[%s2475_s16 + $0x128] ss:$16 sps:$4 sm:$0xff]   ;;  %v2296_v61 = vld [vmem:[%s2475_s16 + $0x14c] ss:$16 sps:$4 sm:$0xff]  }
  0x1c   : > { %1040 = vmatprep.subr.bf16.mxu1 %v2392_v1  ;;  %1272 = vmatprep.subr.bf16.mxu0 %v2392_v1  ;;  %v2283_v62 = vld [vmem:[%s2475_s16 + $0xe0] ss:$16 sps:$4 sm:$0xff]   ;;  %v2286_v63 = vld [vmem:[%s2475_s16 + $0x104] ss:$16 sps:$4 sm:$0xff]   ;;  %v2300_v0 = vld [vmem:[%s2475_s16 + $0x148] ss:$16 sps:$4 sm:$0xff]  }
  0x1d   : > { %v2289_v2 = vld [vmem:[%s2475_s16 + $0x100] ss:$16 sps:$4 sm:$0xff]   ;;  %v2292_v3 = vld [vmem:[%s2475_s16 + $0x124] ss:$16 sps:$4 sm:$0xff]   ;;  %v2306_v4 = vld [vmem:[%s2475_s16 + $0x168] ss:$16 sps:$4 sm:$0xff]  }
  0x1e   : > { %v2308_v5 = vld [vmem:[%s2475_s16 + $0x18c] ss:$16 sps:$4 sm:$0xff]   ;;  %v2295_v6 = vld [vmem:[%s2475_s16 + $0x120] ss:$16 sps:$4 sm:$0xff]   ;;  %v2298_v7 = vld [vmem:[%s2475_s16 + $0x144] ss:$16 sps:$4 sm:$0xff]  }
  0x1f   : > { %1041 = vmatpush1.bf16.msra.mxu1 %v2217_v12  ;;  %1273 = vmatpush1.bf16.msra.mxu0 %v2230_v17  ;;  %v2312_v8 = vld [vmem:[%s2475_s16 + $0x188] ss:$16 sps:$4 sm:$0xff]   ;;  %v2314_v9 = vld [vmem:[%s2475_s16 + $0x1ac] ss:$16 sps:$4 sm:$0xff]   ;;  %v2301_v10 = vld [vmem:[%s2475_s16 + $0x140] ss:$16 sps:$4 sm:$0xff]  }
  0x20   : > { %1042 = vmatprep.subr.bf16.mxu1 %v2392_v1  ;;  %1274 = vmatprep.subr.bf16.mxu0 %v2392_v1  ;;  %v2304_v11 = vld [vmem:[%s2475_s16 + $0x164] ss:$16 sps:$4 sm:$0xff]   ;;  %v2318_v12 = vld [vmem:[%s2475_s16 + $0x1a8] ss:$16 sps:$4 sm:$0xff]   ;;  %v2307_v14 = vld [vmem:[%s2475_s16 + $0x160] ss:$16 sps:$4 sm:$0xff]  }
  0x21   : > { %v2310_v15 = vld [vmem:[%s2475_s16 + $0x184] ss:$16 sps:$4 sm:$0xff]   ;;  %v2324_v16 = vld [vmem:[%s2475_s16 + $0x1c8] ss:$16 sps:$4 sm:$0xff]   ;;  %v2326_v17 = vld [vmem:[%s2475_s16 + $0x1ec] ss:$16 sps:$4 sm:$0xff]  }
  0x23   : > { %1043 = vmatpush1.bf16.msra.mxu1 %v2219_v13  ;;  %1275 = vmatpush1.bf16.msra.mxu0 %v2232_v19  ;;  %v2320_v13 = vld [vmem:[%s2475_s16 + $0x1cc] ss:$16 sps:$4 sm:$0xff]   ;;  %v2316_v19 = vld [vmem:[%s2475_s16 + $0x1a4] ss:$16 sps:$4 sm:$0xff]  }
  0x24   : > { %1044 = vmatprep.subr.bf16.mxu1 %v2392_v1  ;;  %1276 = vmatprep.subr.bf16.mxu0 %v2392_v1 }
  0x27   : > { %1045 = vmatpush1.bf16.msra.mxu1 %v2221_v18  ;;  %1277 = vmatpush1.bf16.msra.mxu0 %v2234_v21  ;;  %v2313_v18 = vld [vmem:[%s2475_s16 + $0x180] ss:$16 sps:$4 sm:$0xff]   ;;  %v2332_v21 = vld [vmem:[%s2475_s16 + $0x20c] ss:$16 sps:$4 sm:$0xff]  }
  0x28   : > { %1046 = vmatprep.subr.bf16.mxu1 %v2392_v1 }
  0x2a   : > { %1293 = vmatmul.mubr.bf16.vlgmr.msra.gmra.mrb[0].mxu0 %v2236_v23  ;;  %v2322_v23 = vld [vmem:[%s2475_s16 + $0x1c4] ss:$16 sps:$4 sm:$0xff]  }
  0x2b   : > { %1047 = vmatpush1.bf16.msra.mxu1 %v2223_v20  ;;  %1979 = vmatprep.mubr.msk.bf16.mxu0 %vm952_vm0, %v2242_v24  ;;  %v2330_v20 = vld [vmem:[%s2475_s16 + $0x1e8] ss:$16 sps:$4 sm:$0xff]  }
  0x2c   : > { %1048 = vmatprep.subr.bf16.mxu1 %v2392_v1  ;;  %v2336_v24 = vld [vmem:[%s2475_s16 + $0x208] ss:$16 sps:$4 sm:$0xff]  }
  0x2f   : > { %1049 = vmatpush1.bf16.msra.mxu1 %v2225_v22  ;;  %v2319_v22 = vld [vmem:[%s2475_s16 + $0x1a0] ss:$16 sps:$4 sm:$0xff]  }
  0x30   : > { %1050 = vmatprep.subr.bf16.mxu1 %v2392_v1 }
  0x32   : > { %1301 = vmatmul.mubr.bf16.gmra.mrb[4].mxu0 %v2246_v27  ;;  %v2328_v27 = vld [vmem:[%s2475_s16 + $0x1e4] ss:$16 sps:$4 sm:$0xff]  }
  0x33   : > { %1051 = vmatpush1.bf16.msra.mxu1 %v2227_v25  ;;  %1980 = vmatprep.mubr.msk.bf16.mxu0 %vm952_vm0, %v2248_v28  ;;  %v2338_v25 = vld [vmem:[%s2475_s16 + $0x22c] ss:$16 sps:$4 sm:$0xff]   ;;  %v2342_v28 = vld [vmem:[%s2475_s16 + $0x228] ss:$16 sps:$4 sm:$0xff]  }
  0x34   : > { %1052 = vmatprep.subr.bf16.mxu1 %v2392_v1 }
  0x37   : > { %1053 = vmatpush1.bf16.msra.mxu1 %v2229_v26  ;;  %v2325_v26 = vld [vmem:[%s2475_s16 + $0x1c0] ss:$16 sps:$4 sm:$0xff]  }
  0x38   : > { %1054 = vmatprep.subr.bf16.mxu1 %v2392_v1 }
  0x3a   : > { %1309 = vmatmul.mubr.bf16.gmra.mrb[8].mxu0 %v2252_v31  ;;  %v2334_v31 = vld [vmem:[%s2475_s16 + $0x204] ss:$16 sps:$4 sm:$0xff]  }
  0x3b   : > { %1055 = vmatpush1.bf16.msra.mxu1 %v2231_v29  ;;  %1981 = vmatprep.mubr.msk.bf16.mxu0 %vm952_vm0, %v2254_v32  ;;  %v2344_v29 = vld [vmem:[%s2475_s16 + $0x24c] ss:$16 sps:$4 sm:$0xff]   ;;  %v2348_v32 = vld [vmem:[%s2475_s16 + $0x248] ss:$16 sps:$4 sm:$0xff]  }
  0x3c   : > { %1056 = vmatprep.subr.bf16.mxu1 %v2392_v1 }
  0x3f   : > { %1057 = vmatpush1.bf16.msra.mxu1 %v2233_v30  ;;  %v2331_v30 = vld [vmem:[%s2475_s16 + $0x1e0] ss:$16 sps:$4 sm:$0xff]  }
  0x40   : > { %1058 = vmatprep.subr.bf16.mxu1 %v2392_v1  ;;  %v2302_v1 = vld [vmem:[%s2475_s16 + $0x16c] ss:$16 sps:$4 sm:$0xff]  }
  0x42   : > { %1317 = vmatmul.mubr.bf16.gmra.mrb[12].mxu0 %v2258_v36  ;;  %v2354_v36 = vld [vmem:[%s2475_s16 + $0x268] ss:$16 sps:$4 sm:$0xff]  }
  0x43   : > { %1059 = vmatpush1.bf16.msra.mxu1 %v2235_v33  ;;  %1982 = vmatprep.mubr.msk.bf16.mxu0 %vm952_vm0, %v2260_v37  ;;  %v2350_v33 = vld [vmem:[%s2475_s16 + $0x26c] ss:$16 sps:$4 sm:$0xff]  }
  0x44   : > { %v2356_v37 = vld [vmem:[%s2475_s16 + $0x28c] ss:$16 sps:$4 sm:$0xff]  }
  0x46   : > { %1061 = vmatmul.mubr.bf16.vlgmr.msra.gmra.mrb[0].mxu1 %v2239_v34  ;;  %v2337_v34 = vld [vmem:[%s2475_s16 + $0x200] ss:$16 sps:$4 sm:$0xff]  }
  0x47   : > { %1068 = vmatprep.mubr.bf16.mxu1 %v2244_v35  ;;  %v2340_v35 = vld [vmem:[%s2475_s16 + $0x224] ss:$16 sps:$4 sm:$0xff]  }
  0x4a   : > { %1325 = vmatmul.mubr.bf16.gmra.mrb[16].mxu0 %v2264_v40  ;;  %v2360_v40 = vld [vmem:[%s2475_s16 + $0x288] ss:$16 sps:$4 sm:$0xff]  }
  0x4b   : > { %1983 = vmatprep.mubr.msk.bf16.mxu0 %vm952_vm0, %v2266_v41  ;;  %v2362_v41 = vld [vmem:[%s2475_s16 + $0x2ac] ss:$16 sps:$4 sm:$0xff]  }
  0x4e   : > { %1069 = vmatmul.mubr.bf16.gmra.mrb[4].mxu1 %v2247_v38  ;;  %v2343_v38 = vld [vmem:[%s2475_s16 + $0x220] ss:$16 sps:$4 sm:$0xff]  }
  0x4f   : > { %1076 = vmatprep.mubr.bf16.mxu1 %v2250_v39  ;;  %v2346_v39 = vld [vmem:[%s2475_s16 + $0x244] ss:$16 sps:$4 sm:$0xff]  }
  0x52   : > { %1333 = vmatmul.mubr.bf16.gmra.mrb[20].mxu0 %v2270_v44  ;;  %v2366_v44 = vld [vmem:[%s2475_s16 + $0x2a8] ss:$16 sps:$4 sm:$0xff]  }
  0x53   : > { %1984 = vmatprep.mubr.msk.bf16.mxu0 %vm952_vm0, %v2272_v45  ;;  %v2368_v45 = vld [vmem:[%s2475_s16 + $0x2cc] ss:$16 sps:$4 sm:$0xff]  }
  0x56   : > { %1077 = vmatmul.mubr.bf16.gmra.mrb[8].mxu1 %v2253_v42  ;;  %v2349_v42 = vld [vmem:[%s2475_s16 + $0x240] ss:$16 sps:$4 sm:$0xff]  }
  0x57   : > { %1084 = vmatprep.mubr.bf16.mxu1 %v2256_v43  ;;  %v2352_v43 = vld [vmem:[%s2475_s16 + $0x264] ss:$16 sps:$4 sm:$0xff]  }
  0x5a   : > { %1341 = vmatmul.mubr.bf16.gmra.mrb[24].mxu0 %v2276_v48  ;;  %v2372_v48 = vld [vmem:[%s2475_s16 + $0x2c8] ss:$16 sps:$4 sm:$0xff]  }
  0x5b   : > { %1985 = vmatprep.mubr.msk.bf16.mxu0 %vm952_vm0, %v2278_v49  ;;  %v2374_v49 = vld [vmem:[%s2475_s16 + $0x2ec] ss:$16 sps:$4 sm:$0xff]  }
  0x5e   : > { %1085 = vmatmul.mubr.bf16.gmra.mrb[12].mxu1 %v2259_v46  ;;  %v2355_v46 = vld [vmem:[%s2475_s16 + $0x260] ss:$16 sps:$4 sm:$0xff]  }
  0x5f   : > { %1092 = vmatprep.mubr.bf16.mxu1 %v2262_v47  ;;  %v2358_v47 = vld [vmem:[%s2475_s16 + $0x284] ss:$16 sps:$4 sm:$0xff]  }
  0x62   : > { %1349 = vmatmul.mubr.bf16.gmra.mrb[28].mxu0 %v2282_v52  ;;  %v275_v52 = vld [vmem:[%s2475_s16 + $0x308] sm:$0xff] }
  0x63   : > { %1986 = vmatprep.mubr.msk.bf16.mxu0 %vm952_vm0, %v2284_v53  ;;  %v2378_v53 = vld [vmem:[%s2475_s16 + $0x2e8] ss:$16 sps:$4 sm:$0xff]  }
  0x66   : > { %1093 = vmatmul.mubr.bf16.gmra.mrb[16].mxu1 %v2265_v50  ;;  %v2361_v50 = vld [vmem:[%s2475_s16 + $0x280] ss:$16 sps:$4 sm:$0xff]  }
  0x67   : > { %1100 = vmatprep.mubr.bf16.mxu1 %v2268_v51  ;;  %v2364_v51 = vld [vmem:[%s2475_s16 + $0x2a4] ss:$16 sps:$4 sm:$0xff]  }
  0x6a   : > { %1357 = vmatmul.mubr.bf16.gmra.mrb[32].mxu0 %v2288_v56  ;;  %v2370_v56 = vld [vmem:[%s2475_s16 + $0x2c4] ss:$16 sps:$4 sm:$0xff]  }
  0x6b   : > { %1987 = vmatprep.mubr.msk.bf16.mxu0 %vm952_vm0, %v2290_v57  ;;  %v1951_v57 = vcombine.low %v275_v52, %v275_v52 }
  0x6e   : > { %1101 = vmatmul.mubr.bf16.gmra.mrb[20].mxu1 %v2271_v54  ;;  %v1952_v54 = vcombine.high %v275_v52, %v275_v52 }
  0x6f   : > { %1108 = vmatprep.mubr.bf16.mxu1 %v2274_v55  ;;  %v2367_v55 = vld [vmem:[%s2475_s16 + $0x2a0] ss:$16 sps:$4 sm:$0xff]  }
  0x72   : > { %1365 = vmatmul.mubr.bf16.gmra.mrb[36].mxu0 %v2294_v60  ;;  %v274_v60 = vld [vmem:[%s2475_s16 + $0x300] sm:$0xff] }
  0x73   : > { %1988 = vmatprep.mubr.msk.bf16.mxu0 %vm952_vm0, %v2296_v61  ;;  %v2379_v61 = vld [vmem:[%s2475_s16 + $0x2e0] ss:$16 sps:$4 sm:$0xff]  }
  0x76   : > { %1109 = vmatmul.mubr.bf16.gmra.mrb[24].mxu1 %v2277_v58  ;;  %v2373_v58 = vld [vmem:[%s2475_s16 + $0x2c0] ss:$16 sps:$4 sm:$0xff]  }
  0x77   : > { %1116 = vmatprep.mubr.bf16.mxu1 %v2280_v59  ;;  %v2376_v59 = vld [vmem:[%s2475_s16 + $0x2e4] ss:$16 sps:$4 sm:$0xff]   ;;  %s1851_s16 = sshll.u32 %s2818_s22, 2 }
  0x78   : > { %s2663_s24 = scalar_lea.vmem %s2816_s3, %s1851_s16 }
  0x7a   : > { %1373 = vmatmul.mubr.bf16.gmra.mrb[40].mxu0 %v2300_v0 }
  0x7b   : > { %1989 = vmatprep.mubr.msk.bf16.mxu0 %vm952_vm0, %v2302_v1 }
  0x7e   : > { %1117 = vmatmul.mubr.bf16.gmra.mrb[28].mxu1 %v2283_v62  ;;  %v1950_v62 = vcombine.high %v274_v60, %v274_v60 }
  0x7f   : > { %1124 = vmatprep.mubr.bf16.mxu1 %v2286_v63  ;;  %v1949_v63 = vcombine.low %v274_v60, %v274_v60 }
  0x82   : > { %1381 = vmatmul.mubr.bf16.gmra.mrb[44].mxu0 %v2306_v4 }
  0x83   : > { %1990 = vmatprep.mubr.msk.bf16.mxu0 %vm952_vm0, %v2308_v5 }
  0x86   : > { %1125 = vmatmul.mubr.bf16.gmra.mrb[32].mxu1 %v2289_v2 }
  0x87   : > { %1132 = vmatprep.mubr.bf16.mxu1 %v2292_v3 }
  0x8a   : > { %1389 = vmatmul.mubr.bf16.gmra.mrb[48].mxu0 %v2312_v8 }
  0x8b   : > { %1991 = vmatprep.mubr.msk.bf16.mxu0 %vm952_vm0, %v2314_v9 }
  0x8e   : > { %1133 = vmatmul.mubr.bf16.gmra.mrb[36].mxu1 %v2295_v6 }
  0x8f   : > { %1140 = vmatprep.mubr.bf16.mxu1 %v2298_v7 }
  0x92   : > { %1397 = vmatmul.mubr.bf16.gmra.mrb[52].mxu0 %v2318_v12 }
  0x93   : > { %1992 = vmatprep.mubr.msk.bf16.mxu0 %vm952_vm0, %v2320_v13 }
  0x96   : > { %1141 = vmatmul.mubr.bf16.gmra.mrb[40].mxu1 %v2301_v10 }
  0x97   : > { %1148 = vmatprep.mubr.bf16.mxu1 %v2304_v11  ;;  %v2655_v11 = vld [vmem:[%s2815_s2] ss:$0 sm:$0xff] }
  0x9a   : > { %1405 = vmatmul.mubr.bf16.gmra.mrb[56].mxu0 %v2324_v16 }
  0x9b   : > { %1993 = vmatprep.mubr.msk.bf16.mxu0 %vm952_vm0, %v2326_v17 }
  0x9e   : > { %1149 = vmatmul.mubr.bf16.gmra.mrb[44].mxu1 %v2307_v14 }
  0x9f   : > { %1156 = vmatprep.mubr.bf16.mxu1 %v2310_v15 }
  0xa2   : > { %1413 = vmatmul.mubr.bf16.gmra.mrb[60].mxu0 %v2330_v20 }
  0xa3   : > { %1994 = vmatprep.mubr.msk.bf16.mxu0 %vm952_vm0, %v2332_v21 }
  0xa6   : > { %1157 = vmatmul.mubr.bf16.gmra.mrb[48].mxu1 %v2313_v18 }
  0xa7   : > { %1164 = vmatprep.mubr.bf16.mxu1 %v2316_v19 }
  0xaa   : > { %1421 = vmatmul.mubr.bf16.gmra.mrb[64].mxu0 %v2336_v24 }
  0xab   : > { %1995 = vmatprep.mubr.msk.bf16.mxu0 %vm952_vm0, %v2338_v25 }
  0xae   : > { %1165 = vmatmul.mubr.bf16.gmra.mrb[52].mxu1 %v2319_v22 }
  0xaf   : > { %1172 = vmatprep.mubr.bf16.mxu1 %v2322_v23 }
  0xb2   : > { %1429 = vmatmul.mubr.bf16.gmra.mrb[68].mxu0 %v2342_v28 }
  0xb3   : > { %1996 = vmatprep.mubr.msk.bf16.mxu0 %vm952_vm0, %v2344_v29 }
  0xb6   : > { %1173 = vmatmul.mubr.bf16.gmra.mrb[56].mxu1 %v2325_v26 }
  0xb7   : > { %1180 = vmatprep.mubr.bf16.mxu1 %v2328_v27 }
  0xba   : > { %1437 = vmatmul.mubr.bf16.gmra.mrb[72].mxu0 %v2348_v32 }
  0xbb   : > { %1997 = vmatprep.mubr.msk.bf16.mxu0 %vm952_vm0, %v2350_v33 }
  0xbe   : > { %1181 = vmatmul.mubr.bf16.gmra.mrb[60].mxu1 %v2331_v30 }
  0xbf   : > { %1188 = vmatprep.mubr.bf16.mxu1 %v2334_v31 }
  0xc2   : > { %1445 = vmatmul.mubr.bf16.gmra.mrb[76].mxu0 %v2354_v36 }
  0xc3   : > { %1998 = vmatprep.mubr.msk.bf16.mxu0 %vm952_vm0, %v2356_v37 }
  0xc6   : > { %1189 = vmatmul.mubr.bf16.gmra.mrb[64].mxu1 %v2337_v34 }
  0xc7   : > { %1196 = vmatprep.mubr.bf16.mxu1 %v2340_v35 }
  0xca   : > { %1453 = vmatmul.mubr.bf16.gmra.mrb[80].mxu0 %v2360_v40 }
  0xcb   : > { %1999 = vmatprep.mubr.msk.bf16.mxu0 %vm952_vm0, %v2362_v41 }
  0xce   : > { %1197 = vmatmul.mubr.bf16.gmra.mrb[68].mxu1 %v2343_v38 }
  0xcf   : > { %1204 = vmatprep.mubr.bf16.mxu1 %v2346_v39 }
  0xd2   : > { %1461 = vmatmul.mubr.bf16.gmra.mrb[84].mxu0 %v2366_v44 }
  0xd3   : > { %2000 = vmatprep.mubr.msk.bf16.mxu0 %vm952_vm0, %v2368_v45 }
  0xd6   : > { %1205 = vmatmul.mubr.bf16.gmra.mrb[72].mxu1 %v2349_v42 }
  0xd7   : > { %1212 = vmatprep.mubr.bf16.mxu1 %v2352_v43 }
  0xda   : > { %1469 = vmatmul.mubr.bf16.gmra.mrb[88].mxu0 %v2372_v48 }
  0xdb   : > { %2001 = vmatprep.mubr.msk.bf16.mxu0 %vm952_vm0, %v2374_v49 }
  0xde   : > { %1213 = vmatmul.mubr.bf16.gmra.mrb[76].mxu1 %v2355_v46 }
  0xdf   : > { %1220 = vmatprep.mubr.bf16.mxu1 %v2358_v47 }
  0xe2   : > { %1477 = vmatmul.mubr.bf16.gmra.mrb[92].mxu0 %v2378_v53 }
  0xe3   : > { %2002 = vmatprep.mubr.msk.bf16.mxu0 %vm952_vm0, %v1952_v54 }
  0xe6   : > { %1221 = vmatmul.mubr.bf16.gmra.mrb[80].mxu1 %v2361_v50 }
  0xe7   : > { %1228 = vmatprep.mubr.bf16.mxu1 %v2364_v51 }
  0xea   : > { %1485 = vmatmul.mubr.bf16.gmra.mrb[96].mxu0 %v1951_v57 }
  0xee   : > { %1229 = vmatmul.mubr.bf16.gmra.mrb[84].mxu1 %v2367_v55 }
  0xef   : > { %1236 = vmatprep.mubr.bf16.mxu1 %v2370_v56 }
  0xf6   : > { %1237 = vmatmul.mubr.bf16.gmra.mrb[88].mxu1 %v2373_v58 }
  0xf7   : > { %1244 = vmatprep.mubr.bf16.mxu1 %v2376_v59 }
  0xfd   : > { %v1294_v0 = vpop.f32.mrb[0].mxu0 }
  0xfe   : > { %1245 = vmatmul.mubr.bf16.gmra.mrb[92].mxu1 %v2379_v61  ;;  %v1296_v1 = vpop.f32.mrb[1].mxu0 }
  0xff   : > { %1252 = vmatprep.mubr.bf16.mxu1 %v1950_v62  ;;  %v1297_v2 = vpop.f32.mrb[2].mxu0 }
 0x100   : > { %v1299_v3 = vpop.f32.mrb[3].mxu0 }
 0x105   : > { %v1302_v4 = vpop.f32.mrb[4].mxu0 }
 0x106   : > { %1253 = vmatmul.mubr.bf16.gmra.mrb[96].mxu1 %v1949_v63  ;;  %v1304_v5 = vpop.f32.mrb[5].mxu0 }
 0x107   : > { %v1305_v6 = vpop.f32.mrb[6].mxu0 }
 0x108   : > { %v1307_v7 = vpop.f32.mrb[7].mxu0 }
 0x10d   : > { %v1310_v8 = vpop.f32.mrb[8].mxu0 }
 0x10e   : > { %v1312_v9 = vpop.f32.mrb[9].mxu0 }
 0x10f   : > { %v1313_v10 = vpop.f32.mrb[10].mxu0 }
 0x110   : > { %v1315_v12 = vpop.f32.mrb[11].mxu0 }
 0x115   : > { %v1318_v20 = vpop.f32.mrb[12].mxu0 }
 0x116   : > { %v1320_v21 = vpop.f32.mrb[13].mxu0 }
 0x117   : > { %v1321_v24 = vpop.f32.mrb[14].mxu0 }
 0x118   : > { %v1323_v25 = vpop.f32.mrb[15].mxu0 }
 0x119   : > { %v1062_v13 = vpop.f32.mrb[0].mxu1 }
 0x11a   : > { %v1063_v14 = vadd.f32 %v2655_v11, %v1062_v13  ;;  %v1064_v15 = vpop.f32.mrb[1].mxu1 }
 0x11b   : > { %v1065_v16 = vpop.f32.mrb[2].mxu1 }
 0x11c   : > { %v1295_v17 = vadd.f32 %v1294_v0, %v1063_v14  ;;  %v1066_v18 = vadd.f32 %v2655_v11, %v1065_v16  ;;  %v1067_v19 = vpop.f32.mrb[3].mxu1 }
 0x11d   : > { %v1326_v36 = vpop.f32.mrb[16].mxu0 }
 0x11e   : > { %v1492_v22 = vmax.f32 %v1295_v17, 0.0  ;;  %v1298_v23 = vadd.f32 %v1297_v2, %v1066_v18  ;;  %v1328_v37 = vpop.f32.mrb[17].mxu0 }
 0x11f   : > { %v1329_v40 = vpop.f32.mrb[18].mxu0 }
 0x120   : > { %v2055_v26 = vpack.c.bf16 %v1492_v22, %v1492_v22  ;;  %v1493_v27 = vmax.f32 %v1298_v23, 0.0  ;;  %v1331_v41 = vpop.f32.mrb[19].mxu0 }
 0x121   : > { %v1070_v28 = vpop.f32.mrb[4].mxu1 }
 0x122   : > { %1739 = vst.msk [vmem:[%s2663_s24] sm:$0xf] %vm1738_vm1, %v2055_v26  ;;  %v2056_v29 = vpack.c.bf16 %v1493_v27, %v1493_v27  ;;  %v1071_v30 = vadd.f32 %v2655_v11, %v1070_v28  ;;  %v1072_v31 = vpop.f32.mrb[5].mxu1 }
 0x123   : > { %v1073_v32 = vpop.f32.mrb[6].mxu1 }
 0x124   : > { %1740 = vst.msk [vmem:[%s2663_s24 + $0x4] sm:$0xf] %vm1738_vm1, %v2056_v29  ;;  %v1303_v33 = vadd.f32 %v1302_v4, %v1071_v30  ;;  %v1074_v34 = vadd.f32 %v2655_v11, %v1073_v32  ;;  %v1075_v35 = vpop.f32.mrb[7].mxu1 }
 0x125   : > { %v1334_v52 = vpop.f32.mrb[20].mxu0 }
 0x126   : > { %v1494_v38 = vmax.f32 %v1303_v33, 0.0  ;;  %v1306_v39 = vadd.f32 %v1305_v6, %v1074_v34  ;;  %v1336_v53 = vpop.f32.mrb[21].mxu0 }
 0x127   : > { %v1337_v56 = vpop.f32.mrb[22].mxu0 }
 0x128   : > { %v2057_v42 = vpack.c.bf16 %v1494_v38, %v1494_v38  ;;  %v1495_v43 = vmax.f32 %v1306_v39, 0.0  ;;  %v1339_v57 = vpop.f32.mrb[23].mxu0 }
 0x129   : > { %v1078_v44 = vpop.f32.mrb[8].mxu1 }
 0x12a   : > { %1741 = vst.msk [vmem:[%s2663_s24 + $0x8] sm:$0xf] %vm1738_vm1, %v2057_v42  ;;  %v2058_v45 = vpack.c.bf16 %v1495_v43, %v1495_v43  ;;  %v1079_v46 = vadd.f32 %v2655_v11, %v1078_v44  ;;  %v1080_v47 = vpop.f32.mrb[9].mxu1 }
 0x12b   : > { %v1081_v48 = vpop.f32.mrb[10].mxu1 }
 0x12c   : > { %1742 = vst.msk [vmem:[%s2663_s24 + $0xc] sm:$0xf] %vm1738_vm1, %v2058_v45  ;;  %v1311_v49 = vadd.f32 %v1310_v8, %v1079_v46  ;;  %v1082_v50 = vadd.f32 %v2655_v11, %v1081_v48  ;;  %v1083_v51 = vpop.f32.mrb[11].mxu1 }
 0x12d   : > { %v1342_v4 = vpop.f32.mrb[24].mxu0 }
 0x12e   : > { %v1496_v54 = vmax.f32 %v1311_v49, 0.0  ;;  %v1314_v55 = vadd.f32 %v1313_v10, %v1082_v50  ;;  %v1344_v5 = vpop.f32.mrb[25].mxu0 }
 0x12f   : > { %v1345_v8 = vpop.f32.mrb[26].mxu0 }
 0x130   : > { %v2059_v58 = vpack.c.bf16 %v1496_v54, %v1496_v54  ;;  %v1497_v59 = vmax.f32 %v1314_v55, 0.0  ;;  %v1347_v9 = vpop.f32.mrb[27].mxu0 }
 0x131   : > { %v1086_v60 = vpop.f32.mrb[12].mxu1 }
 0x132   : > { %1743 = vst.msk [vmem:[%s2663_s24 + $0x10] sm:$0xf] %vm1738_vm1, %v2059_v58  ;;  %v2060_v61 = vpack.c.bf16 %v1497_v59, %v1497_v59  ;;  %v1087_v62 = vadd.f32 %v2655_v11, %v1086_v60  ;;  %v1088_v63 = vpop.f32.mrb[13].mxu1 }
 0x133   : > { %v1089_v0 = vpop.f32.mrb[14].mxu1 }
 0x134   : > { %1744 = vst.msk [vmem:[%s2663_s24 + $0x14] sm:$0xf] %vm1738_vm1, %v2060_v61  ;;  %v1319_v1 = vadd.f32 %v1318_v20, %v1087_v62  ;;  %v1090_v2 = vadd.f32 %v2655_v11, %v1089_v0  ;;  %v1091_v3 = vpop.f32.mrb[15].mxu1 }
 0x135   : > { %v1350_v21 = vpop.f32.mrb[28].mxu0 }
 0x136   : > { %v1498_v6 = vmax.f32 %v1319_v1, 0.0  ;;  %v1322_v7 = vadd.f32 %v1321_v24, %v1090_v2  ;;  %v1352_v22 = vpop.f32.mrb[29].mxu0 }
 0x137   : > { %v1353_v25 = vpop.f32.mrb[30].mxu0 }
 0x138   : > { %v2061_v10 = vpack.c.bf16 %v1498_v6, %v1498_v6  ;;  %v1499_v12 = vmax.f32 %v1322_v7, 0.0  ;;  %v1355_v26 = vpop.f32.mrb[31].mxu0 }
 0x139   : > { %v1094_v13 = vpop.f32.mrb[16].mxu1 }
 0x13a   : > { %1745 = vst.msk [vmem:[%s2663_s24 + $0x18] sm:$0xf] %vm1738_vm1, %v2061_v10  ;;  %v2062_v14 = vpack.c.bf16 %v1499_v12, %v1499_v12  ;;  %v1095_v15 = vadd.f32 %v2655_v11, %v1094_v13  ;;  %v1096_v16 = vpop.f32.mrb[17].mxu1 }
 0x13b   : > { %v1097_v17 = vpop.f32.mrb[18].mxu1 }
 0x13c   : > { %1746 = vst.msk [vmem:[%s2663_s24 + $0x1c] sm:$0xf] %vm1738_vm1, %v2062_v14  ;;  %v1327_v18 = vadd.f32 %v1326_v36, %v1095_v15  ;;  %v1098_v19 = vadd.f32 %v2655_v11, %v1097_v17  ;;  %v1099_v20 = vpop.f32.mrb[19].mxu1 }
 0x13d   : > { %v1358_v37 = vpop.f32.mrb[32].mxu0 }
 0x13e   : > { %v1500_v23 = vmax.f32 %v1327_v18, 0.0  ;;  %v1330_v24 = vadd.f32 %v1329_v40, %v1098_v19  ;;  %v1360_v38 = vpop.f32.mrb[33].mxu0 }
 0x13f   : > { %v1361_v41 = vpop.f32.mrb[34].mxu0 }
 0x140   : > { %v2063_v27 = vpack.c.bf16 %v1500_v23, %v1500_v23  ;;  %v1501_v28 = vmax.f32 %v1330_v24, 0.0  ;;  %v1363_v42 = vpop.f32.mrb[35].mxu0 }
 0x141   : > { %v1102_v29 = vpop.f32.mrb[20].mxu1 }
 0x142   : > { %1747 = vst.msk [vmem:[%s2663_s24 + $0x20] sm:$0xf] %vm1738_vm1, %v2063_v27  ;;  %v2064_v30 = vpack.c.bf16 %v1501_v28, %v1501_v28  ;;  %v1103_v31 = vadd.f32 %v2655_v11, %v1102_v29  ;;  %v1104_v32 = vpop.f32.mrb[21].mxu1 }
 0x143   : > { %v1105_v33 = vpop.f32.mrb[22].mxu1 }
 0x144   : > { %1748 = vst.msk [vmem:[%s2663_s24 + $0x24] sm:$0xf] %vm1738_vm1, %v2064_v30  ;;  %v1335_v34 = vadd.f32 %v1334_v52, %v1103_v31  ;;  %v1106_v35 = vadd.f32 %v2655_v11, %v1105_v33  ;;  %v1107_v36 = vpop.f32.mrb[23].mxu1 }
 0x145   : > { %v1366_v53 = vpop.f32.mrb[36].mxu0 }
 0x146   : > { %v1502_v39 = vmax.f32 %v1335_v34, 0.0  ;;  %v1338_v40 = vadd.f32 %v1337_v56, %v1106_v35  ;;  %v1368_v54 = vpop.f32.mrb[37].mxu0 }
 0x147   : > { %v1369_v57 = vpop.f32.mrb[38].mxu0 }
 0x148   : > { %v2065_v43 = vpack.c.bf16 %v1502_v39, %v1502_v39  ;;  %v1503_v44 = vmax.f32 %v1338_v40, 0.0  ;;  %v1371_v58 = vpop.f32.mrb[39].mxu0 }
 0x149   : > { %v1110_v45 = vpop.f32.mrb[24].mxu1 }
 0x14a   : > { %1749 = vst.msk [vmem:[%s2663_s24 + $0x28] sm:$0xf] %vm1738_vm1, %v2065_v43  ;;  %v2066_v46 = vpack.c.bf16 %v1503_v44, %v1503_v44  ;;  %v1111_v47 = vadd.f32 %v2655_v11, %v1110_v45  ;;  %v1112_v48 = vpop.f32.mrb[25].mxu1 }
 0x14b   : > { %v1113_v49 = vpop.f32.mrb[26].mxu1 }
 0x14c   : > { %1750 = vst.msk [vmem:[%s2663_s24 + $0x2c] sm:$0xf] %vm1738_vm1, %v2066_v46  ;;  %v1343_v50 = vadd.f32 %v1342_v4, %v1111_v47  ;;  %v1114_v51 = vadd.f32 %v2655_v11, %v1113_v49  ;;  %v1115_v52 = vpop.f32.mrb[27].mxu1 }
 0x14d   : > { %v1374_v5 = vpop.f32.mrb[40].mxu0 }
 0x14e   : > { %v1504_v55 = vmax.f32 %v1343_v50, 0.0  ;;  %v1346_v56 = vadd.f32 %v1345_v8, %v1114_v51  ;;  %v1376_v6 = vpop.f32.mrb[41].mxu0 }
 0x14f   : > { %v1377_v9 = vpop.f32.mrb[42].mxu0 }
 0x150   : > { %v2067_v59 = vpack.c.bf16 %v1504_v55, %v1504_v55  ;;  %v1505_v60 = vmax.f32 %v1346_v56, 0.0  ;;  %v1379_v10 = vpop.f32.mrb[43].mxu0 }
 0x151   : > { %v1118_v61 = vpop.f32.mrb[28].mxu1 }
 0x152   : > { %1751 = vst.msk [vmem:[%s2663_s24 + $0x30] sm:$0xf] %vm1738_vm1, %v2067_v59  ;;  %v2068_v62 = vpack.c.bf16 %v1505_v60, %v1505_v60  ;;  %v1119_v63 = vadd.f32 %v2655_v11, %v1118_v61  ;;  %v1120_v0 = vpop.f32.mrb[29].mxu1 }
 0x153   : > { %v1121_v1 = vpop.f32.mrb[30].mxu1 }
 0x154   : > { %1752 = vst.msk [vmem:[%s2663_s24 + $0x34] sm:$0xf] %vm1738_vm1, %v2068_v62  ;;  %v1351_v2 = vadd.f32 %v1350_v21, %v1119_v63  ;;  %v1122_v3 = vadd.f32 %v2655_v11, %v1121_v1  ;;  %v1123_v4 = vpop.f32.mrb[31].mxu1 }
 0x155   : > { %v1382_v22 = vpop.f32.mrb[44].mxu0 }
 0x156   : > { %v1506_v7 = vmax.f32 %v1351_v2, 0.0  ;;  %v1354_v8 = vadd.f32 %v1353_v25, %v1122_v3  ;;  %v1384_v23 = vpop.f32.mrb[45].mxu0 }
 0x157   : > { %v1385_v26 = vpop.f32.mrb[46].mxu0 }
 0x158   : > { %v2069_v12 = vpack.c.bf16 %v1506_v7, %v1506_v7  ;;  %v1507_v13 = vmax.f32 %v1354_v8, 0.0  ;;  %v1387_v27 = vpop.f32.mrb[47].mxu0 }
 0x159   : > { %v1126_v14 = vpop.f32.mrb[32].mxu1 }
 0x15a   : > { %1753 = vst.msk [vmem:[%s2663_s24 + $0x38] sm:$0xf] %vm1738_vm1, %v2069_v12  ;;  %v2070_v15 = vpack.c.bf16 %v1507_v13, %v1507_v13  ;;  %v1127_v16 = vadd.f32 %v2655_v11, %v1126_v14  ;;  %v1128_v17 = vpop.f32.mrb[33].mxu1 }
 0x15b   : > { %v1129_v18 = vpop.f32.mrb[34].mxu1 }
 0x15c   : > { %1754 = vst.msk [vmem:[%s2663_s24 + $0x3c] sm:$0xf] %vm1738_vm1, %v2070_v15  ;;  %v1359_v19 = vadd.f32 %v1358_v37, %v1127_v16  ;;  %v1130_v20 = vadd.f32 %v2655_v11, %v1129_v18  ;;  %v1131_v21 = vpop.f32.mrb[35].mxu1 }
 0x15d   : > { %v1390_v38 = vpop.f32.mrb[48].mxu0 }
 0x15e   : > { %v1508_v24 = vmax.f32 %v1359_v19, 0.0  ;;  %v1362_v25 = vadd.f32 %v1361_v41, %v1130_v20  ;;  %v1392_v39 = vpop.f32.mrb[49].mxu0 }
 0x15f   : > { %v1393_v42 = vpop.f32.mrb[50].mxu0 }
 0x160   : > { %v2071_v28 = vpack.c.bf16 %v1508_v24, %v1508_v24  ;;  %v1509_v29 = vmax.f32 %v1362_v25, 0.0  ;;  %v1395_v43 = vpop.f32.mrb[51].mxu0 }
 0x161   : > { %v1134_v30 = vpop.f32.mrb[36].mxu1 }
 0x162   : > { %1755 = vst.msk [vmem:[%s2663_s24 + $0x40] sm:$0xf] %vm1738_vm1, %v2071_v28  ;;  %v2072_v31 = vpack.c.bf16 %v1509_v29, %v1509_v29  ;;  %v1135_v32 = vadd.f32 %v2655_v11, %v1134_v30  ;;  %v1136_v33 = vpop.f32.mrb[37].mxu1 }
 0x163   : > { %v1137_v34 = vpop.f32.mrb[38].mxu1 }
 0x164   : > { %1756 = vst.msk [vmem:[%s2663_s24 + $0x44] sm:$0xf] %vm1738_vm1, %v2072_v31  ;;  %v1367_v35 = vadd.f32 %v1366_v53, %v1135_v32  ;;  %v1138_v36 = vadd.f32 %v2655_v11, %v1137_v34  ;;  %v1139_v37 = vpop.f32.mrb[39].mxu1 }
 0x165   : > { %v1398_v54 = vpop.f32.mrb[52].mxu0 }
 0x166   : > { %v1510_v40 = vmax.f32 %v1367_v35, 0.0  ;;  %v1370_v41 = vadd.f32 %v1369_v57, %v1138_v36  ;;  %v1400_v55 = vpop.f32.mrb[53].mxu0 }
 0x167   : > { %v1401_v58 = vpop.f32.mrb[54].mxu0 }
 0x168   : > { %v2073_v44 = vpack.c.bf16 %v1510_v40, %v1510_v40  ;;  %v1511_v45 = vmax.f32 %v1370_v41, 0.0  ;;  %v1403_v59 = vpop.f32.mrb[55].mxu0 }
 0x169   : > { %v1142_v46 = vpop.f32.mrb[40].mxu1 }
 0x16a   : > { %1757 = vst.msk [vmem:[%s2663_s24 + $0x48] sm:$0xf] %vm1738_vm1, %v2073_v44  ;;  %v2074_v47 = vpack.c.bf16 %v1511_v45, %v1511_v45  ;;  %v1143_v48 = vadd.f32 %v2655_v11, %v1142_v46  ;;  %v1144_v49 = vpop.f32.mrb[41].mxu1 }
 0x16b   : > { %v1145_v50 = vpop.f32.mrb[42].mxu1 }
 0x16c   : > { %1758 = vst.msk [vmem:[%s2663_s24 + $0x4c] sm:$0xf] %vm1738_vm1, %v2074_v47  ;;  %v1375_v51 = vadd.f32 %v1374_v5, %v1143_v48  ;;  %v1146_v52 = vadd.f32 %v2655_v11, %v1145_v50  ;;  %v1147_v53 = vpop.f32.mrb[43].mxu1 }
 0x16d   : > { %v1406_v6 = vpop.f32.mrb[56].mxu0 }
 0x16e   : > { %v1512_v56 = vmax.f32 %v1375_v51, 0.0  ;;  %v1378_v57 = vadd.f32 %v1377_v9, %v1146_v52  ;;  %v1408_v7 = vpop.f32.mrb[57].mxu0 }
 0x16f   : > { %v1409_v10 = vpop.f32.mrb[58].mxu0 }
 0x170   : > { %v2075_v60 = vpack.c.bf16 %v1512_v56, %v1512_v56  ;;  %v1513_v61 = vmax.f32 %v1378_v57, 0.0  ;;  %v1411_v12 = vpop.f32.mrb[59].mxu0 }
 0x171   : > { %v1150_v62 = vpop.f32.mrb[44].mxu1 }
 0x172   : > { %1759 = vst.msk [vmem:[%s2663_s24 + $0x50] sm:$0xf] %vm1738_vm1, %v2075_v60  ;;  %v2076_v63 = vpack.c.bf16 %v1513_v61, %v1513_v61  ;;  %v1151_v0 = vadd.f32 %v2655_v11, %v1150_v62  ;;  %v1152_v1 = vpop.f32.mrb[45].mxu1 }
 0x173   : > { %v1153_v2 = vpop.f32.mrb[46].mxu1 }
 0x174   : > { %1760 = vst.msk [vmem:[%s2663_s24 + $0x54] sm:$0xf] %vm1738_vm1, %v2076_v63  ;;  %v1383_v3 = vadd.f32 %v1382_v22, %v1151_v0  ;;  %v1154_v4 = vadd.f32 %v2655_v11, %v1153_v2  ;;  %v1155_v5 = vpop.f32.mrb[47].mxu1 }
 0x175   : > { %v1414_v23 = vpop.f32.mrb[60].mxu0 }
 0x176   : > { %v1514_v8 = vmax.f32 %v1383_v3, 0.0  ;;  %v1386_v9 = vadd.f32 %v1385_v26, %v1154_v4  ;;  %v1416_v24 = vpop.f32.mrb[61].mxu0 }
 0x177   : > { %v1417_v27 = vpop.f32.mrb[62].mxu0 }
 0x178   : > { %v2077_v13 = vpack.c.bf16 %v1514_v8, %v1514_v8  ;;  %v1515_v14 = vmax.f32 %v1386_v9, 0.0  ;;  %v1419_v28 = vpop.f32.mrb[63].mxu0 }
 0x179   : > { %v1158_v15 = vpop.f32.mrb[48].mxu1 }
 0x17a   : > { %1761 = vst.msk [vmem:[%s2663_s24 + $0x58] sm:$0xf] %vm1738_vm1, %v2077_v13  ;;  %v2078_v16 = vpack.c.bf16 %v1515_v14, %v1515_v14  ;;  %v1159_v17 = vadd.f32 %v2655_v11, %v1158_v15  ;;  %v1160_v18 = vpop.f32.mrb[49].mxu1 }
 0x17b   : > { %v1161_v19 = vpop.f32.mrb[50].mxu1 }
 0x17c   : > { %1762 = vst.msk [vmem:[%s2663_s24 + $0x5c] sm:$0xf] %vm1738_vm1, %v2078_v16  ;;  %v1391_v20 = vadd.f32 %v1390_v38, %v1159_v17  ;;  %v1162_v21 = vadd.f32 %v2655_v11, %v1161_v19  ;;  %v1163_v22 = vpop.f32.mrb[51].mxu1 }
 0x17d   : > { %v1422_v39 = vpop.f32.mrb[64].mxu0 }
 0x17e   : > { %v1516_v25 = vmax.f32 %v1391_v20, 0.0  ;;  %v1394_v26 = vadd.f32 %v1393_v42, %v1162_v21  ;;  %v1424_v40 = vpop.f32.mrb[65].mxu0 }
 0x17f   : > { %v1425_v43 = vpop.f32.mrb[66].mxu0 }
 0x180   : > { %v2079_v29 = vpack.c.bf16 %v1516_v25, %v1516_v25  ;;  %v1517_v30 = vmax.f32 %v1394_v26, 0.0  ;;  %v1427_v44 = vpop.f32.mrb[67].mxu0 }
 0x181   : > { %v1166_v31 = vpop.f32.mrb[52].mxu1 }
 0x182   : > { %1763 = vst.msk [vmem:[%s2663_s24 + $0x60] sm:$0xf] %vm1738_vm1, %v2079_v29  ;;  %v2080_v32 = vpack.c.bf16 %v1517_v30, %v1517_v30  ;;  %v1167_v33 = vadd.f32 %v2655_v11, %v1166_v31  ;;  %v1168_v34 = vpop.f32.mrb[53].mxu1 }
 0x183   : > { %v1169_v35 = vpop.f32.mrb[54].mxu1 }
 0x184   : > { %1764 = vst.msk [vmem:[%s2663_s24 + $0x64] sm:$0xf] %vm1738_vm1, %v2080_v32  ;;  %v1399_v36 = vadd.f32 %v1398_v54, %v1167_v33  ;;  %v1170_v37 = vadd.f32 %v2655_v11, %v1169_v35  ;;  %v1171_v38 = vpop.f32.mrb[55].mxu1 }
 0x185   : > { %v1430_v55 = vpop.f32.mrb[68].mxu0 }
 0x186   : > { %v1518_v41 = vmax.f32 %v1399_v36, 0.0  ;;  %v1402_v42 = vadd.f32 %v1401_v58, %v1170_v37  ;;  %v1432_v56 = vpop.f32.mrb[69].mxu0 }
 0x187   : > { %v1433_v59 = vpop.f32.mrb[70].mxu0 }
 0x188   : > { %v2081_v45 = vpack.c.bf16 %v1518_v41, %v1518_v41  ;;  %v1519_v46 = vmax.f32 %v1402_v42, 0.0  ;;  %v1435_v60 = vpop.f32.mrb[71].mxu0 }
 0x189   : > { %v1174_v47 = vpop.f32.mrb[56].mxu1 }
 0x18a   : > { %1765 = vst.msk [vmem:[%s2663_s24 + $0x68] sm:$0xf] %vm1738_vm1, %v2081_v45  ;;  %v2082_v48 = vpack.c.bf16 %v1519_v46, %v1519_v46  ;;  %v1175_v49 = vadd.f32 %v2655_v11, %v1174_v47  ;;  %v1176_v50 = vpop.f32.mrb[57].mxu1 }
 0x18b   : > { %v1177_v51 = vpop.f32.mrb[58].mxu1 }
 0x18c   : > { %1766 = vst.msk [vmem:[%s2663_s24 + $0x6c] sm:$0xf] %vm1738_vm1, %v2082_v48  ;;  %v1407_v52 = vadd.f32 %v1406_v6, %v1175_v49  ;;  %v1178_v53 = vadd.f32 %v2655_v11, %v1177_v51  ;;  %v1179_v54 = vpop.f32.mrb[59].mxu1 }
 0x18d   : > { %v1438_v7 = vpop.f32.mrb[72].mxu0 }
 0x18e   : > { %v1520_v57 = vmax.f32 %v1407_v52, 0.0  ;;  %v1410_v58 = vadd.f32 %v1409_v10, %v1178_v53  ;;  %v1440_v8 = vpop.f32.mrb[73].mxu0 }
 0x18f   : > { %v1441_v12 = vpop.f32.mrb[74].mxu0 }
 0x190   : > { %v2083_v61 = vpack.c.bf16 %v1520_v57, %v1520_v57  ;;  %v1521_v62 = vmax.f32 %v1410_v58, 0.0  ;;  %v1443_v13 = vpop.f32.mrb[75].mxu0 }
 0x191   : > { %v1182_v63 = vpop.f32.mrb[60].mxu1 }
 0x192   : > { %1767 = vst.msk [vmem:[%s2663_s24 + $0x70] sm:$0xf] %vm1738_vm1, %v2083_v61  ;;  %v2084_v0 = vpack.c.bf16 %v1521_v62, %v1521_v62  ;;  %v1183_v1 = vadd.f32 %v2655_v11, %v1182_v63  ;;  %v1184_v2 = vpop.f32.mrb[61].mxu1 }
 0x193   : > { %v1185_v3 = vpop.f32.mrb[62].mxu1 }
 0x194   : > { %1768 = vst.msk [vmem:[%s2663_s24 + $0x74] sm:$0xf] %vm1738_vm1, %v2084_v0  ;;  %v1415_v4 = vadd.f32 %v1414_v23, %v1183_v1  ;;  %v1186_v5 = vadd.f32 %v2655_v11, %v1185_v3  ;;  %v1187_v6 = vpop.f32.mrb[63].mxu1 }
 0x195   : > { %v1446_v24 = vpop.f32.mrb[76].mxu0 }
 0x196   : > { %v1522_v9 = vmax.f32 %v1415_v4, 0.0  ;;  %v1418_v10 = vadd.f32 %v1417_v27, %v1186_v5  ;;  %v1448_v25 = vpop.f32.mrb[77].mxu0 }
 0x197   : > { %v1449_v28 = vpop.f32.mrb[78].mxu0 }
 0x198   : > { %v2085_v14 = vpack.c.bf16 %v1522_v9, %v1522_v9  ;;  %v1523_v15 = vmax.f32 %v1418_v10, 0.0  ;;  %v1451_v29 = vpop.f32.mrb[79].mxu0 }
 0x199   : > { %v1190_v16 = vpop.f32.mrb[64].mxu1 }
 0x19a   : > { %1769 = vst.msk [vmem:[%s2663_s24 + $0x78] sm:$0xf] %vm1738_vm1, %v2085_v14  ;;  %v2086_v17 = vpack.c.bf16 %v1523_v15, %v1523_v15  ;;  %v1191_v18 = vadd.f32 %v2655_v11, %v1190_v16  ;;  %v1192_v19 = vpop.f32.mrb[65].mxu1 }
 0x19b   : > { %v1193_v20 = vpop.f32.mrb[66].mxu1 }
 0x19c   : > { %1770 = vst.msk [vmem:[%s2663_s24 + $0x7c] sm:$0xf] %vm1738_vm1, %v2086_v17  ;;  %v1423_v21 = vadd.f32 %v1422_v39, %v1191_v18  ;;  %v1194_v22 = vadd.f32 %v2655_v11, %v1193_v20  ;;  %v1195_v23 = vpop.f32.mrb[67].mxu1 }
 0x19d   : > { %v1454_v40 = vpop.f32.mrb[80].mxu0 }
 0x19e   : > { %v1524_v26 = vmax.f32 %v1423_v21, 0.0  ;;  %v1426_v27 = vadd.f32 %v1425_v43, %v1194_v22  ;;  %v1456_v41 = vpop.f32.mrb[81].mxu0 }
 0x19f   : > { %v1457_v44 = vpop.f32.mrb[82].mxu0 }
 0x1a0   : > { %v2087_v30 = vpack.c.bf16 %v1524_v26, %v1524_v26  ;;  %v1525_v31 = vmax.f32 %v1426_v27, 0.0  ;;  %v1459_v45 = vpop.f32.mrb[83].mxu0 }
 0x1a1   : > { %v1198_v32 = vpop.f32.mrb[68].mxu1 }
 0x1a2   : > { %1771 = vst.msk [vmem:[%s2663_s24 + $0x80] sm:$0xf] %vm1738_vm1, %v2087_v30  ;;  %v2088_v33 = vpack.c.bf16 %v1525_v31, %v1525_v31  ;;  %v1199_v34 = vadd.f32 %v2655_v11, %v1198_v32  ;;  %v1200_v35 = vpop.f32.mrb[69].mxu1 }
 0x1a3   : > { %v1201_v36 = vpop.f32.mrb[70].mxu1 }
 0x1a4   : > { %1772 = vst.msk [vmem:[%s2663_s24 + $0x84] sm:$0xf] %vm1738_vm1, %v2088_v33  ;;  %v1431_v37 = vadd.f32 %v1430_v55, %v1199_v34  ;;  %v1202_v38 = vadd.f32 %v2655_v11, %v1201_v36  ;;  %v1203_v39 = vpop.f32.mrb[71].mxu1 }
 0x1a5   : > { %v1462_v56 = vpop.f32.mrb[84].mxu0 }
 0x1a6   : > { %v1526_v42 = vmax.f32 %v1431_v37, 0.0  ;;  %v1434_v43 = vadd.f32 %v1433_v59, %v1202_v38  ;;  %v1464_v57 = vpop.f32.mrb[85].mxu0 }
 0x1a7   : > { %v1465_v60 = vpop.f32.mrb[86].mxu0 }
 0x1a8   : > { %v2089_v46 = vpack.c.bf16 %v1526_v42, %v1526_v42  ;;  %v1527_v47 = vmax.f32 %v1434_v43, 0.0  ;;  %v1467_v61 = vpop.f32.mrb[87].mxu0 }
 0x1a9   : > { %v1206_v48 = vpop.f32.mrb[72].mxu1 }
 0x1aa   : > { %1773 = vst.msk [vmem:[%s2663_s24 + $0x88] sm:$0xf] %vm1738_vm1, %v2089_v46  ;;  %v2090_v49 = vpack.c.bf16 %v1527_v47, %v1527_v47  ;;  %v1207_v50 = vadd.f32 %v2655_v11, %v1206_v48  ;;  %v1208_v51 = vpop.f32.mrb[73].mxu1 }
 0x1ab   : > { %v1209_v52 = vpop.f32.mrb[74].mxu1 }
 0x1ac   : > { %1774 = vst.msk [vmem:[%s2663_s24 + $0x8c] sm:$0xf] %vm1738_vm1, %v2090_v49  ;;  %v1439_v53 = vadd.f32 %v1438_v7, %v1207_v50  ;;  %v1210_v54 = vadd.f32 %v2655_v11, %v1209_v52  ;;  %v1211_v55 = vpop.f32.mrb[75].mxu1 }
 0x1ad   : > { %v1470_v8 = vpop.f32.mrb[88].mxu0 }
 0x1ae   : > { %v1528_v58 = vmax.f32 %v1439_v53, 0.0  ;;  %v1442_v59 = vadd.f32 %v1441_v12, %v1210_v54  ;;  %v1472_v9 = vpop.f32.mrb[89].mxu0 }
 0x1af   : > { %v1473_v13 = vpop.f32.mrb[90].mxu0 }
 0x1b0   : > { %v2091_v62 = vpack.c.bf16 %v1528_v58, %v1528_v58  ;;  %v1529_v63 = vmax.f32 %v1442_v59, 0.0  ;;  %v1475_v14 = vpop.f32.mrb[91].mxu0 }
 0x1b1   : > { %v1214_v0 = vpop.f32.mrb[76].mxu1 }
 0x1b2   : > { %1775 = vst.msk [vmem:[%s2663_s24 + $0x90] sm:$0xf] %vm1738_vm1, %v2091_v62  ;;  %v2092_v1 = vpack.c.bf16 %v1529_v63, %v1529_v63  ;;  %v1215_v2 = vadd.f32 %v2655_v11, %v1214_v0  ;;  %v1216_v3 = vpop.f32.mrb[77].mxu1 }
 0x1b3   : > { %v1217_v4 = vpop.f32.mrb[78].mxu1 }
 0x1b4   : > { %1776 = vst.msk [vmem:[%s2663_s24 + $0x94] sm:$0xf] %vm1738_vm1, %v2092_v1  ;;  %v1447_v5 = vadd.f32 %v1446_v24, %v1215_v2  ;;  %v1218_v6 = vadd.f32 %v2655_v11, %v1217_v4  ;;  %v1219_v7 = vpop.f32.mrb[79].mxu1 }
 0x1b5   : > { %v1478_v25 = vpop.f32.mrb[92].mxu0 }
 0x1b6   : > { %v1530_v10 = vmax.f32 %v1447_v5, 0.0  ;;  %v1450_v12 = vadd.f32 %v1449_v28, %v1218_v6  ;;  %v1480_v26 = vpop.f32.mrb[93].mxu0 }
 0x1b7   : > { %v1481_v29 = vpop.f32.mrb[94].mxu0 }
 0x1b8   : > { %v2093_v15 = vpack.c.bf16 %v1530_v10, %v1530_v10  ;;  %v1531_v16 = vmax.f32 %v1450_v12, 0.0  ;;  %v1483_v30 = vpop.f32.mrb[95].mxu0 }
 0x1b9   : > { %v1222_v17 = vpop.f32.mrb[80].mxu1 }
 0x1ba   : > { %1777 = vst.msk [vmem:[%s2663_s24 + $0x98] sm:$0xf] %vm1738_vm1, %v2093_v15  ;;  %v2094_v18 = vpack.c.bf16 %v1531_v16, %v1531_v16  ;;  %v1223_v19 = vadd.f32 %v2655_v11, %v1222_v17  ;;  %v1224_v20 = vpop.f32.mrb[81].mxu1 }
 0x1bb   : > { %v1225_v21 = vpop.f32.mrb[82].mxu1 }
 0x1bc   : > { %1778 = vst.msk [vmem:[%s2663_s24 + $0x9c] sm:$0xf] %vm1738_vm1, %v2094_v18  ;;  %v1455_v22 = vadd.f32 %v1454_v40, %v1223_v19  ;;  %v1226_v23 = vadd.f32 %v2655_v11, %v1225_v21  ;;  %v1227_v24 = vpop.f32.mrb[83].mxu1 }
 0x1bd   : > { %v1486_v41 = vpop.f32.mrb[96].mxu0 }
 0x1be   : > { %v1532_v27 = vmax.f32 %v1455_v22, 0.0  ;;  %v1458_v28 = vadd.f32 %v1457_v44, %v1226_v23  ;;  %v1488_v42 = vpop.f32.mrb[97].mxu0 }
 0x1bf   : > { %v1489_v45 = vpop.f32.mrb[98].mxu0 }
 0x1c0   : > { %v2095_v31 = vpack.c.bf16 %v1532_v27, %v1532_v27  ;;  %v1533_v32 = vmax.f32 %v1458_v28, 0.0  ;;  %v1490_v46 = vpop.f32.mrb[99].mxu0 }
 0x1c1   : > { %v1230_v33 = vpop.f32.mrb[84].mxu1 }
 0x1c2   : > { %1779 = vst.msk [vmem:[%s2663_s24 + $0xa0] sm:$0xf] %vm1738_vm1, %v2095_v31  ;;  %v2096_v34 = vpack.c.bf16 %v1533_v32, %v1533_v32  ;;  %v1231_v35 = vadd.f32 %v2655_v11, %v1230_v33  ;;  %v1232_v36 = vpop.f32.mrb[85].mxu1 }
 0x1c3   : > { %v1233_v37 = vpop.f32.mrb[86].mxu1 }
 0x1c4   : > { %1780 = vst.msk [vmem:[%s2663_s24 + $0xa4] sm:$0xf] %vm1738_vm1, %v2096_v34  ;;  %v1463_v38 = vadd.f32 %v1462_v56, %v1231_v35  ;;  %v1234_v39 = vadd.f32 %v2655_v11, %v1233_v37  ;;  %v1235_v40 = vpop.f32.mrb[87].mxu1 }
 0x1c6   : > { %v1534_v43 = vmax.f32 %v1463_v38, 0.0  ;;  %v1466_v44 = vadd.f32 %v1465_v60, %v1234_v39 }
 0x1c8   : > { %v2097_v47 = vpack.c.bf16 %v1534_v43, %v1534_v43  ;;  %v1535_v48 = vmax.f32 %v1466_v44, 0.0 }
 0x1c9   : > { %v1238_v49 = vpop.f32.mrb[88].mxu1 }
 0x1ca   : > { %1781 = vst.msk [vmem:[%s2663_s24 + $0xa8] sm:$0xf] %vm1738_vm1, %v2097_v47  ;;  %v2098_v50 = vpack.c.bf16 %v1535_v48, %v1535_v48  ;;  %v1239_v51 = vadd.f32 %v2655_v11, %v1238_v49  ;;  %v1240_v52 = vpop.f32.mrb[89].mxu1 }
 0x1cb   : > { %v1241_v53 = vpop.f32.mrb[90].mxu1 }
 0x1cc   : > { %1782 = vst.msk [vmem:[%s2663_s24 + $0xac] sm:$0xf] %vm1738_vm1, %v2098_v50  ;;  %v1471_v54 = vadd.f32 %v1470_v8, %v1239_v51  ;;  %v1242_v55 = vadd.f32 %v2655_v11, %v1241_v53  ;;  %v1243_v56 = vpop.f32.mrb[91].mxu1 }
 0x1ce   : > { %v1536_v57 = vmax.f32 %v1471_v54, 0.0  ;;  %v1474_v58 = vadd.f32 %v1473_v13, %v1242_v55 }
 0x1d0   : > { %v2099_v59 = vpack.c.bf16 %v1536_v57, %v1536_v57  ;;  %v1537_v60 = vmax.f32 %v1474_v58, 0.0 }
 0x1d1   : > { %v1246_v61 = vpop.f32.mrb[92].mxu1 }
 0x1d2   : > { %1783 = vst.msk [vmem:[%s2663_s24 + $0xb0] sm:$0xf] %vm1738_vm1, %v2099_v59  ;;  %v2100_v62 = vpack.c.bf16 %v1537_v60, %v1537_v60  ;;  %v1247_v63 = vadd.f32 %v2655_v11, %v1246_v61  ;;  %v1248_v0 = vpop.f32.mrb[93].mxu1 }
 0x1d3   : > { %v1249_v1 = vpop.f32.mrb[94].mxu1 }
 0x1d4   : > { %1784 = vst.msk [vmem:[%s2663_s24 + $0xb4] sm:$0xf] %vm1738_vm1, %v2100_v62  ;;  %v1479_v2 = vadd.f32 %v1478_v25, %v1247_v63  ;;  %v1250_v3 = vadd.f32 %v2655_v11, %v1249_v1  ;;  %v1251_v4 = vpop.f32.mrb[95].mxu1 }
 0x1d6   : > { %v1538_v5 = vmax.f32 %v1479_v2, 0.0  ;;  %v1482_v6 = vadd.f32 %v1481_v29, %v1250_v3 }
 0x1d8   : > { %v2101_v7 = vpack.c.bf16 %v1538_v5, %v1538_v5  ;;  %v1539_v8 = vmax.f32 %v1482_v6, 0.0 }
 0x1d9   : > { %v1254_v9 = vpop.f32.mrb[96].mxu1 }
 0x1da   : > { %1785 = vst.msk [vmem:[%s2663_s24 + $0xb8] sm:$0xf] %vm1738_vm1, %v2101_v7  ;;  %v2102_v10 = vpack.c.bf16 %v1539_v8, %v1539_v8  ;;  %v1255_v12 = vadd.f32 %v2655_v11, %v1254_v9  ;;  %v1256_v13 = vpop.f32.mrb[97].mxu1 }
 0x1db   : > { %v1257_v14 = vpop.f32.mrb[98].mxu1 }
 0x1dc   : > { %1786 = vst.msk [vmem:[%s2663_s24 + $0xbc] sm:$0xf] %vm1738_vm1, %v2102_v10  ;;  %v1487_v15 = vadd.f32 %v1486_v41, %v1255_v12  ;;  %v1258_v16 = vpop.f32.mrb[99].mxu1 }
 0x1de   : > { %v1540_v17 = vmax.f32 %v1487_v15, 0.0 }
 0x1e0   : > { %v2103_v18 = vpack.c.bf16 %v1540_v17, %v1540_v17 }
 0x1e2   : > { %1787 = vst.msk [vmem:[%s2663_s24 + $0xc0] sm:$0xf] %vm1738_vm1, %v2103_v18 }
 0x1e3 PF: > { %s13_s12 = sadd.s32 1, %s2390_s12  }
 0x1e4   : > { %p10_p4 = scmp.ge.s32.totalorder %s13_s12, 6  }
 0x1e6   :  { %12 = sbr.rel (!%p10_p4) target bundleno = 1 (0x1), region = 62 }

// kernel: encoder_forward.6
= control target key start
LH: loop header
LB: loop body
LE: loop exit
PB: predicated region body
PF: predicated region fallthrough
CT: control target
= control target key end

     0   :  { %v3864_v0 = vmov 0   ;;  %v3865_v40 = vmov 0.0   ;;  %vm3866_vm0 = vmmov 0   ;;  %vm1482_vm1 = vcmask 261120   ;;  %s4928_s1 = inlined_call_operand.vmem [shape: bf16[800,32], index: 1, kind: input, shape index: {}]   ;;  %s4929_s0 = inlined_call_operand.vmem [shape: bf16[392,800], index: 0, kind: input, shape index: {}]   ;;  %s4930_s2 = inlined_call_operand.vmem [shape: f32[1,32], index: 2, kind: input, shape index: {}]   ;;  %s4931_s3 = inlined_call_operand.vmem [shape: bf16[392,32], index: 3, kind: output, shape index: {}]  }
   0x1   :  { %1558 = vmatprep.subr.bf16.mxu1 %v3864_v0  ;;  %2022 = vmatprep.subr.bf16.mxu0 %v3864_v0  ;;  %v3567_v1 = vld [vmem:[%s4928_s1] sm:$0xff]   ;;  %v3569_v3 = vld [vmem:[%s4928_s1 + $0x8] sm:$0xff]   ;;  %v3571_v5 = vld [vmem:[%s4928_s1 + $0x10] sm:$0xff]   ;;  %vm2732_vm2 = vcmask 257024  }
   0x2   :  { %v3568_v2 = vld [vmem:[%s4928_s1 + $0x100] sm:$0xff]   ;;  %1559 = vmatpush1.bf16.msra.mxu1 %v3567_v1  ;;  %v3570_v4 = vld [vmem:[%s4928_s1 + $0x108] sm:$0xff]   ;;  %v3572_v6 = vld [vmem:[%s4928_s1 + $0x110] sm:$0xff]  }
   0x3   :  { %2023 = vmatpush1.bf16.msra.mxu0 %v3568_v2  ;;  %1560 = vmatprep.subr.bf16.mxu1 %v3864_v0  ;;  %v3573_v7 = vld [vmem:[%s4928_s1 + $0x18] sm:$0xff]   ;;  %v3575_v9 = vld [vmem:[%s4928_s1 + $0x20] sm:$0xff]   ;;  %v3577_v11 = vld [vmem:[%s4928_s1 + $0x28] sm:$0xff]  }
   0x4   :  { %2024 = vmatprep.subr.bf16.mxu0 %v3864_v0  ;;  %v3574_v8 = vld [vmem:[%s4928_s1 + $0x118] sm:$0xff]   ;;  %v3576_v10 = vld [vmem:[%s4928_s1 + $0x120] sm:$0xff]   ;;  %v3578_v12 = vld [vmem:[%s4928_s1 + $0x128] sm:$0xff]  }
   0x5   :  { %v3579_v13 = vld [vmem:[%s4928_s1 + $0x30] sm:$0xff]   ;;  %v3581_v15 = vld [vmem:[%s4928_s1 + $0x38] sm:$0xff]   ;;  %v3583_v17 = vld [vmem:[%s4928_s1 + $0x40] sm:$0xff]  }
   0x6   :  { %1561 = vmatpush1.bf16.msra.mxu1 %v3569_v3  ;;  %v3580_v14 = vld [vmem:[%s4928_s1 + $0x130] sm:$0xff]   ;;  %v3582_v16 = vld [vmem:[%s4928_s1 + $0x138] sm:$0xff]   ;;  %v3584_v18 = vld [vmem:[%s4928_s1 + $0x140] sm:$0xff]  }
   0x7   :  { %2025 = vmatpush1.bf16.msra.mxu0 %v3570_v4  ;;  %1562 = vmatprep.subr.bf16.mxu1 %v3864_v0  ;;  %v3601_v19 = vld [vmem:[%s4929_s0 + $0x4] ss:$28 sps:$4 sm:$0xff]   ;;  %v3585_v20 = vld [vmem:[%s4928_s1 + $0x48] sm:$0xff]   ;;  %v3604_v21 = vld [vmem:[%s4929_s0 + $0x14] ss:$28 sps:$4 sm:$0xff]  }
   0x8   :  { %2026 = vmatprep.subr.bf16.mxu0 %v3864_v0  ;;  %v3586_v22 = vld [vmem:[%s4928_s1 + $0x148] sm:$0xff]   ;;  %1590 = vmatprep.mubr.bf16.mxu1 %v3601_v19  ;;  %v3587_v23 = vld [vmem:[%s4928_s1 + $0x50] sm:$0xff]   ;;  %v3589_v25 = vld [vmem:[%s4928_s1 + $0x58] sm:$0xff]  }
   0x9   :  { %2054 = vmatprep.mubr.bf16.mxu0 %v3604_v21  ;;  %v3588_v24 = vld [vmem:[%s4928_s1 + $0x150] sm:$0xff]   ;;  %v3590_v26 = vld [vmem:[%s4928_s1 + $0x158] sm:$0xff]   ;;  %v3591_v27 = vld [vmem:[%s4928_s1 + $0x60] sm:$0xff]  }
   0xa   :  { %1563 = vmatpush1.bf16.msra.mxu1 %v3571_v5  ;;  %v3592_v28 = vld [vmem:[%s4928_s1 + $0x160] sm:$0xff]   ;;  %v3593_v29 = vld [vmem:[%s4928_s1 + $0x68] sm:$0xff]   ;;  %v3595_v31 = vld [vmem:[%s4928_s1 + $0x70] sm:$0xff]  }
   0xb   :  { %2027 = vmatpush1.bf16.msra.mxu0 %v3572_v6  ;;  %1564 = vmatprep.subr.bf16.mxu1 %v3864_v0  ;;  %v3594_v30 = vld [vmem:[%s4928_s1 + $0x168] sm:$0xff]   ;;  %v3596_v32 = vld [vmem:[%s4928_s1 + $0x170] sm:$0xff]   ;;  %v3597_v33 = vld [vmem:[%s4928_s1 + $0x78] sm:$0xff]  }
   0xc   :  { %2028 = vmatprep.subr.bf16.mxu0 %v3864_v0  ;;  %v3598_v34 = vld [vmem:[%s4928_s1 + $0x178] sm:$0xff]   ;;  %v3602_v36 = vld [vmem:[%s4929_s0 + $0x10] ss:$28 sps:$4 sm:$0xff]   ;;  %v3605_v37 = vld [vmem:[%s4928_s1 + $0x80] sm:$0xff]  }
   0xd   :  { %v3599_v35 = vld [vmem:[%s4929_s0] ss:$28 sps:$4 sm:$0xff]   ;;  %v3609_v41 = vld [vmem:[%s4929_s0 + $0x4c] ss:$28 sps:$4 sm:$0xff]   ;;  %v3611_v43 = vld [vmem:[%s4929_s0 + $0x38] ss:$28 sps:$4 sm:$0xff]  }
   0xe   :  { %1565 = vmatpush1.bf16.msra.mxu1 %v3573_v7  ;;  %v3606_v38 = vld [vmem:[%s4928_s1 + $0x180] sm:$0xff]   ;;  %v3607_v39 = vld [vmem:[%s4929_s0 + $0x3c] ss:$28 sps:$4 sm:$0xff]   ;;  %v3613_v42 = vld [vmem:[%s4928_s1 + $0x88] sm:$0xff]  }
   0xf   :  { %2029 = vmatpush1.bf16.msra.mxu0 %v3574_v8  ;;  %1566 = vmatprep.subr.bf16.mxu1 %v3864_v0  ;;  %v3612_v44 = vld [vmem:[%s4929_s0 + $0x48] ss:$28 sps:$4 sm:$0xff]   ;;  %v3614_v45 = vld [vmem:[%s4929_s0 + $0x74] ss:$28 sps:$4 sm:$0xff]   ;;  %v3635_v49 = vld [vmem:[%s4928_s1 + $0x98] sm:$0xff]  }
  0x10   :  { %2030 = vmatprep.subr.bf16.mxu0 %v3864_v0  ;;  %v3616_v46 = vld [vmem:[%s4929_s0 + $0x84] ss:$28 sps:$4 sm:$0xff]   ;;  %v3626_v47 = vld [vmem:[%s4928_s1 + $0x90] sm:$0xff]   ;;  %v3620_v51 = vld [vmem:[%s4929_s0 + $0xac] ss:$28 sps:$4 sm:$0xff]  }
  0x11   :  { %v3618_v48 = vld [vmem:[%s4929_s0 + $0x70] ss:$28 sps:$4 sm:$0xff]   ;;  %v3619_v50 = vld [vmem:[%s4929_s0 + $0x80] ss:$28 sps:$4 sm:$0xff]   ;;  %v3624_v56 = vld [vmem:[%s4929_s0 + $0xa8] ss:$28 sps:$4 sm:$0xff]  }
  0x12   :  { %1567 = vmatpush1.bf16.msra.mxu1 %v3575_v9  ;;  %v3622_v52 = vld [vmem:[%s4929_s0 + $0xbc] ss:$28 sps:$4 sm:$0xff]   ;;  %v3646_v53 = vld [vmem:[%s4928_s1 + $0xa0] sm:$0xff]   ;;  %v3691_v54 = vld [vmem:[%s4928_s1 + $0x188] sm:$0xff]  }
  0x13   :  { %2031 = vmatpush1.bf16.msra.mxu0 %v3576_v10  ;;  %1568 = vmatprep.subr.bf16.mxu1 %v3864_v0  ;;  %v3658_v55 = vld [vmem:[%s4928_s1 + $0xa8] sm:$0xff]   ;;  %v3625_v57 = vld [vmem:[%s4929_s0 + $0xb8] ss:$28 sps:$4 sm:$0xff]   ;;  %v3627_v58 = vld [vmem:[%s4929_s0 + $0xe4] ss:$28 sps:$4 sm:$0xff]  }
  0x14   :  { %2032 = vmatprep.subr.bf16.mxu0 %v3864_v0  ;;  %v3629_v59 = vld [vmem:[%s4929_s0 + $0xf4] ss:$28 sps:$4 sm:$0xff]   ;;  %v3679_v61 = vld [vmem:[%s4928_s1 + $0xb8] sm:$0xff]   ;;  %v3636_v2 = vld [vmem:[%s4929_s0 + $0x12c] ss:$28 sps:$4 sm:$0xff]  }
  0x15   :  { %v3666_v60 = vld [vmem:[%s4928_s1 + $0xb0] sm:$0xff]   ;;  %v3631_v62 = vld [vmem:[%s4929_s0 + $0xe0] ss:$28 sps:$4 sm:$0xff]   ;;  %v3700_v4 = vld [vmem:[%s4928_s1 + $0xc8] sm:$0xff]  }
  0x16   :  { %1569 = vmatpush1.bf16.msra.mxu1 %v3577_v11  ;;  %v3632_v63 = vld [vmem:[%s4929_s0 + $0xf0] ss:$28 sps:$4 sm:$0xff]   ;;  %v3633_v1 = vld [vmem:[%s4929_s0 + $0x11c] ss:$28 sps:$4 sm:$0xff]   ;;  %v3686_v3 = vld [vmem:[%s4928_s1 + $0xc0] sm:$0xff]  }
  0x17   :  { %2033 = vmatpush1.bf16.msra.mxu0 %v3578_v12  ;;  %1570 = vmatprep.subr.bf16.mxu1 %v3864_v0  ;;  %v3638_v5 = vld [vmem:[%s4929_s0 + $0x118] ss:$28 sps:$4 sm:$0xff]   ;;  %v3639_v6 = vld [vmem:[%s4929_s0 + $0x128] ss:$28 sps:$4 sm:$0xff]   ;;  %v3644_v10 = vld [vmem:[%s4929_s0 + $0x150] ss:$28 sps:$4 sm:$0xff]  }
  0x18   :  { %2034 = vmatprep.subr.bf16.mxu0 %v3864_v0  ;;  %v3640_v7 = vld [vmem:[%s4929_s0 + $0x154] ss:$28 sps:$4 sm:$0xff]   ;;  %v3642_v8 = vld [vmem:[%s4929_s0 + $0x164] ss:$28 sps:$4 sm:$0xff]   ;;  %v3720_v11 = vld [vmem:[%s4928_s1 + $0xd8] sm:$0xff]  }
  0x19   :  { %v3707_v9 = vld [vmem:[%s4928_s1 + $0xd0] sm:$0xff]   ;;  %v3645_v12 = vld [vmem:[%s4929_s0 + $0x160] ss:$28 sps:$4 sm:$0xff]  }
  0x1a   :  { %1571 = vmatpush1.bf16.msra.mxu1 %v3579_v13  ;;  %v3647_v13 = vld [vmem:[%s4929_s0 + $0x18c] ss:$28 sps:$4 sm:$0xff]   ;;  %v3653_v19 = vld [vmem:[%s4929_s0 + $0x1c4] ss:$28 sps:$4 sm:$0xff]   ;;  %v3752_v21 = vld [vmem:[%s4928_s1 + $0xf0] sm:$0xff]  }
  0x1b   :  { %2035 = vmatpush1.bf16.msra.mxu0 %v3580_v14  ;;  %1572 = vmatprep.subr.bf16.mxu1 %v3864_v0  ;;  %v3649_v14 = vld [vmem:[%s4929_s0 + $0x19c] ss:$28 sps:$4 sm:$0xff]  }
  0x1c   :  { %2036 = vmatprep.subr.bf16.mxu0 %v3864_v0 }
  0x1e   :  { %1573 = vmatpush1.bf16.msra.mxu1 %v3581_v15  ;;  %v3729_v15 = vld [vmem:[%s4928_s1 + $0xe0] sm:$0xff]  }
  0x1f   :  { %2037 = vmatpush1.bf16.msra.mxu0 %v3582_v16  ;;  %1574 = vmatprep.subr.bf16.mxu1 %v3864_v0  ;;  %v3651_v16 = vld [vmem:[%s4929_s0 + $0x188] ss:$28 sps:$4 sm:$0xff]  }
  0x20   :  { %2038 = vmatprep.subr.bf16.mxu0 %v3864_v0 }
  0x22   :  { %1575 = vmatpush1.bf16.msra.mxu1 %v3583_v17  ;;  %v3740_v17 = vld [vmem:[%s4928_s1 + $0xe8] sm:$0xff]  }
  0x23   :  { %2039 = vmatpush1.bf16.msra.mxu0 %v3584_v18  ;;  %1576 = vmatprep.subr.bf16.mxu1 %v3864_v0  ;;  %v3652_v18 = vld [vmem:[%s4929_s0 + $0x198] ss:$28 sps:$4 sm:$0xff]  }
  0x24   :  { %2040 = vmatprep.subr.bf16.mxu0 %v3864_v0 }
  0x26   :  { %1577 = vmatpush1.bf16.msra.mxu1 %v3585_v20  ;;  %v3655_v20 = vld [vmem:[%s4929_s0 + $0x1d4] ss:$28 sps:$4 sm:$0xff]  }
  0x27   :  { %2041 = vmatpush1.bf16.msra.mxu0 %v3586_v22  ;;  %1578 = vmatprep.subr.bf16.mxu1 %v3864_v0  ;;  %v3760_v22 = vld [vmem:[%s4928_s1 + $0xf8] sm:$0xff]  }
  0x28   :  { %2042 = vmatprep.subr.bf16.mxu0 %v3864_v0 }
  0x2a   :  { %1579 = vmatpush1.bf16.msra.mxu1 %v3587_v23  ;;  %v3657_v23 = vld [vmem:[%s4929_s0 + $0x1c0] ss:$28 sps:$4 sm:$0xff]  }
  0x2b   :  { %2043 = vmatpush1.bf16.msra.mxu0 %v3588_v24  ;;  %1580 = vmatprep.subr.bf16.mxu1 %v3864_v0  ;;  %v3659_v24 = vld [vmem:[%s4929_s0 + $0x1d0] ss:$28 sps:$4 sm:$0xff]  }
  0x2c   :  { %2044 = vmatprep.subr.bf16.mxu0 %v3864_v0 }
  0x2e   :  { %1581 = vmatpush1.bf16.msra.mxu1 %v3589_v25  ;;  %v3660_v25 = vld [vmem:[%s4929_s0 + $0x1fc] ss:$28 sps:$4 sm:$0xff]  }
  0x2f   :  { %2045 = vmatpush1.bf16.msra.mxu0 %v3590_v26  ;;  %1582 = vmatprep.subr.bf16.mxu1 %v3864_v0  ;;  %v3662_v26 = vld [vmem:[%s4929_s0 + $0x20c] ss:$28 sps:$4 sm:$0xff]  }
  0x30   :  { %2046 = vmatprep.subr.bf16.mxu0 %v3864_v0 }
  0x32   :  { %1583 = vmatpush1.bf16.msra.mxu1 %v3591_v27  ;;  %v3664_v27 = vld [vmem:[%s4929_s0 + $0x1f8] ss:$28 sps:$4 sm:$0xff]  }
  0x33   :  { %2047 = vmatpush1.bf16.msra.mxu0 %v3592_v28  ;;  %1584 = vmatprep.subr.bf16.mxu1 %v3864_v0  ;;  %v3665_v28 = vld [vmem:[%s4929_s0 + $0x208] ss:$28 sps:$4 sm:$0xff]  }
  0x34   :  { %2048 = vmatprep.subr.bf16.mxu0 %v3864_v0 }
  0x36   :  { %1585 = vmatpush1.bf16.msra.mxu1 %v3593_v29  ;;  %v3669_v29 = vld [vmem:[%s4929_s0 + $0x244] ss:$28 sps:$4 sm:$0xff]  }
  0x37   :  { %2049 = vmatpush1.bf16.msra.mxu0 %v3594_v30  ;;  %1586 = vmatprep.subr.bf16.mxu1 %v3864_v0  ;;  %v3671_v30 = vld [vmem:[%s4929_s0 + $0x230] ss:$28 sps:$4 sm:$0xff]  }
  0x38   :  { %2050 = vmatprep.subr.bf16.mxu0 %v3864_v0 }
  0x3a   :  { %1587 = vmatpush1.bf16.msra.mxu1 %v3595_v31  ;;  %v3672_v31 = vld [vmem:[%s4929_s0 + $0x240] ss:$28 sps:$4 sm:$0xff]  }
  0x3b   :  { %2051 = vmatpush1.bf16.msra.mxu0 %v3596_v32  ;;  %1588 = vmatprep.subr.bf16.mxu1 %v3864_v0  ;;  %v3673_v32 = vld [vmem:[%s4929_s0 + $0x26c] ss:$28 sps:$4 sm:$0xff]  }
  0x3c   :  { %2052 = vmatprep.subr.bf16.mxu0 %v3864_v0 }
  0x3e   :  { %1589 = vmatpush1.bf16.msra.mxu1 %v3597_v33  ;;  %v3675_v33 = vld [vmem:[%s4929_s0 + $0x27c] ss:$28 sps:$4 sm:$0xff]  }
  0x3f   :  { %2053 = vmatpush1.bf16.msra.mxu0 %v3598_v34  ;;  %1790 = vmatprep.subr.bf16.mxu1 %v3864_v0  ;;  %v3677_v34 = vld [vmem:[%s4929_s0 + $0x268] ss:$28 sps:$4 sm:$0xff]  }
  0x40   :  { %3162 = vmatprep.subr.bf16.mxu0 %v3865_v40 }
  0x41   :  { %1591 = vmatmul.mubr.bf16.vlgmr.msra.gmra.mrb[0].mxu1 %v3599_v35  ;;  %v3678_v35 = vld [vmem:[%s4929_s0 + $0x278] ss:$28 sps:$4 sm:$0xff]  }
  0x42   :  { %2055 = vmatmul.mubr.bf16.vlgmr.msra.gmra.mrb[0].mxu0 %v3602_v36  ;;  %1791 = vmatpush1.bf16.msra.mxu1 %v3605_v37  ;;  %v3680_v36 = vld [vmem:[%s4929_s0 + $0x2a4] ss:$28 sps:$4 sm:$0xff]   ;;  %v3682_v37 = vld [vmem:[%s4929_s0 + $0x2b4] ss:$28 sps:$4 sm:$0xff]  }
  0x43   :  { %3163 = vmatpush3.bf16.msra.mxu0 %v3606_v38  ;;  %1598 = vmatprep.mubr.bf16.mxu1 %v3607_v39  ;;  %v3684_v38 = vld [vmem:[%s4929_s0 + $0x2a0] ss:$28 sps:$4 sm:$0xff]   ;;  %v3685_v39 = vld [vmem:[%s4929_s0 + $0x2b0] ss:$28 sps:$4 sm:$0xff]  }
  0x44   :  { %2062 = vmatprep.mubr.bf16.mxu0 %v3609_v41  ;;  %1792 = vmatprep.subr.bf16.mxu1 %v3864_v0  ;;  %v3687_v41 = vld [vmem:[%s4929_s0 + $0x2dc] ss:$28 sps:$4 sm:$0xff]  }
  0x45   :  { %3164 = vmatprep.subr.bf16.mxu0 %v3865_v40 }
  0x46   :  { %1793 = vmatpush1.bf16.msra.mxu1 %v3613_v42  ;;  %v3689_v42 = vld [vmem:[%s4929_s0 + $0x2ec] ss:$28 sps:$4 sm:$0xff]  }
  0x47   :  { %1794 = vmatprep.subr.bf16.mxu1 %v3864_v0  ;;  %3165 = vmatpush3.bf16.msra.mxu0 %v3691_v54  ;;  %v3710_v54 = vld [vmem:[%s4929_s0 + $0x394] ss:$28 sps:$4 sm:$0xff]  }
  0x49   :  { %1599 = vmatmul.mubr.bf16.gmra.mrb[4].mxu1 %v3611_v43  ;;  %v3692_v43 = vld [vmem:[%s4929_s0 + $0x2d8] ss:$28 sps:$4 sm:$0xff]  }
  0x4a   :  { %2063 = vmatmul.mubr.bf16.gmra.mrb[4].mxu0 %v3612_v44  ;;  %1606 = vmatprep.mubr.bf16.mxu1 %v3614_v45  ;;  %v3693_v44 = vld [vmem:[%s4929_s0 + $0x2e8] ss:$28 sps:$4 sm:$0xff]   ;;  %v3694_v45 = vld [vmem:[%s4929_s0 + $0x314] ss:$28 sps:$4 sm:$0xff]  }
  0x4b   :  { %2070 = vmatprep.mubr.bf16.mxu0 %v3616_v46  ;;  %1795 = vmatpush1.bf16.msra.mxu1 %v3626_v47  ;;  %v3696_v46 = vld [vmem:[%s4929_s0 + $0x324] ss:$28 sps:$4 sm:$0xff]   ;;  %v3698_v47 = vld [vmem:[%s4929_s0 + $0x310] ss:$28 sps:$4 sm:$0xff]  }
  0x4c   :  { %1796 = vmatprep.subr.bf16.mxu1 %v3864_v0 }
  0x4f   :  { %1797 = vmatpush1.bf16.msra.mxu1 %v3635_v49  ;;  %v3701_v49 = vld [vmem:[%s4929_s0 + $0x34c] ss:$28 sps:$4 sm:$0xff]  }
  0x50   :  { %1798 = vmatprep.subr.bf16.mxu1 %v3864_v0 }
  0x51   :  { %1607 = vmatmul.mubr.bf16.gmra.mrb[8].mxu1 %v3618_v48  ;;  %v3699_v48 = vld [vmem:[%s4929_s0 + $0x320] ss:$28 sps:$4 sm:$0xff]  }
  0x52   :  { %2071 = vmatmul.mubr.bf16.gmra.mrb[8].mxu0 %v3619_v50  ;;  %1614 = vmatprep.mubr.bf16.mxu1 %v3620_v51  ;;  %v3703_v50 = vld [vmem:[%s4929_s0 + $0x35c] ss:$28 sps:$4 sm:$0xff]   ;;  %v3705_v51 = vld [vmem:[%s4929_s0 + $0x348] ss:$28 sps:$4 sm:$0xff]  }
  0x53   :  { %2078 = vmatprep.mubr.bf16.mxu0 %v3622_v52  ;;  %1799 = vmatpush1.bf16.msra.mxu1 %v3646_v53  ;;  %v3706_v52 = vld [vmem:[%s4929_s0 + $0x358] ss:$28 sps:$4 sm:$0xff]   ;;  %v3708_v53 = vld [vmem:[%s4929_s0 + $0x384] ss:$28 sps:$4 sm:$0xff]  }
  0x54   :  { %1800 = vmatprep.subr.bf16.mxu1 %v3864_v0 }
  0x57   :  { %1801 = vmatpush1.bf16.msra.mxu1 %v3658_v55  ;;  %v3712_v55 = vld [vmem:[%s4929_s0 + $0x380] ss:$28 sps:$4 sm:$0xff]  }
  0x58   :  { %1802 = vmatprep.subr.bf16.mxu1 %v3864_v0 }
  0x59   :  { %1615 = vmatmul.mubr.bf16.gmra.mrb[12].mxu1 %v3624_v56  ;;  %v3713_v56 = vld [vmem:[%s4929_s0 + $0x390] ss:$28 sps:$4 sm:$0xff]  }
  0x5a   :  { %2079 = vmatmul.mubr.bf16.gmra.mrb[12].mxu0 %v3625_v57  ;;  %1622 = vmatprep.mubr.bf16.mxu1 %v3627_v58  ;;  %v3714_v57 = vld [vmem:[%s4929_s0 + $0x3bc] ss:$28 sps:$4 sm:$0xff]   ;;  %v3716_v58 = vld [vmem:[%s4929_s0 + $0x3cc] ss:$28 sps:$4 sm:$0xff]  }
  0x5b   :  { %2086 = vmatprep.mubr.bf16.mxu0 %v3629_v59  ;;  %1803 = vmatpush1.bf16.msra.mxu1 %v3666_v60  ;;  %v3718_v59 = vld [vmem:[%s4929_s0 + $0x3b8] ss:$28 sps:$4 sm:$0xff]   ;;  %v3719_v60 = vld [vmem:[%s4929_s0 + $0x3c8] ss:$28 sps:$4 sm:$0xff]  }
  0x5c   :  { %1804 = vmatprep.subr.bf16.mxu1 %v3864_v0 }
  0x5f   :  { %1805 = vmatpush1.bf16.msra.mxu1 %v3679_v61  ;;  %v3721_v61 = vld [vmem:[%s4929_s0 + $0x3f4] ss:$28 sps:$4 sm:$0xff]  }
  0x60   :  { %1806 = vmatprep.subr.bf16.mxu1 %v3864_v0 }
  0x61   :  { %1623 = vmatmul.mubr.bf16.gmra.mrb[16].mxu1 %v3631_v62  ;;  %v3723_v62 = vld [vmem:[%s4929_s0 + $0x404] ss:$28 sps:$4 sm:$0xff]  }
  0x62   :  { %2087 = vmatmul.mubr.bf16.gmra.mrb[16].mxu0 %v3632_v63  ;;  %1630 = vmatprep.mubr.bf16.mxu1 %v3633_v1  ;;  %v3725_v63 = vld [vmem:[%s4929_s0 + $0x3f0] ss:$28 sps:$4 sm:$0xff]   ;;  %v3726_v1 = vld [vmem:[%s4929_s0 + $0x400] ss:$28 sps:$4 sm:$0xff]  }
  0x63   :  { %2094 = vmatprep.mubr.bf16.mxu0 %v3636_v2  ;;  %1807 = vmatpush1.bf16.msra.mxu1 %v3686_v3  ;;  %v3727_v2 = vld [vmem:[%s4929_s0 + $0x42c] ss:$28 sps:$4 sm:$0xff]   ;;  %v3730_v3 = vld [vmem:[%s4929_s0 + $0x43c] ss:$28 sps:$4 sm:$0xff]  }
  0x64   :  { %1808 = vmatprep.subr.bf16.mxu1 %v3864_v0 }
  0x67   :  { %1809 = vmatpush1.bf16.msra.mxu1 %v3700_v4  ;;  %v3732_v4 = vld [vmem:[%s4929_s0 + $0x428] ss:$28 sps:$4 sm:$0xff]  }
  0x68   :  { %1810 = vmatprep.subr.bf16.mxu1 %v3864_v0 }
  0x69   :  { %1631 = vmatmul.mubr.bf16.gmra.mrb[20].mxu1 %v3638_v5  ;;  %v3733_v5 = vld [vmem:[%s4929_s0 + $0x438] ss:$28 sps:$4 sm:$0xff]  }
  0x6a   :  { %2095 = vmatmul.mubr.bf16.gmra.mrb[20].mxu0 %v3639_v6  ;;  %1638 = vmatprep.mubr.bf16.mxu1 %v3640_v7  ;;  %v3734_v6 = vld [vmem:[%s4929_s0 + $0x464] ss:$28 sps:$4 sm:$0xff]   ;;  %v3736_v7 = vld [vmem:[%s4929_s0 + $0x474] ss:$28 sps:$4 sm:$0xff]  }
  0x6b   :  { %2102 = vmatprep.mubr.bf16.mxu0 %v3642_v8  ;;  %1811 = vmatpush1.bf16.msra.mxu1 %v3707_v9  ;;  %v3738_v8 = vld [vmem:[%s4929_s0 + $0x460] ss:$28 sps:$4 sm:$0xff]   ;;  %v3739_v9 = vld [vmem:[%s4929_s0 + $0x470] ss:$28 sps:$4 sm:$0xff]  }
  0x6c   :  { %1812 = vmatprep.subr.bf16.mxu1 %v3864_v0 }
  0x6f   :  { %1813 = vmatpush1.bf16.msra.mxu1 %v3720_v11  ;;  %v3743_v11 = vld [vmem:[%s4929_s0 + $0x4ac] ss:$28 sps:$4 sm:$0xff]  }
  0x70   :  { %1814 = vmatprep.subr.bf16.mxu1 %v3864_v0 }
  0x71   :  { %1639 = vmatmul.mubr.bf16.gmra.mrb[24].mxu1 %v3644_v10  ;;  %v3741_v10 = vld [vmem:[%s4929_s0 + $0x49c] ss:$28 sps:$4 sm:$0xff]  }
  0x72   :  { %2103 = vmatmul.mubr.bf16.gmra.mrb[24].mxu0 %v3645_v12  ;;  %1646 = vmatprep.mubr.bf16.mxu1 %v3647_v13  ;;  %v3745_v12 = vld [vmem:[%s4929_s0 + $0x498] ss:$28 sps:$4 sm:$0xff]   ;;  %v3746_v13 = vld [vmem:[%s4929_s0 + $0x4a8] ss:$28 sps:$4 sm:$0xff]  }
  0x73   :  { %2110 = vmatprep.mubr.bf16.mxu0 %v3649_v14  ;;  %1815 = vmatpush1.bf16.msra.mxu1 %v3729_v15  ;;  %v3747_v14 = vld [vmem:[%s4929_s0 + $0x4d4] ss:$28 sps:$4 sm:$0xff]   ;;  %v3749_v15 = vld [vmem:[%s4929_s0 + $0x4e4] ss:$28 sps:$4 sm:$0xff]  }
  0x74   :  { %1816 = vmatprep.subr.bf16.mxu1 %v3864_v0 }
  0x77   :  { %1817 = vmatpush1.bf16.msra.mxu1 %v3740_v17  ;;  %v3753_v17 = vld [vmem:[%s4929_s0 + $0x4e0] ss:$28 sps:$4 sm:$0xff]  }
  0x78   :  { %1818 = vmatprep.subr.bf16.mxu1 %v3864_v0 }
  0x79   :  { %1647 = vmatmul.mubr.bf16.gmra.mrb[28].mxu1 %v3651_v16  ;;  %v3751_v16 = vld [vmem:[%s4929_s0 + $0x4d0] ss:$28 sps:$4 sm:$0xff]  }
  0x7a   :  { %2111 = vmatmul.mubr.bf16.gmra.mrb[28].mxu0 %v3652_v18  ;;  %1654 = vmatprep.mubr.bf16.mxu1 %v3653_v19  ;;  %v3754_v18 = vld [vmem:[%s4929_s0 + $0x50c] ss:$28 sps:$4 sm:$0xff]   ;;  %v3756_v19 = vld [vmem:[%s4929_s0 + $0x51c] ss:$28 sps:$4 sm:$0xff]  }
  0x7b   :  { %2118 = vmatprep.mubr.bf16.mxu0 %v3655_v20  ;;  %1819 = vmatpush1.bf16.msra.mxu1 %v3752_v21  ;;  %v207_v20 = vld [vmem:[%s4929_s0 + $0x540] sm:$0xff]  ;;  %v209_v21 = vld [vmem:[%s4929_s0 + $0x550] sm:$0xff] }
  0x7c   :  { %1820 = vmatprep.subr.bf16.mxu1 %v3864_v0  ;;  %v3667_v0 = vld [vmem:[%s4929_s0 + $0x234] ss:$28 sps:$4 sm:$0xff]  }
  0x7f   :  { %1821 = vmatpush1.bf16.msra.mxu1 %v3760_v22  ;;  %v3758_v22 = vld [vmem:[%s4929_s0 + $0x508] ss:$28 sps:$4 sm:$0xff]  }
  0x81   :  { %1655 = vmatmul.mubr.bf16.gmra.mrb[32].mxu1 %v3657_v23  ;;  %v3759_v23 = vld [vmem:[%s4929_s0 + $0x518] ss:$28 sps:$4 sm:$0xff]  }
  0x82   :  { %2119 = vmatmul.mubr.bf16.gmra.mrb[32].mxu0 %v3659_v24  ;;  %1662 = vmatprep.mubr.bf16.mxu1 %v3660_v25  ;;  %v2956_v24 = vcombine.high %v207_v20, %v207_v20  ;;  %v2960_v25 = vcombine.high %v209_v21, %v209_v21 }
  0x83   :  { %2126 = vmatprep.mubr.bf16.mxu0 %v3662_v26  ;;  %v2955_v26 = vcombine.low %v207_v20, %v207_v20  ;;  %v3839_v20 = vld [vmem:[%s4929_s0 + $0x3f8] ss:$28 sps:$4 sm:$0xff]  }
  0x89   :  { %1663 = vmatmul.mubr.bf16.gmra.mrb[36].mxu1 %v3664_v27  ;;  %v2959_v27 = vcombine.low %v209_v21, %v209_v21  ;;  %v3840_v21 = vld [vmem:[%s4929_s0 + $0x408] ss:$28 sps:$4 sm:$0xff]  }
  0x8a   :  { %2127 = vmatmul.mubr.bf16.gmra.mrb[36].mxu0 %v3665_v28  ;;  %1670 = vmatprep.mubr.bf16.mxu1 %v3667_v0  ;;  %v3767_v28 = vld [vmem:[%s4929_s0 + $0xc] ss:$28 sps:$4 sm:$0xff]  }
  0x8b   :  { %2134 = vmatprep.mubr.bf16.mxu0 %v3669_v29  ;;  %v3765_v0 = vld [vmem:[%s4929_s0 + $0x8] ss:$28 sps:$4 sm:$0xff]   ;;  %v3768_v29 = vld [vmem:[%s4929_s0 + $0x18] ss:$28 sps:$4 sm:$0xff]  }
  0x91   :  { %1671 = vmatmul.mubr.bf16.gmra.mrb[40].mxu1 %v3671_v30  ;;  %v3769_v30 = vld [vmem:[%s4929_s0 + $0x44] ss:$28 sps:$4 sm:$0xff]  }
  0x92   :  { %2135 = vmatmul.mubr.bf16.gmra.mrb[40].mxu0 %v3672_v31  ;;  %1678 = vmatprep.mubr.bf16.mxu1 %v3673_v32  ;;  %v3771_v31 = vld [vmem:[%s4929_s0 + $0x40] ss:$28 sps:$4 sm:$0xff]   ;;  %v3772_v32 = vld [vmem:[%s4929_s0 + $0x50] ss:$28 sps:$4 sm:$0xff]  }
  0x93   :  { %2142 = vmatprep.mubr.bf16.mxu0 %v3675_v33  ;;  %v3773_v33 = vld [vmem:[%s4929_s0 + $0x7c] ss:$28 sps:$4 sm:$0xff]  }
  0x99   :  { %1679 = vmatmul.mubr.bf16.gmra.mrb[44].mxu1 %v3677_v34  ;;  %v3775_v34 = vld [vmem:[%s4929_s0 + $0x78] ss:$28 sps:$4 sm:$0xff]  }
  0x9a   :  { %2143 = vmatmul.mubr.bf16.gmra.mrb[44].mxu0 %v3678_v35  ;;  %1686 = vmatprep.mubr.bf16.mxu1 %v3680_v36  ;;  %v3776_v35 = vld [vmem:[%s4929_s0 + $0x88] ss:$28 sps:$4 sm:$0xff]   ;;  %v3777_v36 = vld [vmem:[%s4929_s0 + $0xb4] ss:$28 sps:$4 sm:$0xff]  }
  0x9b   :  { %2150 = vmatprep.mubr.bf16.mxu0 %v3682_v37  ;;  %v3779_v37 = vld [vmem:[%s4929_s0 + $0xb0] ss:$28 sps:$4 sm:$0xff]  }
  0xa1   :  { %1687 = vmatmul.mubr.bf16.gmra.mrb[48].mxu1 %v3684_v38  ;;  %v3780_v38 = vld [vmem:[%s4929_s0 + $0xc0] ss:$28 sps:$4 sm:$0xff]  }
  0xa2   :  { %2151 = vmatmul.mubr.bf16.gmra.mrb[48].mxu0 %v3685_v39  ;;  %1694 = vmatprep.mubr.bf16.mxu1 %v3687_v41  ;;  %v3781_v39 = vld [vmem:[%s4929_s0 + $0xec] ss:$28 sps:$4 sm:$0xff]  }
  0xa3   :  { %2158 = vmatprep.mubr.bf16.mxu0 %v3689_v42  ;;  %v3783_v41 = vld [vmem:[%s4929_s0 + $0xe8] ss:$28 sps:$4 sm:$0xff]   ;;  %v3784_v42 = vld [vmem:[%s4929_s0 + $0xf8] ss:$28 sps:$4 sm:$0xff]  }
  0xa9   :  { %1695 = vmatmul.mubr.bf16.gmra.mrb[52].mxu1 %v3692_v43  ;;  %v3785_v43 = vld [vmem:[%s4929_s0 + $0x124] ss:$28 sps:$4 sm:$0xff]  }
  0xaa   :  { %2159 = vmatmul.mubr.bf16.gmra.mrb[52].mxu0 %v3693_v44  ;;  %1702 = vmatprep.mubr.bf16.mxu1 %v3694_v45  ;;  %v3787_v44 = vld [vmem:[%s4929_s0 + $0x120] ss:$28 sps:$4 sm:$0xff]   ;;  %v3788_v45 = vld [vmem:[%s4929_s0 + $0x130] ss:$28 sps:$4 sm:$0xff]  }
  0xab   :  { %2166 = vmatprep.mubr.bf16.mxu0 %v3696_v46  ;;  %v3789_v46 = vld [vmem:[%s4929_s0 + $0x15c] ss:$28 sps:$4 sm:$0xff]  }
  0xb1   :  { %1703 = vmatmul.mubr.bf16.gmra.mrb[56].mxu1 %v3698_v47  ;;  %v3791_v47 = vld [vmem:[%s4929_s0 + $0x158] ss:$28 sps:$4 sm:$0xff]  }
  0xb2   :  { %2167 = vmatmul.mubr.bf16.gmra.mrb[56].mxu0 %v3699_v48  ;;  %1710 = vmatprep.mubr.bf16.mxu1 %v3701_v49  ;;  %v3792_v48 = vld [vmem:[%s4929_s0 + $0x168] ss:$28 sps:$4 sm:$0xff]   ;;  %v3793_v49 = vld [vmem:[%s4929_s0 + $0x194] ss:$28 sps:$4 sm:$0xff]  }
  0xb3   :  { %2174 = vmatprep.mubr.bf16.mxu0 %v3703_v50  ;;  %v3795_v50 = vld [vmem:[%s4929_s0 + $0x190] ss:$28 sps:$4 sm:$0xff]  }
  0xb9   :  { %1711 = vmatmul.mubr.bf16.gmra.mrb[60].mxu1 %v3705_v51  ;;  %v3796_v51 = vld [vmem:[%s4929_s0 + $0x1a0] ss:$28 sps:$4 sm:$0xff]  }
  0xba   :  { %2175 = vmatmul.mubr.bf16.gmra.mrb[60].mxu0 %v3706_v52  ;;  %1718 = vmatprep.mubr.bf16.mxu1 %v3708_v53  ;;  %v3797_v52 = vld [vmem:[%s4929_s0 + $0x1cc] ss:$28 sps:$4 sm:$0xff]  }
  0xbb   :  { %2182 = vmatprep.mubr.bf16.mxu0 %v3710_v54  ;;  %v3799_v53 = vld [vmem:[%s4929_s0 + $0x1c8] ss:$28 sps:$4 sm:$0xff]   ;;  %v3800_v54 = vld [vmem:[%s4929_s0 + $0x1d8] ss:$28 sps:$4 sm:$0xff]  }
  0xc1   :  { %1719 = vmatmul.mubr.bf16.gmra.mrb[64].mxu1 %v3712_v55  ;;  %v3801_v55 = vld [vmem:[%s4929_s0 + $0x204] ss:$28 sps:$4 sm:$0xff]  }
  0xc2   :  { %2183 = vmatmul.mubr.bf16.gmra.mrb[64].mxu0 %v3713_v56  ;;  %1726 = vmatprep.mubr.bf16.mxu1 %v3714_v57  ;;  %v3803_v56 = vld [vmem:[%s4929_s0 + $0x200] ss:$28 sps:$4 sm:$0xff]   ;;  %v3804_v57 = vld [vmem:[%s4929_s0 + $0x210] ss:$28 sps:$4 sm:$0xff]  }
  0xc3   :  { %2190 = vmatprep.mubr.bf16.mxu0 %v3716_v58  ;;  %v3805_v58 = vld [vmem:[%s4929_s0 + $0x23c] ss:$28 sps:$4 sm:$0xff]  }
  0xc9   :  { %1727 = vmatmul.mubr.bf16.gmra.mrb[68].mxu1 %v3718_v59  ;;  %v3807_v59 = vld [vmem:[%s4929_s0 + $0x238] ss:$28 sps:$4 sm:$0xff]  }
  0xca   :  { %2191 = vmatmul.mubr.bf16.gmra.mrb[68].mxu0 %v3719_v60  ;;  %1734 = vmatprep.mubr.bf16.mxu1 %v3721_v61  ;;  %v3808_v60 = vld [vmem:[%s4929_s0 + $0x248] ss:$28 sps:$4 sm:$0xff]   ;;  %v3809_v61 = vld [vmem:[%s4929_s0 + $0x274] ss:$28 sps:$4 sm:$0xff]  }
  0xcb   :  { %2198 = vmatprep.mubr.bf16.mxu0 %v3723_v62  ;;  %v3811_v62 = vld [vmem:[%s4929_s0 + $0x270] ss:$28 sps:$4 sm:$0xff]  }
  0xd1   :  { %1735 = vmatmul.mubr.bf16.gmra.mrb[72].mxu1 %v3725_v63  ;;  %v3812_v63 = vld [vmem:[%s4929_s0 + $0x280] ss:$28 sps:$4 sm:$0xff]  }
  0xd2   :  { %2199 = vmatmul.mubr.bf16.gmra.mrb[72].mxu0 %v3726_v1  ;;  %1742 = vmatprep.mubr.bf16.mxu1 %v3727_v2  ;;  %v3813_v1 = vld [vmem:[%s4929_s0 + $0x2ac] ss:$28 sps:$4 sm:$0xff]  }
  0xd3   :  { %2206 = vmatprep.mubr.bf16.mxu0 %v3730_v3  ;;  %v3815_v2 = vld [vmem:[%s4929_s0 + $0x2a8] ss:$28 sps:$4 sm:$0xff]   ;;  %v3816_v3 = vld [vmem:[%s4929_s0 + $0x2b8] ss:$28 sps:$4 sm:$0xff]  }
  0xd9   :  { %1743 = vmatmul.mubr.bf16.gmra.mrb[76].mxu1 %v3732_v4  ;;  %v3817_v4 = vld [vmem:[%s4929_s0 + $0x2e4] ss:$28 sps:$4 sm:$0xff]  }
  0xda   :  { %2207 = vmatmul.mubr.bf16.gmra.mrb[76].mxu0 %v3733_v5  ;;  %1750 = vmatprep.mubr.bf16.mxu1 %v3734_v6  ;;  %v3819_v5 = vld [vmem:[%s4929_s0 + $0x2e0] ss:$28 sps:$4 sm:$0xff]   ;;  %v3820_v6 = vld [vmem:[%s4929_s0 + $0x2f0] ss:$28 sps:$4 sm:$0xff]  }
  0xdb   :  { %2214 = vmatprep.mubr.bf16.mxu0 %v3736_v7  ;;  %v3821_v7 = vld [vmem:[%s4929_s0 + $0x31c] ss:$28 sps:$4 sm:$0xff]  }
  0xe1   :  { %1751 = vmatmul.mubr.bf16.gmra.mrb[80].mxu1 %v3738_v8  ;;  %v3823_v8 = vld [vmem:[%s4929_s0 + $0x318] ss:$28 sps:$4 sm:$0xff]  }
  0xe2   :  { %2215 = vmatmul.mubr.bf16.gmra.mrb[80].mxu0 %v3739_v9  ;;  %1758 = vmatprep.mubr.bf16.mxu1 %v3741_v10  ;;  %v3824_v9 = vld [vmem:[%s4929_s0 + $0x328] ss:$28 sps:$4 sm:$0xff]   ;;  %v3825_v10 = vld [vmem:[%s4929_s0 + $0x354] ss:$28 sps:$4 sm:$0xff]  }
  0xe3   :  { %2222 = vmatprep.mubr.bf16.mxu0 %v3743_v11  ;;  %v3827_v11 = vld [vmem:[%s4929_s0 + $0x350] ss:$28 sps:$4 sm:$0xff]  }
  0xe9   :  { %1759 = vmatmul.mubr.bf16.gmra.mrb[84].mxu1 %v3745_v12  ;;  %v3828_v12 = vld [vmem:[%s4929_s0 + $0x360] ss:$28 sps:$4 sm:$0xff]  }
  0xea   :  { %2223 = vmatmul.mubr.bf16.gmra.mrb[84].mxu0 %v3746_v13  ;;  %1766 = vmatprep.mubr.bf16.mxu1 %v3747_v14  ;;  %v3829_v13 = vld [vmem:[%s4929_s0 + $0x38c] ss:$28 sps:$4 sm:$0xff]  }
  0xeb   :  { %2230 = vmatprep.mubr.bf16.mxu0 %v3749_v15  ;;  %v3831_v14 = vld [vmem:[%s4929_s0 + $0x388] ss:$28 sps:$4 sm:$0xff]   ;;  %v3832_v15 = vld [vmem:[%s4929_s0 + $0x398] ss:$28 sps:$4 sm:$0xff]  }
  0xf1   :  { %1767 = vmatmul.mubr.bf16.gmra.mrb[88].mxu1 %v3751_v16  ;;  %v3833_v16 = vld [vmem:[%s4929_s0 + $0x3c4] ss:$28 sps:$4 sm:$0xff]  }
  0xf2   :  { %2231 = vmatmul.mubr.bf16.gmra.mrb[88].mxu0 %v3753_v17  ;;  %1774 = vmatprep.mubr.bf16.mxu1 %v3754_v18  ;;  %v3835_v17 = vld [vmem:[%s4929_s0 + $0x3c0] ss:$28 sps:$4 sm:$0xff]   ;;  %v3836_v18 = vld [vmem:[%s4929_s0 + $0x3d0] ss:$28 sps:$4 sm:$0xff]  }
  0xf3   :  { %2238 = vmatprep.mubr.bf16.mxu0 %v3756_v19  ;;  %v3837_v19 = vld [vmem:[%s4929_s0 + $0x3fc] ss:$28 sps:$4 sm:$0xff]  }
  0xf9   :  { %1775 = vmatmul.mubr.bf16.gmra.mrb[92].mxu1 %v3758_v22  ;;  %v3841_v22 = vld [vmem:[%s4929_s0 + $0x434] ss:$28 sps:$4 sm:$0xff]  }
  0xfa   :  { %2239 = vmatmul.mubr.bf16.gmra.mrb[92].mxu0 %v3759_v23  ;;  %1782 = vmatprep.mubr.bf16.mxu1 %v2956_v24  ;;  %v3843_v23 = vld [vmem:[%s4929_s0 + $0x430] ss:$28 sps:$4 sm:$0xff]   ;;  %v3844_v24 = vld [vmem:[%s4929_s0 + $0x440] ss:$28 sps:$4 sm:$0xff]  }
  0xfb   :  { %2246 = vmatprep.mubr.bf16.mxu0 %v2960_v25  ;;  %v3845_v25 = vld [vmem:[%s4929_s0 + $0x46c] ss:$28 sps:$4 sm:$0xff]  }
 0x101   :  { %1783 = vmatmul.mubr.bf16.gmra.mrb[96].mxu1 %v2955_v26  ;;  %v3847_v26 = vld [vmem:[%s4929_s0 + $0x468] ss:$28 sps:$4 sm:$0xff]  }
 0x102   :  { %2247 = vmatmul.mubr.bf16.gmra.mrb[96].mxu0 %v2959_v27  ;;  %1822 = vmatprep.mubr.bf16.mxu1 %v3767_v28  ;;  %v3848_v27 = vld [vmem:[%s4929_s0 + $0x478] ss:$28 sps:$4 sm:$0xff]   ;;  %v3849_v28 = vld [vmem:[%s4929_s0 + $0x4a4] ss:$28 sps:$4 sm:$0xff]  }
 0x103   :  { %3166 = vmatprep.mubr.msk.bf16.mxu0 %vm3866_vm0, %v3865_v40 }
 0x109   :  { %1823 = vmatmul.mubr.bf16.vlgmr.msra.gmra.mrb[0].mxu1 %v3765_v0  ;;  %v3851_v0 = vld [vmem:[%s4929_s0 + $0x4a0] ss:$28 sps:$4 sm:$0xff]  }
 0x10a   :  { %3167 = vmatmul.mubr.msk.bf16.vlgmr.msra.gmra.mrb[0].mxu0 %vm1482_vm1, %v3768_v29  ;;  %1830 = vmatprep.mubr.bf16.mxu1 %v3769_v30  ;;  %v3852_v29 = vld [vmem:[%s4929_s0 + $0x4b0] ss:$28 sps:$4 sm:$0xff]   ;;  %v3853_v30 = vld [vmem:[%s4929_s0 + $0x4dc] ss:$28 sps:$4 sm:$0xff]  }
 0x10b   :  { %3170 = vmatprep.mubr.msk.bf16.mxu0 %vm3866_vm0, %v3865_v40 }
 0x111   :  { %1831 = vmatmul.mubr.bf16.gmra.mrb[4].mxu1 %v3771_v31  ;;  %v3855_v31 = vld [vmem:[%s4929_s0 + $0x4d8] ss:$28 sps:$4 sm:$0xff]  }
 0x112   :  { %3171 = vmatmul.mubr.msk.bf16.gmra.mrb[4].mxu0 %vm1482_vm1, %v3772_v32  ;;  %1838 = vmatprep.mubr.bf16.mxu1 %v3773_v33  ;;  %v3856_v32 = vld [vmem:[%s4929_s0 + $0x4e8] ss:$28 sps:$4 sm:$0xff]   ;;  %v3857_v33 = vld [vmem:[%s4929_s0 + $0x514] ss:$28 sps:$4 sm:$0xff]  }
 0x113   :  { %3174 = vmatprep.mubr.msk.bf16.mxu0 %vm3866_vm0, %v3865_v40 }
 0x119   :  { %1839 = vmatmul.mubr.bf16.gmra.mrb[8].mxu1 %v3775_v34  ;;  %v208_v34 = vld [vmem:[%s4929_s0 + $0x548] sm:$0xff] }
 0x11a   :  { %3175 = vmatmul.mubr.msk.bf16.gmra.mrb[8].mxu0 %vm1482_vm1, %v3776_v35  ;;  %1846 = vmatprep.mubr.bf16.mxu1 %v3777_v36  ;;  %v3859_v35 = vld [vmem:[%s4929_s0 + $0x510] ss:$28 sps:$4 sm:$0xff]   ;;  %v3860_v36 = vld [vmem:[%s4929_s0 + $0x520] ss:$28 sps:$4 sm:$0xff]  }
 0x11b   :  { %3178 = vmatprep.mubr.msk.bf16.mxu0 %vm3866_vm0, %v3865_v40 }
 0x121   :  { %1847 = vmatmul.mubr.bf16.gmra.mrb[12].mxu1 %v3779_v37  ;;  %v2958_v37 = vcombine.high %v208_v34, %v208_v34 }
 0x122   :  { %3179 = vmatmul.mubr.msk.bf16.gmra.mrb[12].mxu0 %vm1482_vm1, %v3780_v38  ;;  %1854 = vmatprep.mubr.bf16.mxu1 %v3781_v39  ;;  %v2957_v38 = vcombine.low %v208_v34, %v208_v34  ;;  %v3863_v39 = vld [vmem:[%s4929_s0 + $0x558] ss:$0 sps:$4 sm:$0xff]  }
 0x123   :  { %3182 = vmatprep.mubr.msk.bf16.mxu0 %vm3866_vm0, %v3865_v40 }
 0x129   :  { %1855 = vmatmul.mubr.bf16.gmra.mrb[16].mxu1 %v3783_v41  ;;  %v4681_v41 = vld [vmem:[%s4930_s2] ss:$0 sm:$0xff] }
 0x12a   :  { %3183 = vmatmul.mubr.msk.bf16.gmra.mrb[16].mxu0 %vm1482_vm1, %v3784_v42  ;;  %1862 = vmatprep.mubr.bf16.mxu1 %v3785_v43 }
 0x12b   :  { %3186 = vmatprep.mubr.msk.bf16.mxu0 %vm3866_vm0, %v3865_v40 }
 0x131   :  { %1863 = vmatmul.mubr.bf16.gmra.mrb[20].mxu1 %v3787_v44 }
 0x132   :  { %3187 = vmatmul.mubr.msk.bf16.gmra.mrb[20].mxu0 %vm1482_vm1, %v3788_v45  ;;  %1870 = vmatprep.mubr.bf16.mxu1 %v3789_v46 }
 0x133   :  { %3190 = vmatprep.mubr.msk.bf16.mxu0 %vm3866_vm0, %v3865_v40 }
 0x139   :  { %1871 = vmatmul.mubr.bf16.gmra.mrb[24].mxu1 %v3791_v47 }
 0x13a   :  { %3191 = vmatmul.mubr.msk.bf16.gmra.mrb[24].mxu0 %vm1482_vm1, %v3792_v48  ;;  %1878 = vmatprep.mubr.bf16.mxu1 %v3793_v49 }
 0x13b   :  { %3194 = vmatprep.mubr.msk.bf16.mxu0 %vm3866_vm0, %v3865_v40 }
 0x141   :  { %1879 = vmatmul.mubr.bf16.gmra.mrb[28].mxu1 %v3795_v50 }
 0x142   :  { %3195 = vmatmul.mubr.msk.bf16.gmra.mrb[28].mxu0 %vm1482_vm1, %v3796_v51  ;;  %1886 = vmatprep.mubr.bf16.mxu1 %v3797_v52 }
 0x143   :  { %3198 = vmatprep.mubr.msk.bf16.mxu0 %vm3866_vm0, %v3865_v40 }
 0x149   :  { %1887 = vmatmul.mubr.bf16.gmra.mrb[32].mxu1 %v3799_v53 }
 0x14a   :  { %3199 = vmatmul.mubr.msk.bf16.gmra.mrb[32].mxu0 %vm1482_vm1, %v3800_v54  ;;  %1894 = vmatprep.mubr.bf16.mxu1 %v3801_v55 }
 0x14b   :  { %3202 = vmatprep.mubr.msk.bf16.mxu0 %vm3866_vm0, %v3865_v40 }
 0x151   :  { %1895 = vmatmul.mubr.bf16.gmra.mrb[36].mxu1 %v3803_v56 }
 0x152   :  { %3203 = vmatmul.mubr.msk.bf16.gmra.mrb[36].mxu0 %vm1482_vm1, %v3804_v57  ;;  %1902 = vmatprep.mubr.bf16.mxu1 %v3805_v58 }
 0x153   :  { %3206 = vmatprep.mubr.msk.bf16.mxu0 %vm3866_vm0, %v3865_v40 }
 0x159   :  { %1903 = vmatmul.mubr.bf16.gmra.mrb[40].mxu1 %v3807_v59 }
 0x15a   :  { %3207 = vmatmul.mubr.msk.bf16.gmra.mrb[40].mxu0 %vm1482_vm1, %v3808_v60  ;;  %1910 = vmatprep.mubr.bf16.mxu1 %v3809_v61 }
 0x15b   :  { %3210 = vmatprep.mubr.msk.bf16.mxu0 %vm3866_vm0, %v3865_v40 }
 0x161   :  { %1911 = vmatmul.mubr.bf16.gmra.mrb[44].mxu1 %v3811_v62 }
 0x162   :  { %3211 = vmatmul.mubr.msk.bf16.gmra.mrb[44].mxu0 %vm1482_vm1, %v3812_v63  ;;  %1918 = vmatprep.mubr.bf16.mxu1 %v3813_v1 }
 0x163   :  { %3214 = vmatprep.mubr.msk.bf16.mxu0 %vm3866_vm0, %v3865_v40 }
 0x169   :  { %1919 = vmatmul.mubr.bf16.gmra.mrb[48].mxu1 %v3815_v2 }
 0x16a   :  { %3215 = vmatmul.mubr.msk.bf16.gmra.mrb[48].mxu0 %vm1482_vm1, %v3816_v3  ;;  %1926 = vmatprep.mubr.bf16.mxu1 %v3817_v4 }
 0x16b   :  { %3218 = vmatprep.mubr.msk.bf16.mxu0 %vm3866_vm0, %v3865_v40 }
 0x171   :  { %1927 = vmatmul.mubr.bf16.gmra.mrb[52].mxu1 %v3819_v5 }
 0x172   :  { %3219 = vmatmul.mubr.msk.bf16.gmra.mrb[52].mxu0 %vm1482_vm1, %v3820_v6  ;;  %1934 = vmatprep.mubr.bf16.mxu1 %v3821_v7 }
 0x173   :  { %3222 = vmatprep.mubr.msk.bf16.mxu0 %vm3866_vm0, %v3865_v40 }
 0x179   :  { %1935 = vmatmul.mubr.bf16.gmra.mrb[56].mxu1 %v3823_v8 }
 0x17a   :  { %3223 = vmatmul.mubr.msk.bf16.gmra.mrb[56].mxu0 %vm1482_vm1, %v3824_v9  ;;  %1942 = vmatprep.mubr.bf16.mxu1 %v3825_v10 }
 0x17b   :  { %3226 = vmatprep.mubr.msk.bf16.mxu0 %vm3866_vm0, %v3865_v40 }
 0x181   :  { %1943 = vmatmul.mubr.bf16.gmra.mrb[60].mxu1 %v3827_v11 }
 0x182   :  { %3227 = vmatmul.mubr.msk.bf16.gmra.mrb[60].mxu0 %vm1482_vm1, %v3828_v12  ;;  %1950 = vmatprep.mubr.bf16.mxu1 %v3829_v13 }
 0x183   :  { %3230 = vmatprep.mubr.msk.bf16.mxu0 %vm3866_vm0, %v3865_v40 }
 0x189   :  { %1951 = vmatmul.mubr.bf16.gmra.mrb[64].mxu1 %v3831_v14 }
 0x18a   :  { %3231 = vmatmul.mubr.msk.bf16.gmra.mrb[64].mxu0 %vm1482_vm1, %v3832_v15  ;;  %1958 = vmatprep.mubr.bf16.mxu1 %v3833_v16 }
 0x18b   :  { %3234 = vmatprep.mubr.msk.bf16.mxu0 %vm3866_vm0, %v3865_v40 }
 0x191   :  { %1959 = vmatmul.mubr.bf16.gmra.mrb[68].mxu1 %v3835_v17 }
 0x192   :  { %3235 = vmatmul.mubr.msk.bf16.gmra.mrb[68].mxu0 %vm1482_vm1, %v3836_v18  ;;  %1966 = vmatprep.mubr.bf16.mxu1 %v3837_v19 }
 0x193   :  { %3238 = vmatprep.mubr.msk.bf16.mxu0 %vm3866_vm0, %v3865_v40 }
 0x199   :  { %1967 = vmatmul.mubr.bf16.gmra.mrb[72].mxu1 %v3839_v20 }
 0x19a   :  { %3239 = vmatmul.mubr.msk.bf16.gmra.mrb[72].mxu0 %vm1482_vm1, %v3840_v21  ;;  %1974 = vmatprep.mubr.bf16.mxu1 %v3841_v22 }
 0x19b   :  { %3242 = vmatprep.mubr.msk.bf16.mxu0 %vm3866_vm0, %v3865_v40 }
 0x1a1   :  { %1975 = vmatmul.mubr.bf16.gmra.mrb[76].mxu1 %v3843_v23 }
 0x1a2   :  { %3243 = vmatmul.mubr.msk.bf16.gmra.mrb[76].mxu0 %vm1482_vm1, %v3844_v24  ;;  %1982 = vmatprep.mubr.bf16.mxu1 %v3845_v25 }
 0x1a3   :  { %3246 = vmatprep.mubr.msk.bf16.mxu0 %vm3866_vm0, %v3865_v40 }
 0x1a9   :  { %1983 = vmatmul.mubr.bf16.gmra.mrb[80].mxu1 %v3847_v26 }
 0x1aa   :  { %3247 = vmatmul.mubr.msk.bf16.gmra.mrb[80].mxu0 %vm1482_vm1, %v3848_v27  ;;  %1990 = vmatprep.mubr.bf16.mxu1 %v3849_v28 }
 0x1ab   :  { %3250 = vmatprep.mubr.msk.bf16.mxu0 %vm3866_vm0, %v3865_v40 }
 0x1b1   :  { %1991 = vmatmul.mubr.bf16.gmra.mrb[84].mxu1 %v3851_v0 }
 0x1b2   :  { %3251 = vmatmul.mubr.msk.bf16.gmra.mrb[84].mxu0 %vm1482_vm1, %v3852_v29  ;;  %1998 = vmatprep.mubr.bf16.mxu1 %v3853_v30 }
 0x1b3   :  { %3254 = vmatprep.mubr.msk.bf16.mxu0 %vm3866_vm0, %v3865_v40 }
 0x1b9   :  { %1999 = vmatmul.mubr.bf16.gmra.mrb[88].mxu1 %v3855_v31 }
 0x1ba   :  { %3255 = vmatmul.mubr.msk.bf16.gmra.mrb[88].mxu0 %vm1482_vm1, %v3856_v32  ;;  %2006 = vmatprep.mubr.bf16.mxu1 %v3857_v33 }
 0x1bb   :  { %3258 = vmatprep.mubr.msk.bf16.mxu0 %vm3866_vm0, %v3865_v40 }
 0x1c1   :  { %2007 = vmatmul.mubr.bf16.gmra.mrb[92].mxu1 %v3859_v35 }
 0x1c2   :  { %3259 = vmatmul.mubr.msk.bf16.gmra.mrb[92].mxu0 %vm1482_vm1, %v3860_v36  ;;  %2014 = vmatprep.mubr.bf16.mxu1 %v2958_v37 }
 0x1c3   :  { %3262 = vmatprep.mubr.msk.bf16.mxu0 %vm3866_vm0, %v3865_v40 }
 0x1c9   :  { %2015 = vmatmul.mubr.bf16.gmra.mrb[96].mxu1 %v2957_v38 }
 0x1ca   :  { %3263 = vmatmul.mubr.msk.bf16.gmra.mrb[96].mxu0 %vm1482_vm1, %v3863_v39 }
 0x1dc   :  { %v1824_v42 = vpop.f32.mrb[0].mxu1 }
 0x1dd   :  { %v3266_v43 = vadd.f32 %v4681_v41, %v1824_v42  ;;  %v2288_v44 = vpop.f32.mrb[0].mxu0  ;;  %v1826_v45 = vpop.f32.mrb[1].mxu1 }
 0x1de   :  { %v3168_v46 = vpop.f32.mrb[1].mxu0  ;;  %v1827_v40 = vpop.f32.mrb[2].mxu1 }
 0x1df   :  { %v3267_v47 = vadd.f32 %v3266_v43, %v2288_v44  ;;  %v3268_v48 = vadd.f32 %v4681_v41, %v1827_v40  ;;  %v2291_v49 = vpop.f32.mrb[2].mxu0  ;;  %v1829_v50 = vpop.f32.mrb[3].mxu1 }
 0x1e0   :  { %v3169_v51 = vpop.f32.mrb[3].mxu0 }
 0x1e1   :  { %v2486_v52 = vmax.f32 %v3267_v47, 0.0  ;;  %v3269_v53 = vadd.f32 %v3268_v48, %v2291_v49 }
 0x1e3   :  { %v3086_v54 = vpack.c.bf16 %v2486_v52, %v2486_v52  ;;  %v2487_v55 = vmax.f32 %v3269_v53, 0.0 }
 0x1e4   :  { %v1832_v56 = vpop.f32.mrb[4].mxu1 }
 0x1e5   :  { %2733 = vst.msk [vmem:[%s4931_s3] sm:$0xf] %vm2732_vm2, %v3086_v54  ;;  %v3087_v57 = vpack.c.bf16 %v2487_v55, %v2487_v55  ;;  %v3270_v58 = vadd.f32 %v4681_v41, %v1832_v56  ;;  %v2296_v59 = vpop.f32.mrb[4].mxu0  ;;  %v1834_v60 = vpop.f32.mrb[5].mxu1 }
 0x1e6   :  { %v3172_v61 = vpop.f32.mrb[5].mxu0  ;;  %v1835_v62 = vpop.f32.mrb[6].mxu1 }
 0x1e7   :  { %2734 = vst.msk [vmem:[%s4931_s3 + $0x4] sm:$0xf] %vm2732_vm2, %v3087_v57  ;;  %v3271_v63 = vadd.f32 %v3270_v58, %v2296_v59  ;;  %v3272_v1 = vadd.f32 %v4681_v41, %v1835_v62  ;;  %v2299_v2 = vpop.f32.mrb[6].mxu0  ;;  %v1837_v3 = vpop.f32.mrb[7].mxu1 }
 0x1e8   :  { %v3173_v4 = vpop.f32.mrb[7].mxu0 }
 0x1e9   :  { %v2488_v5 = vmax.f32 %v3271_v63, 0.0  ;;  %v3273_v6 = vadd.f32 %v3272_v1, %v2299_v2 }
 0x1eb   :  { %v3088_v7 = vpack.c.bf16 %v2488_v5, %v2488_v5  ;;  %v2489_v8 = vmax.f32 %v3273_v6, 0.0 }
 0x1ec   :  { %v1840_v9 = vpop.f32.mrb[8].mxu1 }
 0x1ed   :  { %2735 = vst.msk [vmem:[%s4931_s3 + $0x8] sm:$0xf] %vm2732_vm2, %v3088_v7  ;;  %v3089_v10 = vpack.c.bf16 %v2489_v8, %v2489_v8  ;;  %v3274_v11 = vadd.f32 %v4681_v41, %v1840_v9  ;;  %v2304_v12 = vpop.f32.mrb[8].mxu0  ;;  %v1842_v13 = vpop.f32.mrb[9].mxu1 }
 0x1ee   :  { %v3176_v14 = vpop.f32.mrb[9].mxu0  ;;  %v1843_v15 = vpop.f32.mrb[10].mxu1 }
 0x1ef   :  { %2736 = vst.msk [vmem:[%s4931_s3 + $0xc] sm:$0xf] %vm2732_vm2, %v3089_v10  ;;  %v3275_v16 = vadd.f32 %v3274_v11, %v2304_v12  ;;  %v3276_v17 = vadd.f32 %v4681_v41, %v1843_v15  ;;  %v2307_v18 = vpop.f32.mrb[10].mxu0  ;;  %v1845_v19 = vpop.f32.mrb[11].mxu1 }
 0x1f0   :  { %v3177_v20 = vpop.f32.mrb[11].mxu0 }
 0x1f1   :  { %v2490_v21 = vmax.f32 %v3275_v16, 0.0  ;;  %v3277_v22 = vadd.f32 %v3276_v17, %v2307_v18 }
 0x1f3   :  { %v3090_v23 = vpack.c.bf16 %v2490_v21, %v2490_v21  ;;  %v2491_v24 = vmax.f32 %v3277_v22, 0.0 }
 0x1f4   :  { %v1848_v25 = vpop.f32.mrb[12].mxu1 }
 0x1f5   :  { %2737 = vst.msk [vmem:[%s4931_s3 + $0x10] sm:$0xf] %vm2732_vm2, %v3090_v23  ;;  %v3091_v26 = vpack.c.bf16 %v2491_v24, %v2491_v24  ;;  %v3278_v27 = vadd.f32 %v4681_v41, %v1848_v25  ;;  %v2312_v28 = vpop.f32.mrb[12].mxu0  ;;  %v1850_v0 = vpop.f32.mrb[13].mxu1 }
 0x1f6   :  { %v3180_v29 = vpop.f32.mrb[13].mxu0  ;;  %v1851_v30 = vpop.f32.mrb[14].mxu1 }
 0x1f7   :  { %2738 = vst.msk [vmem:[%s4931_s3 + $0x14] sm:$0xf] %vm2732_vm2, %v3091_v26  ;;  %v3279_v31 = vadd.f32 %v3278_v27, %v2312_v28  ;;  %v3280_v32 = vadd.f32 %v4681_v41, %v1851_v30  ;;  %v2315_v33 = vpop.f32.mrb[14].mxu0  ;;  %v1853_v34 = vpop.f32.mrb[15].mxu1 }
 0x1f8   :  { %v3181_v35 = vpop.f32.mrb[15].mxu0 }
 0x1f9   :  { %v2492_v36 = vmax.f32 %v3279_v31, 0.0  ;;  %v3281_v37 = vadd.f32 %v3280_v32, %v2315_v33 }
 0x1fb   :  { %v3092_v38 = vpack.c.bf16 %v2492_v36, %v2492_v36  ;;  %v2493_v39 = vmax.f32 %v3281_v37, 0.0 }
 0x1fc   :  { %v1856_v42 = vpop.f32.mrb[16].mxu1 }
 0x1fd   :  { %2739 = vst.msk [vmem:[%s4931_s3 + $0x18] sm:$0xf] %vm2732_vm2, %v3092_v38  ;;  %v3093_v43 = vpack.c.bf16 %v2493_v39, %v2493_v39  ;;  %v3282_v44 = vadd.f32 %v4681_v41, %v1856_v42  ;;  %v2320_v45 = vpop.f32.mrb[16].mxu0  ;;  %v1858_v46 = vpop.f32.mrb[17].mxu1 }
 0x1fe   :  { %v3184_v40 = vpop.f32.mrb[17].mxu0  ;;  %v1859_v47 = vpop.f32.mrb[18].mxu1 }
 0x1ff   :  { %2740 = vst.msk [vmem:[%s4931_s3 + $0x1c] sm:$0xf] %vm2732_vm2, %v3093_v43  ;;  %v3283_v48 = vadd.f32 %v3282_v44, %v2320_v45  ;;  %v3284_v49 = vadd.f32 %v4681_v41, %v1859_v47  ;;  %v2323_v50 = vpop.f32.mrb[18].mxu0  ;;  %v1861_v51 = vpop.f32.mrb[19].mxu1 }
 0x200   :  { %v3185_v52 = vpop.f32.mrb[19].mxu0 }
 0x201   :  { %v2494_v53 = vmax.f32 %v3283_v48, 0.0  ;;  %v3285_v54 = vadd.f32 %v3284_v49, %v2323_v50 }
 0x203   :  { %v3094_v55 = vpack.c.bf16 %v2494_v53, %v2494_v53  ;;  %v2495_v56 = vmax.f32 %v3285_v54, 0.0 }
 0x204   :  { %v1864_v57 = vpop.f32.mrb[20].mxu1 }
 0x205   :  { %2741 = vst.msk [vmem:[%s4931_s3 + $0x20] sm:$0xf] %vm2732_vm2, %v3094_v55  ;;  %v3095_v58 = vpack.c.bf16 %v2495_v56, %v2495_v56  ;;  %v3286_v59 = vadd.f32 %v4681_v41, %v1864_v57  ;;  %v2328_v60 = vpop.f32.mrb[20].mxu0  ;;  %v1866_v61 = vpop.f32.mrb[21].mxu1 }
 0x206   :  { %v3188_v62 = vpop.f32.mrb[21].mxu0  ;;  %v1867_v63 = vpop.f32.mrb[22].mxu1 }
 0x207   :  { %2742 = vst.msk [vmem:[%s4931_s3 + $0x24] sm:$0xf] %vm2732_vm2, %v3095_v58  ;;  %v3287_v1 = vadd.f32 %v3286_v59, %v2328_v60  ;;  %v3288_v2 = vadd.f32 %v4681_v41, %v1867_v63  ;;  %v2331_v3 = vpop.f32.mrb[22].mxu0  ;;  %v1869_v4 = vpop.f32.mrb[23].mxu1 }
 0x208   :  { %v3189_v5 = vpop.f32.mrb[23].mxu0 }
 0x209   :  { %v2496_v6 = vmax.f32 %v3287_v1, 0.0  ;;  %v3289_v7 = vadd.f32 %v3288_v2, %v2331_v3 }
 0x20b   :  { %v3096_v8 = vpack.c.bf16 %v2496_v6, %v2496_v6  ;;  %v2497_v9 = vmax.f32 %v3289_v7, 0.0 }
 0x20c   :  { %v1872_v10 = vpop.f32.mrb[24].mxu1 }
 0x20d   :  { %2743 = vst.msk [vmem:[%s4931_s3 + $0x28] sm:$0xf] %vm2732_vm2, %v3096_v8  ;;  %v3097_v11 = vpack.c.bf16 %v2497_v9, %v2497_v9  ;;  %v3290_v12 = vadd.f32 %v4681_v41, %v1872_v10  ;;  %v2336_v13 = vpop.f32.mrb[24].mxu0  ;;  %v1874_v14 = vpop.f32.mrb[25].mxu1 }
 0x20e   :  { %v3192_v15 = vpop.f32.mrb[25].mxu0  ;;  %v1875_v16 = vpop.f32.mrb[26].mxu1 }
 0x20f   :  { %2744 = vst.msk [vmem:[%s4931_s3 + $0x2c] sm:$0xf] %vm2732_vm2, %v3097_v11  ;;  %v3291_v17 = vadd.f32 %v3290_v12, %v2336_v13  ;;  %v3292_v18 = vadd.f32 %v4681_v41, %v1875_v16  ;;  %v2339_v19 = vpop.f32.mrb[26].mxu0  ;;  %v1877_v20 = vpop.f32.mrb[27].mxu1 }
 0x210   :  { %v3193_v21 = vpop.f32.mrb[27].mxu0 }
 0x211   :  { %v2498_v22 = vmax.f32 %v3291_v17, 0.0  ;;  %v3293_v23 = vadd.f32 %v3292_v18, %v2339_v19 }
 0x213   :  { %v3098_v24 = vpack.c.bf16 %v2498_v22, %v2498_v22  ;;  %v2499_v25 = vmax.f32 %v3293_v23, 0.0 }
 0x214   :  { %v1880_v26 = vpop.f32.mrb[28].mxu1 }
 0x215   :  { %2745 = vst.msk [vmem:[%s4931_s3 + $0x30] sm:$0xf] %vm2732_vm2, %v3098_v24  ;;  %v3099_v27 = vpack.c.bf16 %v2499_v25, %v2499_v25  ;;  %v3294_v28 = vadd.f32 %v4681_v41, %v1880_v26  ;;  %v2344_v0 = vpop.f32.mrb[28].mxu0  ;;  %v1882_v29 = vpop.f32.mrb[29].mxu1 }
 0x216   :  { %v3196_v30 = vpop.f32.mrb[29].mxu0  ;;  %v1883_v31 = vpop.f32.mrb[30].mxu1 }
 0x217   :  { %2746 = vst.msk [vmem:[%s4931_s3 + $0x34] sm:$0xf] %vm2732_vm2, %v3099_v27  ;;  %v3295_v32 = vadd.f32 %v3294_v28, %v2344_v0  ;;  %v3296_v33 = vadd.f32 %v4681_v41, %v1883_v31  ;;  %v2347_v34 = vpop.f32.mrb[30].mxu0  ;;  %v1885_v35 = vpop.f32.mrb[31].mxu1 }
 0x218   :  { %v3197_v36 = vpop.f32.mrb[31].mxu0 }
 0x219   :  { %v2500_v37 = vmax.f32 %v3295_v32, 0.0  ;;  %v3297_v38 = vadd.f32 %v3296_v33, %v2347_v34 }
 0x21b   :  { %v3100_v39 = vpack.c.bf16 %v2500_v37, %v2500_v37  ;;  %v2501_v42 = vmax.f32 %v3297_v38, 0.0 }
 0x21c   :  { %v1888_v43 = vpop.f32.mrb[32].mxu1 }
 0x21d   :  { %2747 = vst.msk [vmem:[%s4931_s3 + $0x38] sm:$0xf] %vm2732_vm2, %v3100_v39  ;;  %v3101_v44 = vpack.c.bf16 %v2501_v42, %v2501_v42  ;;  %v3298_v45 = vadd.f32 %v4681_v41, %v1888_v43  ;;  %v2352_v46 = vpop.f32.mrb[32].mxu0  ;;  %v1890_v40 = vpop.f32.mrb[33].mxu1 }
 0x21e   :  { %v3200_v47 = vpop.f32.mrb[33].mxu0  ;;  %v1891_v48 = vpop.f32.mrb[34].mxu1 }
 0x21f   :  { %2748 = vst.msk [vmem:[%s4931_s3 + $0x3c] sm:$0xf] %vm2732_vm2, %v3101_v44  ;;  %v3299_v49 = vadd.f32 %v3298_v45, %v2352_v46  ;;  %v3300_v50 = vadd.f32 %v4681_v41, %v1891_v48  ;;  %v2355_v51 = vpop.f32.mrb[34].mxu0  ;;  %v1893_v52 = vpop.f32.mrb[35].mxu1 }
 0x220   :  { %v3201_v53 = vpop.f32.mrb[35].mxu0 }
 0x221   :  { %v2502_v54 = vmax.f32 %v3299_v49, 0.0  ;;  %v3301_v55 = vadd.f32 %v3300_v50, %v2355_v51 }
 0x223   :  { %v3102_v56 = vpack.c.bf16 %v2502_v54, %v2502_v54  ;;  %v2503_v57 = vmax.f32 %v3301_v55, 0.0 }
 0x224   :  { %v1896_v58 = vpop.f32.mrb[36].mxu1 }
 0x225   :  { %2749 = vst.msk [vmem:[%s4931_s3 + $0x40] sm:$0xf] %vm2732_vm2, %v3102_v56  ;;  %v3103_v59 = vpack.c.bf16 %v2503_v57, %v2503_v57  ;;  %v3302_v60 = vadd.f32 %v4681_v41, %v1896_v58  ;;  %v2360_v61 = vpop.f32.mrb[36].mxu0  ;;  %v1898_v62 = vpop.f32.mrb[37].mxu1 }
 0x226   :  { %v3204_v63 = vpop.f32.mrb[37].mxu0  ;;  %v1899_v1 = vpop.f32.mrb[38].mxu1 }
 0x227   :  { %2750 = vst.msk [vmem:[%s4931_s3 + $0x44] sm:$0xf] %vm2732_vm2, %v3103_v59  ;;  %v3303_v2 = vadd.f32 %v3302_v60, %v2360_v61  ;;  %v3304_v3 = vadd.f32 %v4681_v41, %v1899_v1  ;;  %v2363_v4 = vpop.f32.mrb[38].mxu0  ;;  %v1901_v5 = vpop.f32.mrb[39].mxu1 }
 0x228   :  { %v3205_v6 = vpop.f32.mrb[39].mxu0 }
 0x229   :  { %v2504_v7 = vmax.f32 %v3303_v2, 0.0  ;;  %v3305_v8 = vadd.f32 %v3304_v3, %v2363_v4 }
 0x22b   :  { %v3104_v9 = vpack.c.bf16 %v2504_v7, %v2504_v7  ;;  %v2505_v10 = vmax.f32 %v3305_v8, 0.0 }
 0x22c   :  { %v1904_v11 = vpop.f32.mrb[40].mxu1 }
 0x22d   :  { %2751 = vst.msk [vmem:[%s4931_s3 + $0x48] sm:$0xf] %vm2732_vm2, %v3104_v9  ;;  %v3105_v12 = vpack.c.bf16 %v2505_v10, %v2505_v10  ;;  %v3306_v13 = vadd.f32 %v4681_v41, %v1904_v11  ;;  %v2368_v14 = vpop.f32.mrb[40].mxu0  ;;  %v1906_v15 = vpop.f32.mrb[41].mxu1 }
 0x22e   :  { %v3208_v16 = vpop.f32.mrb[41].mxu0  ;;  %v1907_v17 = vpop.f32.mrb[42].mxu1 }
 0x22f   :  { %2752 = vst.msk [vmem:[%s4931_s3 + $0x4c] sm:$0xf] %vm2732_vm2, %v3105_v12  ;;  %v3307_v18 = vadd.f32 %v3306_v13, %v2368_v14  ;;  %v3308_v19 = vadd.f32 %v4681_v41, %v1907_v17  ;;  %v2371_v20 = vpop.f32.mrb[42].mxu0  ;;  %v1909_v21 = vpop.f32.mrb[43].mxu1 }
 0x230   :  { %v3209_v22 = vpop.f32.mrb[43].mxu0 }
 0x231   :  { %v2506_v23 = vmax.f32 %v3307_v18, 0.0  ;;  %v3309_v24 = vadd.f32 %v3308_v19, %v2371_v20 }
 0x233   :  { %v3106_v25 = vpack.c.bf16 %v2506_v23, %v2506_v23  ;;  %v2507_v26 = vmax.f32 %v3309_v24, 0.0 }
 0x234   :  { %v1912_v27 = vpop.f32.mrb[44].mxu1 }
 0x235   :  { %2753 = vst.msk [vmem:[%s4931_s3 + $0x50] sm:$0xf] %vm2732_vm2, %v3106_v25  ;;  %v3107_v28 = vpack.c.bf16 %v2507_v26, %v2507_v26  ;;  %v3310_v0 = vadd.f32 %v4681_v41, %v1912_v27  ;;  %v2376_v29 = vpop.f32.mrb[44].mxu0  ;;  %v1914_v30 = vpop.f32.mrb[45].mxu1 }
 0x236   :  { %v3212_v31 = vpop.f32.mrb[45].mxu0  ;;  %v1915_v32 = vpop.f32.mrb[46].mxu1 }
 0x237   :  { %2754 = vst.msk [vmem:[%s4931_s3 + $0x54] sm:$0xf] %vm2732_vm2, %v3107_v28  ;;  %v3311_v33 = vadd.f32 %v3310_v0, %v2376_v29  ;;  %v3312_v34 = vadd.f32 %v4681_v41, %v1915_v32  ;;  %v2379_v35 = vpop.f32.mrb[46].mxu0  ;;  %v1917_v36 = vpop.f32.mrb[47].mxu1 }
 0x238   :  { %v3213_v37 = vpop.f32.mrb[47].mxu0 }
 0x239   :  { %v2508_v38 = vmax.f32 %v3311_v33, 0.0  ;;  %v3313_v39 = vadd.f32 %v3312_v34, %v2379_v35 }
 0x23b   :  { %v3108_v42 = vpack.c.bf16 %v2508_v38, %v2508_v38  ;;  %v2509_v43 = vmax.f32 %v3313_v39, 0.0 }
 0x23c   :  { %v1920_v44 = vpop.f32.mrb[48].mxu1 }
 0x23d   :  { %2755 = vst.msk [vmem:[%s4931_s3 + $0x58] sm:$0xf] %vm2732_vm2, %v3108_v42  ;;  %v3109_v45 = vpack.c.bf16 %v2509_v43, %v2509_v43  ;;  %v3314_v46 = vadd.f32 %v4681_v41, %v1920_v44  ;;  %v2384_v40 = vpop.f32.mrb[48].mxu0  ;;  %v1922_v47 = vpop.f32.mrb[49].mxu1 }
 0x23e   :  { %v3216_v48 = vpop.f32.mrb[49].mxu0  ;;  %v1923_v49 = vpop.f32.mrb[50].mxu1 }
 0x23f   :  { %2756 = vst.msk [vmem:[%s4931_s3 + $0x5c] sm:$0xf] %vm2732_vm2, %v3109_v45  ;;  %v3315_v50 = vadd.f32 %v3314_v46, %v2384_v40  ;;  %v3316_v51 = vadd.f32 %v4681_v41, %v1923_v49  ;;  %v2387_v52 = vpop.f32.mrb[50].mxu0  ;;  %v1925_v53 = vpop.f32.mrb[51].mxu1 }
 0x240   :  { %v3217_v54 = vpop.f32.mrb[51].mxu0 }
 0x241   :  { %v2510_v55 = vmax.f32 %v3315_v50, 0.0  ;;  %v3317_v56 = vadd.f32 %v3316_v51, %v2387_v52 }
 0x243   :  { %v3110_v57 = vpack.c.bf16 %v2510_v55, %v2510_v55  ;;  %v2511_v58 = vmax.f32 %v3317_v56, 0.0 }
 0x244   :  { %v1928_v59 = vpop.f32.mrb[52].mxu1 }
 0x245   :  { %2757 = vst.msk [vmem:[%s4931_s3 + $0x60] sm:$0xf] %vm2732_vm2, %v3110_v57  ;;  %v3111_v60 = vpack.c.bf16 %v2511_v58, %v2511_v58  ;;  %v3318_v61 = vadd.f32 %v4681_v41, %v1928_v59  ;;  %v2392_v62 = vpop.f32.mrb[52].mxu0  ;;  %v1930_v63 = vpop.f32.mrb[53].mxu1 }
 0x246   :  { %v3220_v1 = vpop.f32.mrb[53].mxu0  ;;  %v1931_v2 = vpop.f32.mrb[54].mxu1 }
 0x247   :  { %2758 = vst.msk [vmem:[%s4931_s3 + $0x64] sm:$0xf] %vm2732_vm2, %v3111_v60  ;;  %v3319_v3 = vadd.f32 %v3318_v61, %v2392_v62  ;;  %v3320_v4 = vadd.f32 %v4681_v41, %v1931_v2  ;;  %v2395_v5 = vpop.f32.mrb[54].mxu0  ;;  %v1933_v6 = vpop.f32.mrb[55].mxu1 }
 0x248   :  { %v3221_v7 = vpop.f32.mrb[55].mxu0 }
 0x249   :  { %v2512_v8 = vmax.f32 %v3319_v3, 0.0  ;;  %v3321_v9 = vadd.f32 %v3320_v4, %v2395_v5 }
 0x24b   :  { %v3112_v10 = vpack.c.bf16 %v2512_v8, %v2512_v8  ;;  %v2513_v11 = vmax.f32 %v3321_v9, 0.0 }
 0x24c   :  { %v1936_v12 = vpop.f32.mrb[56].mxu1 }
 0x24d   :  { %2759 = vst.msk [vmem:[%s4931_s3 + $0x68] sm:$0xf] %vm2732_vm2, %v3112_v10  ;;  %v3113_v13 = vpack.c.bf16 %v2513_v11, %v2513_v11  ;;  %v3322_v14 = vadd.f32 %v4681_v41, %v1936_v12  ;;  %v2400_v15 = vpop.f32.mrb[56].mxu0  ;;  %v1938_v16 = vpop.f32.mrb[57].mxu1 }
 0x24e   :  { %v3224_v17 = vpop.f32.mrb[57].mxu0  ;;  %v1939_v18 = vpop.f32.mrb[58].mxu1 }
 0x24f   :  { %2760 = vst.msk [vmem:[%s4931_s3 + $0x6c] sm:$0xf] %vm2732_vm2, %v3113_v13  ;;  %v3323_v19 = vadd.f32 %v3322_v14, %v2400_v15  ;;  %v3324_v20 = vadd.f32 %v4681_v41, %v1939_v18  ;;  %v2403_v21 = vpop.f32.mrb[58].mxu0  ;;  %v1941_v22 = vpop.f32.mrb[59].mxu1 }
 0x250   :  { %v3225_v23 = vpop.f32.mrb[59].mxu0 }
 0x251   :  { %v2514_v24 = vmax.f32 %v3323_v19, 0.0  ;;  %v3325_v25 = vadd.f32 %v3324_v20, %v2403_v21 }
 0x253   :  { %v3114_v26 = vpack.c.bf16 %v2514_v24, %v2514_v24  ;;  %v2515_v27 = vmax.f32 %v3325_v25, 0.0 }
 0x254   :  { %v1944_v28 = vpop.f32.mrb[60].mxu1 }
 0x255   :  { %2761 = vst.msk [vmem:[%s4931_s3 + $0x70] sm:$0xf] %vm2732_vm2, %v3114_v26  ;;  %v3115_v0 = vpack.c.bf16 %v2515_v27, %v2515_v27  ;;  %v3326_v29 = vadd.f32 %v4681_v41, %v1944_v28  ;;  %v2408_v30 = vpop.f32.mrb[60].mxu0  ;;  %v1946_v31 = vpop.f32.mrb[61].mxu1 }
 0x256   :  { %v3228_v32 = vpop.f32.mrb[61].mxu0  ;;  %v1947_v33 = vpop.f32.mrb[62].mxu1 }
 0x257   :  { %2762 = vst.msk [vmem:[%s4931_s3 + $0x74] sm:$0xf] %vm2732_vm2, %v3115_v0  ;;  %v3327_v34 = vadd.f32 %v3326_v29, %v2408_v30  ;;  %v3328_v35 = vadd.f32 %v4681_v41, %v1947_v33  ;;  %v2411_v36 = vpop.f32.mrb[62].mxu0  ;;  %v1949_v37 = vpop.f32.mrb[63].mxu1 }
 0x258   :  { %v3229_v38 = vpop.f32.mrb[63].mxu0 }
 0x259   :  { %v2516_v39 = vmax.f32 %v3327_v34, 0.0  ;;  %v3329_v42 = vadd.f32 %v3328_v35, %v2411_v36 }
 0x25b   :  { %v3116_v43 = vpack.c.bf16 %v2516_v39, %v2516_v39  ;;  %v2517_v44 = vmax.f32 %v3329_v42, 0.0 }
 0x25c   :  { %v1952_v45 = vpop.f32.mrb[64].mxu1 }
 0x25d   :  { %2763 = vst.msk [vmem:[%s4931_s3 + $0x78] sm:$0xf] %vm2732_vm2, %v3116_v43  ;;  %v3117_v46 = vpack.c.bf16 %v2517_v44, %v2517_v44  ;;  %v3330_v40 = vadd.f32 %v4681_v41, %v1952_v45  ;;  %v2416_v47 = vpop.f32.mrb[64].mxu0  ;;  %v1954_v48 = vpop.f32.mrb[65].mxu1 }
 0x25e   :  { %v3232_v49 = vpop.f32.mrb[65].mxu0  ;;  %v1955_v50 = vpop.f32.mrb[66].mxu1 }
 0x25f   :  { %2764 = vst.msk [vmem:[%s4931_s3 + $0x7c] sm:$0xf] %vm2732_vm2, %v3117_v46  ;;  %v3331_v51 = vadd.f32 %v3330_v40, %v2416_v47  ;;  %v3332_v52 = vadd.f32 %v4681_v41, %v1955_v50  ;;  %v2419_v53 = vpop.f32.mrb[66].mxu0  ;;  %v1957_v54 = vpop.f32.mrb[67].mxu1 }
 0x260   :  { %v3233_v55 = vpop.f32.mrb[67].mxu0 }
 0x261   :  { %v2518_v56 = vmax.f32 %v3331_v51, 0.0  ;;  %v3333_v57 = vadd.f32 %v3332_v52, %v2419_v53 }
 0x263   :  { %v3118_v58 = vpack.c.bf16 %v2518_v56, %v2518_v56  ;;  %v2519_v59 = vmax.f32 %v3333_v57, 0.0 }
 0x264   :  { %v1960_v60 = vpop.f32.mrb[68].mxu1 }
 0x265   :  { %2765 = vst.msk [vmem:[%s4931_s3 + $0x80] sm:$0xf] %vm2732_vm2, %v3118_v58  ;;  %v3119_v61 = vpack.c.bf16 %v2519_v59, %v2519_v59  ;;  %v3334_v62 = vadd.f32 %v4681_v41, %v1960_v60  ;;  %v2424_v63 = vpop.f32.mrb[68].mxu0  ;;  %v1962_v1 = vpop.f32.mrb[69].mxu1 }
 0x266   :  { %v3236_v2 = vpop.f32.mrb[69].mxu0  ;;  %v1963_v3 = vpop.f32.mrb[70].mxu1 }
 0x267   :  { %2766 = vst.msk [vmem:[%s4931_s3 + $0x84] sm:$0xf] %vm2732_vm2, %v3119_v61  ;;  %v3335_v4 = vadd.f32 %v3334_v62, %v2424_v63  ;;  %v3336_v5 = vadd.f32 %v4681_v41, %v1963_v3  ;;  %v2427_v6 = vpop.f32.mrb[70].mxu0  ;;  %v1965_v7 = vpop.f32.mrb[71].mxu1 }
 0x268   :  { %v3237_v8 = vpop.f32.mrb[71].mxu0 }
 0x269   :  { %v2520_v9 = vmax.f32 %v3335_v4, 0.0  ;;  %v3337_v10 = vadd.f32 %v3336_v5, %v2427_v6 }
 0x26b   :  { %v3120_v11 = vpack.c.bf16 %v2520_v9, %v2520_v9  ;;  %v2521_v12 = vmax.f32 %v3337_v10, 0.0 }
 0x26c   :  { %v1968_v13 = vpop.f32.mrb[72].mxu1 }
 0x26d   :  { %2767 = vst.msk [vmem:[%s4931_s3 + $0x88] sm:$0xf] %vm2732_vm2, %v3120_v11  ;;  %v3121_v14 = vpack.c.bf16 %v2521_v12, %v2521_v12  ;;  %v3338_v15 = vadd.f32 %v4681_v41, %v1968_v13  ;;  %v2432_v16 = vpop.f32.mrb[72].mxu0  ;;  %v1970_v17 = vpop.f32.mrb[73].mxu1 }
 0x26e   :  { %v3240_v18 = vpop.f32.mrb[73].mxu0  ;;  %v1971_v19 = vpop.f32.mrb[74].mxu1 }
 0x26f   :  { %2768 = vst.msk [vmem:[%s4931_s3 + $0x8c] sm:$0xf] %vm2732_vm2, %v3121_v14  ;;  %v3339_v20 = vadd.f32 %v3338_v15, %v2432_v16  ;;  %v3340_v21 = vadd.f32 %v4681_v41, %v1971_v19  ;;  %v2435_v22 = vpop.f32.mrb[74].mxu0  ;;  %v1973_v23 = vpop.f32.mrb[75].mxu1 }
 0x270   :  { %v3241_v24 = vpop.f32.mrb[75].mxu0 }
 0x271   :  { %v2522_v25 = vmax.f32 %v3339_v20, 0.0  ;;  %v3341_v26 = vadd.f32 %v3340_v21, %v2435_v22 }
 0x273   :  { %v3122_v27 = vpack.c.bf16 %v2522_v25, %v2522_v25  ;;  %v2523_v28 = vmax.f32 %v3341_v26, 0.0 }
 0x274   :  { %v1976_v0 = vpop.f32.mrb[76].mxu1 }
 0x275   :  { %2769 = vst.msk [vmem:[%s4931_s3 + $0x90] sm:$0xf] %vm2732_vm2, %v3122_v27  ;;  %v3123_v29 = vpack.c.bf16 %v2523_v28, %v2523_v28  ;;  %v3342_v30 = vadd.f32 %v4681_v41, %v1976_v0  ;;  %v2440_v31 = vpop.f32.mrb[76].mxu0  ;;  %v1978_v32 = vpop.f32.mrb[77].mxu1 }
 0x276   :  { %v3244_v33 = vpop.f32.mrb[77].mxu0  ;;  %v1979_v34 = vpop.f32.mrb[78].mxu1 }
 0x277   :  { %2770 = vst.msk [vmem:[%s4931_s3 + $0x94] sm:$0xf] %vm2732_vm2, %v3123_v29  ;;  %v3343_v35 = vadd.f32 %v3342_v30, %v2440_v31  ;;  %v3344_v36 = vadd.f32 %v4681_v41, %v1979_v34  ;;  %v2443_v37 = vpop.f32.mrb[78].mxu0  ;;  %v1981_v38 = vpop.f32.mrb[79].mxu1 }
 0x278   :  { %v3245_v39 = vpop.f32.mrb[79].mxu0 }
 0x279   :  { %v2524_v42 = vmax.f32 %v3343_v35, 0.0  ;;  %v3345_v43 = vadd.f32 %v3344_v36, %v2443_v37 }
 0x27b   :  { %v3124_v44 = vpack.c.bf16 %v2524_v42, %v2524_v42  ;;  %v2525_v45 = vmax.f32 %v3345_v43, 0.0 }
 0x27c   :  { %v1984_v46 = vpop.f32.mrb[80].mxu1 }
 0x27d   :  { %2771 = vst.msk [vmem:[%s4931_s3 + $0x98] sm:$0xf] %vm2732_vm2, %v3124_v44  ;;  %v3125_v40 = vpack.c.bf16 %v2525_v45, %v2525_v45  ;;  %v3346_v47 = vadd.f32 %v4681_v41, %v1984_v46  ;;  %v2448_v48 = vpop.f32.mrb[80].mxu0  ;;  %v1986_v49 = vpop.f32.mrb[81].mxu1 }
 0x27e   :  { %v3248_v50 = vpop.f32.mrb[81].mxu0  ;;  %v1987_v51 = vpop.f32.mrb[82].mxu1 }
 0x27f   :  { %2772 = vst.msk [vmem:[%s4931_s3 + $0x9c] sm:$0xf] %vm2732_vm2, %v3125_v40  ;;  %v3347_v52 = vadd.f32 %v3346_v47, %v2448_v48  ;;  %v3348_v53 = vadd.f32 %v4681_v41, %v1987_v51  ;;  %v2451_v54 = vpop.f32.mrb[82].mxu0  ;;  %v1989_v55 = vpop.f32.mrb[83].mxu1 }
 0x280   :  { %v3249_v56 = vpop.f32.mrb[83].mxu0 }
 0x281   :  { %v2526_v57 = vmax.f32 %v3347_v52, 0.0  ;;  %v3349_v58 = vadd.f32 %v3348_v53, %v2451_v54 }
 0x283   :  { %v3126_v59 = vpack.c.bf16 %v2526_v57, %v2526_v57  ;;  %v2527_v60 = vmax.f32 %v3349_v58, 0.0 }
 0x284   :  { %v1992_v61 = vpop.f32.mrb[84].mxu1 }
 0x285   :  { %2773 = vst.msk [vmem:[%s4931_s3 + $0xa0] sm:$0xf] %vm2732_vm2, %v3126_v59  ;;  %v3127_v62 = vpack.c.bf16 %v2527_v60, %v2527_v60  ;;  %v3350_v63 = vadd.f32 %v4681_v41, %v1992_v61  ;;  %v2456_v1 = vpop.f32.mrb[84].mxu0  ;;  %v1994_v2 = vpop.f32.mrb[85].mxu1 }
 0x286   :  { %v3252_v3 = vpop.f32.mrb[85].mxu0  ;;  %v1995_v4 = vpop.f32.mrb[86].mxu1 }
 0x287   :  { %2774 = vst.msk [vmem:[%s4931_s3 + $0xa4] sm:$0xf] %vm2732_vm2, %v3127_v62  ;;  %v3351_v5 = vadd.f32 %v3350_v63, %v2456_v1  ;;  %v3352_v6 = vadd.f32 %v4681_v41, %v1995_v4  ;;  %v2459_v7 = vpop.f32.mrb[86].mxu0  ;;  %v1997_v8 = vpop.f32.mrb[87].mxu1 }
 0x288   :  { %v3253_v9 = vpop.f32.mrb[87].mxu0 }
 0x289   :  { %v2528_v10 = vmax.f32 %v3351_v5, 0.0  ;;  %v3353_v11 = vadd.f32 %v3352_v6, %v2459_v7 }
 0x28b   :  { %v3128_v12 = vpack.c.bf16 %v2528_v10, %v2528_v10  ;;  %v2529_v13 = vmax.f32 %v3353_v11, 0.0 }
 0x28c   :  { %v2000_v14 = vpop.f32.mrb[88].mxu1 }
 0x28d   :  { %2775 = vst.msk [vmem:[%s4931_s3 + $0xa8] sm:$0xf] %vm2732_vm2, %v3128_v12  ;;  %v3129_v15 = vpack.c.bf16 %v2529_v13, %v2529_v13  ;;  %v3354_v16 = vadd.f32 %v4681_v41, %v2000_v14  ;;  %v2464_v17 = vpop.f32.mrb[88].mxu0  ;;  %v2002_v18 = vpop.f32.mrb[89].mxu1 }
 0x28e   :  { %v3256_v19 = vpop.f32.mrb[89].mxu0  ;;  %v2003_v20 = vpop.f32.mrb[90].mxu1 }
 0x28f   :  { %2776 = vst.msk [vmem:[%s4931_s3 + $0xac] sm:$0xf] %vm2732_vm2, %v3129_v15  ;;  %v3355_v21 = vadd.f32 %v3354_v16, %v2464_v17  ;;  %v3356_v22 = vadd.f32 %v4681_v41, %v2003_v20  ;;  %v2467_v23 = vpop.f32.mrb[90].mxu0  ;;  %v2005_v24 = vpop.f32.mrb[91].mxu1 }
 0x290   :  { %v3257_v25 = vpop.f32.mrb[91].mxu0 }
 0x291   :  { %v2530_v26 = vmax.f32 %v3355_v21, 0.0  ;;  %v3357_v27 = vadd.f32 %v3356_v22, %v2467_v23 }
 0x293   :  { %v3130_v28 = vpack.c.bf16 %v2530_v26, %v2530_v26  ;;  %v2531_v0 = vmax.f32 %v3357_v27, 0.0 }
 0x294   :  { %v2008_v29 = vpop.f32.mrb[92].mxu1 }
 0x295   :  { %2777 = vst.msk [vmem:[%s4931_s3 + $0xb0] sm:$0xf] %vm2732_vm2, %v3130_v28  ;;  %v3131_v30 = vpack.c.bf16 %v2531_v0, %v2531_v0  ;;  %v3358_v31 = vadd.f32 %v4681_v41, %v2008_v29  ;;  %v2472_v32 = vpop.f32.mrb[92].mxu0  ;;  %v2010_v33 = vpop.f32.mrb[93].mxu1 }
 0x296   :  { %v3260_v34 = vpop.f32.mrb[93].mxu0  ;;  %v2011_v35 = vpop.f32.mrb[94].mxu1 }
 0x297   :  { %2778 = vst.msk [vmem:[%s4931_s3 + $0xb4] sm:$0xf] %vm2732_vm2, %v3131_v30  ;;  %v3359_v36 = vadd.f32 %v3358_v31, %v2472_v32  ;;  %v3360_v37 = vadd.f32 %v4681_v41, %v2011_v35  ;;  %v2475_v38 = vpop.f32.mrb[94].mxu0  ;;  %v2013_v39 = vpop.f32.mrb[95].mxu1 }
 0x298   :  { %v3261_v42 = vpop.f32.mrb[95].mxu0 }
 0x299   :  { %v2532_v43 = vmax.f32 %v3359_v36, 0.0  ;;  %v3361_v44 = vadd.f32 %v3360_v37, %v2475_v38 }
 0x29b   :  { %v3132_v45 = vpack.c.bf16 %v2532_v43, %v2532_v43  ;;  %v2533_v46 = vmax.f32 %v3361_v44, 0.0 }
 0x29c   :  { %v2016_v40 = vpop.f32.mrb[96].mxu1 }
 0x29d   :  { %2779 = vst.msk [vmem:[%s4931_s3 + $0xb8] sm:$0xf] %vm2732_vm2, %v3132_v45  ;;  %v3133_v47 = vpack.c.bf16 %v2533_v46, %v2533_v46  ;;  %v3362_v48 = vadd.f32 %v4681_v41, %v2016_v40  ;;  %v2480_v49 = vpop.f32.mrb[96].mxu0  ;;  %v2018_v50 = vpop.f32.mrb[97].mxu1 }
 0x29e   :  { %v3264_v51 = vpop.f32.mrb[97].mxu0  ;;  %v2019_v52 = vpop.f32.mrb[98].mxu1 }
 0x29f   :  { %2780 = vst.msk [vmem:[%s4931_s3 + $0xbc] sm:$0xf] %vm2732_vm2, %v3133_v47  ;;  %v3363_v53 = vadd.f32 %v3362_v48, %v2480_v49  ;;  %v2483_v54 = vpop.f32.mrb[98].mxu0  ;;  %v2020_v55 = vpop.f32.mrb[99].mxu1 }
 0x2a0   :  { %v3265_v56 = vpop.f32.mrb[99].mxu0 }
 0x2a1   :  { %v2534_v57 = vmax.f32 %v3363_v53, 0.0 }
 0x2a3   :  { %v3134_v58 = vpack.c.bf16 %v2534_v57, %v2534_v57 }
 0x2a5   :  { %2781 = vst.msk [vmem:[%s4931_s3 + $0xc0] sm:$0xf] %vm2732_vm2, %v3134_v58 }

// kernel: encoder_forward.7
= control target key start
LH: loop header
LB: loop body
LE: loop exit
PB: predicated region body
PF: predicated region fallthrough
CT: control target
= control target key end

     0   :  { %v3864_v0 = vmov 0   ;;  %v3865_v40 = vmov 0.0   ;;  %vm3866_vm0 = vmmov 0   ;;  %vm1482_vm1 = vcmask 261120   ;;  %s4928_s1 = inlined_call_operand.vmem [shape: bf16[800,64], index: 1, kind: input, shape index: {}]   ;;  %s4929_s0 = inlined_call_operand.vmem [shape: bf16[392,800], index: 0, kind: input, shape index: {}]   ;;  %s4930_s2 = inlined_call_operand.vmem [shape: f32[1,64], index: 2, kind: input, shape index: {}]   ;;  %s4931_s3 = inlined_call_operand.vmem [shape: bf16[392,64], index: 3, kind: output, shape index: {}]  }
   0x1   :  { %1558 = vmatprep.subr.bf16.mxu1 %v3864_v0  ;;  %2022 = vmatprep.subr.bf16.mxu0 %v3864_v0  ;;  %v3567_v1 = vld [vmem:[%s4928_s1] sm:$0xff]   ;;  %v3569_v3 = vld [vmem:[%s4928_s1 + $0x8] sm:$0xff]   ;;  %v3571_v5 = vld [vmem:[%s4928_s1 + $0x10] sm:$0xff]   ;;  %vm2732_vm2 = vcmask 519168  }
   0x2   :  { %v3568_v2 = vld [vmem:[%s4928_s1 + $0x100] sm:$0xff]   ;;  %1559 = vmatpush1.bf16.msra.mxu1 %v3567_v1  ;;  %v3570_v4 = vld [vmem:[%s4928_s1 + $0x108] sm:$0xff]   ;;  %v3572_v6 = vld [vmem:[%s4928_s1 + $0x110] sm:$0xff]  }
   0x3   :  { %2023 = vmatpush1.bf16.msra.mxu0 %v3568_v2  ;;  %1560 = vmatprep.subr.bf16.mxu1 %v3864_v0  ;;  %v3573_v7 = vld [vmem:[%s4928_s1 + $0x18] sm:$0xff]   ;;  %v3575_v9 = vld [vmem:[%s4928_s1 + $0x20] sm:$0xff]   ;;  %v3577_v11 = vld [vmem:[%s4928_s1 + $0x28] sm:$0xff]  }
   0x4   :  { %2024 = vmatprep.subr.bf16.mxu0 %v3864_v0  ;;  %v3574_v8 = vld [vmem:[%s4928_s1 + $0x118] sm:$0xff]   ;;  %v3576_v10 = vld [vmem:[%s4928_s1 + $0x120] sm:$0xff]   ;;  %v3578_v12 = vld [vmem:[%s4928_s1 + $0x128] sm:$0xff]  }
   0x5   :  { %v3579_v13 = vld [vmem:[%s4928_s1 + $0x30] sm:$0xff]   ;;  %v3581_v15 = vld [vmem:[%s4928_s1 + $0x38] sm:$0xff]   ;;  %v3583_v17 = vld [vmem:[%s4928_s1 + $0x40] sm:$0xff]  }
   0x6   :  { %1561 = vmatpush1.bf16.msra.mxu1 %v3569_v3  ;;  %v3580_v14 = vld [vmem:[%s4928_s1 + $0x130] sm:$0xff]   ;;  %v3582_v16 = vld [vmem:[%s4928_s1 + $0x138] sm:$0xff]   ;;  %v3584_v18 = vld [vmem:[%s4928_s1 + $0x140] sm:$0xff]  }
   0x7   :  { %2025 = vmatpush1.bf16.msra.mxu0 %v3570_v4  ;;  %1562 = vmatprep.subr.bf16.mxu1 %v3864_v0  ;;  %v3601_v19 = vld [vmem:[%s4929_s0 + $0x4] ss:$28 sps:$4 sm:$0xff]   ;;  %v3585_v20 = vld [vmem:[%s4928_s1 + $0x48] sm:$0xff]   ;;  %v3604_v21 = vld [vmem:[%s4929_s0 + $0x14] ss:$28 sps:$4 sm:$0xff]  }
   0x8   :  { %2026 = vmatprep.subr.bf16.mxu0 %v3864_v0  ;;  %v3586_v22 = vld [vmem:[%s4928_s1 + $0x148] sm:$0xff]   ;;  %1590 = vmatprep.mubr.bf16.mxu1 %v3601_v19  ;;  %v3587_v23 = vld [vmem:[%s4928_s1 + $0x50] sm:$0xff]   ;;  %v3589_v25 = vld [vmem:[%s4928_s1 + $0x58] sm:$0xff]  }
   0x9   :  { %2054 = vmatprep.mubr.bf16.mxu0 %v3604_v21  ;;  %v3588_v24 = vld [vmem:[%s4928_s1 + $0x150] sm:$0xff]   ;;  %v3590_v26 = vld [vmem:[%s4928_s1 + $0x158] sm:$0xff]   ;;  %v3591_v27 = vld [vmem:[%s4928_s1 + $0x60] sm:$0xff]  }
   0xa   :  { %1563 = vmatpush1.bf16.msra.mxu1 %v3571_v5  ;;  %v3592_v28 = vld [vmem:[%s4928_s1 + $0x160] sm:$0xff]   ;;  %v3593_v29 = vld [vmem:[%s4928_s1 + $0x68] sm:$0xff]   ;;  %v3595_v31 = vld [vmem:[%s4928_s1 + $0x70] sm:$0xff]  }
   0xb   :  { %2027 = vmatpush1.bf16.msra.mxu0 %v3572_v6  ;;  %1564 = vmatprep.subr.bf16.mxu1 %v3864_v0  ;;  %v3594_v30 = vld [vmem:[%s4928_s1 + $0x168] sm:$0xff]   ;;  %v3596_v32 = vld [vmem:[%s4928_s1 + $0x170] sm:$0xff]   ;;  %v3597_v33 = vld [vmem:[%s4928_s1 + $0x78] sm:$0xff]  }
   0xc   :  { %2028 = vmatprep.subr.bf16.mxu0 %v3864_v0  ;;  %v3598_v34 = vld [vmem:[%s4928_s1 + $0x178] sm:$0xff]   ;;  %v3602_v36 = vld [vmem:[%s4929_s0 + $0x10] ss:$28 sps:$4 sm:$0xff]   ;;  %v3605_v37 = vld [vmem:[%s4928_s1 + $0x80] sm:$0xff]  }
   0xd   :  { %v3599_v35 = vld [vmem:[%s4929_s0] ss:$28 sps:$4 sm:$0xff]   ;;  %v3609_v41 = vld [vmem:[%s4929_s0 + $0x4c] ss:$28 sps:$4 sm:$0xff]   ;;  %v3611_v43 = vld [vmem:[%s4929_s0 + $0x38] ss:$28 sps:$4 sm:$0xff]  }
   0xe   :  { %1565 = vmatpush1.bf16.msra.mxu1 %v3573_v7  ;;  %v3606_v38 = vld [vmem:[%s4928_s1 + $0x180] sm:$0xff]   ;;  %v3607_v39 = vld [vmem:[%s4929_s0 + $0x3c] ss:$28 sps:$4 sm:$0xff]   ;;  %v3613_v42 = vld [vmem:[%s4928_s1 + $0x88] sm:$0xff]  }
   0xf   :  { %2029 = vmatpush1.bf16.msra.mxu0 %v3574_v8  ;;  %1566 = vmatprep.subr.bf16.mxu1 %v3864_v0  ;;  %v3612_v44 = vld [vmem:[%s4929_s0 + $0x48] ss:$28 sps:$4 sm:$0xff]   ;;  %v3614_v45 = vld [vmem:[%s4929_s0 + $0x74] ss:$28 sps:$4 sm:$0xff]   ;;  %v3635_v49 = vld [vmem:[%s4928_s1 + $0x98] sm:$0xff]  }
  0x10   :  { %2030 = vmatprep.subr.bf16.mxu0 %v3864_v0  ;;  %v3616_v46 = vld [vmem:[%s4929_s0 + $0x84] ss:$28 sps:$4 sm:$0xff]   ;;  %v3626_v47 = vld [vmem:[%s4928_s1 + $0x90] sm:$0xff]   ;;  %v3620_v51 = vld [vmem:[%s4929_s0 + $0xac] ss:$28 sps:$4 sm:$0xff]  }
  0x11   :  { %v3618_v48 = vld [vmem:[%s4929_s0 + $0x70] ss:$28 sps:$4 sm:$0xff]   ;;  %v3619_v50 = vld [vmem:[%s4929_s0 + $0x80] ss:$28 sps:$4 sm:$0xff]   ;;  %v3624_v56 = vld [vmem:[%s4929_s0 + $0xa8] ss:$28 sps:$4 sm:$0xff]  }
  0x12   :  { %1567 = vmatpush1.bf16.msra.mxu1 %v3575_v9  ;;  %v3622_v52 = vld [vmem:[%s4929_s0 + $0xbc] ss:$28 sps:$4 sm:$0xff]   ;;  %v3646_v53 = vld [vmem:[%s4928_s1 + $0xa0] sm:$0xff]   ;;  %v3691_v54 = vld [vmem:[%s4928_s1 + $0x188] sm:$0xff]  }
  0x13   :  { %2031 = vmatpush1.bf16.msra.mxu0 %v3576_v10  ;;  %1568 = vmatprep.subr.bf16.mxu1 %v3864_v0  ;;  %v3658_v55 = vld [vmem:[%s4928_s1 + $0xa8] sm:$0xff]   ;;  %v3625_v57 = vld [vmem:[%s4929_s0 + $0xb8] ss:$28 sps:$4 sm:$0xff]   ;;  %v3627_v58 = vld [vmem:[%s4929_s0 + $0xe4] ss:$28 sps:$4 sm:$0xff]  }
  0x14   :  { %2032 = vmatprep.subr.bf16.mxu0 %v3864_v0  ;;  %v3629_v59 = vld [vmem:[%s4929_s0 + $0xf4] ss:$28 sps:$4 sm:$0xff]   ;;  %v3679_v61 = vld [vmem:[%s4928_s1 + $0xb8] sm:$0xff]   ;;  %v3636_v2 = vld [vmem:[%s4929_s0 + $0x12c] ss:$28 sps:$4 sm:$0xff]  }
  0x15   :  { %v3666_v60 = vld [vmem:[%s4928_s1 + $0xb0] sm:$0xff]   ;;  %v3631_v62 = vld [vmem:[%s4929_s0 + $0xe0] ss:$28 sps:$4 sm:$0xff]   ;;  %v3700_v4 = vld [vmem:[%s4928_s1 + $0xc8] sm:$0xff]  }
  0x16   :  { %1569 = vmatpush1.bf16.msra.mxu1 %v3577_v11  ;;  %v3632_v63 = vld [vmem:[%s4929_s0 + $0xf0] ss:$28 sps:$4 sm:$0xff]   ;;  %v3633_v1 = vld [vmem:[%s4929_s0 + $0x11c] ss:$28 sps:$4 sm:$0xff]   ;;  %v3686_v3 = vld [vmem:[%s4928_s1 + $0xc0] sm:$0xff]  }
  0x17   :  { %2033 = vmatpush1.bf16.msra.mxu0 %v3578_v12  ;;  %1570 = vmatprep.subr.bf16.mxu1 %v3864_v0  ;;  %v3638_v5 = vld [vmem:[%s4929_s0 + $0x118] ss:$28 sps:$4 sm:$0xff]   ;;  %v3639_v6 = vld [vmem:[%s4929_s0 + $0x128] ss:$28 sps:$4 sm:$0xff]   ;;  %v3644_v10 = vld [vmem:[%s4929_s0 + $0x150] ss:$28 sps:$4 sm:$0xff]  }
  0x18   :  { %2034 = vmatprep.subr.bf16.mxu0 %v3864_v0  ;;  %v3640_v7 = vld [vmem:[%s4929_s0 + $0x154] ss:$28 sps:$4 sm:$0xff]   ;;  %v3642_v8 = vld [vmem:[%s4929_s0 + $0x164] ss:$28 sps:$4 sm:$0xff]   ;;  %v3720_v11 = vld [vmem:[%s4928_s1 + $0xd8] sm:$0xff]  }
  0x19   :  { %v3707_v9 = vld [vmem:[%s4928_s1 + $0xd0] sm:$0xff]   ;;  %v3645_v12 = vld [vmem:[%s4929_s0 + $0x160] ss:$28 sps:$4 sm:$0xff]  }
  0x1a   :  { %1571 = vmatpush1.bf16.msra.mxu1 %v3579_v13  ;;  %v3647_v13 = vld [vmem:[%s4929_s0 + $0x18c] ss:$28 sps:$4 sm:$0xff]   ;;  %v3653_v19 = vld [vmem:[%s4929_s0 + $0x1c4] ss:$28 sps:$4 sm:$0xff]   ;;  %v3752_v21 = vld [vmem:[%s4928_s1 + $0xf0] sm:$0xff]  }
  0x1b   :  { %2035 = vmatpush1.bf16.msra.mxu0 %v3580_v14  ;;  %1572 = vmatprep.subr.bf16.mxu1 %v3864_v0  ;;  %v3649_v14 = vld [vmem:[%s4929_s0 + $0x19c] ss:$28 sps:$4 sm:$0xff]  }
  0x1c   :  { %2036 = vmatprep.subr.bf16.mxu0 %v3864_v0 }
  0x1e   :  { %1573 = vmatpush1.bf16.msra.mxu1 %v3581_v15  ;;  %v3729_v15 = vld [vmem:[%s4928_s1 + $0xe0] sm:$0xff]  }
  0x1f   :  { %2037 = vmatpush1.bf16.msra.mxu0 %v3582_v16  ;;  %1574 = vmatprep.subr.bf16.mxu1 %v3864_v0  ;;  %v3651_v16 = vld [vmem:[%s4929_s0 + $0x188] ss:$28 sps:$4 sm:$0xff]  }
  0x20   :  { %2038 = vmatprep.subr.bf16.mxu0 %v3864_v0 }
  0x22   :  { %1575 = vmatpush1.bf16.msra.mxu1 %v3583_v17  ;;  %v3740_v17 = vld [vmem:[%s4928_s1 + $0xe8] sm:$0xff]  }
  0x23   :  { %2039 = vmatpush1.bf16.msra.mxu0 %v3584_v18  ;;  %1576 = vmatprep.subr.bf16.mxu1 %v3864_v0  ;;  %v3652_v18 = vld [vmem:[%s4929_s0 + $0x198] ss:$28 sps:$4 sm:$0xff]  }
  0x24   :  { %2040 = vmatprep.subr.bf16.mxu0 %v3864_v0 }
  0x26   :  { %1577 = vmatpush1.bf16.msra.mxu1 %v3585_v20  ;;  %v3655_v20 = vld [vmem:[%s4929_s0 + $0x1d4] ss:$28 sps:$4 sm:$0xff]  }
  0x27   :  { %2041 = vmatpush1.bf16.msra.mxu0 %v3586_v22  ;;  %1578 = vmatprep.subr.bf16.mxu1 %v3864_v0  ;;  %v3760_v22 = vld [vmem:[%s4928_s1 + $0xf8] sm:$0xff]  }
  0x28   :  { %2042 = vmatprep.subr.bf16.mxu0 %v3864_v0 }
  0x2a   :  { %1579 = vmatpush1.bf16.msra.mxu1 %v3587_v23  ;;  %v3657_v23 = vld [vmem:[%s4929_s0 + $0x1c0] ss:$28 sps:$4 sm:$0xff]  }
  0x2b   :  { %2043 = vmatpush1.bf16.msra.mxu0 %v3588_v24  ;;  %1580 = vmatprep.subr.bf16.mxu1 %v3864_v0  ;;  %v3659_v24 = vld [vmem:[%s4929_s0 + $0x1d0] ss:$28 sps:$4 sm:$0xff]  }
  0x2c   :  { %2044 = vmatprep.subr.bf16.mxu0 %v3864_v0 }
  0x2e   :  { %1581 = vmatpush1.bf16.msra.mxu1 %v3589_v25  ;;  %v3660_v25 = vld [vmem:[%s4929_s0 + $0x1fc] ss:$28 sps:$4 sm:$0xff]  }
  0x2f   :  { %2045 = vmatpush1.bf16.msra.mxu0 %v3590_v26  ;;  %1582 = vmatprep.subr.bf16.mxu1 %v3864_v0  ;;  %v3662_v26 = vld [vmem:[%s4929_s0 + $0x20c] ss:$28 sps:$4 sm:$0xff]  }
  0x30   :  { %2046 = vmatprep.subr.bf16.mxu0 %v3864_v0 }
  0x32   :  { %1583 = vmatpush1.bf16.msra.mxu1 %v3591_v27  ;;  %v3664_v27 = vld [vmem:[%s4929_s0 + $0x1f8] ss:$28 sps:$4 sm:$0xff]  }
  0x33   :  { %2047 = vmatpush1.bf16.msra.mxu0 %v3592_v28  ;;  %1584 = vmatprep.subr.bf16.mxu1 %v3864_v0  ;;  %v3665_v28 = vld [vmem:[%s4929_s0 + $0x208] ss:$28 sps:$4 sm:$0xff]  }
  0x34   :  { %2048 = vmatprep.subr.bf16.mxu0 %v3864_v0 }
  0x36   :  { %1585 = vmatpush1.bf16.msra.mxu1 %v3593_v29  ;;  %v3669_v29 = vld [vmem:[%s4929_s0 + $0x244] ss:$28 sps:$4 sm:$0xff]  }
  0x37   :  { %2049 = vmatpush1.bf16.msra.mxu0 %v3594_v30  ;;  %1586 = vmatprep.subr.bf16.mxu1 %v3864_v0  ;;  %v3671_v30 = vld [vmem:[%s4929_s0 + $0x230] ss:$28 sps:$4 sm:$0xff]  }
  0x38   :  { %2050 = vmatprep.subr.bf16.mxu0 %v3864_v0 }
  0x3a   :  { %1587 = vmatpush1.bf16.msra.mxu1 %v3595_v31  ;;  %v3672_v31 = vld [vmem:[%s4929_s0 + $0x240] ss:$28 sps:$4 sm:$0xff]  }
  0x3b   :  { %2051 = vmatpush1.bf16.msra.mxu0 %v3596_v32  ;;  %1588 = vmatprep.subr.bf16.mxu1 %v3864_v0  ;;  %v3673_v32 = vld [vmem:[%s4929_s0 + $0x26c] ss:$28 sps:$4 sm:$0xff]  }
  0x3c   :  { %2052 = vmatprep.subr.bf16.mxu0 %v3864_v0 }
  0x3e   :  { %1589 = vmatpush1.bf16.msra.mxu1 %v3597_v33  ;;  %v3675_v33 = vld [vmem:[%s4929_s0 + $0x27c] ss:$28 sps:$4 sm:$0xff]  }
  0x3f   :  { %2053 = vmatpush1.bf16.msra.mxu0 %v3598_v34  ;;  %1790 = vmatprep.subr.bf16.mxu1 %v3864_v0  ;;  %v3677_v34 = vld [vmem:[%s4929_s0 + $0x268] ss:$28 sps:$4 sm:$0xff]  }
  0x40   :  { %3162 = vmatprep.subr.bf16.mxu0 %v3865_v40 }
  0x41   :  { %1591 = vmatmul.mubr.bf16.vlgmr.msra.gmra.mrb[0].mxu1 %v3599_v35  ;;  %v3678_v35 = vld [vmem:[%s4929_s0 + $0x278] ss:$28 sps:$4 sm:$0xff]  }
  0x42   :  { %2055 = vmatmul.mubr.bf16.vlgmr.msra.gmra.mrb[0].mxu0 %v3602_v36  ;;  %1791 = vmatpush1.bf16.msra.mxu1 %v3605_v37  ;;  %v3680_v36 = vld [vmem:[%s4929_s0 + $0x2a4] ss:$28 sps:$4 sm:$0xff]   ;;  %v3682_v37 = vld [vmem:[%s4929_s0 + $0x2b4] ss:$28 sps:$4 sm:$0xff]  }
  0x43   :  { %3163 = vmatpush3.bf16.msra.mxu0 %v3606_v38  ;;  %1598 = vmatprep.mubr.bf16.mxu1 %v3607_v39  ;;  %v3684_v38 = vld [vmem:[%s4929_s0 + $0x2a0] ss:$28 sps:$4 sm:$0xff]   ;;  %v3685_v39 = vld [vmem:[%s4929_s0 + $0x2b0] ss:$28 sps:$4 sm:$0xff]  }
  0x44   :  { %2062 = vmatprep.mubr.bf16.mxu0 %v3609_v41  ;;  %1792 = vmatprep.subr.bf16.mxu1 %v3864_v0  ;;  %v3687_v41 = vld [vmem:[%s4929_s0 + $0x2dc] ss:$28 sps:$4 sm:$0xff]  }
  0x45   :  { %3164 = vmatprep.subr.bf16.mxu0 %v3865_v40 }
  0x46   :  { %1793 = vmatpush1.bf16.msra.mxu1 %v3613_v42  ;;  %v3689_v42 = vld [vmem:[%s4929_s0 + $0x2ec] ss:$28 sps:$4 sm:$0xff]  }
  0x47   :  { %1794 = vmatprep.subr.bf16.mxu1 %v3864_v0  ;;  %3165 = vmatpush3.bf16.msra.mxu0 %v3691_v54  ;;  %v3710_v54 = vld [vmem:[%s4929_s0 + $0x394] ss:$28 sps:$4 sm:$0xff]  }
  0x49   :  { %1599 = vmatmul.mubr.bf16.gmra.mrb[4].mxu1 %v3611_v43  ;;  %v3692_v43 = vld [vmem:[%s4929_s0 + $0x2d8] ss:$28 sps:$4 sm:$0xff]  }
  0x4a   :  { %2063 = vmatmul.mubr.bf16.gmra.mrb[4].mxu0 %v3612_v44  ;;  %1606 = vmatprep.mubr.bf16.mxu1 %v3614_v45  ;;  %v3693_v44 = vld [vmem:[%s4929_s0 + $0x2e8] ss:$28 sps:$4 sm:$0xff]   ;;  %v3694_v45 = vld [vmem:[%s4929_s0 + $0x314] ss:$28 sps:$4 sm:$0xff]  }
  0x4b   :  { %2070 = vmatprep.mubr.bf16.mxu0 %v3616_v46  ;;  %1795 = vmatpush1.bf16.msra.mxu1 %v3626_v47  ;;  %v3696_v46 = vld [vmem:[%s4929_s0 + $0x324] ss:$28 sps:$4 sm:$0xff]   ;;  %v3698_v47 = vld [vmem:[%s4929_s0 + $0x310] ss:$28 sps:$4 sm:$0xff]  }
  0x4c   :  { %1796 = vmatprep.subr.bf16.mxu1 %v3864_v0 }
  0x4f   :  { %1797 = vmatpush1.bf16.msra.mxu1 %v3635_v49  ;;  %v3701_v49 = vld [vmem:[%s4929_s0 + $0x34c] ss:$28 sps:$4 sm:$0xff]  }
  0x50   :  { %1798 = vmatprep.subr.bf16.mxu1 %v3864_v0 }
  0x51   :  { %1607 = vmatmul.mubr.bf16.gmra.mrb[8].mxu1 %v3618_v48  ;;  %v3699_v48 = vld [vmem:[%s4929_s0 + $0x320] ss:$28 sps:$4 sm:$0xff]  }
  0x52   :  { %2071 = vmatmul.mubr.bf16.gmra.mrb[8].mxu0 %v3619_v50  ;;  %1614 = vmatprep.mubr.bf16.mxu1 %v3620_v51  ;;  %v3703_v50 = vld [vmem:[%s4929_s0 + $0x35c] ss:$28 sps:$4 sm:$0xff]   ;;  %v3705_v51 = vld [vmem:[%s4929_s0 + $0x348] ss:$28 sps:$4 sm:$0xff]  }
  0x53   :  { %2078 = vmatprep.mubr.bf16.mxu0 %v3622_v52  ;;  %1799 = vmatpush1.bf16.msra.mxu1 %v3646_v53  ;;  %v3706_v52 = vld [vmem:[%s4929_s0 + $0x358] ss:$28 sps:$4 sm:$0xff]   ;;  %v3708_v53 = vld [vmem:[%s4929_s0 + $0x384] ss:$28 sps:$4 sm:$0xff]  }
  0x54   :  { %1800 = vmatprep.subr.bf16.mxu1 %v3864_v0 }
  0x57   :  { %1801 = vmatpush1.bf16.msra.mxu1 %v3658_v55  ;;  %v3712_v55 = vld [vmem:[%s4929_s0 + $0x380] ss:$28 sps:$4 sm:$0xff]  }
  0x58   :  { %1802 = vmatprep.subr.bf16.mxu1 %v3864_v0 }
  0x59   :  { %1615 = vmatmul.mubr.bf16.gmra.mrb[12].mxu1 %v3624_v56  ;;  %v3713_v56 = vld [vmem:[%s4929_s0 + $0x390] ss:$28 sps:$4 sm:$0xff]  }
  0x5a   :  { %2079 = vmatmul.mubr.bf16.gmra.mrb[12].mxu0 %v3625_v57  ;;  %1622 = vmatprep.mubr.bf16.mxu1 %v3627_v58  ;;  %v3714_v57 = vld [vmem:[%s4929_s0 + $0x3bc] ss:$28 sps:$4 sm:$0xff]   ;;  %v3716_v58 = vld [vmem:[%s4929_s0 + $0x3cc] ss:$28 sps:$4 sm:$0xff]  }
  0x5b   :  { %2086 = vmatprep.mubr.bf16.mxu0 %v3629_v59  ;;  %1803 = vmatpush1.bf16.msra.mxu1 %v3666_v60  ;;  %v3718_v59 = vld [vmem:[%s4929_s0 + $0x3b8] ss:$28 sps:$4 sm:$0xff]   ;;  %v3719_v60 = vld [vmem:[%s4929_s0 + $0x3c8] ss:$28 sps:$4 sm:$0xff]  }
  0x5c   :  { %1804 = vmatprep.subr.bf16.mxu1 %v3864_v0 }
  0x5f   :  { %1805 = vmatpush1.bf16.msra.mxu1 %v3679_v61  ;;  %v3721_v61 = vld [vmem:[%s4929_s0 + $0x3f4] ss:$28 sps:$4 sm:$0xff]  }
  0x60   :  { %1806 = vmatprep.subr.bf16.mxu1 %v3864_v0 }
  0x61   :  { %1623 = vmatmul.mubr.bf16.gmra.mrb[16].mxu1 %v3631_v62  ;;  %v3723_v62 = vld [vmem:[%s4929_s0 + $0x404] ss:$28 sps:$4 sm:$0xff]  }
  0x62   :  { %2087 = vmatmul.mubr.bf16.gmra.mrb[16].mxu0 %v3632_v63  ;;  %1630 = vmatprep.mubr.bf16.mxu1 %v3633_v1  ;;  %v3725_v63 = vld [vmem:[%s4929_s0 + $0x3f0] ss:$28 sps:$4 sm:$0xff]   ;;  %v3726_v1 = vld [vmem:[%s4929_s0 + $0x400] ss:$28 sps:$4 sm:$0xff]  }
  0x63   :  { %2094 = vmatprep.mubr.bf16.mxu0 %v3636_v2  ;;  %1807 = vmatpush1.bf16.msra.mxu1 %v3686_v3  ;;  %v3727_v2 = vld [vmem:[%s4929_s0 + $0x42c] ss:$28 sps:$4 sm:$0xff]   ;;  %v3730_v3 = vld [vmem:[%s4929_s0 + $0x43c] ss:$28 sps:$4 sm:$0xff]  }
  0x64   :  { %1808 = vmatprep.subr.bf16.mxu1 %v3864_v0 }
  0x67   :  { %1809 = vmatpush1.bf16.msra.mxu1 %v3700_v4  ;;  %v3732_v4 = vld [vmem:[%s4929_s0 + $0x428] ss:$28 sps:$4 sm:$0xff]  }
  0x68   :  { %1810 = vmatprep.subr.bf16.mxu1 %v3864_v0 }
  0x69   :  { %1631 = vmatmul.mubr.bf16.gmra.mrb[20].mxu1 %v3638_v5  ;;  %v3733_v5 = vld [vmem:[%s4929_s0 + $0x438] ss:$28 sps:$4 sm:$0xff]  }
  0x6a   :  { %2095 = vmatmul.mubr.bf16.gmra.mrb[20].mxu0 %v3639_v6  ;;  %1638 = vmatprep.mubr.bf16.mxu1 %v3640_v7  ;;  %v3734_v6 = vld [vmem:[%s4929_s0 + $0x464] ss:$28 sps:$4 sm:$0xff]   ;;  %v3736_v7 = vld [vmem:[%s4929_s0 + $0x474] ss:$28 sps:$4 sm:$0xff]  }
  0x6b   :  { %2102 = vmatprep.mubr.bf16.mxu0 %v3642_v8  ;;  %1811 = vmatpush1.bf16.msra.mxu1 %v3707_v9  ;;  %v3738_v8 = vld [vmem:[%s4929_s0 + $0x460] ss:$28 sps:$4 sm:$0xff]   ;;  %v3739_v9 = vld [vmem:[%s4929_s0 + $0x470] ss:$28 sps:$4 sm:$0xff]  }
  0x6c   :  { %1812 = vmatprep.subr.bf16.mxu1 %v3864_v0 }
  0x6f   :  { %1813 = vmatpush1.bf16.msra.mxu1 %v3720_v11  ;;  %v3743_v11 = vld [vmem:[%s4929_s0 + $0x4ac] ss:$28 sps:$4 sm:$0xff]  }
  0x70   :  { %1814 = vmatprep.subr.bf16.mxu1 %v3864_v0 }
  0x71   :  { %1639 = vmatmul.mubr.bf16.gmra.mrb[24].mxu1 %v3644_v10  ;;  %v3741_v10 = vld [vmem:[%s4929_s0 + $0x49c] ss:$28 sps:$4 sm:$0xff]  }
  0x72   :  { %2103 = vmatmul.mubr.bf16.gmra.mrb[24].mxu0 %v3645_v12  ;;  %1646 = vmatprep.mubr.bf16.mxu1 %v3647_v13  ;;  %v3745_v12 = vld [vmem:[%s4929_s0 + $0x498] ss:$28 sps:$4 sm:$0xff]   ;;  %v3746_v13 = vld [vmem:[%s4929_s0 + $0x4a8] ss:$28 sps:$4 sm:$0xff]  }
  0x73   :  { %2110 = vmatprep.mubr.bf16.mxu0 %v3649_v14  ;;  %1815 = vmatpush1.bf16.msra.mxu1 %v3729_v15  ;;  %v3747_v14 = vld [vmem:[%s4929_s0 + $0x4d4] ss:$28 sps:$4 sm:$0xff]   ;;  %v3749_v15 = vld [vmem:[%s4929_s0 + $0x4e4] ss:$28 sps:$4 sm:$0xff]  }
  0x74   :  { %1816 = vmatprep.subr.bf16.mxu1 %v3864_v0 }
  0x77   :  { %1817 = vmatpush1.bf16.msra.mxu1 %v3740_v17  ;;  %v3753_v17 = vld [vmem:[%s4929_s0 + $0x4e0] ss:$28 sps:$4 sm:$0xff]  }
  0x78   :  { %1818 = vmatprep.subr.bf16.mxu1 %v3864_v0 }
  0x79   :  { %1647 = vmatmul.mubr.bf16.gmra.mrb[28].mxu1 %v3651_v16  ;;  %v3751_v16 = vld [vmem:[%s4929_s0 + $0x4d0] ss:$28 sps:$4 sm:$0xff]  }
  0x7a   :  { %2111 = vmatmul.mubr.bf16.gmra.mrb[28].mxu0 %v3652_v18  ;;  %1654 = vmatprep.mubr.bf16.mxu1 %v3653_v19  ;;  %v3754_v18 = vld [vmem:[%s4929_s0 + $0x50c] ss:$28 sps:$4 sm:$0xff]   ;;  %v3756_v19 = vld [vmem:[%s4929_s0 + $0x51c] ss:$28 sps:$4 sm:$0xff]  }
  0x7b   :  { %2118 = vmatprep.mubr.bf16.mxu0 %v3655_v20  ;;  %1819 = vmatpush1.bf16.msra.mxu1 %v3752_v21  ;;  %v207_v20 = vld [vmem:[%s4929_s0 + $0x540] sm:$0xff]  ;;  %v209_v21 = vld [vmem:[%s4929_s0 + $0x550] sm:$0xff] }
  0x7c   :  { %1820 = vmatprep.subr.bf16.mxu1 %v3864_v0  ;;  %v3667_v0 = vld [vmem:[%s4929_s0 + $0x234] ss:$28 sps:$4 sm:$0xff]  }
  0x7f   :  { %1821 = vmatpush1.bf16.msra.mxu1 %v3760_v22  ;;  %v3758_v22 = vld [vmem:[%s4929_s0 + $0x508] ss:$28 sps:$4 sm:$0xff]  }
  0x81   :  { %1655 = vmatmul.mubr.bf16.gmra.mrb[32].mxu1 %v3657_v23  ;;  %v3759_v23 = vld [vmem:[%s4929_s0 + $0x518] ss:$28 sps:$4 sm:$0xff]  }
  0x82   :  { %2119 = vmatmul.mubr.bf16.gmra.mrb[32].mxu0 %v3659_v24  ;;  %1662 = vmatprep.mubr.bf16.mxu1 %v3660_v25  ;;  %v2956_v24 = vcombine.high %v207_v20, %v207_v20  ;;  %v2960_v25 = vcombine.high %v209_v21, %v209_v21 }
  0x83   :  { %2126 = vmatprep.mubr.bf16.mxu0 %v3662_v26  ;;  %v2955_v26 = vcombine.low %v207_v20, %v207_v20  ;;  %v3839_v20 = vld [vmem:[%s4929_s0 + $0x3f8] ss:$28 sps:$4 sm:$0xff]  }
  0x89   :  { %1663 = vmatmul.mubr.bf16.gmra.mrb[36].mxu1 %v3664_v27  ;;  %v2959_v27 = vcombine.low %v209_v21, %v209_v21  ;;  %v3840_v21 = vld [vmem:[%s4929_s0 + $0x408] ss:$28 sps:$4 sm:$0xff]  }
  0x8a   :  { %2127 = vmatmul.mubr.bf16.gmra.mrb[36].mxu0 %v3665_v28  ;;  %1670 = vmatprep.mubr.bf16.mxu1 %v3667_v0  ;;  %v3767_v28 = vld [vmem:[%s4929_s0 + $0xc] ss:$28 sps:$4 sm:$0xff]  }
  0x8b   :  { %2134 = vmatprep.mubr.bf16.mxu0 %v3669_v29  ;;  %v3765_v0 = vld [vmem:[%s4929_s0 + $0x8] ss:$28 sps:$4 sm:$0xff]   ;;  %v3768_v29 = vld [vmem:[%s4929_s0 + $0x18] ss:$28 sps:$4 sm:$0xff]  }
  0x91   :  { %1671 = vmatmul.mubr.bf16.gmra.mrb[40].mxu1 %v3671_v30  ;;  %v3769_v30 = vld [vmem:[%s4929_s0 + $0x44] ss:$28 sps:$4 sm:$0xff]  }
  0x92   :  { %2135 = vmatmul.mubr.bf16.gmra.mrb[40].mxu0 %v3672_v31  ;;  %1678 = vmatprep.mubr.bf16.mxu1 %v3673_v32  ;;  %v3771_v31 = vld [vmem:[%s4929_s0 + $0x40] ss:$28 sps:$4 sm:$0xff]   ;;  %v3772_v32 = vld [vmem:[%s4929_s0 + $0x50] ss:$28 sps:$4 sm:$0xff]  }
  0x93   :  { %2142 = vmatprep.mubr.bf16.mxu0 %v3675_v33  ;;  %v3773_v33 = vld [vmem:[%s4929_s0 + $0x7c] ss:$28 sps:$4 sm:$0xff]  }
  0x99   :  { %1679 = vmatmul.mubr.bf16.gmra.mrb[44].mxu1 %v3677_v34  ;;  %v3775_v34 = vld [vmem:[%s4929_s0 + $0x78] ss:$28 sps:$4 sm:$0xff]  }
  0x9a   :  { %2143 = vmatmul.mubr.bf16.gmra.mrb[44].mxu0 %v3678_v35  ;;  %1686 = vmatprep.mubr.bf16.mxu1 %v3680_v36  ;;  %v3776_v35 = vld [vmem:[%s4929_s0 + $0x88] ss:$28 sps:$4 sm:$0xff]   ;;  %v3777_v36 = vld [vmem:[%s4929_s0 + $0xb4] ss:$28 sps:$4 sm:$0xff]  }
  0x9b   :  { %2150 = vmatprep.mubr.bf16.mxu0 %v3682_v37  ;;  %v3779_v37 = vld [vmem:[%s4929_s0 + $0xb0] ss:$28 sps:$4 sm:$0xff]  }
  0xa1   :  { %1687 = vmatmul.mubr.bf16.gmra.mrb[48].mxu1 %v3684_v38  ;;  %v3780_v38 = vld [vmem:[%s4929_s0 + $0xc0] ss:$28 sps:$4 sm:$0xff]  }
  0xa2   :  { %2151 = vmatmul.mubr.bf16.gmra.mrb[48].mxu0 %v3685_v39  ;;  %1694 = vmatprep.mubr.bf16.mxu1 %v3687_v41  ;;  %v3781_v39 = vld [vmem:[%s4929_s0 + $0xec] ss:$28 sps:$4 sm:$0xff]  }
  0xa3   :  { %2158 = vmatprep.mubr.bf16.mxu0 %v3689_v42  ;;  %v3783_v41 = vld [vmem:[%s4929_s0 + $0xe8] ss:$28 sps:$4 sm:$0xff]   ;;  %v3784_v42 = vld [vmem:[%s4929_s0 + $0xf8] ss:$28 sps:$4 sm:$0xff]  }
  0xa9   :  { %1695 = vmatmul.mubr.bf16.gmra.mrb[52].mxu1 %v3692_v43  ;;  %v3785_v43 = vld [vmem:[%s4929_s0 + $0x124] ss:$28 sps:$4 sm:$0xff]  }
  0xaa   :  { %2159 = vmatmul.mubr.bf16.gmra.mrb[52].mxu0 %v3693_v44  ;;  %1702 = vmatprep.mubr.bf16.mxu1 %v3694_v45  ;;  %v3787_v44 = vld [vmem:[%s4929_s0 + $0x120] ss:$28 sps:$4 sm:$0xff]   ;;  %v3788_v45 = vld [vmem:[%s4929_s0 + $0x130] ss:$28 sps:$4 sm:$0xff]  }
  0xab   :  { %2166 = vmatprep.mubr.bf16.mxu0 %v3696_v46  ;;  %v3789_v46 = vld [vmem:[%s4929_s0 + $0x15c] ss:$28 sps:$4 sm:$0xff]  }
  0xb1   :  { %1703 = vmatmul.mubr.bf16.gmra.mrb[56].mxu1 %v3698_v47  ;;  %v3791_v47 = vld [vmem:[%s4929_s0 + $0x158] ss:$28 sps:$4 sm:$0xff]  }
  0xb2   :  { %2167 = vmatmul.mubr.bf16.gmra.mrb[56].mxu0 %v3699_v48  ;;  %1710 = vmatprep.mubr.bf16.mxu1 %v3701_v49  ;;  %v3792_v48 = vld [vmem:[%s4929_s0 + $0x168] ss:$28 sps:$4 sm:$0xff]   ;;  %v3793_v49 = vld [vmem:[%s4929_s0 + $0x194] ss:$28 sps:$4 sm:$0xff]  }
  0xb3   :  { %2174 = vmatprep.mubr.bf16.mxu0 %v3703_v50  ;;  %v3795_v50 = vld [vmem:[%s4929_s0 + $0x190] ss:$28 sps:$4 sm:$0xff]  }
  0xb9   :  { %1711 = vmatmul.mubr.bf16.gmra.mrb[60].mxu1 %v3705_v51  ;;  %v3796_v51 = vld [vmem:[%s4929_s0 + $0x1a0] ss:$28 sps:$4 sm:$0xff]  }
  0xba   :  { %2175 = vmatmul.mubr.bf16.gmra.mrb[60].mxu0 %v3706_v52  ;;  %1718 = vmatprep.mubr.bf16.mxu1 %v3708_v53  ;;  %v3797_v52 = vld [vmem:[%s4929_s0 + $0x1cc] ss:$28 sps:$4 sm:$0xff]  }
  0xbb   :  { %2182 = vmatprep.mubr.bf16.mxu0 %v3710_v54  ;;  %v3799_v53 = vld [vmem:[%s4929_s0 + $0x1c8] ss:$28 sps:$4 sm:$0xff]   ;;  %v3800_v54 = vld [vmem:[%s4929_s0 + $0x1d8] ss:$28 sps:$4 sm:$0xff]  }
  0xc1   :  { %1719 = vmatmul.mubr.bf16.gmra.mrb[64].mxu1 %v3712_v55  ;;  %v3801_v55 = vld [vmem:[%s4929_s0 + $0x204] ss:$28 sps:$4 sm:$0xff]  }
  0xc2   :  { %2183 = vmatmul.mubr.bf16.gmra.mrb[64].mxu0 %v3713_v56  ;;  %1726 = vmatprep.mubr.bf16.mxu1 %v3714_v57  ;;  %v3803_v56 = vld [vmem:[%s4929_s0 + $0x200] ss:$28 sps:$4 sm:$0xff]   ;;  %v3804_v57 = vld [vmem:[%s4929_s0 + $0x210] ss:$28 sps:$4 sm:$0xff]  }
  0xc3   :  { %2190 = vmatprep.mubr.bf16.mxu0 %v3716_v58  ;;  %v3805_v58 = vld [vmem:[%s4929_s0 + $0x23c] ss:$28 sps:$4 sm:$0xff]  }
  0xc9   :  { %1727 = vmatmul.mubr.bf16.gmra.mrb[68].mxu1 %v3718_v59  ;;  %v3807_v59 = vld [vmem:[%s4929_s0 + $0x238] ss:$28 sps:$4 sm:$0xff]  }
  0xca   :  { %2191 = vmatmul.mubr.bf16.gmra.mrb[68].mxu0 %v3719_v60  ;;  %1734 = vmatprep.mubr.bf16.mxu1 %v3721_v61  ;;  %v3808_v60 = vld [vmem:[%s4929_s0 + $0x248] ss:$28 sps:$4 sm:$0xff]   ;;  %v3809_v61 = vld [vmem:[%s4929_s0 + $0x274] ss:$28 sps:$4 sm:$0xff]  }
  0xcb   :  { %2198 = vmatprep.mubr.bf16.mxu0 %v3723_v62  ;;  %v3811_v62 = vld [vmem:[%s4929_s0 + $0x270] ss:$28 sps:$4 sm:$0xff]  }
  0xd1   :  { %1735 = vmatmul.mubr.bf16.gmra.mrb[72].mxu1 %v3725_v63  ;;  %v3812_v63 = vld [vmem:[%s4929_s0 + $0x280] ss:$28 sps:$4 sm:$0xff]  }
  0xd2   :  { %2199 = vmatmul.mubr.bf16.gmra.mrb[72].mxu0 %v3726_v1  ;;  %1742 = vmatprep.mubr.bf16.mxu1 %v3727_v2  ;;  %v3813_v1 = vld [vmem:[%s4929_s0 + $0x2ac] ss:$28 sps:$4 sm:$0xff]  }
  0xd3   :  { %2206 = vmatprep.mubr.bf16.mxu0 %v3730_v3  ;;  %v3815_v2 = vld [vmem:[%s4929_s0 + $0x2a8] ss:$28 sps:$4 sm:$0xff]   ;;  %v3816_v3 = vld [vmem:[%s4929_s0 + $0x2b8] ss:$28 sps:$4 sm:$0xff]  }
  0xd9   :  { %1743 = vmatmul.mubr.bf16.gmra.mrb[76].mxu1 %v3732_v4  ;;  %v3817_v4 = vld [vmem:[%s4929_s0 + $0x2e4] ss:$28 sps:$4 sm:$0xff]  }
  0xda   :  { %2207 = vmatmul.mubr.bf16.gmra.mrb[76].mxu0 %v3733_v5  ;;  %1750 = vmatprep.mubr.bf16.mxu1 %v3734_v6  ;;  %v3819_v5 = vld [vmem:[%s4929_s0 + $0x2e0] ss:$28 sps:$4 sm:$0xff]   ;;  %v3820_v6 = vld [vmem:[%s4929_s0 + $0x2f0] ss:$28 sps:$4 sm:$0xff]  }
  0xdb   :  { %2214 = vmatprep.mubr.bf16.mxu0 %v3736_v7  ;;  %v3821_v7 = vld [vmem:[%s4929_s0 + $0x31c] ss:$28 sps:$4 sm:$0xff]  }
  0xe1   :  { %1751 = vmatmul.mubr.bf16.gmra.mrb[80].mxu1 %v3738_v8  ;;  %v3823_v8 = vld [vmem:[%s4929_s0 + $0x318] ss:$28 sps:$4 sm:$0xff]  }
  0xe2   :  { %2215 = vmatmul.mubr.bf16.gmra.mrb[80].mxu0 %v3739_v9  ;;  %1758 = vmatprep.mubr.bf16.mxu1 %v3741_v10  ;;  %v3824_v9 = vld [vmem:[%s4929_s0 + $0x328] ss:$28 sps:$4 sm:$0xff]   ;;  %v3825_v10 = vld [vmem:[%s4929_s0 + $0x354] ss:$28 sps:$4 sm:$0xff]  }
  0xe3   :  { %2222 = vmatprep.mubr.bf16.mxu0 %v3743_v11  ;;  %v3827_v11 = vld [vmem:[%s4929_s0 + $0x350] ss:$28 sps:$4 sm:$0xff]  }
  0xe9   :  { %1759 = vmatmul.mubr.bf16.gmra.mrb[84].mxu1 %v3745_v12  ;;  %v3828_v12 = vld [vmem:[%s4929_s0 + $0x360] ss:$28 sps:$4 sm:$0xff]  }
  0xea   :  { %2223 = vmatmul.mubr.bf16.gmra.mrb[84].mxu0 %v3746_v13  ;;  %1766 = vmatprep.mubr.bf16.mxu1 %v3747_v14  ;;  %v3829_v13 = vld [vmem:[%s4929_s0 + $0x38c] ss:$28 sps:$4 sm:$0xff]  }
  0xeb   :  { %2230 = vmatprep.mubr.bf16.mxu0 %v3749_v15  ;;  %v3831_v14 = vld [vmem:[%s4929_s0 + $0x388] ss:$28 sps:$4 sm:$0xff]   ;;  %v3832_v15 = vld [vmem:[%s4929_s0 + $0x398] ss:$28 sps:$4 sm:$0xff]  }
  0xf1   :  { %1767 = vmatmul.mubr.bf16.gmra.mrb[88].mxu1 %v3751_v16  ;;  %v3833_v16 = vld [vmem:[%s4929_s0 + $0x3c4] ss:$28 sps:$4 sm:$0xff]  }
  0xf2   :  { %2231 = vmatmul.mubr.bf16.gmra.mrb[88].mxu0 %v3753_v17  ;;  %1774 = vmatprep.mubr.bf16.mxu1 %v3754_v18  ;;  %v3835_v17 = vld [vmem:[%s4929_s0 + $0x3c0] ss:$28 sps:$4 sm:$0xff]   ;;  %v3836_v18 = vld [vmem:[%s4929_s0 + $0x3d0] ss:$28 sps:$4 sm:$0xff]  }
  0xf3   :  { %2238 = vmatprep.mubr.bf16.mxu0 %v3756_v19  ;;  %v3837_v19 = vld [vmem:[%s4929_s0 + $0x3fc] ss:$28 sps:$4 sm:$0xff]  }
  0xf9   :  { %1775 = vmatmul.mubr.bf16.gmra.mrb[92].mxu1 %v3758_v22  ;;  %v3841_v22 = vld [vmem:[%s4929_s0 + $0x434] ss:$28 sps:$4 sm:$0xff]  }
  0xfa   :  { %2239 = vmatmul.mubr.bf16.gmra.mrb[92].mxu0 %v3759_v23  ;;  %1782 = vmatprep.mubr.bf16.mxu1 %v2956_v24  ;;  %v3843_v23 = vld [vmem:[%s4929_s0 + $0x430] ss:$28 sps:$4 sm:$0xff]   ;;  %v3844_v24 = vld [vmem:[%s4929_s0 + $0x440] ss:$28 sps:$4 sm:$0xff]  }
  0xfb   :  { %2246 = vmatprep.mubr.bf16.mxu0 %v2960_v25  ;;  %v3845_v25 = vld [vmem:[%s4929_s0 + $0x46c] ss:$28 sps:$4 sm:$0xff]  }
 0x101   :  { %1783 = vmatmul.mubr.bf16.gmra.mrb[96].mxu1 %v2955_v26  ;;  %v3847_v26 = vld [vmem:[%s4929_s0 + $0x468] ss:$28 sps:$4 sm:$0xff]  }
 0x102   :  { %2247 = vmatmul.mubr.bf16.gmra.mrb[96].mxu0 %v2959_v27  ;;  %1822 = vmatprep.mubr.bf16.mxu1 %v3767_v28  ;;  %v3848_v27 = vld [vmem:[%s4929_s0 + $0x478] ss:$28 sps:$4 sm:$0xff]   ;;  %v3849_v28 = vld [vmem:[%s4929_s0 + $0x4a4] ss:$28 sps:$4 sm:$0xff]  }
 0x103   :  { %3166 = vmatprep.mubr.msk.bf16.mxu0 %vm3866_vm0, %v3865_v40 }
 0x109   :  { %1823 = vmatmul.mubr.bf16.vlgmr.msra.gmra.mrb[0].mxu1 %v3765_v0  ;;  %v3851_v0 = vld [vmem:[%s4929_s0 + $0x4a0] ss:$28 sps:$4 sm:$0xff]  }
 0x10a   :  { %3167 = vmatmul.mubr.msk.bf16.vlgmr.msra.gmra.mrb[0].mxu0 %vm1482_vm1, %v3768_v29  ;;  %1830 = vmatprep.mubr.bf16.mxu1 %v3769_v30  ;;  %v3852_v29 = vld [vmem:[%s4929_s0 + $0x4b0] ss:$28 sps:$4 sm:$0xff]   ;;  %v3853_v30 = vld [vmem:[%s4929_s0 + $0x4dc] ss:$28 sps:$4 sm:$0xff]  }
 0x10b   :  { %3170 = vmatprep.mubr.msk.bf16.mxu0 %vm3866_vm0, %v3865_v40 }
 0x111   :  { %1831 = vmatmul.mubr.bf16.gmra.mrb[4].mxu1 %v3771_v31  ;;  %v3855_v31 = vld [vmem:[%s4929_s0 + $0x4d8] ss:$28 sps:$4 sm:$0xff]  }
 0x112   :  { %3171 = vmatmul.mubr.msk.bf16.gmra.mrb[4].mxu0 %vm1482_vm1, %v3772_v32  ;;  %1838 = vmatprep.mubr.bf16.mxu1 %v3773_v33  ;;  %v3856_v32 = vld [vmem:[%s4929_s0 + $0x4e8] ss:$28 sps:$4 sm:$0xff]   ;;  %v3857_v33 = vld [vmem:[%s4929_s0 + $0x514] ss:$28 sps:$4 sm:$0xff]  }
 0x113   :  { %3174 = vmatprep.mubr.msk.bf16.mxu0 %vm3866_vm0, %v3865_v40 }
 0x119   :  { %1839 = vmatmul.mubr.bf16.gmra.mrb[8].mxu1 %v3775_v34  ;;  %v208_v34 = vld [vmem:[%s4929_s0 + $0x548] sm:$0xff] }
 0x11a   :  { %3175 = vmatmul.mubr.msk.bf16.gmra.mrb[8].mxu0 %vm1482_vm1, %v3776_v35  ;;  %1846 = vmatprep.mubr.bf16.mxu1 %v3777_v36  ;;  %v3859_v35 = vld [vmem:[%s4929_s0 + $0x510] ss:$28 sps:$4 sm:$0xff]   ;;  %v3860_v36 = vld [vmem:[%s4929_s0 + $0x520] ss:$28 sps:$4 sm:$0xff]  }
 0x11b   :  { %3178 = vmatprep.mubr.msk.bf16.mxu0 %vm3866_vm0, %v3865_v40 }
 0x121   :  { %1847 = vmatmul.mubr.bf16.gmra.mrb[12].mxu1 %v3779_v37  ;;  %v2958_v37 = vcombine.high %v208_v34, %v208_v34 }
 0x122   :  { %3179 = vmatmul.mubr.msk.bf16.gmra.mrb[12].mxu0 %vm1482_vm1, %v3780_v38  ;;  %1854 = vmatprep.mubr.bf16.mxu1 %v3781_v39  ;;  %v2957_v38 = vcombine.low %v208_v34, %v208_v34  ;;  %v3863_v39 = vld [vmem:[%s4929_s0 + $0x558] ss:$0 sps:$4 sm:$0xff]  }
 0x123   :  { %3182 = vmatprep.mubr.msk.bf16.mxu0 %vm3866_vm0, %v3865_v40 }
 0x129   :  { %1855 = vmatmul.mubr.bf16.gmra.mrb[16].mxu1 %v3783_v41  ;;  %v4681_v41 = vld [vmem:[%s4930_s2] ss:$0 sm:$0xff] }
 0x12a   :  { %3183 = vmatmul.mubr.msk.bf16.gmra.mrb[16].mxu0 %vm1482_vm1, %v3784_v42  ;;  %1862 = vmatprep.mubr.bf16.mxu1 %v3785_v43 }
 0x12b   :  { %3186 = vmatprep.mubr.msk.bf16.mxu0 %vm3866_vm0, %v3865_v40 }
 0x131   :  { %1863 = vmatmul.mubr.bf16.gmra.mrb[20].mxu1 %v3787_v44 }
 0x132   :  { %3187 = vmatmul.mubr.msk.bf16.gmra.mrb[20].mxu0 %vm1482_vm1, %v3788_v45  ;;  %1870 = vmatprep.mubr.bf16.mxu1 %v3789_v46 }
 0x133   :  { %3190 = vmatprep.mubr.msk.bf16.mxu0 %vm3866_vm0, %v3865_v40 }
 0x139   :  { %1871 = vmatmul.mubr.bf16.gmra.mrb[24].mxu1 %v3791_v47 }
 0x13a   :  { %3191 = vmatmul.mubr.msk.bf16.gmra.mrb[24].mxu0 %vm1482_vm1, %v3792_v48  ;;  %1878 = vmatprep.mubr.bf16.mxu1 %v3793_v49 }
 0x13b   :  { %3194 = vmatprep.mubr.msk.bf16.mxu0 %vm3866_vm0, %v3865_v40 }
 0x141   :  { %1879 = vmatmul.mubr.bf16.gmra.mrb[28].mxu1 %v3795_v50 }
 0x142   :  { %3195 = vmatmul.mubr.msk.bf16.gmra.mrb[28].mxu0 %vm1482_vm1, %v3796_v51  ;;  %1886 = vmatprep.mubr.bf16.mxu1 %v3797_v52 }
 0x143   :  { %3198 = vmatprep.mubr.msk.bf16.mxu0 %vm3866_vm0, %v3865_v40 }
 0x149   :  { %1887 = vmatmul.mubr.bf16.gmra.mrb[32].mxu1 %v3799_v53 }
 0x14a   :  { %3199 = vmatmul.mubr.msk.bf16.gmra.mrb[32].mxu0 %vm1482_vm1, %v3800_v54  ;;  %1894 = vmatprep.mubr.bf16.mxu1 %v3801_v55 }
 0x14b   :  { %3202 = vmatprep.mubr.msk.bf16.mxu0 %vm3866_vm0, %v3865_v40 }
 0x151   :  { %1895 = vmatmul.mubr.bf16.gmra.mrb[36].mxu1 %v3803_v56 }
 0x152   :  { %3203 = vmatmul.mubr.msk.bf16.gmra.mrb[36].mxu0 %vm1482_vm1, %v3804_v57  ;;  %1902 = vmatprep.mubr.bf16.mxu1 %v3805_v58 }
 0x153   :  { %3206 = vmatprep.mubr.msk.bf16.mxu0 %vm3866_vm0, %v3865_v40 }
 0x159   :  { %1903 = vmatmul.mubr.bf16.gmra.mrb[40].mxu1 %v3807_v59 }
 0x15a   :  { %3207 = vmatmul.mubr.msk.bf16.gmra.mrb[40].mxu0 %vm1482_vm1, %v3808_v60  ;;  %1910 = vmatprep.mubr.bf16.mxu1 %v3809_v61 }
 0x15b   :  { %3210 = vmatprep.mubr.msk.bf16.mxu0 %vm3866_vm0, %v3865_v40 }
 0x161   :  { %1911 = vmatmul.mubr.bf16.gmra.mrb[44].mxu1 %v3811_v62 }
 0x162   :  { %3211 = vmatmul.mubr.msk.bf16.gmra.mrb[44].mxu0 %vm1482_vm1, %v3812_v63  ;;  %1918 = vmatprep.mubr.bf16.mxu1 %v3813_v1 }
 0x163   :  { %3214 = vmatprep.mubr.msk.bf16.mxu0 %vm3866_vm0, %v3865_v40 }
 0x169   :  { %1919 = vmatmul.mubr.bf16.gmra.mrb[48].mxu1 %v3815_v2 }
 0x16a   :  { %3215 = vmatmul.mubr.msk.bf16.gmra.mrb[48].mxu0 %vm1482_vm1, %v3816_v3  ;;  %1926 = vmatprep.mubr.bf16.mxu1 %v3817_v4 }
 0x16b   :  { %3218 = vmatprep.mubr.msk.bf16.mxu0 %vm3866_vm0, %v3865_v40 }
 0x171   :  { %1927 = vmatmul.mubr.bf16.gmra.mrb[52].mxu1 %v3819_v5 }
 0x172   :  { %3219 = vmatmul.mubr.msk.bf16.gmra.mrb[52].mxu0 %vm1482_vm1, %v3820_v6  ;;  %1934 = vmatprep.mubr.bf16.mxu1 %v3821_v7 }
 0x173   :  { %3222 = vmatprep.mubr.msk.bf16.mxu0 %vm3866_vm0, %v3865_v40 }
 0x179   :  { %1935 = vmatmul.mubr.bf16.gmra.mrb[56].mxu1 %v3823_v8 }
 0x17a   :  { %3223 = vmatmul.mubr.msk.bf16.gmra.mrb[56].mxu0 %vm1482_vm1, %v3824_v9  ;;  %1942 = vmatprep.mubr.bf16.mxu1 %v3825_v10 }
 0x17b   :  { %3226 = vmatprep.mubr.msk.bf16.mxu0 %vm3866_vm0, %v3865_v40 }
 0x181   :  { %1943 = vmatmul.mubr.bf16.gmra.mrb[60].mxu1 %v3827_v11 }
 0x182   :  { %3227 = vmatmul.mubr.msk.bf16.gmra.mrb[60].mxu0 %vm1482_vm1, %v3828_v12  ;;  %1950 = vmatprep.mubr.bf16.mxu1 %v3829_v13 }
 0x183   :  { %3230 = vmatprep.mubr.msk.bf16.mxu0 %vm3866_vm0, %v3865_v40 }
 0x189   :  { %1951 = vmatmul.mubr.bf16.gmra.mrb[64].mxu1 %v3831_v14 }
 0x18a   :  { %3231 = vmatmul.mubr.msk.bf16.gmra.mrb[64].mxu0 %vm1482_vm1, %v3832_v15  ;;  %1958 = vmatprep.mubr.bf16.mxu1 %v3833_v16 }
 0x18b   :  { %3234 = vmatprep.mubr.msk.bf16.mxu0 %vm3866_vm0, %v3865_v40 }
 0x191   :  { %1959 = vmatmul.mubr.bf16.gmra.mrb[68].mxu1 %v3835_v17 }
 0x192   :  { %3235 = vmatmul.mubr.msk.bf16.gmra.mrb[68].mxu0 %vm1482_vm1, %v3836_v18  ;;  %1966 = vmatprep.mubr.bf16.mxu1 %v3837_v19 }
 0x193   :  { %3238 = vmatprep.mubr.msk.bf16.mxu0 %vm3866_vm0, %v3865_v40 }
 0x199   :  { %1967 = vmatmul.mubr.bf16.gmra.mrb[72].mxu1 %v3839_v20 }
 0x19a   :  { %3239 = vmatmul.mubr.msk.bf16.gmra.mrb[72].mxu0 %vm1482_vm1, %v3840_v21  ;;  %1974 = vmatprep.mubr.bf16.mxu1 %v3841_v22 }
 0x19b   :  { %3242 = vmatprep.mubr.msk.bf16.mxu0 %vm3866_vm0, %v3865_v40 }
 0x1a1   :  { %1975 = vmatmul.mubr.bf16.gmra.mrb[76].mxu1 %v3843_v23 }
 0x1a2   :  { %3243 = vmatmul.mubr.msk.bf16.gmra.mrb[76].mxu0 %vm1482_vm1, %v3844_v24  ;;  %1982 = vmatprep.mubr.bf16.mxu1 %v3845_v25 }
 0x1a3   :  { %3246 = vmatprep.mubr.msk.bf16.mxu0 %vm3866_vm0, %v3865_v40 }
 0x1a9   :  { %1983 = vmatmul.mubr.bf16.gmra.mrb[80].mxu1 %v3847_v26 }
 0x1aa   :  { %3247 = vmatmul.mubr.msk.bf16.gmra.mrb[80].mxu0 %vm1482_vm1, %v3848_v27  ;;  %1990 = vmatprep.mubr.bf16.mxu1 %v3849_v28 }
 0x1ab   :  { %3250 = vmatprep.mubr.msk.bf16.mxu0 %vm3866_vm0, %v3865_v40 }
 0x1b1   :  { %1991 = vmatmul.mubr.bf16.gmra.mrb[84].mxu1 %v3851_v0 }
 0x1b2   :  { %3251 = vmatmul.mubr.msk.bf16.gmra.mrb[84].mxu0 %vm1482_vm1, %v3852_v29  ;;  %1998 = vmatprep.mubr.bf16.mxu1 %v3853_v30 }
 0x1b3   :  { %3254 = vmatprep.mubr.msk.bf16.mxu0 %vm3866_vm0, %v3865_v40 }
 0x1b9   :  { %1999 = vmatmul.mubr.bf16.gmra.mrb[88].mxu1 %v3855_v31 }
 0x1ba   :  { %3255 = vmatmul.mubr.msk.bf16.gmra.mrb[88].mxu0 %vm1482_vm1, %v3856_v32  ;;  %2006 = vmatprep.mubr.bf16.mxu1 %v3857_v33 }
 0x1bb   :  { %3258 = vmatprep.mubr.msk.bf16.mxu0 %vm3866_vm0, %v3865_v40 }
 0x1c1   :  { %2007 = vmatmul.mubr.bf16.gmra.mrb[92].mxu1 %v3859_v35 }
 0x1c2   :  { %3259 = vmatmul.mubr.msk.bf16.gmra.mrb[92].mxu0 %vm1482_vm1, %v3860_v36  ;;  %2014 = vmatprep.mubr.bf16.mxu1 %v2958_v37 }
 0x1c3   :  { %3262 = vmatprep.mubr.msk.bf16.mxu0 %vm3866_vm0, %v3865_v40 }
 0x1c9   :  { %2015 = vmatmul.mubr.bf16.gmra.mrb[96].mxu1 %v2957_v38 }
 0x1ca   :  { %3263 = vmatmul.mubr.msk.bf16.gmra.mrb[96].mxu0 %vm1482_vm1, %v3863_v39 }
 0x1dc   :  { %v1824_v42 = vpop.f32.mrb[0].mxu1 }
 0x1dd   :  { %v3266_v43 = vadd.f32 %v4681_v41, %v1824_v42  ;;  %v2288_v44 = vpop.f32.mrb[0].mxu0  ;;  %v1826_v45 = vpop.f32.mrb[1].mxu1 }
 0x1de   :  { %v3168_v46 = vpop.f32.mrb[1].mxu0  ;;  %v1827_v40 = vpop.f32.mrb[2].mxu1 }
 0x1df   :  { %v3267_v47 = vadd.f32 %v3266_v43, %v2288_v44  ;;  %v3268_v48 = vadd.f32 %v4681_v41, %v1827_v40  ;;  %v2291_v49 = vpop.f32.mrb[2].mxu0  ;;  %v1829_v50 = vpop.f32.mrb[3].mxu1 }
 0x1e0   :  { %v3169_v51 = vpop.f32.mrb[3].mxu0 }
 0x1e1   :  { %v2486_v52 = vmax.f32 %v3267_v47, 0.0  ;;  %v3269_v53 = vadd.f32 %v3268_v48, %v2291_v49 }
 0x1e3   :  { %v3086_v54 = vpack.c.bf16 %v2486_v52, %v2486_v52  ;;  %v2487_v55 = vmax.f32 %v3269_v53, 0.0 }
 0x1e4   :  { %v1832_v56 = vpop.f32.mrb[4].mxu1 }
 0x1e5   :  { %2733 = vst.msk [vmem:[%s4931_s3] sm:$0xf] %vm2732_vm2, %v3086_v54  ;;  %v3087_v57 = vpack.c.bf16 %v2487_v55, %v2487_v55  ;;  %v3270_v58 = vadd.f32 %v4681_v41, %v1832_v56  ;;  %v2296_v59 = vpop.f32.mrb[4].mxu0  ;;  %v1834_v60 = vpop.f32.mrb[5].mxu1 }
 0x1e6   :  { %v3172_v61 = vpop.f32.mrb[5].mxu0  ;;  %v1835_v62 = vpop.f32.mrb[6].mxu1 }
 0x1e7   :  { %2734 = vst.msk [vmem:[%s4931_s3 + $0x4] sm:$0xf] %vm2732_vm2, %v3087_v57  ;;  %v3271_v63 = vadd.f32 %v3270_v58, %v2296_v59  ;;  %v3272_v1 = vadd.f32 %v4681_v41, %v1835_v62  ;;  %v2299_v2 = vpop.f32.mrb[6].mxu0  ;;  %v1837_v3 = vpop.f32.mrb[7].mxu1 }
 0x1e8   :  { %v3173_v4 = vpop.f32.mrb[7].mxu0 }
 0x1e9   :  { %v2488_v5 = vmax.f32 %v3271_v63, 0.0  ;;  %v3273_v6 = vadd.f32 %v3272_v1, %v2299_v2 }
 0x1eb   :  { %v3088_v7 = vpack.c.bf16 %v2488_v5, %v2488_v5  ;;  %v2489_v8 = vmax.f32 %v3273_v6, 0.0 }
 0x1ec   :  { %v1840_v9 = vpop.f32.mrb[8].mxu1 }
 0x1ed   :  { %2735 = vst.msk [vmem:[%s4931_s3 + $0x8] sm:$0xf] %vm2732_vm2, %v3088_v7  ;;  %v3089_v10 = vpack.c.bf16 %v2489_v8, %v2489_v8  ;;  %v3274_v11 = vadd.f32 %v4681_v41, %v1840_v9  ;;  %v2304_v12 = vpop.f32.mrb[8].mxu0  ;;  %v1842_v13 = vpop.f32.mrb[9].mxu1 }
 0x1ee   :  { %v3176_v14 = vpop.f32.mrb[9].mxu0  ;;  %v1843_v15 = vpop.f32.mrb[10].mxu1 }
 0x1ef   :  { %2736 = vst.msk [vmem:[%s4931_s3 + $0xc] sm:$0xf] %vm2732_vm2, %v3089_v10  ;;  %v3275_v16 = vadd.f32 %v3274_v11, %v2304_v12  ;;  %v3276_v17 = vadd.f32 %v4681_v41, %v1843_v15  ;;  %v2307_v18 = vpop.f32.mrb[10].mxu0  ;;  %v1845_v19 = vpop.f32.mrb[11].mxu1 }
 0x1f0   :  { %v3177_v20 = vpop.f32.mrb[11].mxu0 }
 0x1f1   :  { %v2490_v21 = vmax.f32 %v3275_v16, 0.0  ;;  %v3277_v22 = vadd.f32 %v3276_v17, %v2307_v18 }
 0x1f3   :  { %v3090_v23 = vpack.c.bf16 %v2490_v21, %v2490_v21  ;;  %v2491_v24 = vmax.f32 %v3277_v22, 0.0 }
 0x1f4   :  { %v1848_v25 = vpop.f32.mrb[12].mxu1 }
 0x1f5   :  { %2737 = vst.msk [vmem:[%s4931_s3 + $0x10] sm:$0xf] %vm2732_vm2, %v3090_v23  ;;  %v3091_v26 = vpack.c.bf16 %v2491_v24, %v2491_v24  ;;  %v3278_v27 = vadd.f32 %v4681_v41, %v1848_v25  ;;  %v2312_v28 = vpop.f32.mrb[12].mxu0  ;;  %v1850_v0 = vpop.f32.mrb[13].mxu1 }
 0x1f6   :  { %v3180_v29 = vpop.f32.mrb[13].mxu0  ;;  %v1851_v30 = vpop.f32.mrb[14].mxu1 }
 0x1f7   :  { %2738 = vst.msk [vmem:[%s4931_s3 + $0x14] sm:$0xf] %vm2732_vm2, %v3091_v26  ;;  %v3279_v31 = vadd.f32 %v3278_v27, %v2312_v28  ;;  %v3280_v32 = vadd.f32 %v4681_v41, %v1851_v30  ;;  %v2315_v33 = vpop.f32.mrb[14].mxu0  ;;  %v1853_v34 = vpop.f32.mrb[15].mxu1 }
 0x1f8   :  { %v3181_v35 = vpop.f32.mrb[15].mxu0 }
 0x1f9   :  { %v2492_v36 = vmax.f32 %v3279_v31, 0.0  ;;  %v3281_v37 = vadd.f32 %v3280_v32, %v2315_v33 }
 0x1fb   :  { %v3092_v38 = vpack.c.bf16 %v2492_v36, %v2492_v36  ;;  %v2493_v39 = vmax.f32 %v3281_v37, 0.0 }
 0x1fc   :  { %v1856_v42 = vpop.f32.mrb[16].mxu1 }
 0x1fd   :  { %2739 = vst.msk [vmem:[%s4931_s3 + $0x18] sm:$0xf] %vm2732_vm2, %v3092_v38  ;;  %v3093_v43 = vpack.c.bf16 %v2493_v39, %v2493_v39  ;;  %v3282_v44 = vadd.f32 %v4681_v41, %v1856_v42  ;;  %v2320_v45 = vpop.f32.mrb[16].mxu0  ;;  %v1858_v46 = vpop.f32.mrb[17].mxu1 }
 0x1fe   :  { %v3184_v40 = vpop.f32.mrb[17].mxu0  ;;  %v1859_v47 = vpop.f32.mrb[18].mxu1 }
 0x1ff   :  { %2740 = vst.msk [vmem:[%s4931_s3 + $0x1c] sm:$0xf] %vm2732_vm2, %v3093_v43  ;;  %v3283_v48 = vadd.f32 %v3282_v44, %v2320_v45  ;;  %v3284_v49 = vadd.f32 %v4681_v41, %v1859_v47  ;;  %v2323_v50 = vpop.f32.mrb[18].mxu0  ;;  %v1861_v51 = vpop.f32.mrb[19].mxu1 }
 0x200   :  { %v3185_v52 = vpop.f32.mrb[19].mxu0 }
 0x201   :  { %v2494_v53 = vmax.f32 %v3283_v48, 0.0  ;;  %v3285_v54 = vadd.f32 %v3284_v49, %v2323_v50 }
 0x203   :  { %v3094_v55 = vpack.c.bf16 %v2494_v53, %v2494_v53  ;;  %v2495_v56 = vmax.f32 %v3285_v54, 0.0 }
 0x204   :  { %v1864_v57 = vpop.f32.mrb[20].mxu1 }
 0x205   :  { %2741 = vst.msk [vmem:[%s4931_s3 + $0x20] sm:$0xf] %vm2732_vm2, %v3094_v55  ;;  %v3095_v58 = vpack.c.bf16 %v2495_v56, %v2495_v56  ;;  %v3286_v59 = vadd.f32 %v4681_v41, %v1864_v57  ;;  %v2328_v60 = vpop.f32.mrb[20].mxu0  ;;  %v1866_v61 = vpop.f32.mrb[21].mxu1 }
 0x206   :  { %v3188_v62 = vpop.f32.mrb[21].mxu0  ;;  %v1867_v63 = vpop.f32.mrb[22].mxu1 }
 0x207   :  { %2742 = vst.msk [vmem:[%s4931_s3 + $0x24] sm:$0xf] %vm2732_vm2, %v3095_v58  ;;  %v3287_v1 = vadd.f32 %v3286_v59, %v2328_v60  ;;  %v3288_v2 = vadd.f32 %v4681_v41, %v1867_v63  ;;  %v2331_v3 = vpop.f32.mrb[22].mxu0  ;;  %v1869_v4 = vpop.f32.mrb[23].mxu1 }
 0x208   :  { %v3189_v5 = vpop.f32.mrb[23].mxu0 }
 0x209   :  { %v2496_v6 = vmax.f32 %v3287_v1, 0.0  ;;  %v3289_v7 = vadd.f32 %v3288_v2, %v2331_v3 }
 0x20b   :  { %v3096_v8 = vpack.c.bf16 %v2496_v6, %v2496_v6  ;;  %v2497_v9 = vmax.f32 %v3289_v7, 0.0 }
 0x20c   :  { %v1872_v10 = vpop.f32.mrb[24].mxu1 }
 0x20d   :  { %2743 = vst.msk [vmem:[%s4931_s3 + $0x28] sm:$0xf] %vm2732_vm2, %v3096_v8  ;;  %v3097_v11 = vpack.c.bf16 %v2497_v9, %v2497_v9  ;;  %v3290_v12 = vadd.f32 %v4681_v41, %v1872_v10  ;;  %v2336_v13 = vpop.f32.mrb[24].mxu0  ;;  %v1874_v14 = vpop.f32.mrb[25].mxu1 }
 0x20e   :  { %v3192_v15 = vpop.f32.mrb[25].mxu0  ;;  %v1875_v16 = vpop.f32.mrb[26].mxu1 }
 0x20f   :  { %2744 = vst.msk [vmem:[%s4931_s3 + $0x2c] sm:$0xf] %vm2732_vm2, %v3097_v11  ;;  %v3291_v17 = vadd.f32 %v3290_v12, %v2336_v13  ;;  %v3292_v18 = vadd.f32 %v4681_v41, %v1875_v16  ;;  %v2339_v19 = vpop.f32.mrb[26].mxu0  ;;  %v1877_v20 = vpop.f32.mrb[27].mxu1 }
 0x210   :  { %v3193_v21 = vpop.f32.mrb[27].mxu0 }
 0x211   :  { %v2498_v22 = vmax.f32 %v3291_v17, 0.0  ;;  %v3293_v23 = vadd.f32 %v3292_v18, %v2339_v19 }
 0x213   :  { %v3098_v24 = vpack.c.bf16 %v2498_v22, %v2498_v22  ;;  %v2499_v25 = vmax.f32 %v3293_v23, 0.0 }
 0x214   :  { %v1880_v26 = vpop.f32.mrb[28].mxu1 }
 0x215   :  { %2745 = vst.msk [vmem:[%s4931_s3 + $0x30] sm:$0xf] %vm2732_vm2, %v3098_v24  ;;  %v3099_v27 = vpack.c.bf16 %v2499_v25, %v2499_v25  ;;  %v3294_v28 = vadd.f32 %v4681_v41, %v1880_v26  ;;  %v2344_v0 = vpop.f32.mrb[28].mxu0  ;;  %v1882_v29 = vpop.f32.mrb[29].mxu1 }
 0x216   :  { %v3196_v30 = vpop.f32.mrb[29].mxu0  ;;  %v1883_v31 = vpop.f32.mrb[30].mxu1 }
 0x217   :  { %2746 = vst.msk [vmem:[%s4931_s3 + $0x34] sm:$0xf] %vm2732_vm2, %v3099_v27  ;;  %v3295_v32 = vadd.f32 %v3294_v28, %v2344_v0  ;;  %v3296_v33 = vadd.f32 %v4681_v41, %v1883_v31  ;;  %v2347_v34 = vpop.f32.mrb[30].mxu0  ;;  %v1885_v35 = vpop.f32.mrb[31].mxu1 }
 0x218   :  { %v3197_v36 = vpop.f32.mrb[31].mxu0 }
 0x219   :  { %v2500_v37 = vmax.f32 %v3295_v32, 0.0  ;;  %v3297_v38 = vadd.f32 %v3296_v33, %v2347_v34 }
 0x21b   :  { %v3100_v39 = vpack.c.bf16 %v2500_v37, %v2500_v37  ;;  %v2501_v42 = vmax.f32 %v3297_v38, 0.0 }
 0x21c   :  { %v1888_v43 = vpop.f32.mrb[32].mxu1 }
 0x21d   :  { %2747 = vst.msk [vmem:[%s4931_s3 + $0x38] sm:$0xf] %vm2732_vm2, %v3100_v39  ;;  %v3101_v44 = vpack.c.bf16 %v2501_v42, %v2501_v42  ;;  %v3298_v45 = vadd.f32 %v4681_v41, %v1888_v43  ;;  %v2352_v46 = vpop.f32.mrb[32].mxu0  ;;  %v1890_v40 = vpop.f32.mrb[33].mxu1 }
 0x21e   :  { %v3200_v47 = vpop.f32.mrb[33].mxu0  ;;  %v1891_v48 = vpop.f32.mrb[34].mxu1 }
 0x21f   :  { %2748 = vst.msk [vmem:[%s4931_s3 + $0x3c] sm:$0xf] %vm2732_vm2, %v3101_v44  ;;  %v3299_v49 = vadd.f32 %v3298_v45, %v2352_v46  ;;  %v3300_v50 = vadd.f32 %v4681_v41, %v1891_v48  ;;  %v2355_v51 = vpop.f32.mrb[34].mxu0  ;;  %v1893_v52 = vpop.f32.mrb[35].mxu1 }
 0x220   :  { %v3201_v53 = vpop.f32.mrb[35].mxu0 }
 0x221   :  { %v2502_v54 = vmax.f32 %v3299_v49, 0.0  ;;  %v3301_v55 = vadd.f32 %v3300_v50, %v2355_v51 }
 0x223   :  { %v3102_v56 = vpack.c.bf16 %v2502_v54, %v2502_v54  ;;  %v2503_v57 = vmax.f32 %v3301_v55, 0.0 }
 0x224   :  { %v1896_v58 = vpop.f32.mrb[36].mxu1 }
 0x225   :  { %2749 = vst.msk [vmem:[%s4931_s3 + $0x40] sm:$0xf] %vm2732_vm2, %v3102_v56  ;;  %v3103_v59 = vpack.c.bf16 %v2503_v57, %v2503_v57  ;;  %v3302_v60 = vadd.f32 %v4681_v41, %v1896_v58  ;;  %v2360_v61 = vpop.f32.mrb[36].mxu0  ;;  %v1898_v62 = vpop.f32.mrb[37].mxu1 }
 0x226   :  { %v3204_v63 = vpop.f32.mrb[37].mxu0  ;;  %v1899_v1 = vpop.f32.mrb[38].mxu1 }
 0x227   :  { %2750 = vst.msk [vmem:[%s4931_s3 + $0x44] sm:$0xf] %vm2732_vm2, %v3103_v59  ;;  %v3303_v2 = vadd.f32 %v3302_v60, %v2360_v61  ;;  %v3304_v3 = vadd.f32 %v4681_v41, %v1899_v1  ;;  %v2363_v4 = vpop.f32.mrb[38].mxu0  ;;  %v1901_v5 = vpop.f32.mrb[39].mxu1 }
 0x228   :  { %v3205_v6 = vpop.f32.mrb[39].mxu0 }
 0x229   :  { %v2504_v7 = vmax.f32 %v3303_v2, 0.0  ;;  %v3305_v8 = vadd.f32 %v3304_v3, %v2363_v4 }
 0x22b   :  { %v3104_v9 = vpack.c.bf16 %v2504_v7, %v2504_v7  ;;  %v2505_v10 = vmax.f32 %v3305_v8, 0.0 }
 0x22c   :  { %v1904_v11 = vpop.f32.mrb[40].mxu1 }
 0x22d   :  { %2751 = vst.msk [vmem:[%s4931_s3 + $0x48] sm:$0xf] %vm2732_vm2, %v3104_v9  ;;  %v3105_v12 = vpack.c.bf16 %v2505_v10, %v2505_v10  ;;  %v3306_v13 = vadd.f32 %v4681_v41, %v1904_v11  ;;  %v2368_v14 = vpop.f32.mrb[40].mxu0  ;;  %v1906_v15 = vpop.f32.mrb[41].mxu1 }
 0x22e   :  { %v3208_v16 = vpop.f32.mrb[41].mxu0  ;;  %v1907_v17 = vpop.f32.mrb[42].mxu1 }
 0x22f   :  { %2752 = vst.msk [vmem:[%s4931_s3 + $0x4c] sm:$0xf] %vm2732_vm2, %v3105_v12  ;;  %v3307_v18 = vadd.f32 %v3306_v13, %v2368_v14  ;;  %v3308_v19 = vadd.f32 %v4681_v41, %v1907_v17  ;;  %v2371_v20 = vpop.f32.mrb[42].mxu0  ;;  %v1909_v21 = vpop.f32.mrb[43].mxu1 }
 0x230   :  { %v3209_v22 = vpop.f32.mrb[43].mxu0 }
 0x231   :  { %v2506_v23 = vmax.f32 %v3307_v18, 0.0  ;;  %v3309_v24 = vadd.f32 %v3308_v19, %v2371_v20 }
 0x233   :  { %v3106_v25 = vpack.c.bf16 %v2506_v23, %v2506_v23  ;;  %v2507_v26 = vmax.f32 %v3309_v24, 0.0 }
 0x234   :  { %v1912_v27 = vpop.f32.mrb[44].mxu1 }
 0x235   :  { %2753 = vst.msk [vmem:[%s4931_s3 + $0x50] sm:$0xf] %vm2732_vm2, %v3106_v25  ;;  %v3107_v28 = vpack.c.bf16 %v2507_v26, %v2507_v26  ;;  %v3310_v0 = vadd.f32 %v4681_v41, %v1912_v27  ;;  %v2376_v29 = vpop.f32.mrb[44].mxu0  ;;  %v1914_v30 = vpop.f32.mrb[45].mxu1 }
 0x236   :  { %v3212_v31 = vpop.f32.mrb[45].mxu0  ;;  %v1915_v32 = vpop.f32.mrb[46].mxu1 }
 0x237   :  { %2754 = vst.msk [vmem:[%s4931_s3 + $0x54] sm:$0xf] %vm2732_vm2, %v3107_v28  ;;  %v3311_v33 = vadd.f32 %v3310_v0, %v2376_v29  ;;  %v3312_v34 = vadd.f32 %v4681_v41, %v1915_v32  ;;  %v2379_v35 = vpop.f32.mrb[46].mxu0  ;;  %v1917_v36 = vpop.f32.mrb[47].mxu1 }
 0x238   :  { %v3213_v37 = vpop.f32.mrb[47].mxu0 }
 0x239   :  { %v2508_v38 = vmax.f32 %v3311_v33, 0.0  ;;  %v3313_v39 = vadd.f32 %v3312_v34, %v2379_v35 }
 0x23b   :  { %v3108_v42 = vpack.c.bf16 %v2508_v38, %v2508_v38  ;;  %v2509_v43 = vmax.f32 %v3313_v39, 0.0 }
 0x23c   :  { %v1920_v44 = vpop.f32.mrb[48].mxu1 }
 0x23d   :  { %2755 = vst.msk [vmem:[%s4931_s3 + $0x58] sm:$0xf] %vm2732_vm2, %v3108_v42  ;;  %v3109_v45 = vpack.c.bf16 %v2509_v43, %v2509_v43  ;;  %v3314_v46 = vadd.f32 %v4681_v41, %v1920_v44  ;;  %v2384_v40 = vpop.f32.mrb[48].mxu0  ;;  %v1922_v47 = vpop.f32.mrb[49].mxu1 }
 0x23e   :  { %v3216_v48 = vpop.f32.mrb[49].mxu0  ;;  %v1923_v49 = vpop.f32.mrb[50].mxu1 }
 0x23f   :  { %2756 = vst.msk [vmem:[%s4931_s3 + $0x5c] sm:$0xf] %vm2732_vm2, %v3109_v45  ;;  %v3315_v50 = vadd.f32 %v3314_v46, %v2384_v40  ;;  %v3316_v51 = vadd.f32 %v4681_v41, %v1923_v49  ;;  %v2387_v52 = vpop.f32.mrb[50].mxu0  ;;  %v1925_v53 = vpop.f32.mrb[51].mxu1 }
 0x240   :  { %v3217_v54 = vpop.f32.mrb[51].mxu0 }
 0x241   :  { %v2510_v55 = vmax.f32 %v3315_v50, 0.0  ;;  %v3317_v56 = vadd.f32 %v3316_v51, %v2387_v52 }
 0x243   :  { %v3110_v57 = vpack.c.bf16 %v2510_v55, %v2510_v55  ;;  %v2511_v58 = vmax.f32 %v3317_v56, 0.0 }
 0x244   :  { %v1928_v59 = vpop.f32.mrb[52].mxu1 }
 0x245   :  { %2757 = vst.msk [vmem:[%s4931_s3 + $0x60] sm:$0xf] %vm2732_vm2, %v3110_v57  ;;  %v3111_v60 = vpack.c.bf16 %v2511_v58, %v2511_v58  ;;  %v3318_v61 = vadd.f32 %v4681_v41, %v1928_v59  ;;  %v2392_v62 = vpop.f32.mrb[52].mxu0  ;;  %v1930_v63 = vpop.f32.mrb[53].mxu1 }
 0x246   :  { %v3220_v1 = vpop.f32.mrb[53].mxu0  ;;  %v1931_v2 = vpop.f32.mrb[54].mxu1 }
 0x247   :  { %2758 = vst.msk [vmem:[%s4931_s3 + $0x64] sm:$0xf] %vm2732_vm2, %v3111_v60  ;;  %v3319_v3 = vadd.f32 %v3318_v61, %v2392_v62  ;;  %v3320_v4 = vadd.f32 %v4681_v41, %v1931_v2  ;;  %v2395_v5 = vpop.f32.mrb[54].mxu0  ;;  %v1933_v6 = vpop.f32.mrb[55].mxu1 }
 0x248   :  { %v3221_v7 = vpop.f32.mrb[55].mxu0 }
 0x249   :  { %v2512_v8 = vmax.f32 %v3319_v3, 0.0  ;;  %v3321_v9 = vadd.f32 %v3320_v4, %v2395_v5 }
 0x24b   :  { %v3112_v10 = vpack.c.bf16 %v2512_v8, %v2512_v8  ;;  %v2513_v11 = vmax.f32 %v3321_v9, 0.0 }
 0x24c   :  { %v1936_v12 = vpop.f32.mrb[56].mxu1 }
 0x24d   :  { %2759 = vst.msk [vmem:[%s4931_s3 + $0x68] sm:$0xf] %vm2732_vm2, %v3112_v10  ;;  %v3113_v13 = vpack.c.bf16 %v2513_v11, %v2513_v11  ;;  %v3322_v14 = vadd.f32 %v4681_v41, %v1936_v12  ;;  %v2400_v15 = vpop.f32.mrb[56].mxu0  ;;  %v1938_v16 = vpop.f32.mrb[57].mxu1 }
 0x24e   :  { %v3224_v17 = vpop.f32.mrb[57].mxu0  ;;  %v1939_v18 = vpop.f32.mrb[58].mxu1 }
 0x24f   :  { %2760 = vst.msk [vmem:[%s4931_s3 + $0x6c] sm:$0xf] %vm2732_vm2, %v3113_v13  ;;  %v3323_v19 = vadd.f32 %v3322_v14, %v2400_v15  ;;  %v3324_v20 = vadd.f32 %v4681_v41, %v1939_v18  ;;  %v2403_v21 = vpop.f32.mrb[58].mxu0  ;;  %v1941_v22 = vpop.f32.mrb[59].mxu1 }
 0x250   :  { %v3225_v23 = vpop.f32.mrb[59].mxu0 }
 0x251   :  { %v2514_v24 = vmax.f32 %v3323_v19, 0.0  ;;  %v3325_v25 = vadd.f32 %v3324_v20, %v2403_v21 }
 0x253   :  { %v3114_v26 = vpack.c.bf16 %v2514_v24, %v2514_v24  ;;  %v2515_v27 = vmax.f32 %v3325_v25, 0.0 }
 0x254   :  { %v1944_v28 = vpop.f32.mrb[60].mxu1 }
 0x255   :  { %2761 = vst.msk [vmem:[%s4931_s3 + $0x70] sm:$0xf] %vm2732_vm2, %v3114_v26  ;;  %v3115_v0 = vpack.c.bf16 %v2515_v27, %v2515_v27  ;;  %v3326_v29 = vadd.f32 %v4681_v41, %v1944_v28  ;;  %v2408_v30 = vpop.f32.mrb[60].mxu0  ;;  %v1946_v31 = vpop.f32.mrb[61].mxu1 }
 0x256   :  { %v3228_v32 = vpop.f32.mrb[61].mxu0  ;;  %v1947_v33 = vpop.f32.mrb[62].mxu1 }
 0x257   :  { %2762 = vst.msk [vmem:[%s4931_s3 + $0x74] sm:$0xf] %vm2732_vm2, %v3115_v0  ;;  %v3327_v34 = vadd.f32 %v3326_v29, %v2408_v30  ;;  %v3328_v35 = vadd.f32 %v4681_v41, %v1947_v33  ;;  %v2411_v36 = vpop.f32.mrb[62].mxu0  ;;  %v1949_v37 = vpop.f32.mrb[63].mxu1 }
 0x258   :  { %v3229_v38 = vpop.f32.mrb[63].mxu0 }
 0x259   :  { %v2516_v39 = vmax.f32 %v3327_v34, 0.0  ;;  %v3329_v42 = vadd.f32 %v3328_v35, %v2411_v36 }
 0x25b   :  { %v3116_v43 = vpack.c.bf16 %v2516_v39, %v2516_v39  ;;  %v2517_v44 = vmax.f32 %v3329_v42, 0.0 }
 0x25c   :  { %v1952_v45 = vpop.f32.mrb[64].mxu1 }
 0x25d   :  { %2763 = vst.msk [vmem:[%s4931_s3 + $0x78] sm:$0xf] %vm2732_vm2, %v3116_v43  ;;  %v3117_v46 = vpack.c.bf16 %v2517_v44, %v2517_v44  ;;  %v3330_v40 = vadd.f32 %v4681_v41, %v1952_v45  ;;  %v2416_v47 = vpop.f32.mrb[64].mxu0  ;;  %v1954_v48 = vpop.f32.mrb[65].mxu1 }
 0x25e   :  { %v3232_v49 = vpop.f32.mrb[65].mxu0  ;;  %v1955_v50 = vpop.f32.mrb[66].mxu1 }
 0x25f   :  { %2764 = vst.msk [vmem:[%s4931_s3 + $0x7c] sm:$0xf] %vm2732_vm2, %v3117_v46  ;;  %v3331_v51 = vadd.f32 %v3330_v40, %v2416_v47  ;;  %v3332_v52 = vadd.f32 %v4681_v41, %v1955_v50  ;;  %v2419_v53 = vpop.f32.mrb[66].mxu0  ;;  %v1957_v54 = vpop.f32.mrb[67].mxu1 }
 0x260   :  { %v3233_v55 = vpop.f32.mrb[67].mxu0 }
 0x261   :  { %v2518_v56 = vmax.f32 %v3331_v51, 0.0  ;;  %v3333_v57 = vadd.f32 %v3332_v52, %v2419_v53 }
 0x263   :  { %v3118_v58 = vpack.c.bf16 %v2518_v56, %v2518_v56  ;;  %v2519_v59 = vmax.f32 %v3333_v57, 0.0 }
 0x264   :  { %v1960_v60 = vpop.f32.mrb[68].mxu1 }
 0x265   :  { %2765 = vst.msk [vmem:[%s4931_s3 + $0x80] sm:$0xf] %vm2732_vm2, %v3118_v58  ;;  %v3119_v61 = vpack.c.bf16 %v2519_v59, %v2519_v59  ;;  %v3334_v62 = vadd.f32 %v4681_v41, %v1960_v60  ;;  %v2424_v63 = vpop.f32.mrb[68].mxu0  ;;  %v1962_v1 = vpop.f32.mrb[69].mxu1 }
 0x266   :  { %v3236_v2 = vpop.f32.mrb[69].mxu0  ;;  %v1963_v3 = vpop.f32.mrb[70].mxu1 }
 0x267   :  { %2766 = vst.msk [vmem:[%s4931_s3 + $0x84] sm:$0xf] %vm2732_vm2, %v3119_v61  ;;  %v3335_v4 = vadd.f32 %v3334_v62, %v2424_v63  ;;  %v3336_v5 = vadd.f32 %v4681_v41, %v1963_v3  ;;  %v2427_v6 = vpop.f32.mrb[70].mxu0  ;;  %v1965_v7 = vpop.f32.mrb[71].mxu1 }
 0x268   :  { %v3237_v8 = vpop.f32.mrb[71].mxu0 }
 0x269   :  { %v2520_v9 = vmax.f32 %v3335_v4, 0.0  ;;  %v3337_v10 = vadd.f32 %v3336_v5, %v2427_v6 }
 0x26b   :  { %v3120_v11 = vpack.c.bf16 %v2520_v9, %v2520_v9  ;;  %v2521_v12 = vmax.f32 %v3337_v10, 0.0 }
 0x26c   :  { %v1968_v13 = vpop.f32.mrb[72].mxu1 }
 0x26d   :  { %2767 = vst.msk [vmem:[%s4931_s3 + $0x88] sm:$0xf] %vm2732_vm2, %v3120_v11  ;;  %v3121_v14 = vpack.c.bf16 %v2521_v12, %v2521_v12  ;;  %v3338_v15 = vadd.f32 %v4681_v41, %v1968_v13  ;;  %v2432_v16 = vpop.f32.mrb[72].mxu0  ;;  %v1970_v17 = vpop.f32.mrb[73].mxu1 }
 0x26e   :  { %v3240_v18 = vpop.f32.mrb[73].mxu0  ;;  %v1971_v19 = vpop.f32.mrb[74].mxu1 }
 0x26f   :  { %2768 = vst.msk [vmem:[%s4931_s3 + $0x8c] sm:$0xf] %vm2732_vm2, %v3121_v14  ;;  %v3339_v20 = vadd.f32 %v3338_v15, %v2432_v16  ;;  %v3340_v21 = vadd.f32 %v4681_v41, %v1971_v19  ;;  %v2435_v22 = vpop.f32.mrb[74].mxu0  ;;  %v1973_v23 = vpop.f32.mrb[75].mxu1 }
 0x270   :  { %v3241_v24 = vpop.f32.mrb[75].mxu0 }
 0x271   :  { %v2522_v25 = vmax.f32 %v3339_v20, 0.0  ;;  %v3341_v26 = vadd.f32 %v3340_v21, %v2435_v22 }
 0x273   :  { %v3122_v27 = vpack.c.bf16 %v2522_v25, %v2522_v25  ;;  %v2523_v28 = vmax.f32 %v3341_v26, 0.0 }
 0x274   :  { %v1976_v0 = vpop.f32.mrb[76].mxu1 }
 0x275   :  { %2769 = vst.msk [vmem:[%s4931_s3 + $0x90] sm:$0xf] %vm2732_vm2, %v3122_v27  ;;  %v3123_v29 = vpack.c.bf16 %v2523_v28, %v2523_v28  ;;  %v3342_v30 = vadd.f32 %v4681_v41, %v1976_v0  ;;  %v2440_v31 = vpop.f32.mrb[76].mxu0  ;;  %v1978_v32 = vpop.f32.mrb[77].mxu1 }
 0x276   :  { %v3244_v33 = vpop.f32.mrb[77].mxu0  ;;  %v1979_v34 = vpop.f32.mrb[78].mxu1 }
 0x277   :  { %2770 = vst.msk [vmem:[%s4931_s3 + $0x94] sm:$0xf] %vm2732_vm2, %v3123_v29  ;;  %v3343_v35 = vadd.f32 %v3342_v30, %v2440_v31  ;;  %v3344_v36 = vadd.f32 %v4681_v41, %v1979_v34  ;;  %v2443_v37 = vpop.f32.mrb[78].mxu0  ;;  %v1981_v38 = vpop.f32.mrb[79].mxu1 }
 0x278   :  { %v3245_v39 = vpop.f32.mrb[79].mxu0 }
 0x279   :  { %v2524_v42 = vmax.f32 %v3343_v35, 0.0  ;;  %v3345_v43 = vadd.f32 %v3344_v36, %v2443_v37 }
 0x27b   :  { %v3124_v44 = vpack.c.bf16 %v2524_v42, %v2524_v42  ;;  %v2525_v45 = vmax.f32 %v3345_v43, 0.0 }
 0x27c   :  { %v1984_v46 = vpop.f32.mrb[80].mxu1 }
 0x27d   :  { %2771 = vst.msk [vmem:[%s4931_s3 + $0x98] sm:$0xf] %vm2732_vm2, %v3124_v44  ;;  %v3125_v40 = vpack.c.bf16 %v2525_v45, %v2525_v45  ;;  %v3346_v47 = vadd.f32 %v4681_v41, %v1984_v46  ;;  %v2448_v48 = vpop.f32.mrb[80].mxu0  ;;  %v1986_v49 = vpop.f32.mrb[81].mxu1 }
 0x27e   :  { %v3248_v50 = vpop.f32.mrb[81].mxu0  ;;  %v1987_v51 = vpop.f32.mrb[82].mxu1 }
 0x27f   :  { %2772 = vst.msk [vmem:[%s4931_s3 + $0x9c] sm:$0xf] %vm2732_vm2, %v3125_v40  ;;  %v3347_v52 = vadd.f32 %v3346_v47, %v2448_v48  ;;  %v3348_v53 = vadd.f32 %v4681_v41, %v1987_v51  ;;  %v2451_v54 = vpop.f32.mrb[82].mxu0  ;;  %v1989_v55 = vpop.f32.mrb[83].mxu1 }
 0x280   :  { %v3249_v56 = vpop.f32.mrb[83].mxu0 }
 0x281   :  { %v2526_v57 = vmax.f32 %v3347_v52, 0.0  ;;  %v3349_v58 = vadd.f32 %v3348_v53, %v2451_v54 }
 0x283   :  { %v3126_v59 = vpack.c.bf16 %v2526_v57, %v2526_v57  ;;  %v2527_v60 = vmax.f32 %v3349_v58, 0.0 }
 0x284   :  { %v1992_v61 = vpop.f32.mrb[84].mxu1 }
 0x285   :  { %2773 = vst.msk [vmem:[%s4931_s3 + $0xa0] sm:$0xf] %vm2732_vm2, %v3126_v59  ;;  %v3127_v62 = vpack.c.bf16 %v2527_v60, %v2527_v60  ;;  %v3350_v63 = vadd.f32 %v4681_v41, %v1992_v61  ;;  %v2456_v1 = vpop.f32.mrb[84].mxu0  ;;  %v1994_v2 = vpop.f32.mrb[85].mxu1 }
 0x286   :  { %v3252_v3 = vpop.f32.mrb[85].mxu0  ;;  %v1995_v4 = vpop.f32.mrb[86].mxu1 }
 0x287   :  { %2774 = vst.msk [vmem:[%s4931_s3 + $0xa4] sm:$0xf] %vm2732_vm2, %v3127_v62  ;;  %v3351_v5 = vadd.f32 %v3350_v63, %v2456_v1  ;;  %v3352_v6 = vadd.f32 %v4681_v41, %v1995_v4  ;;  %v2459_v7 = vpop.f32.mrb[86].mxu0  ;;  %v1997_v8 = vpop.f32.mrb[87].mxu1 }
 0x288   :  { %v3253_v9 = vpop.f32.mrb[87].mxu0 }
 0x289   :  { %v2528_v10 = vmax.f32 %v3351_v5, 0.0  ;;  %v3353_v11 = vadd.f32 %v3352_v6, %v2459_v7 }
 0x28b   :  { %v3128_v12 = vpack.c.bf16 %v2528_v10, %v2528_v10  ;;  %v2529_v13 = vmax.f32 %v3353_v11, 0.0 }
 0x28c   :  { %v2000_v14 = vpop.f32.mrb[88].mxu1 }
 0x28d   :  { %2775 = vst.msk [vmem:[%s4931_s3 + $0xa8] sm:$0xf] %vm2732_vm2, %v3128_v12  ;;  %v3129_v15 = vpack.c.bf16 %v2529_v13, %v2529_v13  ;;  %v3354_v16 = vadd.f32 %v4681_v41, %v2000_v14  ;;  %v2464_v17 = vpop.f32.mrb[88].mxu0  ;;  %v2002_v18 = vpop.f32.mrb[89].mxu1 }
 0x28e   :  { %v3256_v19 = vpop.f32.mrb[89].mxu0  ;;  %v2003_v20 = vpop.f32.mrb[90].mxu1 }
 0x28f   :  { %2776 = vst.msk [vmem:[%s4931_s3 + $0xac] sm:$0xf] %vm2732_vm2, %v3129_v15  ;;  %v3355_v21 = vadd.f32 %v3354_v16, %v2464_v17  ;;  %v3356_v22 = vadd.f32 %v4681_v41, %v2003_v20  ;;  %v2467_v23 = vpop.f32.mrb[90].mxu0  ;;  %v2005_v24 = vpop.f32.mrb[91].mxu1 }
 0x290   :  { %v3257_v25 = vpop.f32.mrb[91].mxu0 }
 0x291   :  { %v2530_v26 = vmax.f32 %v3355_v21, 0.0  ;;  %v3357_v27 = vadd.f32 %v3356_v22, %v2467_v23 }
 0x293   :  { %v3130_v28 = vpack.c.bf16 %v2530_v26, %v2530_v26  ;;  %v2531_v0 = vmax.f32 %v3357_v27, 0.0 }
 0x294   :  { %v2008_v29 = vpop.f32.mrb[92].mxu1 }
 0x295   :  { %2777 = vst.msk [vmem:[%s4931_s3 + $0xb0] sm:$0xf] %vm2732_vm2, %v3130_v28  ;;  %v3131_v30 = vpack.c.bf16 %v2531_v0, %v2531_v0  ;;  %v3358_v31 = vadd.f32 %v4681_v41, %v2008_v29  ;;  %v2472_v32 = vpop.f32.mrb[92].mxu0  ;;  %v2010_v33 = vpop.f32.mrb[93].mxu1 }
 0x296   :  { %v3260_v34 = vpop.f32.mrb[93].mxu0  ;;  %v2011_v35 = vpop.f32.mrb[94].mxu1 }
 0x297   :  { %2778 = vst.msk [vmem:[%s4931_s3 + $0xb4] sm:$0xf] %vm2732_vm2, %v3131_v30  ;;  %v3359_v36 = vadd.f32 %v3358_v31, %v2472_v32  ;;  %v3360_v37 = vadd.f32 %v4681_v41, %v2011_v35  ;;  %v2475_v38 = vpop.f32.mrb[94].mxu0  ;;  %v2013_v39 = vpop.f32.mrb[95].mxu1 }
 0x298   :  { %v3261_v42 = vpop.f32.mrb[95].mxu0 }
 0x299   :  { %v2532_v43 = vmax.f32 %v3359_v36, 0.0  ;;  %v3361_v44 = vadd.f32 %v3360_v37, %v2475_v38 }
 0x29b   :  { %v3132_v45 = vpack.c.bf16 %v2532_v43, %v2532_v43  ;;  %v2533_v46 = vmax.f32 %v3361_v44, 0.0 }
 0x29c   :  { %v2016_v40 = vpop.f32.mrb[96].mxu1 }
 0x29d   :  { %2779 = vst.msk [vmem:[%s4931_s3 + $0xb8] sm:$0xf] %vm2732_vm2, %v3132_v45  ;;  %v3133_v47 = vpack.c.bf16 %v2533_v46, %v2533_v46  ;;  %v3362_v48 = vadd.f32 %v4681_v41, %v2016_v40  ;;  %v2480_v49 = vpop.f32.mrb[96].mxu0  ;;  %v2018_v50 = vpop.f32.mrb[97].mxu1 }
 0x29e   :  { %v3264_v51 = vpop.f32.mrb[97].mxu0  ;;  %v2019_v52 = vpop.f32.mrb[98].mxu1 }
 0x29f   :  { %2780 = vst.msk [vmem:[%s4931_s3 + $0xbc] sm:$0xf] %vm2732_vm2, %v3133_v47  ;;  %v3363_v53 = vadd.f32 %v3362_v48, %v2480_v49  ;;  %v2483_v54 = vpop.f32.mrb[98].mxu0  ;;  %v2020_v55 = vpop.f32.mrb[99].mxu1 }
 0x2a0   :  { %v3265_v56 = vpop.f32.mrb[99].mxu0 }
 0x2a1   :  { %v2534_v57 = vmax.f32 %v3363_v53, 0.0 }
 0x2a3   :  { %v3134_v58 = vpack.c.bf16 %v2534_v57, %v2534_v57 }
 0x2a5   :  { %2781 = vst.msk [vmem:[%s4931_s3 + $0xc0] sm:$0xf] %vm2732_vm2, %v3134_v58 }

// kernel: encoder_forward.8
= control target key start
LH: loop header
LB: loop body
LE: loop exit
PB: predicated region body
PF: predicated region fallthrough
CT: control target
= control target key end

     0   :  { %vm2936_vm0 = vmmov 0   ;;  %vm1348_vm1 = vcmask 523264   ;;  %vm2052_vm2 = vcmask 519168   ;;  %s3706_s1 = inlined_call_operand.vmem [shape: bf16[1600,64], index: 1, kind: input, shape index: {}]   ;;  %s3707_s0 = inlined_call_operand.vmem [shape: bf16[104,1600], index: 0, kind: input, shape index: {}]   ;;  %s3708_s2 = inlined_call_operand.vmem [shape: f32[1,64], index: 2, kind: input, shape index: {}]   ;;  %s3709_s3 = inlined_call_operand.vmem [shape: bf16[104,64], index: 3, kind: output, shape index: {}]  }
   0x1   :  { %v2708_v0 = vld [vmem:[%s3706_s1 + $0x40] sm:$0xff]   ;;  %v2710_v2 = vld [vmem:[%s3706_s1 + $0x48] sm:$0xff]   ;;  %v2712_v4 = vld [vmem:[%s3706_s1 + $0x50] sm:$0xff]  }
   0x2   :  { %v2709_v1 = vld [vmem:[%s3706_s1] sm:$0xff]   ;;  %2690 = vmatprep.subr.bf16.mxu1 %v2708_v0  ;;  %2295 = vmatprep.subr.bf16.mxu0 %v2708_v0  ;;  %v2711_v3 = vld [vmem:[%s3706_s1 + $0x8] sm:$0xff]   ;;  %v2713_v5 = vld [vmem:[%s3706_s1 + $0x10] sm:$0xff]  }
   0x3   :  { %2698 = vmatpush3.bf16.msra.mxu1 %v2709_v1  ;;  %2296 = vmatpush3.bf16.msra.mxu0 %v2709_v1  ;;  %v2714_v6 = vld [vmem:[%s3706_s1 + $0x58] sm:$0xff]   ;;  %v2716_v8 = vld [vmem:[%s3706_s1 + $0x60] sm:$0xff]   ;;  %v2718_v10 = vld [vmem:[%s3706_s1 + $0x68] sm:$0xff]  }
   0x4   :  { %2691 = vmatprep.subr.bf16.mxu1 %v2710_v2  ;;  %2297 = vmatprep.subr.bf16.mxu0 %v2710_v2  ;;  %v2715_v7 = vld [vmem:[%s3706_s1 + $0x18] sm:$0xff]   ;;  %v2717_v9 = vld [vmem:[%s3706_s1 + $0x20] sm:$0xff]   ;;  %v2719_v12 = vld [vmem:[%s3706_s1 + $0x28] sm:$0xff]  }
   0x5   :  { %v2726_v11 = vld [vmem:[%s3707_s0 + $0x1a4] ss:$52 sps:$4 sm:$0xff]   ;;  %v2720_v14 = vld [vmem:[%s3706_s1 + $0x70] sm:$0xff]   ;;  %v2734_v24 = vld [vmem:[%s3706_s1 + $0xc8] sm:$0xff]  }
   0x6   :  { %v2730_v13 = vld [vmem:[%s3707_s0 + $0x4] ss:$52 sps:$4 sm:$0xff]   ;;  %1434 = vmatprep.mubr.bf16.mxu1 %v2726_v11  ;;  %v2721_v15 = vld [vmem:[%s3706_s1 + $0x30] sm:$0xff]   ;;  %v2736_v25 = vld [vmem:[%s3706_s1 + $0x148] sm:$0xff]  }
   0x7   :  { %2699 = vmatpush3.bf16.msra.mxu1 %v2711_v3  ;;  %2298 = vmatpush3.bf16.msra.mxu0 %v2711_v3  ;;  %v2722_v16 = vld [vmem:[%s3706_s1 + $0x78] sm:$0xff]   ;;  %v2727_v18 = vld [vmem:[%s3706_s1 + $0xc0] sm:$0xff]   ;;  %v2735_v27 = vld [vmem:[%s3706_s1 + $0x88] sm:$0xff]  }
   0x8   :  { %2692 = vmatprep.subr.bf16.mxu1 %v2712_v4  ;;  %2299 = vmatprep.subr.bf16.mxu0 %v2712_v4  ;;  %v2723_v17 = vld [vmem:[%s3706_s1 + $0x38] sm:$0xff]   ;;  %v2724_v19 = vld [vmem:[%s3707_s0 + $0x1a0] ss:$52 sps:$4 sm:$0xff]   ;;  %v2737_v29 = vld [vmem:[%s3706_s1 + $0x108] sm:$0xff]  }
   0x9   :  { %1402 = vmatprep.mubr.bf16.mxu0 %v2730_v13  ;;  %v2728_v20 = vld [vmem:[%s3707_s0] ss:$52 sps:$4 sm:$0xff]   ;;  %v2742_v33 = vld [vmem:[%s3707_s0 + $0x68] ss:$52 sps:$4 sm:$0xff]   ;;  %v2756_v46 = vld [vmem:[%s3707_s0 + $0xd0] ss:$52 sps:$4 sm:$0xff]  }
   0xa   :  { %v2732_v21 = vld [vmem:[%s3706_s1 + $0x140] sm:$0xff]   ;;  %v2738_v30 = vld [vmem:[%s3706_s1 + $0xd0] sm:$0xff]   ;;  %v2749_v34 = vld [vmem:[%s3707_s0 + $0x208] ss:$52 sps:$4 sm:$0xff]  }
   0xb   :  { %2700 = vmatpush3.bf16.msra.mxu1 %v2713_v5  ;;  %2300 = vmatpush3.bf16.msra.mxu0 %v2713_v5  ;;  %v2731_v22 = vld [vmem:[%s3706_s1 + $0x80] sm:$0xff]   ;;  %v2743_v31 = vld [vmem:[%s3706_s1 + $0x150] sm:$0xff]   ;;  %v2745_v36 = vld [vmem:[%s3706_s1 + $0xd8] sm:$0xff]  }
   0xc   :  { %2693 = vmatprep.subr.bf16.mxu1 %v2714_v6  ;;  %2301 = vmatprep.subr.bf16.mxu0 %v2714_v6  ;;  %v2733_v23 = vld [vmem:[%s3706_s1 + $0x100] sm:$0xff]   ;;  %v2741_v32 = vld [vmem:[%s3706_s1 + $0x90] sm:$0xff]   ;;  %v2750_v37 = vld [vmem:[%s3706_s1 + $0x158] sm:$0xff]  }
   0xd   :  { %v2739_v26 = vld [vmem:[%s3707_s0 + $0x6c] ss:$52 sps:$4 sm:$0xff]   ;;  %v2744_v35 = vld [vmem:[%s3706_s1 + $0x110] sm:$0xff]   ;;  %v2748_v38 = vld [vmem:[%s3706_s1 + $0x98] sm:$0xff]  }
   0xe   :  { %v2746_v28 = vld [vmem:[%s3707_s0 + $0x20c] ss:$52 sps:$4 sm:$0xff]   ;;  %v2753_v39 = vld [vmem:[%s3707_s0 + $0xd4] ss:$52 sps:$4 sm:$0xff]   ;;  %v2751_v40 = vld [vmem:[%s3706_s1 + $0x118] sm:$0xff]  }
   0xf   :  { %2701 = vmatpush3.bf16.msra.mxu1 %v2715_v7  ;;  %2302 = vmatpush3.bf16.msra.mxu0 %v2715_v7  ;;  %v2752_v41 = vld [vmem:[%s3706_s1 + $0xe0] sm:$0xff]   ;;  %v99_v42 = vld [vmem:[%s3707_s0 + $0x270] sm:$0xff]  ;;  %v2759_v49 = vld [vmem:[%s3706_s1 + $0xe8] sm:$0xff]  }
  0x10   :  { %2694 = vmatprep.subr.bf16.mxu1 %v2716_v8  ;;  %2303 = vmatprep.subr.bf16.mxu0 %v2716_v8  ;;  %v2757_v43 = vld [vmem:[%s3706_s1 + $0x160] sm:$0xff]   ;;  %v2150_v44 = vcombine.high %v99_v42, %v99_v42  ;;  %v2149_v48 = vcombine.low %v99_v42, %v99_v42  ;;  %v2763_v50 = vld [vmem:[%s3706_s1 + $0x168] sm:$0xff]   ;;  %v2766_v52 = vld [vmem:[%s3707_s0 + $0x13c] ss:$52 sps:$4 sm:$0xff]  }
  0x11   :  { %v2755_v45 = vld [vmem:[%s3706_s1 + $0xa0] sm:$0xff]   ;;  %v2761_v51 = vld [vmem:[%s3706_s1 + $0xa8] sm:$0xff]   ;;  %v2765_v54 = vld [vmem:[%s3706_s1 + $0xf0] sm:$0xff]  }
  0x12   :  { %v2758_v47 = vld [vmem:[%s3706_s1 + $0x120] sm:$0xff]   ;;  %v2764_v53 = vld [vmem:[%s3706_s1 + $0x128] sm:$0xff]   ;;  %v2770_v55 = vld [vmem:[%s3706_s1 + $0x170] sm:$0xff]  }
  0x13   :  { %2702 = vmatpush3.bf16.msra.mxu1 %v2717_v9  ;;  %2304 = vmatpush3.bf16.msra.mxu0 %v2717_v9  ;;  %v2768_v56 = vld [vmem:[%s3706_s1 + $0xb0] sm:$0xff]   ;;  %v2769_v57 = vld [vmem:[%s3707_s0 + $0x138] ss:$52 sps:$4 sm:$0xff]   ;;  %v2779_v0 = vld [vmem:[%s3706_s1 + $0x1c0] sm:$0xff]  }
  0x14   :  { %2695 = vmatprep.subr.bf16.mxu1 %v2718_v10  ;;  %2305 = vmatprep.subr.bf16.mxu0 %v2718_v10  ;;  %v2771_v58 = vld [vmem:[%s3706_s1 + $0x130] sm:$0xff]   ;;  %v2772_v59 = vld [vmem:[%s3706_s1 + $0xf8] sm:$0xff]   ;;  %v2777_v61 = vld [vmem:[%s3707_s0 + $0xc] ss:$52 sps:$4 sm:$0xff]  }
  0x15   :  { %v2774_v60 = vld [vmem:[%s3706_s1 + $0x178] sm:$0xff]   ;;  %v2782_v1 = vld [vmem:[%s3707_s0 + $0x14] ss:$52 sps:$4 sm:$0xff]   ;;  %v2780_v3 = vld [vmem:[%s3707_s0 + $0x10] ss:$52 sps:$4 sm:$0xff]  }
  0x16   :  { %v2773_v62 = vld [vmem:[%s3706_s1 + $0xb8] sm:$0xff]   ;;  %v2783_v4 = vld [vmem:[%s3706_s1 + $0x180] sm:$0xff]   ;;  %v2786_v7 = vld [vmem:[%s3707_s0 + $0x74] ss:$52 sps:$4 sm:$0xff]  }
  0x17   :  { %2703 = vmatpush3.bf16.msra.mxu1 %v2719_v12  ;;  %2306 = vmatpush3.bf16.msra.mxu0 %v2719_v12  ;;  %v2778_v63 = vld [vmem:[%s3706_s1 + $0x138] sm:$0xff]   ;;  %v2784_v5 = vld [vmem:[%s3706_s1 + $0x240] sm:$0xff]   ;;  %v2788_v8 = vld [vmem:[%s3706_s1 + $0x1c8] sm:$0xff]  }
  0x18   :  { %2696 = vmatprep.subr.bf16.mxu1 %v2720_v14  ;;  %2307 = vmatprep.subr.bf16.mxu0 %v2720_v14  ;;  %v2775_v2 = vld [vmem:[%s3707_s0 + $0x8] ss:$52 sps:$4 sm:$0xff]   ;;  %v2785_v6 = vld [vmem:[%s3706_s1 + $0x200] sm:$0xff]   ;;  %v2793_v12 = vld [vmem:[%s3707_s0 + $0x78] ss:$52 sps:$4 sm:$0xff]  }
  0x19   :  { %v2790_v9 = vld [vmem:[%s3706_s1 + $0x188] sm:$0xff]   ;;  %v2791_v10 = vld [vmem:[%s3707_s0 + $0x7c] ss:$52 sps:$4 sm:$0xff]  }
  0x1a   :  { %v2789_v11 = vld [vmem:[%s3707_s0 + $0x70] ss:$52 sps:$4 sm:$0xff]   ;;  %v2794_v13 = vld [vmem:[%s3706_s1 + $0x248] sm:$0xff]  }
  0x1b   :  { %2704 = vmatpush3.bf16.msra.mxu1 %v2721_v15  ;;  %2308 = vmatpush3.bf16.msra.mxu0 %v2721_v15  ;;  %v2795_v14 = vld [vmem:[%s3706_s1 + $0x208] sm:$0xff]   ;;  %v2796_v15 = vld [vmem:[%s3706_s1 + $0x1d0] sm:$0xff]  }
  0x1c   :  { %2697 = vmatprep.subr.bf16.mxu1 %v2722_v16  ;;  %2309 = vmatprep.subr.bf16.mxu0 %v2722_v16  ;;  %v2797_v16 = vld [vmem:[%s3707_s0 + $0xdc] ss:$52 sps:$4 sm:$0xff]   ;;  %v2831_v42 = vld [vmem:[%s3706_s1 + $0x268] sm:$0xff]  }
  0x1f   :  { %2705 = vmatpush3.bf16.msra.mxu1 %v2723_v17  ;;  %2310 = vmatpush3.bf16.msra.mxu0 %v2723_v17  ;;  %v2799_v17 = vld [vmem:[%s3706_s1 + $0x190] sm:$0xff]  }
  0x20   :  { %2353 = vmatprep.subr.bf16.mxu1 %v2727_v18  ;;  %2411 = vmatprep.subr.bf16.mxu0 %v2732_v21  ;;  %v2801_v18 = vld [vmem:[%s3707_s0 + $0xe4] ss:$52 sps:$4 sm:$0xff]   ;;  %v2803_v21 = vld [vmem:[%s3707_s0 + $0xe0] ss:$52 sps:$4 sm:$0xff]  }
  0x22   :  { %1435 = vmatmul.mubr.bf16.vlgmr.msra.gmra.mrb[0].mxu1 %v2724_v19  ;;  %1403 = vmatmul.mubr.bf16.vlgmr.msra.gmra.mrb[0].mxu0 %v2728_v20  ;;  %v2804_v19 = vld [vmem:[%s3706_s1 + $0x250] sm:$0xff]   ;;  %v2800_v20 = vld [vmem:[%s3707_s0 + $0xd8] ss:$52 sps:$4 sm:$0xff]  }
  0x23   :  { %2354 = vmatpush3.bf16.msra.mxu1 %v2731_v22  ;;  %2412 = vmatpush3.bf16.msra.mxu0 %v2733_v23  ;;  %v2805_v22 = vld [vmem:[%s3706_s1 + $0x210] sm:$0xff]   ;;  %v2806_v23 = vld [vmem:[%s3706_s1 + $0x1d8] sm:$0xff]  }
  0x24   :  { %2355 = vmatprep.subr.bf16.mxu1 %v2734_v24  ;;  %2413 = vmatprep.subr.bf16.mxu0 %v2736_v25  ;;  %v2807_v24 = vld [vmem:[%s3706_s1 + $0x198] sm:$0xff]  }
  0x25   :  { %1410 = vmatprep.mubr.bf16.mxu0 %v2739_v26  ;;  %1442 = vmatprep.mubr.bf16.mxu1 %v2746_v28  ;;  %v2808_v25 = vld [vmem:[%s3707_s0 + $0x144] ss:$52 sps:$4 sm:$0xff]   ;;  %v2811_v26 = vld [vmem:[%s3707_s0 + $0x14c] ss:$52 sps:$4 sm:$0xff]  }
  0x26   :  { %v2815_v28 = vld [vmem:[%s3706_s1 + $0x218] sm:$0xff]  }
  0x27   :  { %2356 = vmatpush3.bf16.msra.mxu1 %v2735_v27  ;;  %2414 = vmatpush3.bf16.msra.mxu0 %v2737_v29  ;;  %v2814_v27 = vld [vmem:[%s3706_s1 + $0x258] sm:$0xff]   ;;  %v2816_v29 = vld [vmem:[%s3706_s1 + $0x1e0] sm:$0xff]  }
  0x28   :  { %2357 = vmatprep.subr.bf16.mxu1 %v2738_v30  ;;  %2415 = vmatprep.subr.bf16.mxu0 %v2743_v31  ;;  %v2810_v30 = vld [vmem:[%s3707_s0 + $0x140] ss:$52 sps:$4 sm:$0xff]  }
  0x29   :  { %v2817_v31 = vld [vmem:[%s3706_s1 + $0x1a0] sm:$0xff]  }
  0x2a   :  { %1411 = vmatmul.mubr.bf16.gmra.mrb[4].mxu0 %v2742_v33  ;;  %1443 = vmatmul.mubr.bf16.gmra.mrb[4].mxu1 %v2749_v34  ;;  %v2818_v33 = vld [vmem:[%s3707_s0 + $0x1ac] ss:$52 sps:$4 sm:$0xff]   ;;  %v2821_v34 = vld [vmem:[%s3707_s0 + $0x1b4] ss:$52 sps:$4 sm:$0xff]  }
  0x2b   :  { %2358 = vmatpush3.bf16.msra.mxu1 %v2741_v32  ;;  %2416 = vmatpush3.bf16.msra.mxu0 %v2744_v35  ;;  %v2813_v32 = vld [vmem:[%s3707_s0 + $0x148] ss:$52 sps:$4 sm:$0xff]   ;;  %v2823_v35 = vld [vmem:[%s3706_s1 + $0x260] sm:$0xff]  }
  0x2c   :  { %2359 = vmatprep.subr.bf16.mxu1 %v2745_v36  ;;  %2417 = vmatprep.subr.bf16.mxu0 %v2750_v37  ;;  %v2825_v36 = vld [vmem:[%s3706_s1 + $0x220] sm:$0xff]   ;;  %v2826_v37 = vld [vmem:[%s3706_s1 + $0x1e8] sm:$0xff]  }
  0x2d   :  { %1418 = vmatprep.mubr.bf16.mxu0 %v2753_v39  ;;  %1450 = vmatprep.mubr.bf16.mxu1 %v2150_v44  ;;  %v2820_v39 = vld [vmem:[%s3707_s0 + $0x1a8] ss:$52 sps:$4 sm:$0xff]  }
  0x2e   :  { %v2834_v44 = vld [vmem:[%s3706_s1 + $0x228] sm:$0xff]  }
  0x2f   :  { %2360 = vmatpush3.bf16.msra.mxu1 %v2748_v38  ;;  %2418 = vmatpush3.bf16.msra.mxu0 %v2751_v40  ;;  %v2827_v38 = vld [vmem:[%s3706_s1 + $0x1a8] sm:$0xff]   ;;  %v2824_v40 = vld [vmem:[%s3707_s0 + $0x1b0] ss:$52 sps:$4 sm:$0xff]  }
  0x30   :  { %2361 = vmatprep.subr.bf16.mxu1 %v2752_v41  ;;  %2419 = vmatprep.subr.bf16.mxu0 %v2757_v43  ;;  %v2828_v41 = vld [vmem:[%s3707_s0 + $0x214] ss:$52 sps:$4 sm:$0xff]   ;;  %v2832_v43 = vld [vmem:[%s3707_s0 + $0x21c] ss:$52 sps:$4 sm:$0xff]  }
  0x32   :  { %1419 = vmatmul.mubr.bf16.gmra.mrb[8].mxu0 %v2756_v46  ;;  %1451 = vmatmul.mubr.bf16.gmra.mrb[8].mxu1 %v2149_v48  ;;  %v2837_v46 = vld [vmem:[%s3706_s1 + $0x1b0] sm:$0xff]  }
  0x33   :  { %2362 = vmatpush3.bf16.msra.mxu1 %v2755_v45  ;;  %2420 = vmatpush3.bf16.msra.mxu0 %v2758_v47  ;;  %v2836_v45 = vld [vmem:[%s3706_s1 + $0x1f0] sm:$0xff]   ;;  %v100_v47 = vld [vmem:[%s3707_s0 + $0x278] sm:$0xff] }
  0x34   :  { %2363 = vmatprep.subr.bf16.mxu1 %v2759_v49  ;;  %2421 = vmatprep.subr.bf16.mxu0 %v2763_v50  ;;  %v2839_v48 = vld [vmem:[%s3706_s1 + $0x270] sm:$0xff]   ;;  %v2835_v50 = vld [vmem:[%s3707_s0 + $0x218] ss:$52 sps:$4 sm:$0xff]  }
  0x35   :  { %1426 = vmatprep.mubr.bf16.mxu0 %v2766_v52  ;;  %1490 = vmatprep.mubr.bf16.mxu1 %v2777_v61  ;;  %v2830_v49 = vld [vmem:[%s3707_s0 + $0x210] ss:$52 sps:$4 sm:$0xff]   ;;  %v2151_v61 = vcombine.low %v100_v47, %v100_v47 }
  0x36   :  { %v101_v52 = vld [vmem:[%s3707_s0 + $0x280] sm:$0xff] }
  0x37   :  { %2364 = vmatpush3.bf16.msra.mxu1 %v2761_v51  ;;  %2422 = vmatpush3.bf16.msra.mxu0 %v2764_v53  ;;  %v2841_v51 = vld [vmem:[%s3706_s1 + $0x230] sm:$0xff]   ;;  %v2843_v53 = vld [vmem:[%s3706_s1 + $0x1f8] sm:$0xff]  }
  0x38   :  { %2365 = vmatprep.subr.bf16.mxu1 %v2765_v54  ;;  %2423 = vmatprep.subr.bf16.mxu0 %v2770_v55  ;;  %v2845_v54 = vld [vmem:[%s3706_s1 + $0x1b8] sm:$0xff]   ;;  %v2152_v55 = vcombine.high %v100_v47, %v100_v47 }
  0x3a   :  { %1427 = vmatmul.mubr.bf16.gmra.mrb[12].mxu0 %v2769_v57  ;;  %v2846_v57 = vld [vmem:[%s3706_s1 + $0x278] sm:$0xff]  }
  0x3b   :  { %2366 = vmatpush3.bf16.msra.mxu1 %v2768_v56  ;;  %2424 = vmatpush3.bf16.msra.mxu0 %v2771_v58  ;;  %v2154_v56 = vcombine.high %v101_v52, %v101_v52  ;;  %v2850_v58 = vld [vmem:[%s3706_s1 + $0x238] sm:$0xff]  }
  0x3c   :  { %2367 = vmatprep.subr.bf16.mxu1 %v2772_v59  ;;  %2425 = vmatprep.subr.bf16.mxu0 %v2774_v60  ;;  %v2851_v59 = vld [vmem:[%s3706_s1 + $0x2c0] sm:$0xff]   ;;  %v2935_v60 = vmov 0.0  }
  0x3d   :  { %1578 = vmatprep.mubr.bf16.mxu0 %v2782_v1  ;;  %v2847_v1 = vld [vmem:[%s3707_s0 + $0x18] ss:$52 sps:$4 sm:$0xff]  }
  0x3f   :  { %2368 = vmatpush3.bf16.msra.mxu1 %v2773_v62  ;;  %2426 = vmatpush3.bf16.msra.mxu0 %v2778_v63  ;;  %v2153_v62 = vcombine.low %v101_v52, %v101_v52  ;;  %v2849_v63 = vld [vmem:[%s3707_s0 + $0x1c] ss:$52 sps:$4 sm:$0xff]  }
  0x40   :  { %2469 = vmatprep.subr.bf16.mxu1 %v2779_v0  ;;  %2527 = vmatprep.subr.bf16.mxu0 %v2784_v5  ;;  %v2854_v0 = vld [vmem:[%s3707_s0 + $0x24] ss:$52 sps:$4 sm:$0xff]  }
  0x41   :  { %v2857_v5 = vld [vmem:[%s3707_s0 + $0x84] ss:$52 sps:$4 sm:$0xff]  }
  0x42   :  { %1491 = vmatmul.mubr.bf16.vlgmr.msra.gmra.mrb[12].mxu1 %v2775_v2  ;;  %1579 = vmatmul.mubr.bf16.vlgmr.msra.gmra.mrb[16].mxu0 %v2780_v3  ;;  %v2852_v2 = vld [vmem:[%s3707_s0 + $0x20] ss:$52 sps:$4 sm:$0xff]   ;;  %v2914_v52 = vld [vmem:[%s3707_s0 + $0x90] ss:$52 sps:$4 sm:$0xff]  }
  0x43   :  { %2470 = vmatpush3.bf16.msra.mxu1 %v2783_v4  ;;  %2528 = vmatpush3.bf16.msra.mxu0 %v2785_v6  ;;  %v2855_v3 = vld [vmem:[%s3706_s1 + $0x280] sm:$0xff]   ;;  %v2859_v6 = vld [vmem:[%s3706_s1 + $0x2c8] sm:$0xff]  }
  0x44   :  { %1498 = vmatprep.mubr.bf16.mxu1 %v2786_v7  ;;  %2471 = vmatprep.subr.bf16.mxu1 %v2788_v8  ;;  %v2856_v4 = vld [vmem:[%s3706_s1 + $0x300] sm:$0xff]   ;;  %v2861_v8 = vld [vmem:[%s3706_s1 + $0x288] sm:$0xff]  }
  0x45   :  { %1586 = vmatprep.mubr.bf16.mxu0 %v2791_v10  ;;  %2529 = vmatprep.subr.bf16.mxu0 %v2794_v13  ;;  %v2862_v7 = vld [vmem:[%s3707_s0 + $0x8c] ss:$52 sps:$4 sm:$0xff]   ;;  %v2865_v10 = vld [vmem:[%s3706_s1 + $0x2d0] sm:$0xff]  }
  0x46   :  { %v2866_v13 = vld [vmem:[%s3707_s0 + $0xec] ss:$52 sps:$4 sm:$0xff]  }
  0x47   :  { %2472 = vmatpush3.bf16.msra.mxu1 %v2790_v9  ;;  %2530 = vmatpush3.bf16.msra.mxu0 %v2795_v14  ;;  %v2873_v9 = vld [vmem:[%s3706_s1 + $0x308] sm:$0xff]   ;;  %v2868_v14 = vld [vmem:[%s3706_s1 + $0x290] sm:$0xff]  }
  0x48   :  { %2473 = vmatprep.subr.bf16.mxu1 %v2796_v15  ;;  %2531 = vmatprep.subr.bf16.mxu0 %v2804_v19  ;;  %v2870_v15 = vld [vmem:[%s3707_s0 + $0xf4] ss:$52 sps:$4 sm:$0xff]   ;;  %v2882_v19 = vld [vmem:[%s3706_s1 + $0x2e0] sm:$0xff]  }
  0x4a   :  { %1499 = vmatmul.mubr.bf16.gmra.mrb[16].mxu1 %v2789_v11  ;;  %1587 = vmatmul.mubr.bf16.gmra.mrb[20].mxu0 %v2793_v12  ;;  %v2860_v11 = vld [vmem:[%s3707_s0 + $0x80] ss:$52 sps:$4 sm:$0xff]   ;;  %v2864_v12 = vld [vmem:[%s3707_s0 + $0x88] ss:$52 sps:$4 sm:$0xff]  }
  0x4b   :  { %1506 = vmatprep.mubr.bf16.mxu1 %v2797_v16  ;;  %2474 = vmatpush3.bf16.msra.mxu1 %v2799_v17  ;;  %v2874_v16 = vld [vmem:[%s3706_s1 + $0x2d8] sm:$0xff]  }
  0x4c   :  { %1594 = vmatprep.mubr.bf16.mxu0 %v2801_v18  ;;  %2532 = vmatpush3.bf16.msra.mxu0 %v2805_v22  ;;  %v2875_v17 = vld [vmem:[%s3706_s1 + $0x298] sm:$0xff]   ;;  %v2890_v18 = vld [vmem:[%s3706_s1 + $0x310] sm:$0xff]  }
  0x4d   :  { %2475 = vmatprep.subr.bf16.mxu1 %v2806_v23  ;;  %2533 = vmatprep.subr.bf16.mxu0 %v2814_v27  ;;  %v2876_v22 = vld [vmem:[%s3707_s0 + $0x154] ss:$52 sps:$4 sm:$0xff]   ;;  %v2879_v23 = vld [vmem:[%s3707_s0 + $0x15c] ss:$52 sps:$4 sm:$0xff]  }
  0x4e   :  { %v2878_v27 = vld [vmem:[%s3707_s0 + $0x150] ss:$52 sps:$4 sm:$0xff]  }
  0x4f   :  { %2476 = vmatpush3.bf16.msra.mxu1 %v2807_v24  ;;  %v2883_v24 = vld [vmem:[%s3706_s1 + $0x2a0] sm:$0xff]  }
  0x50   :  { %2534 = vmatpush3.bf16.msra.mxu0 %v2815_v28  ;;  %2477 = vmatprep.subr.bf16.mxu1 %v2816_v29  ;;  %v2892_v28 = vld [vmem:[%s3706_s1 + $0x2a8] sm:$0xff]   ;;  %v2899_v29 = vld [vmem:[%s3706_s1 + $0x2f0] sm:$0xff]  }
  0x51   :  { %2535 = vmatprep.subr.bf16.mxu0 %v2823_v35  ;;  %v2907_v35 = vld [vmem:[%s3706_s1 + $0x2b8] sm:$0xff]  }
  0x52   :  { %1507 = vmatmul.mubr.bf16.gmra.mrb[20].mxu1 %v2800_v20  ;;  %1595 = vmatmul.mubr.bf16.gmra.mrb[24].mxu0 %v2803_v21  ;;  %v2869_v20 = vld [vmem:[%s3707_s0 + $0xe8] ss:$52 sps:$4 sm:$0xff]   ;;  %v2872_v21 = vld [vmem:[%s3707_s0 + $0xf0] ss:$52 sps:$4 sm:$0xff]  }
  0x53   :  { %1514 = vmatprep.mubr.bf16.mxu1 %v2808_v25  ;;  %1602 = vmatprep.mubr.bf16.mxu0 %v2811_v26  ;;  %v2891_v25 = vld [vmem:[%s3706_s1 + $0x2e8] sm:$0xff]   ;;  %v2903_v26 = vld [vmem:[%s3706_s1 + $0x318] sm:$0xff]  }
  0x54   :  { %2478 = vmatpush3.bf16.msra.mxu1 %v2817_v31  ;;  %2536 = vmatpush3.bf16.msra.mxu0 %v2825_v36  ;;  %v2884_v31 = vld [vmem:[%s3707_s0 + $0x1bc] ss:$52 sps:$4 sm:$0xff]   ;;  %v2886_v36 = vld [vmem:[%s3707_s0 + $0x1b8] ss:$52 sps:$4 sm:$0xff]  }
  0x55   :  { %2479 = vmatprep.subr.bf16.mxu1 %v2826_v37  ;;  %2537 = vmatprep.subr.bf16.mxu0 %v2831_v42  ;;  %v2889_v37 = vld [vmem:[%s3707_s0 + $0x1c0] ss:$52 sps:$4 sm:$0xff]  }
  0x56   :  { %v2895_v42 = vld [vmem:[%s3707_s0 + $0x220] ss:$52 sps:$4 sm:$0xff]  }
  0x58   :  { %2480 = vmatpush3.bf16.msra.mxu1 %v2827_v38  ;;  %2538 = vmatpush3.bf16.msra.mxu0 %v2834_v44  ;;  %v2893_v38 = vld [vmem:[%s3707_s0 + $0x224] ss:$52 sps:$4 sm:$0xff]  }
  0x59   :  { %2481 = vmatprep.subr.bf16.mxu1 %v2836_v45  ;;  %2539 = vmatprep.subr.bf16.mxu0 %v2839_v48  ;;  %v2910_v48 = vld [vmem:[%s3707_s0 + $0x2c] ss:$52 sps:$4 sm:$0xff]  }
  0x5a   :  { %1515 = vmatmul.mubr.bf16.gmra.mrb[24].mxu1 %v2810_v30  ;;  %1603 = vmatmul.mubr.bf16.gmra.mrb[28].mxu0 %v2813_v32  ;;  %v2881_v30 = vld [vmem:[%s3707_s0 + $0x158] ss:$52 sps:$4 sm:$0xff]  }
  0x5b   :  { %1522 = vmatprep.mubr.bf16.mxu1 %v2818_v33  ;;  %1610 = vmatprep.mubr.bf16.mxu0 %v2821_v34  ;;  %v2887_v32 = vld [vmem:[%s3707_s0 + $0x1c4] ss:$52 sps:$4 sm:$0xff]   ;;  %v2900_v33 = vld [vmem:[%s3706_s1 + $0x2b0] sm:$0xff]  }
  0x5c   :  { %2482 = vmatpush3.bf16.msra.mxu1 %v2837_v46  ;;  %2540 = vmatpush3.bf16.msra.mxu0 %v2841_v51  ;;  %v2905_v34 = vld [vmem:[%s3706_s1 + $0x2f8] sm:$0xff]   ;;  %v2912_v51 = vld [vmem:[%s3707_s0 + $0x94] ss:$52 sps:$4 sm:$0xff]  }
  0x5d   :  { %2483 = vmatprep.subr.bf16.mxu1 %v2843_v53  ;;  %2541 = vmatprep.subr.bf16.mxu0 %v2846_v57  ;;  %v2915_v53 = vld [vmem:[%s3707_s0 + $0x98] ss:$52 sps:$4 sm:$0xff]  }
  0x5e   :  { %v2920_v57 = vld [vmem:[%s3707_s0 + $0x164] ss:$52 sps:$4 sm:$0xff]  }
  0x60   :  { %2484 = vmatpush3.bf16.msra.mxu1 %v2845_v54  ;;  %2542 = vmatpush3.bf16.msra.mxu0 %v2850_v58  ;;  %v2916_v54 = vld [vmem:[%s3707_s0 + $0xfc] ss:$52 sps:$4 sm:$0xff]   ;;  %v2922_v58 = vld [vmem:[%s3707_s0 + $0x160] ss:$52 sps:$4 sm:$0xff]  }
  0x61   :  { %2585 = vmatprep.subr.bf16.mxu1 %v2851_v59  ;;  %2654 = vmatprep.subr.bf16.mxu0 %v2935_v60  ;;  %v2923_v59 = vld [vmem:[%s3707_s0 + $0x168] ss:$52 sps:$4 sm:$0xff]  }
  0x62   :  { %1523 = vmatmul.mubr.bf16.gmra.mrb[28].mxu1 %v2820_v39  ;;  %1611 = vmatmul.mubr.bf16.gmra.mrb[32].mxu0 %v2824_v40  ;;  %v2896_v39 = vld [vmem:[%s3707_s0 + $0x22c] ss:$52 sps:$4 sm:$0xff]  }
  0x63   :  { %1530 = vmatprep.mubr.bf16.mxu1 %v2828_v41  ;;  %1618 = vmatprep.mubr.bf16.mxu0 %v2832_v43  ;;  %v102_v40 = vld [vmem:[%s3707_s0 + $0x288] sm:$0xff]  ;;  %v103_v41 = vld [vmem:[%s3707_s0 + $0x290] sm:$0xff] }
  0x64   :  { %v2898_v43 = vld [vmem:[%s3707_s0 + $0x228] ss:$52 sps:$4 sm:$0xff]   ;;  %v2156_v44 = vcombine.high %v102_v40, %v102_v40  ;;  %v2158_v45 = vcombine.high %v103_v41, %v103_v41  ;;  %v2155_v46 = vcombine.low %v102_v40, %v102_v40  ;;  %v2157_v47 = vcombine.low %v103_v41, %v103_v41 }
  0x6a   :  { %1531 = vmatmul.mubr.bf16.gmra.mrb[32].mxu1 %v2830_v49  ;;  %1619 = vmatmul.mubr.bf16.gmra.mrb[36].mxu0 %v2835_v50  ;;  %v2908_v49 = vld [vmem:[%s3707_s0 + $0x28] ss:$52 sps:$4 sm:$0xff]   ;;  %v2911_v50 = vld [vmem:[%s3707_s0 + $0x30] ss:$52 sps:$4 sm:$0xff]  }
  0x6b   :  { %1538 = vmatprep.mubr.bf16.mxu1 %v2152_v55  ;;  %1626 = vmatprep.mubr.bf16.mxu0 %v2154_v56  ;;  %v2918_v55 = vld [vmem:[%s3707_s0 + $0xf8] ss:$52 sps:$4 sm:$0xff]   ;;  %v2919_v56 = vld [vmem:[%s3707_s0 + $0x100] ss:$52 sps:$4 sm:$0xff]  }
  0x72   :  { %1539 = vmatmul.mubr.bf16.gmra.mrb[36].mxu1 %v2151_v61  ;;  %1627 = vmatmul.mubr.bf16.gmra.mrb[40].mxu0 %v2153_v62  ;;  %v2924_v61 = vld [vmem:[%s3707_s0 + $0x1cc] ss:$52 sps:$4 sm:$0xff]   ;;  %v2926_v62 = vld [vmem:[%s3707_s0 + $0x1c8] ss:$52 sps:$4 sm:$0xff]  }
  0x73   :  { %1666 = vmatprep.mubr.bf16.mxu1 %v2849_v63  ;;  %1754 = vmatprep.mubr.bf16.mxu0 %v2854_v0  ;;  %v2927_v63 = vld [vmem:[%s3707_s0 + $0x1d0] ss:$52 sps:$4 sm:$0xff]   ;;  %v2928_v0 = vld [vmem:[%s3707_s0 + $0x234] ss:$52 sps:$4 sm:$0xff]  }
  0x7a   :  { %1667 = vmatmul.mubr.bf16.vlgmr.msra.gmra.mrb[40].mxu1 %v2847_v1  ;;  %1755 = vmatmul.mubr.bf16.vlgmr.msra.gmra.mrb[44].mxu0 %v2852_v2  ;;  %v104_v1 = vld [vmem:[%s3707_s0 + $0x298] sm:$0xff]  ;;  %v2930_v2 = vld [vmem:[%s3707_s0 + $0x230] ss:$52 sps:$4 sm:$0xff]  }
  0x7b   :  { %2586 = vmatpush3.bf16.msra.mxu1 %v2855_v3  ;;  %2655 = vmatpush3.bf16.msra.mxu0 %v2856_v4  ;;  %v2931_v3 = vld [vmem:[%s3707_s0 + $0x238] ss:$52 sps:$4 sm:$0xff]   ;;  %v2160_v4 = vcombine.high %v104_v1, %v104_v1 }
  0x7c   :  { %1674 = vmatprep.mubr.bf16.mxu1 %v2857_v5  ;;  %2587 = vmatprep.subr.bf16.mxu1 %v2859_v6  ;;  %v2159_v5 = vcombine.low %v104_v1, %v104_v1  ;;  %v2934_v6 = vld [vmem:[%s3707_s0 + $0x2a0] ss:$0 sps:$4 sm:$0xff]  }
  0x7d   :  { %1762 = vmatprep.mubr.bf16.mxu0 %v2862_v7  ;;  %2656 = vmatprep.subr.bf16.mxu0 %v2935_v60 }
  0x7f   :  { %2588 = vmatpush3.bf16.msra.mxu1 %v2861_v8  ;;  %2657 = vmatpush3.bf16.msra.mxu0 %v2873_v9 }
  0x80   :  { %2589 = vmatprep.subr.bf16.mxu1 %v2865_v10  ;;  %2658 = vmatprep.subr.bf16.mxu0 %v2935_v60 }
  0x82   :  { %1675 = vmatmul.mubr.bf16.gmra.mrb[44].mxu1 %v2860_v11  ;;  %1763 = vmatmul.mubr.bf16.gmra.mrb[48].mxu0 %v2864_v12 }
  0x83   :  { %1682 = vmatprep.mubr.bf16.mxu1 %v2866_v13  ;;  %2590 = vmatpush3.bf16.msra.mxu1 %v2868_v14 }
  0x84   :  { %1770 = vmatprep.mubr.bf16.mxu0 %v2870_v15  ;;  %2591 = vmatprep.subr.bf16.mxu1 %v2874_v16 }
  0x85   :  { %2659 = vmatpush3.bf16.msra.mxu0 %v2890_v18 }
  0x86   :  { %2660 = vmatprep.subr.bf16.mxu0 %v2935_v60 }
  0x87   :  { %2592 = vmatpush3.bf16.msra.mxu1 %v2875_v17 }
  0x88   :  { %2593 = vmatprep.subr.bf16.mxu1 %v2882_v19 }
  0x89   :  { %2661 = vmatpush3.bf16.msra.mxu0 %v2903_v26 }
  0x8a   :  { %1683 = vmatmul.mubr.bf16.gmra.mrb[48].mxu1 %v2869_v20  ;;  %1771 = vmatmul.mubr.bf16.gmra.mrb[52].mxu0 %v2872_v21 }
  0x8b   :  { %1690 = vmatprep.mubr.bf16.mxu1 %v2876_v22  ;;  %1778 = vmatprep.mubr.bf16.mxu0 %v2879_v23 }
  0x8c   :  { %2594 = vmatpush3.bf16.msra.mxu1 %v2883_v24 }
  0x8d   :  { %2595 = vmatprep.subr.bf16.mxu1 %v2891_v25 }
  0x90   :  { %2596 = vmatpush3.bf16.msra.mxu1 %v2892_v28 }
  0x91   :  { %2597 = vmatprep.subr.bf16.mxu1 %v2899_v29 }
  0x92   :  { %1691 = vmatmul.mubr.bf16.gmra.mrb[52].mxu1 %v2878_v27  ;;  %1779 = vmatmul.mubr.bf16.gmra.mrb[56].mxu0 %v2881_v30 }
  0x93   :  { %1698 = vmatprep.mubr.bf16.mxu1 %v2884_v31  ;;  %1786 = vmatprep.mubr.bf16.mxu0 %v2887_v32 }
  0x94   :  { %2598 = vmatpush3.bf16.msra.mxu1 %v2900_v33 }
  0x95   :  { %2599 = vmatprep.subr.bf16.mxu1 %v2905_v34 }
  0x98   :  { %2600 = vmatpush3.bf16.msra.mxu1 %v2907_v35 }
  0x9a   :  { %1699 = vmatmul.mubr.bf16.gmra.mrb[56].mxu1 %v2886_v36  ;;  %1787 = vmatmul.mubr.bf16.gmra.mrb[60].mxu0 %v2889_v37 }
  0x9b   :  { %1706 = vmatprep.mubr.bf16.mxu1 %v2893_v38  ;;  %1794 = vmatprep.mubr.bf16.mxu0 %v2896_v39 }
  0xa2   :  { %1707 = vmatmul.mubr.bf16.gmra.mrb[60].mxu1 %v2895_v42  ;;  %1795 = vmatmul.mubr.bf16.gmra.mrb[64].mxu0 %v2898_v43 }
  0xa3   :  { %1714 = vmatprep.mubr.bf16.mxu1 %v2156_v44  ;;  %1802 = vmatprep.mubr.bf16.mxu0 %v2158_v45 }
  0xaa   :  { %1715 = vmatmul.mubr.bf16.gmra.mrb[64].mxu1 %v2155_v46  ;;  %1803 = vmatmul.mubr.bf16.gmra.mrb[68].mxu0 %v2157_v47 }
  0xab   :  { %1842 = vmatprep.mubr.bf16.mxu1 %v2910_v48  ;;  %2662 = vmatprep.mubr.msk.bf16.mxu0 %vm2936_vm0, %v2935_v60 }
  0xb2   :  { %1843 = vmatmul.mubr.bf16.vlgmr.msra.gmra.mrb[68].mxu1 %v2908_v49  ;;  %2663 = vmatmul.mubr.msk.bf16.vlgmr.msra.gmra.mrb[72].mxu0 %vm1348_vm1, %v2911_v50  ;;  %v3554_v49 = vld [vmem:[%s3708_s2] ss:$0 sm:$0xff] }
  0xb3   :  { %1850 = vmatprep.mubr.bf16.mxu1 %v2912_v51  ;;  %2666 = vmatprep.mubr.msk.bf16.mxu0 %vm2936_vm0, %v2935_v60 }
  0xba   :  { %1851 = vmatmul.mubr.bf16.gmra.mrb[72].mxu1 %v2914_v52  ;;  %2667 = vmatmul.mubr.msk.bf16.gmra.mrb[76].mxu0 %vm1348_vm1, %v2915_v53 }
  0xbb   :  { %1858 = vmatprep.mubr.bf16.mxu1 %v2916_v54  ;;  %2670 = vmatprep.mubr.msk.bf16.mxu0 %vm2936_vm0, %v2935_v60 }
  0xc2   :  { %1859 = vmatmul.mubr.bf16.gmra.mrb[76].mxu1 %v2918_v55  ;;  %2671 = vmatmul.mubr.msk.bf16.gmra.mrb[80].mxu0 %vm1348_vm1, %v2919_v56 }
  0xc3   :  { %1866 = vmatprep.mubr.bf16.mxu1 %v2920_v57  ;;  %2674 = vmatprep.mubr.msk.bf16.mxu0 %vm2936_vm0, %v2935_v60 }
  0xca   :  { %1867 = vmatmul.mubr.bf16.gmra.mrb[80].mxu1 %v2922_v58  ;;  %2675 = vmatmul.mubr.msk.bf16.gmra.mrb[84].mxu0 %vm1348_vm1, %v2923_v59 }
  0xcb   :  { %1874 = vmatprep.mubr.bf16.mxu1 %v2924_v61  ;;  %2678 = vmatprep.mubr.msk.bf16.mxu0 %vm2936_vm0, %v2935_v60 }
  0xd2   :  { %1875 = vmatmul.mubr.bf16.gmra.mrb[84].mxu1 %v2926_v62  ;;  %2679 = vmatmul.mubr.msk.bf16.gmra.mrb[88].mxu0 %vm1348_vm1, %v2927_v63 }
  0xd3   :  { %1882 = vmatprep.mubr.bf16.mxu1 %v2928_v0  ;;  %2682 = vmatprep.mubr.msk.bf16.mxu0 %vm2936_vm0, %v2935_v60 }
  0xda   :  { %1883 = vmatmul.mubr.bf16.gmra.mrb[88].mxu1 %v2930_v2  ;;  %2683 = vmatmul.mubr.msk.bf16.gmra.mrb[92].mxu0 %vm1348_vm1, %v2931_v3 }
  0xdb   :  { %1890 = vmatprep.mubr.bf16.mxu1 %v2160_v4  ;;  %2686 = vmatprep.mubr.msk.bf16.mxu0 %vm2936_vm0, %v2935_v60 }
  0xe2   :  { %1891 = vmatmul.mubr.bf16.gmra.mrb[92].mxu1 %v2159_v5  ;;  %2687 = vmatmul.mubr.msk.bf16.gmra.mrb[96].mxu0 %vm1348_vm1, %v2934_v6 }
  0xf5   :  { %v2335_v7 = vpop.f32.mrb[0].mxu1  ;;  %v2311_v8 = vpop.f32.mrb[0].mxu0 }
  0xf6   :  { %v2336_v9 = vpop.f32.mrb[1].mxu1  ;;  %v2312_v10 = vpop.f32.mrb[1].mxu0 }
  0xf7   :  { %v3537_v11 = vadd.f32 %v2336_v9, %v2335_v7  ;;  %v2338_v12 = vpop.f32.mrb[2].mxu1  ;;  %v2313_v13 = vadd.f32 %v2312_v10, %v2311_v8  ;;  %v2314_v14 = vpop.f32.mrb[2].mxu0 }
  0xf8   :  { %v2339_v15 = vpop.f32.mrb[3].mxu1  ;;  %v2315_v16 = vpop.f32.mrb[3].mxu0 }
  0xf9   :  { %v3539_v60 = vadd.f32 %v2339_v15, %v2338_v12  ;;  %v2316_v17 = vadd.f32 %v2315_v16, %v2314_v14  ;;  %v1405_v52 = vadd.f32 %v2313_v13, %v3554_v49 }
  0xfb   :  { %v1408_v59 = vadd.f32 %v2316_v17, %v3554_v49 }
  0xfd   :  { %v2317_v18 = vpop.f32.mrb[4].mxu0  ;;  %v2341_v19 = vpop.f32.mrb[4].mxu1 }
  0xfe   :  { %v2318_v20 = vpop.f32.mrb[5].mxu0  ;;  %v2342_v21 = vpop.f32.mrb[5].mxu1 }
  0xff   :  { %v2319_v22 = vadd.f32 %v2318_v20, %v2317_v18  ;;  %v2320_v23 = vpop.f32.mrb[6].mxu0  ;;  %v3541_v24 = vadd.f32 %v2342_v21, %v2341_v19  ;;  %v2344_v25 = vpop.f32.mrb[6].mxu1 }
 0x100   :  { %v2321_v26 = vpop.f32.mrb[7].mxu0  ;;  %v2345_v27 = vpop.f32.mrb[7].mxu1 }
 0x101   :  { %v2322_v28 = vadd.f32 %v2321_v26, %v2320_v23  ;;  %v3543_v29 = vadd.f32 %v2345_v27, %v2344_v25  ;;  %v1413_v7 = vadd.f32 %v2319_v22, %v3554_v49 }
 0x103   :  { %v1416_v15 = vadd.f32 %v2322_v28, %v3554_v49 }
 0x105   :  { %v2323_v30 = vpop.f32.mrb[8].mxu0  ;;  %v2347_v31 = vpop.f32.mrb[8].mxu1 }
 0x106   :  { %v2324_v32 = vpop.f32.mrb[9].mxu0  ;;  %v2348_v33 = vpop.f32.mrb[9].mxu1 }
 0x107   :  { %v2325_v34 = vadd.f32 %v2324_v32, %v2323_v30  ;;  %v2326_v35 = vpop.f32.mrb[10].mxu0  ;;  %v3545_v36 = vadd.f32 %v2348_v33, %v2347_v31  ;;  %v2350_v37 = vpop.f32.mrb[10].mxu1 }
 0x108   :  { %v2327_v38 = vpop.f32.mrb[11].mxu0  ;;  %v2351_v39 = vpop.f32.mrb[11].mxu1 }
 0x109   :  { %v2328_v40 = vadd.f32 %v2327_v38, %v2326_v35  ;;  %v1421_v27 = vadd.f32 %v2325_v34, %v3554_v49 }
 0x10b   :  { %v1424_v37 = vadd.f32 %v2328_v40, %v3554_v49 }
 0x10d   :  { %v2329_v41 = vpop.f32.mrb[12].mxu0 }
 0x10e   :  { %v2330_v42 = vpop.f32.mrb[13].mxu0 }
 0x10f   :  { %v3547_v43 = vadd.f32 %v2330_v42, %v2329_v41  ;;  %v2332_v44 = vpop.f32.mrb[14].mxu0 }
 0x110   :  { %v2333_v45 = vpop.f32.mrb[15].mxu0 }
 0x111   :  { %v3549_v46 = vadd.f32 %v2333_v45, %v2332_v44 }
 0x115   :  { %v2369_v47 = vpop.f32.mrb[12].mxu1  ;;  %v2427_v48 = vpop.f32.mrb[16].mxu0 }
 0x116   :  { %v2370_v50 = vpop.f32.mrb[13].mxu1  ;;  %v2428_v51 = vpop.f32.mrb[17].mxu0 }
 0x117   :  { %v2371_v53 = vadd.f32 %v2370_v50, %v2369_v47  ;;  %v2372_v54 = vpop.f32.mrb[14].mxu1  ;;  %v2429_v55 = vadd.f32 %v2428_v51, %v2427_v48  ;;  %v2430_v56 = vpop.f32.mrb[18].mxu0  ;;  %v1429_v51 = vadd.f32 %v3547_v43, %v3554_v49 }
 0x118   :  { %v2373_v57 = vpop.f32.mrb[15].mxu1  ;;  %v2431_v58 = vpop.f32.mrb[19].mxu0 }
 0x119   :  { %v1493_v61 = vadd.f32 %v2371_v53, %v1405_v52  ;;  %v2374_v62 = vadd.f32 %v2373_v57, %v2372_v54  ;;  %v2432_v63 = vadd.f32 %v2431_v58, %v2430_v56  ;;  %v1432_v57 = vadd.f32 %v3549_v46, %v3554_v49 }
 0x11b   :  { %v1496_v0 = vadd.f32 %v2374_v62, %v1408_v59  ;;  %v3558_v1 = vadd.f32 %v2429_v55, %v1493_v61 }
 0x11d   :  { %v3560_v2 = vadd.f32 %v2432_v63, %v1496_v0  ;;  %v2375_v3 = vpop.f32.mrb[16].mxu1  ;;  %v2433_v4 = vpop.f32.mrb[20].mxu0 }
 0x11e   :  { %v2376_v5 = vpop.f32.mrb[17].mxu1  ;;  %v2434_v6 = vpop.f32.mrb[21].mxu0 }
 0x11f   :  { %v2377_v8 = vadd.f32 %v2376_v5, %v2375_v3  ;;  %v2378_v9 = vpop.f32.mrb[18].mxu1  ;;  %v2435_v10 = vadd.f32 %v2434_v6, %v2433_v4  ;;  %v2436_v12 = vpop.f32.mrb[22].mxu0  ;;  %v1437_v6 = vadd.f32 %v3537_v11, %v3554_v49 }
 0x120   :  { %v2379_v13 = vpop.f32.mrb[19].mxu1  ;;  %v2437_v14 = vpop.f32.mrb[23].mxu0 }
 0x121   :  { %v1501_v16 = vadd.f32 %v2377_v8, %v1413_v7  ;;  %v2380_v17 = vadd.f32 %v2379_v13, %v2378_v9  ;;  %v2438_v18 = vadd.f32 %v2437_v14, %v2436_v12  ;;  %v1440_v13 = vadd.f32 %v3539_v60, %v3554_v49 }
 0x123   :  { %v1504_v19 = vadd.f32 %v2380_v17, %v1416_v15  ;;  %v3564_v20 = vadd.f32 %v2435_v10, %v1501_v16 }
 0x125   :  { %v3566_v21 = vadd.f32 %v2438_v18, %v1504_v19  ;;  %v2381_v23 = vpop.f32.mrb[20].mxu1  ;;  %v2439_v25 = vpop.f32.mrb[24].mxu0 }
 0x126   :  { %v2382_v26 = vpop.f32.mrb[21].mxu1  ;;  %v2440_v22 = vpop.f32.mrb[25].mxu0 }
 0x127   :  { %v2383_v30 = vadd.f32 %v2382_v26, %v2381_v23  ;;  %v2384_v31 = vpop.f32.mrb[22].mxu1  ;;  %v2441_v32 = vadd.f32 %v2440_v22, %v2439_v25  ;;  %v2442_v33 = vpop.f32.mrb[26].mxu0  ;;  %v1445_v22 = vadd.f32 %v3541_v24, %v3554_v49 }
 0x128   :  { %v2385_v35 = vpop.f32.mrb[23].mxu1  ;;  %v2443_v28 = vpop.f32.mrb[27].mxu0 }
 0x129   :  { %v1509_v38 = vadd.f32 %v2383_v30, %v1421_v27  ;;  %v2386_v39 = vadd.f32 %v2385_v35, %v2384_v31  ;;  %v2444_v41 = vadd.f32 %v2443_v28, %v2442_v33  ;;  %v1448_v35 = vadd.f32 %v3543_v29, %v3554_v49 }
 0x12b   :  { %v1512_v42 = vadd.f32 %v2386_v39, %v1424_v37  ;;  %v3570_v44 = vadd.f32 %v2441_v32, %v1509_v38 }
 0x12d   :  { %v3572_v45 = vadd.f32 %v2444_v41, %v1512_v42  ;;  %v2387_v47 = vpop.f32.mrb[24].mxu1  ;;  %v2445_v48 = vpop.f32.mrb[28].mxu0 }
 0x12e   :  { %v2388_v50 = vpop.f32.mrb[25].mxu1  ;;  %v2446_v34 = vpop.f32.mrb[29].mxu0 }
 0x12f   :  { %v2389_v52 = vadd.f32 %v2388_v50, %v2387_v47  ;;  %v2390_v53 = vpop.f32.mrb[26].mxu1  ;;  %v2447_v54 = vadd.f32 %v2446_v34, %v2445_v48  ;;  %v2448_v55 = vpop.f32.mrb[30].mxu0  ;;  %v1453_v34 = vadd.f32 %v3545_v36, %v3554_v49 }
 0x130   :  { %v2391_v40 = vpop.f32.mrb[27].mxu1  ;;  %v2449_v56 = vpop.f32.mrb[31].mxu0 }
 0x131   :  { %v1517_v58 = vadd.f32 %v2389_v52, %v1429_v51  ;;  %v2392_v59 = vadd.f32 %v2391_v40, %v2390_v53  ;;  %v2450_v61 = vadd.f32 %v2449_v56, %v2448_v55 }
 0x133   :  { %v1520_v62 = vadd.f32 %v2392_v59, %v1432_v57  ;;  %v3578_v63 = vadd.f32 %v2447_v54, %v1517_v58 }
 0x135   :  { %v3580_v0 = vadd.f32 %v2450_v61, %v1520_v62  ;;  %v2393_v3 = vpop.f32.mrb[28].mxu1  ;;  %v2451_v4 = vpop.f32.mrb[32].mxu0 }
 0x136   :  { %v2394_v43 = vpop.f32.mrb[29].mxu1  ;;  %v2452_v5 = vpop.f32.mrb[33].mxu0 }
 0x137   :  { %v2395_v7 = vadd.f32 %v2394_v43, %v2393_v3  ;;  %v2396_v8 = vpop.f32.mrb[30].mxu1  ;;  %v2453_v9 = vadd.f32 %v2452_v5, %v2451_v4  ;;  %v2454_v10 = vpop.f32.mrb[34].mxu0 }
 0x138   :  { %v2397_v46 = vpop.f32.mrb[31].mxu1  ;;  %v2455_v12 = vpop.f32.mrb[35].mxu0 }
 0x139   :  { %v1525_v14 = vadd.f32 %v2395_v7, %v1437_v6  ;;  %v2398_v15 = vadd.f32 %v2397_v46, %v2396_v8  ;;  %v2456_v16 = vadd.f32 %v2455_v12, %v2454_v10 }
 0x13b   :  { %v1528_v17 = vadd.f32 %v2398_v15, %v1440_v13  ;;  %v3586_v18 = vadd.f32 %v2453_v9, %v1525_v14 }
 0x13d   :  { %v3588_v19 = vadd.f32 %v2456_v16, %v1528_v17  ;;  %v2399_v23 = vpop.f32.mrb[32].mxu1  ;;  %v2457_v25 = vpop.f32.mrb[36].mxu0 }
 0x13e   :  { %v2400_v11 = vpop.f32.mrb[33].mxu1  ;;  %v2458_v26 = vpop.f32.mrb[37].mxu0 }
 0x13f   :  { %v2401_v27 = vadd.f32 %v2400_v11, %v2399_v23  ;;  %v2402_v30 = vpop.f32.mrb[34].mxu1  ;;  %v2459_v31 = vadd.f32 %v2458_v26, %v2457_v25  ;;  %v2460_v32 = vpop.f32.mrb[38].mxu0 }
 0x140   :  { %v2403_v60 = vpop.f32.mrb[35].mxu1  ;;  %v2461_v33 = vpop.f32.mrb[39].mxu0 }
 0x141   :  { %v1533_v28 = vadd.f32 %v2401_v27, %v1445_v22  ;;  %v2404_v37 = vadd.f32 %v2403_v60, %v2402_v30  ;;  %v2462_v38 = vadd.f32 %v2461_v33, %v2460_v32 }
 0x143   :  { %v1536_v39 = vadd.f32 %v2404_v37, %v1448_v35  ;;  %v3594_v41 = vadd.f32 %v2459_v31, %v1533_v28 }
 0x145   :  { %v3596_v42 = vadd.f32 %v2462_v38, %v1536_v39  ;;  %v2405_v47 = vpop.f32.mrb[36].mxu1  ;;  %v2463_v48 = vpop.f32.mrb[40].mxu0 }
 0x146   :  { %v2406_v24 = vpop.f32.mrb[37].mxu1  ;;  %v2464_v50 = vpop.f32.mrb[41].mxu0 }
 0x147   :  { %v2407_v51 = vadd.f32 %v2406_v24, %v2405_v47  ;;  %v2408_v52 = vpop.f32.mrb[38].mxu1  ;;  %v2465_v53 = vadd.f32 %v2464_v50, %v2463_v48  ;;  %v2466_v54 = vpop.f32.mrb[42].mxu0 }
 0x148   :  { %v2409_v29 = vpop.f32.mrb[39].mxu1  ;;  %v2467_v55 = vpop.f32.mrb[43].mxu0 }
 0x149   :  { %v1541_v40 = vadd.f32 %v2407_v51, %v1453_v34 }
 0x14b   :  { %v3600_v56 = vadd.f32 %v2465_v53, %v1541_v40 }
 0x14d   :  { %v2485_v57 = vpop.f32.mrb[40].mxu1  ;;  %v2543_v58 = vpop.f32.mrb[44].mxu0 }
 0x14e   :  { %v2486_v59 = vpop.f32.mrb[41].mxu1  ;;  %v2544_v61 = vpop.f32.mrb[45].mxu0 }
 0x14f   :  { %v2487_v62 = vadd.f32 %v2486_v59, %v2485_v57  ;;  %v2488_v3 = vpop.f32.mrb[42].mxu1  ;;  %v2545_v4 = vadd.f32 %v2544_v61, %v2543_v58  ;;  %v2546_v43 = vpop.f32.mrb[46].mxu0 }
 0x150   :  { %v2489_v5 = vpop.f32.mrb[43].mxu1  ;;  %v2547_v6 = vpop.f32.mrb[47].mxu0 }
 0x151   :  { %v1669_v36 = vadd.f32 %v2487_v62, %v3558_v1  ;;  %v2490_v49 = vadd.f32 %v2489_v5, %v2488_v3  ;;  %v2548_v7 = vadd.f32 %v2547_v6, %v2546_v43 }
 0x153   :  { %v1672_v8 = vadd.f32 %v2490_v49, %v3560_v2  ;;  %v3604_v9 = vadd.f32 %v2545_v4, %v1669_v36 }
 0x155   :  { %v3606_v10 = vadd.f32 %v2548_v7, %v1672_v8  ;;  %v2491_v46 = vpop.f32.mrb[44].mxu1  ;;  %v2549_v12 = vpop.f32.mrb[48].mxu0 }
 0x156   :  { %v2492_v13 = vpop.f32.mrb[45].mxu1  ;;  %v2550_v14 = vpop.f32.mrb[49].mxu0 }
 0x157   :  { %v2493_v15 = vadd.f32 %v2492_v13, %v2491_v46  ;;  %v2494_v16 = vpop.f32.mrb[46].mxu1  ;;  %v2551_v17 = vadd.f32 %v2550_v14, %v2549_v12  ;;  %v2552_v23 = vpop.f32.mrb[50].mxu0 }
 0x158   :  { %v2495_v25 = vpop.f32.mrb[47].mxu1  ;;  %v2553_v11 = vpop.f32.mrb[51].mxu0 }
 0x159   :  { %v1677_v1 = vadd.f32 %v2493_v15, %v3564_v20  ;;  %v2496_v26 = vadd.f32 %v2495_v25, %v2494_v16  ;;  %v2554_v22 = vadd.f32 %v2553_v11, %v2552_v23 }
 0x15b   :  { %v1680_v2 = vadd.f32 %v2496_v26, %v3566_v21  ;;  %v3610_v27 = vadd.f32 %v2551_v17, %v1677_v1 }
 0x15d   :  { %v3612_v30 = vadd.f32 %v2554_v22, %v1680_v2  ;;  %v2497_v31 = vpop.f32.mrb[48].mxu1  ;;  %v2555_v32 = vpop.f32.mrb[52].mxu0 }
 0x15e   :  { %v2498_v60 = vpop.f32.mrb[49].mxu1  ;;  %v2556_v33 = vpop.f32.mrb[53].mxu0 }
 0x15f   :  { %v2499_v35 = vadd.f32 %v2498_v60, %v2497_v31  ;;  %v2500_v28 = vpop.f32.mrb[50].mxu1  ;;  %v2557_v37 = vadd.f32 %v2556_v33, %v2555_v32  ;;  %v2558_v38 = vpop.f32.mrb[54].mxu0 }
 0x160   :  { %v2501_v39 = vpop.f32.mrb[51].mxu1  ;;  %v2559_v47 = vpop.f32.mrb[55].mxu0 }
 0x161   :  { %v1685_v20 = vadd.f32 %v2499_v35, %v3570_v44  ;;  %v2502_v48 = vadd.f32 %v2501_v39, %v2500_v28  ;;  %v2560_v24 = vadd.f32 %v2559_v47, %v2558_v38 }
 0x163   :  { %v1688_v21 = vadd.f32 %v2502_v48, %v3572_v45  ;;  %v3616_v50 = vadd.f32 %v2557_v37, %v1685_v20 }
 0x165   :  { %v3618_v34 = vadd.f32 %v2560_v24, %v1688_v21  ;;  %v2503_v51 = vpop.f32.mrb[52].mxu1  ;;  %v2561_v52 = vpop.f32.mrb[56].mxu0 }
 0x166   :  { %v2504_v53 = vpop.f32.mrb[53].mxu1  ;;  %v2562_v54 = vpop.f32.mrb[57].mxu0 }
 0x167   :  { %v2505_v29 = vadd.f32 %v2504_v53, %v2503_v51  ;;  %v2506_v55 = vpop.f32.mrb[54].mxu1  ;;  %v2563_v40 = vadd.f32 %v2562_v54, %v2561_v52  ;;  %v2564_v57 = vpop.f32.mrb[58].mxu0 }
 0x168   :  { %v2507_v58 = vpop.f32.mrb[55].mxu1  ;;  %v2565_v59 = vpop.f32.mrb[59].mxu0 }
 0x169   :  { %v1693_v44 = vadd.f32 %v2505_v29, %v3578_v63  ;;  %v2508_v61 = vadd.f32 %v2507_v58, %v2506_v55  ;;  %v2566_v62 = vadd.f32 %v2565_v59, %v2564_v57 }
 0x16b   :  { %v1696_v45 = vadd.f32 %v2508_v61, %v3580_v0  ;;  %v3622_v3 = vadd.f32 %v2563_v40, %v1693_v44 }
 0x16d   :  { %v3624_v4 = vadd.f32 %v2566_v62, %v1696_v45  ;;  %v2509_v43 = vpop.f32.mrb[56].mxu1  ;;  %v2567_v5 = vpop.f32.mrb[60].mxu0 }
 0x16e   :  { %v2510_v6 = vpop.f32.mrb[57].mxu1  ;;  %v2568_v36 = vpop.f32.mrb[61].mxu0 }
 0x16f   :  { %v2511_v49 = vadd.f32 %v2510_v6, %v2509_v43  ;;  %v2512_v7 = vpop.f32.mrb[58].mxu1  ;;  %v2569_v8 = vadd.f32 %v2568_v36, %v2567_v5  ;;  %v2570_v46 = vpop.f32.mrb[62].mxu0 }
 0x170   :  { %v2513_v12 = vpop.f32.mrb[59].mxu1  ;;  %v2571_v13 = vpop.f32.mrb[63].mxu0 }
 0x171   :  { %v1701_v63 = vadd.f32 %v2511_v49, %v3586_v18  ;;  %v2514_v14 = vadd.f32 %v2513_v12, %v2512_v7  ;;  %v2572_v15 = vadd.f32 %v2571_v13, %v2570_v46 }
 0x173   :  { %v1704_v0 = vadd.f32 %v2514_v14, %v3588_v19  ;;  %v3628_v16 = vadd.f32 %v2569_v8, %v1701_v63 }
 0x175   :  { %v3630_v17 = vadd.f32 %v2572_v15, %v1704_v0  ;;  %v2515_v23 = vpop.f32.mrb[60].mxu1  ;;  %v2573_v25 = vpop.f32.mrb[64].mxu0 }
 0x176   :  { %v2516_v11 = vpop.f32.mrb[61].mxu1  ;;  %v2574_v1 = vpop.f32.mrb[65].mxu0 }
 0x177   :  { %v2517_v26 = vadd.f32 %v2516_v11, %v2515_v23  ;;  %v2518_v22 = vpop.f32.mrb[62].mxu1  ;;  %v2575_v2 = vadd.f32 %v2574_v1, %v2573_v25  ;;  %v2576_v31 = vpop.f32.mrb[66].mxu0 }
 0x178   :  { %v2519_v32 = vpop.f32.mrb[63].mxu1  ;;  %v2577_v60 = vpop.f32.mrb[67].mxu0 }
 0x179   :  { %v1709_v18 = vadd.f32 %v2517_v26, %v3594_v41  ;;  %v2520_v33 = vadd.f32 %v2519_v32, %v2518_v22  ;;  %v2578_v35 = vadd.f32 %v2577_v60, %v2576_v31 }
 0x17b   :  { %v1712_v19 = vadd.f32 %v2520_v33, %v3596_v42  ;;  %v3634_v28 = vadd.f32 %v2575_v2, %v1709_v18 }
 0x17d   :  { %v3636_v37 = vadd.f32 %v2578_v35, %v1712_v19  ;;  %v2521_v38 = vpop.f32.mrb[64].mxu1  ;;  %v2579_v39 = vpop.f32.mrb[68].mxu0 }
 0x17e   :  { %v2522_v47 = vpop.f32.mrb[65].mxu1  ;;  %v2580_v20 = vpop.f32.mrb[69].mxu0 }
 0x17f   :  { %v2523_v48 = vadd.f32 %v2522_v47, %v2521_v38  ;;  %v2524_v24 = vpop.f32.mrb[66].mxu1  ;;  %v2581_v21 = vadd.f32 %v2580_v20, %v2579_v39  ;;  %v2582_v51 = vpop.f32.mrb[70].mxu0 }
 0x180   :  { %v2525_v52 = vpop.f32.mrb[67].mxu1  ;;  %v2583_v53 = vpop.f32.mrb[71].mxu0 }
 0x181   :  { %v1717_v41 = vadd.f32 %v2523_v48, %v3600_v56 }
 0x183   :  { %v3639_v54 = vadd.f32 %v2581_v21, %v1717_v41 }
 0x185   :  { %v2601_v29 = vpop.f32.mrb[68].mxu1  ;;  %v1932_v42 = vpop.f32.mrb[72].mxu0 }
 0x186   :  { %v2602_v55 = vpop.f32.mrb[69].mxu1  ;;  %v2664_v40 = vpop.f32.mrb[73].mxu0 }
 0x187   :  { %v2603_v57 = vadd.f32 %v2602_v55, %v2601_v29  ;;  %v2604_v58 = vpop.f32.mrb[70].mxu1  ;;  %v1935_v59 = vpop.f32.mrb[74].mxu0 }
 0x188   :  { %v2605_v44 = vpop.f32.mrb[71].mxu1  ;;  %v2665_v61 = vpop.f32.mrb[75].mxu0 }
 0x189   :  { %v2606_v62 = vadd.f32 %v2605_v44, %v2604_v58  ;;  %v1845_v45 = vadd.f32 %v2603_v57, %v3604_v9 }
 0x18b   :  { %v1933_v43 = vadd.f32 %v1932_v42, %v1845_v45  ;;  %v1848_v5 = vadd.f32 %v2606_v62, %v3606_v10 }
 0x18d   :  { %v1986_v6 = vmax.f32 %v1933_v43, 0.0  ;;  %v1936_v36 = vadd.f32 %v1935_v59, %v1848_v5  ;;  %v2607_v56 = vpop.f32.mrb[72].mxu1  ;;  %v1940_v49 = vpop.f32.mrb[76].mxu0 }
 0x18e   :  { %v2608_v7 = vpop.f32.mrb[73].mxu1  ;;  %v2668_v8 = vpop.f32.mrb[77].mxu0 }
 0x18f   :  { %v2282_v46 = vpack.c.bf16 %v1986_v6, %v1986_v6  ;;  %v1987_v12 = vmax.f32 %v1936_v36, 0.0  ;;  %v2609_v13 = vadd.f32 %v2608_v7, %v2607_v56  ;;  %v2610_v63 = vpop.f32.mrb[74].mxu1  ;;  %v1943_v14 = vpop.f32.mrb[78].mxu0 }
 0x190   :  { %v2611_v15 = vpop.f32.mrb[75].mxu1  ;;  %v2669_v0 = vpop.f32.mrb[79].mxu0 }
 0x191   :  { %2053 = vst.msk [vmem:[%s3709_s3] sm:$0xf] %vm2052_vm2, %v2282_v46  ;;  %v2283_v9 = vpack.c.bf16 %v1987_v12, %v1987_v12  ;;  %v2612_v10 = vadd.f32 %v2611_v15, %v2610_v63  ;;  %v1853_v23 = vadd.f32 %v2609_v13, %v3610_v27 }
 0x193   :  { %2054 = vst.msk [vmem:[%s3709_s3 + $0x4] sm:$0xf] %vm2052_vm2, %v2283_v9  ;;  %v1941_v25 = vadd.f32 %v1940_v49, %v1853_v23  ;;  %v1856_v11 = vadd.f32 %v2612_v10, %v3612_v30 }
 0x195   :  { %v1988_v1 = vmax.f32 %v1941_v25, 0.0  ;;  %v1944_v26 = vadd.f32 %v1943_v14, %v1856_v11  ;;  %v2613_v22 = vpop.f32.mrb[76].mxu1  ;;  %v1948_v2 = vpop.f32.mrb[80].mxu0 }
 0x196   :  { %v2614_v31 = vpop.f32.mrb[77].mxu1  ;;  %v2672_v32 = vpop.f32.mrb[81].mxu0 }
 0x197   :  { %v2284_v60 = vpack.c.bf16 %v1988_v1, %v1988_v1  ;;  %v1989_v18 = vmax.f32 %v1944_v26, 0.0  ;;  %v2615_v33 = vadd.f32 %v2614_v31, %v2613_v22  ;;  %v2616_v35 = vpop.f32.mrb[78].mxu1  ;;  %v1951_v19 = vpop.f32.mrb[82].mxu0 }
 0x198   :  { %v2617_v27 = vpop.f32.mrb[79].mxu1  ;;  %v2673_v38 = vpop.f32.mrb[83].mxu0 }
 0x199   :  { %2055 = vst.msk [vmem:[%s3709_s3 + $0x8] sm:$0xf] %vm2052_vm2, %v2284_v60  ;;  %v2285_v39 = vpack.c.bf16 %v1989_v18, %v1989_v18  ;;  %v2618_v30 = vadd.f32 %v2617_v27, %v2616_v35  ;;  %v1861_v47 = vadd.f32 %v2615_v33, %v3616_v50 }
 0x19b   :  { %2056 = vst.msk [vmem:[%s3709_s3 + $0xc] sm:$0xf] %vm2052_vm2, %v2285_v39  ;;  %v1949_v20 = vadd.f32 %v1948_v2, %v1861_v47  ;;  %v1864_v48 = vadd.f32 %v2618_v30, %v3618_v34 }
 0x19d   :  { %v1990_v24 = vmax.f32 %v1949_v20, 0.0  ;;  %v1952_v21 = vadd.f32 %v1951_v19, %v1864_v48  ;;  %v2619_v51 = vpop.f32.mrb[80].mxu1  ;;  %v1956_v52 = vpop.f32.mrb[84].mxu0 }
 0x19e   :  { %v2620_v53 = vpop.f32.mrb[81].mxu1  ;;  %v2676_v41 = vpop.f32.mrb[85].mxu0 }
 0x19f   :  { %v2286_v29 = vpack.c.bf16 %v1990_v24, %v1990_v24  ;;  %v1991_v42 = vmax.f32 %v1952_v21, 0.0  ;;  %v2621_v55 = vadd.f32 %v2620_v53, %v2619_v51  ;;  %v2622_v40 = vpop.f32.mrb[82].mxu1  ;;  %v1959_v57 = vpop.f32.mrb[86].mxu0 }
 0x1a0   :  { %v2623_v50 = vpop.f32.mrb[83].mxu1  ;;  %v2677_v58 = vpop.f32.mrb[87].mxu0 }
 0x1a1   :  { %2057 = vst.msk [vmem:[%s3709_s3 + $0x10] sm:$0xf] %vm2052_vm2, %v2286_v29  ;;  %v2287_v59 = vpack.c.bf16 %v1991_v42, %v1991_v42  ;;  %v2624_v34 = vadd.f32 %v2623_v50, %v2622_v40  ;;  %v1869_v44 = vadd.f32 %v2621_v55, %v3622_v3 }
 0x1a3   :  { %2058 = vst.msk [vmem:[%s3709_s3 + $0x14] sm:$0xf] %vm2052_vm2, %v2287_v59  ;;  %v1957_v61 = vadd.f32 %v1956_v52, %v1869_v44  ;;  %v1872_v62 = vadd.f32 %v2624_v34, %v3624_v4 }
 0x1a5   :  { %v1992_v45 = vmax.f32 %v1957_v61, 0.0  ;;  %v1960_v43 = vadd.f32 %v1959_v57, %v1872_v62  ;;  %v2625_v5 = vpop.f32.mrb[84].mxu1  ;;  %v1964_v6 = vpop.f32.mrb[88].mxu0 }
 0x1a6   :  { %v2626_v36 = vpop.f32.mrb[85].mxu1  ;;  %v2680_v56 = vpop.f32.mrb[89].mxu0 }
 0x1a7   :  { %v2288_v49 = vpack.c.bf16 %v1992_v45, %v1992_v45  ;;  %v1993_v7 = vmax.f32 %v1960_v43, 0.0  ;;  %v2627_v8 = vadd.f32 %v2626_v36, %v2625_v5  ;;  %v2628_v46 = vpop.f32.mrb[86].mxu1  ;;  %v1967_v12 = vpop.f32.mrb[90].mxu0 }
 0x1a8   :  { %v2629_v3 = vpop.f32.mrb[87].mxu1  ;;  %v2681_v13 = vpop.f32.mrb[91].mxu0 }
 0x1a9   :  { %2059 = vst.msk [vmem:[%s3709_s3 + $0x18] sm:$0xf] %vm2052_vm2, %v2288_v49  ;;  %v2289_v63 = vpack.c.bf16 %v1993_v7, %v1993_v7  ;;  %v2630_v4 = vadd.f32 %v2629_v3, %v2628_v46  ;;  %v1877_v14 = vadd.f32 %v2627_v8, %v3628_v16 }
 0x1ab   :  { %2060 = vst.msk [vmem:[%s3709_s3 + $0x1c] sm:$0xf] %vm2052_vm2, %v2289_v63  ;;  %v1965_v15 = vadd.f32 %v1964_v6, %v1877_v14  ;;  %v1880_v0 = vadd.f32 %v2630_v4, %v3630_v17 }
 0x1ad   :  { %v1994_v9 = vmax.f32 %v1965_v15, 0.0  ;;  %v1968_v10 = vadd.f32 %v1967_v12, %v1880_v0  ;;  %v2631_v23 = vpop.f32.mrb[88].mxu1  ;;  %v1972_v25 = vpop.f32.mrb[92].mxu0 }
 0x1ae   :  { %v2632_v11 = vpop.f32.mrb[89].mxu1  ;;  %v2684_v1 = vpop.f32.mrb[93].mxu0 }
 0x1af   :  { %v2290_v26 = vpack.c.bf16 %v1994_v9, %v1994_v9  ;;  %v1995_v22 = vmax.f32 %v1968_v10, 0.0  ;;  %v2633_v2 = vadd.f32 %v2632_v11, %v2631_v23  ;;  %v2634_v31 = vpop.f32.mrb[90].mxu1  ;;  %v1975_v32 = vpop.f32.mrb[94].mxu0 }
 0x1b0   :  { %v2635_v16 = vpop.f32.mrb[91].mxu1  ;;  %v2685_v60 = vpop.f32.mrb[95].mxu0 }
 0x1b1   :  { %2061 = vst.msk [vmem:[%s3709_s3 + $0x20] sm:$0xf] %vm2052_vm2, %v2290_v26  ;;  %v2291_v18 = vpack.c.bf16 %v1995_v22, %v1995_v22  ;;  %v2636_v17 = vadd.f32 %v2635_v16, %v2634_v31  ;;  %v1885_v33 = vadd.f32 %v2633_v2, %v3634_v28 }
 0x1b3   :  { %2062 = vst.msk [vmem:[%s3709_s3 + $0x24] sm:$0xf] %vm2052_vm2, %v2291_v18  ;;  %v1973_v35 = vadd.f32 %v1972_v25, %v1885_v33  ;;  %v1888_v19 = vadd.f32 %v2636_v17, %v3636_v37 }
 0x1b5   :  { %v1996_v27 = vmax.f32 %v1973_v35, 0.0  ;;  %v1976_v38 = vadd.f32 %v1975_v32, %v1888_v19  ;;  %v2637_v39 = vpop.f32.mrb[92].mxu1  ;;  %v1980_v30 = vpop.f32.mrb[96].mxu0 }
 0x1b6   :  { %v2638_v47 = vpop.f32.mrb[93].mxu1  ;;  %v2688_v20 = vpop.f32.mrb[97].mxu0 }
 0x1b7   :  { %v2292_v48 = vpack.c.bf16 %v1996_v27, %v1996_v27  ;;  %v1997_v24 = vmax.f32 %v1976_v38, 0.0  ;;  %v2639_v21 = vadd.f32 %v2638_v47, %v2637_v39  ;;  %v2640_v51 = vpop.f32.mrb[94].mxu1  ;;  %v1983_v52 = vpop.f32.mrb[98].mxu0 }
 0x1b8   :  { %v2641_v28 = vpop.f32.mrb[95].mxu1  ;;  %v2689_v53 = vpop.f32.mrb[99].mxu0 }
 0x1b9   :  { %2063 = vst.msk [vmem:[%s3709_s3 + $0x28] sm:$0xf] %vm2052_vm2, %v2292_v48  ;;  %v2293_v41 = vpack.c.bf16 %v1997_v24, %v1997_v24  ;;  %v1893_v37 = vadd.f32 %v2639_v21, %v3639_v54 }
 0x1bb   :  { %2064 = vst.msk [vmem:[%s3709_s3 + $0x2c] sm:$0xf] %vm2052_vm2, %v2293_v41  ;;  %v1981_v29 = vadd.f32 %v1980_v30, %v1893_v37 }
 0x1bd   :  { %v1998_v42 = vmax.f32 %v1981_v29, 0.0 }
 0x1bf   :  { %v2294_v55 = vpack.c.bf16 %v1998_v42, %v1998_v42 }
 0x1c1   :  { %2065 = vst.msk [vmem:[%s3709_s3 + $0x30] sm:$0xf] %vm2052_vm2, %v2294_v55 }

// kernel: encoder_forward.9
= control target key start
LH: loop header
LB: loop body
LE: loop exit
PB: predicated region body
PF: predicated region fallthrough
CT: control target
= control target key end

     0   :  { %vm3112_vm0 = vmmov 0   ;;  %vm1702_vm1 = vcmask 523264   ;;  %vm2275_vm2 = vcmask 654336   ;;  %vm2319_vm3 = vcmask 162816   ;;  %s3113_s17 = smov 108   ;;  %s3833_s1 = inlined_call_operand.vmem [shape: bf16[3136,80], index: 1, kind: input, shape index: {}]   ;;  %s3834_s0 = inlined_call_operand.vmem [shape: bf16[8,3136], index: 0, kind: input, shape index: {}]   ;;  %s3835_s2 = inlined_call_operand.vmem [shape: f32[1,80], index: 2, kind: input, shape index: {}]   ;;  %s3836_s3 = inlined_call_operand.vmem [shape: bf16[80,40], index: 3, kind: input, shape index: {}]   ;;  %s3837_s4 = inlined_call_operand.vmem [shape: f32[1,40], index: 4, kind: input, shape index: {}]   ;;  %s3838_s6 = inlined_call_operand.vmem [shape: f32[8,20], index: 6, kind: output, shape index: {0}]   ;;  %s3839_s5 = inlined_call_operand.vmem [shape: f32[8,20], index: 5, kind: input, shape index: {}]   ;;  %s3840_s7 = inlined_call_operand.vmem [shape: f32[8,20], index: 7, kind: output, shape index: {1}]   ;;  %s3841_s8 = inlined_call_operand.vmem [shape: f32[8,20], index: 8, kind: output, shape index: {2}]  }
   0x1   :  { %v2883_v0 = vld [vmem:[%s3833_s1 + $0x40] sm:$0xff]   ;;  %v2887_v4 = vld [vmem:[%s3833_s1 + $0x48] sm:$0xff]   ;;  %v2891_v8 = vld [vmem:[%s3833_s1 + $0x50] sm:$0xff]  }
   0x2   :  { %v2884_v1 = vld [vmem:[%s3833_s1] sm:$0xff]   ;;  %2579 = vmatprep.subr.bf16.mxu0 %v2883_v0  ;;  %v2888_v5 = vld [vmem:[%s3833_s1 + $0x8] sm:$0xff]   ;;  %v2892_v9 = vld [vmem:[%s3833_s1 + $0x10] sm:$0xff]  }
   0x3   :  { %v2885_v2 = vld [vmem:[%s3833_s1 + $0xc0] sm:$0xff]   ;;  %2580 = vmatpush3.bf16.msra.mxu0 %v2884_v1  ;;  %v2889_v6 = vld [vmem:[%s3833_s1 + $0xc8] sm:$0xff]   ;;  %v2893_v10 = vld [vmem:[%s3833_s1 + $0xd0] sm:$0xff]  }
   0x4   :  { %v2886_v3 = vld [vmem:[%s3833_s1 + $0x80] sm:$0xff]   ;;  %2601 = vmatprep.subr.bf16.mxu1 %v2885_v2  ;;  %2581 = vmatprep.subr.bf16.mxu0 %v2887_v4  ;;  %v2890_v7 = vld [vmem:[%s3833_s1 + $0x88] sm:$0xff]   ;;  %v2894_v11 = vld [vmem:[%s3833_s1 + $0x90] sm:$0xff]  }
   0x5   :  { %2602 = vmatpush3.bf16.msra.mxu1 %v2886_v3  ;;  %v2895_v12 = vld [vmem:[%s3833_s1 + $0x58] sm:$0xff]   ;;  %v2899_v16 = vld [vmem:[%s3833_s1 + $0x60] sm:$0xff]   ;;  %v2903_v20 = vld [vmem:[%s3833_s1 + $0x68] sm:$0xff]  }
   0x6   :  { %2603 = vmatprep.subr.bf16.mxu1 %v2889_v6  ;;  %v2896_v13 = vld [vmem:[%s3833_s1 + $0x18] sm:$0xff]   ;;  %v2900_v17 = vld [vmem:[%s3833_s1 + $0x20] sm:$0xff]   ;;  %v2904_v21 = vld [vmem:[%s3833_s1 + $0x28] sm:$0xff]  }
   0x7   :  { %2582 = vmatpush3.bf16.msra.mxu0 %v2888_v5  ;;  %v2897_v14 = vld [vmem:[%s3833_s1 + $0xd8] sm:$0xff]   ;;  %v2901_v18 = vld [vmem:[%s3833_s1 + $0xe0] sm:$0xff]   ;;  %v2905_v22 = vld [vmem:[%s3833_s1 + $0xe8] sm:$0xff]  }
   0x8   :  { %2583 = vmatprep.subr.bf16.mxu0 %v2891_v8  ;;  %v2898_v15 = vld [vmem:[%s3833_s1 + $0x98] sm:$0xff]   ;;  %v2902_v19 = vld [vmem:[%s3833_s1 + $0xa0] sm:$0xff]   ;;  %v2906_v23 = vld [vmem:[%s3833_s1 + $0xa8] sm:$0xff]  }
   0x9   :  { %2604 = vmatpush3.bf16.msra.mxu1 %v2890_v7  ;;  %v2907_v24 = vld [vmem:[%s3833_s1 + $0x70] sm:$0xff]   ;;  %v2911_v28 = vld [vmem:[%s3833_s1 + $0x78] sm:$0xff]   ;;  %v27_v31 = vld [vmem:[%s3834_s0] sm:$0xff] }
   0xa   :  { %2605 = vmatprep.subr.bf16.mxu1 %v2893_v10  ;;  %v2908_v25 = vld [vmem:[%s3833_s1 + $0x30] sm:$0xff]   ;;  %v2912_v29 = vld [vmem:[%s3833_s1 + $0x38] sm:$0xff]   ;;  %v2350_v32 = vcombine.low %v27_v31, %v27_v31  ;;  %v2351_v33 = vcombine.high %v27_v31, %v27_v31  ;;  %v2917_v35 = vld [vmem:[%s3833_s1 + $0x140] sm:$0xff]  }
   0xb   :  { %2584 = vmatpush3.bf16.msra.mxu0 %v2892_v9  ;;  %v2909_v26 = vld [vmem:[%s3833_s1 + $0xf0] sm:$0xff]   ;;  %v2913_v30 = vld [vmem:[%s3833_s1 + $0xf8] sm:$0xff]   ;;  %v28_v36 = vld [vmem:[%s3834_s0 + $0x8] sm:$0xff] }
   0xc   :  { %2585 = vmatprep.subr.bf16.mxu0 %v2895_v12  ;;  %v2910_v27 = vld [vmem:[%s3833_s1 + $0xb0] sm:$0xff]   ;;  %v2916_v34 = vld [vmem:[%s3833_s1 + $0xb8] sm:$0xff]   ;;  %1738 = vmatprep.mubr.bf16.mxu0 %v2351_v33  ;;  %v2352_v37 = vcombine.low %v28_v36, %v28_v36  ;;  %v2353_v38 = vcombine.high %v28_v36, %v28_v36  ;;  %v2920_v39 = vld [vmem:[%s3833_s1 + $0x100] sm:$0xff]  }
   0xd   :  { %2606 = vmatpush3.bf16.msra.mxu1 %v2894_v11  ;;  %v2921_v40 = vld [vmem:[%s3833_s1 + $0x1c0] sm:$0xff]   ;;  %v2923_v42 = vld [vmem:[%s3833_s1 + $0x148] sm:$0xff]   ;;  %v2927_v46 = vld [vmem:[%s3833_s1 + $0x150] sm:$0xff]  }
   0xe   :  { %2607 = vmatprep.subr.bf16.mxu1 %v2897_v14  ;;  %1778 = vmatprep.mubr.bf16.mxu1 %v2353_v38  ;;  %v2922_v41 = vld [vmem:[%s3833_s1 + $0x180] sm:$0xff]   ;;  %v2924_v43 = vld [vmem:[%s3833_s1 + $0x108] sm:$0xff]   ;;  %v2928_v47 = vld [vmem:[%s3833_s1 + $0x110] sm:$0xff]  }
   0xf   :  { %2586 = vmatpush3.bf16.msra.mxu0 %v2896_v13  ;;  %v2925_v44 = vld [vmem:[%s3833_s1 + $0x1c8] sm:$0xff]   ;;  %v2929_v48 = vld [vmem:[%s3833_s1 + $0x1d0] sm:$0xff]   ;;  %v2931_v50 = vld [vmem:[%s3833_s1 + $0x158] sm:$0xff]  }
  0x10   :  { %2587 = vmatprep.subr.bf16.mxu0 %v2899_v16  ;;  %v2926_v45 = vld [vmem:[%s3833_s1 + $0x188] sm:$0xff]   ;;  %v2930_v49 = vld [vmem:[%s3833_s1 + $0x190] sm:$0xff]   ;;  %v2932_v51 = vld [vmem:[%s3833_s1 + $0x118] sm:$0xff]  }
  0x11   :  { %2608 = vmatpush3.bf16.msra.mxu1 %v2898_v15  ;;  %v2933_v52 = vld [vmem:[%s3833_s1 + $0x1d8] sm:$0xff]   ;;  %v2935_v54 = vld [vmem:[%s3833_s1 + $0x160] sm:$0xff]   ;;  %v2939_v58 = vld [vmem:[%s3833_s1 + $0x168] sm:$0xff]  }
  0x12   :  { %2609 = vmatprep.subr.bf16.mxu1 %v2901_v18  ;;  %v2934_v53 = vld [vmem:[%s3833_s1 + $0x198] sm:$0xff]   ;;  %v2936_v55 = vld [vmem:[%s3833_s1 + $0x120] sm:$0xff]   ;;  %v2940_v59 = vld [vmem:[%s3833_s1 + $0x128] sm:$0xff]  }
  0x13   :  { %2588 = vmatpush3.bf16.msra.mxu0 %v2900_v17  ;;  %v2937_v56 = vld [vmem:[%s3833_s1 + $0x1e0] sm:$0xff]   ;;  %v2941_v60 = vld [vmem:[%s3833_s1 + $0x1e8] sm:$0xff]   ;;  %v2943_v62 = vld [vmem:[%s3833_s1 + $0x170] sm:$0xff]  }
  0x14   :  { %2589 = vmatprep.subr.bf16.mxu0 %v2903_v20  ;;  %v2938_v57 = vld [vmem:[%s3833_s1 + $0x1a0] sm:$0xff]   ;;  %v2942_v61 = vld [vmem:[%s3833_s1 + $0x1a8] sm:$0xff]   ;;  %v2944_v63 = vld [vmem:[%s3833_s1 + $0x130] sm:$0xff]  }
  0x15   :  { %2610 = vmatpush3.bf16.msra.mxu1 %v2902_v19  ;;  %v2945_v0 = vld [vmem:[%s3833_s1 + $0x1f0] sm:$0xff]   ;;  %v2947_v2 = vld [vmem:[%s3833_s1 + $0x178] sm:$0xff]   ;;  %v2953_v9 = vld [vmem:[%s3833_s1 + $0x240] sm:$0xff]  }
  0x16   :  { %2611 = vmatprep.subr.bf16.mxu1 %v2905_v22  ;;  %v2946_v1 = vld [vmem:[%s3833_s1 + $0x1b0] sm:$0xff]   ;;  %v2948_v3 = vld [vmem:[%s3833_s1 + $0x138] sm:$0xff]   ;;  %v2956_v13 = vld [vmem:[%s3833_s1 + $0x200] sm:$0xff]  }
  0x17   :  { %2590 = vmatpush3.bf16.msra.mxu0 %v2904_v21  ;;  %v2949_v4 = vld [vmem:[%s3833_s1 + $0x1f8] sm:$0xff]   ;;  %v29_v5 = vld [vmem:[%s3834_s0 + $0x10] sm:$0xff]  ;;  %v2957_v14 = vld [vmem:[%s3833_s1 + $0x2c0] sm:$0xff]  }
  0x18   :  { %2591 = vmatprep.subr.bf16.mxu0 %v2907_v24  ;;  %v2354_v6 = vcombine.low %v29_v5, %v29_v5  ;;  %v2355_v7 = vcombine.high %v29_v5, %v29_v5  ;;  %v2952_v8 = vld [vmem:[%s3833_s1 + $0x1b8] sm:$0xff]   ;;  %v2958_v15 = vld [vmem:[%s3833_s1 + $0x280] sm:$0xff]   ;;  %v2959_v16 = vld [vmem:[%s3833_s1 + $0x248] sm:$0xff]  }
  0x19   :  { %2612 = vmatpush3.bf16.msra.mxu1 %v2906_v23  ;;  %v30_v10 = vld [vmem:[%s3834_s0 + $0x18] sm:$0xff]  ;;  %v2960_v17 = vld [vmem:[%s3833_s1 + $0x208] sm:$0xff]   ;;  %v2963_v20 = vld [vmem:[%s3833_s1 + $0x250] sm:$0xff]  }
  0x1a   :  { %2613 = vmatprep.subr.bf16.mxu1 %v2909_v26  ;;  %v2356_v11 = vcombine.low %v30_v10, %v30_v10  ;;  %v2357_v12 = vcombine.high %v30_v10, %v30_v10  ;;  %v2961_v18 = vld [vmem:[%s3833_s1 + $0x2c8] sm:$0xff]   ;;  %v2964_v21 = vld [vmem:[%s3833_s1 + $0x210] sm:$0xff]   ;;  %v2967_v24 = vld [vmem:[%s3833_s1 + $0x258] sm:$0xff]  }
  0x1b   :  { %2592 = vmatpush3.bf16.msra.mxu0 %v2908_v25  ;;  %v2962_v19 = vld [vmem:[%s3833_s1 + $0x288] sm:$0xff]   ;;  %v2965_v22 = vld [vmem:[%s3833_s1 + $0x2d0] sm:$0xff]   ;;  %v2968_v25 = vld [vmem:[%s3833_s1 + $0x218] sm:$0xff]  }
  0x1c   :  { %2593 = vmatprep.subr.bf16.mxu0 %v2911_v28  ;;  %v2966_v23 = vld [vmem:[%s3833_s1 + $0x290] sm:$0xff]   ;;  %v2969_v26 = vld [vmem:[%s3833_s1 + $0x2d8] sm:$0xff]   ;;  %v2971_v28 = vld [vmem:[%s3833_s1 + $0x260] sm:$0xff]  }
  0x1d   :  { %2614 = vmatpush3.bf16.msra.mxu1 %v2910_v27  ;;  %v2970_v27 = vld [vmem:[%s3833_s1 + $0x298] sm:$0xff]   ;;  %v2974_v31 = vld [vmem:[%s3833_s1 + $0x2a0] sm:$0xff]   ;;  %v2976_v33 = vld [vmem:[%s3833_s1 + $0x228] sm:$0xff]  }
  0x1e   :  { %2615 = vmatprep.subr.bf16.mxu1 %v2913_v30  ;;  %v2973_v30 = vld [vmem:[%s3833_s1 + $0x2e0] sm:$0xff]   ;;  %v2979_v36 = vld [vmem:[%s3833_s1 + $0x270] sm:$0xff]  }
  0x1f   :  { %2594 = vmatpush3.bf16.msra.mxu0 %v2912_v29  ;;  %v2972_v29 = vld [vmem:[%s3833_s1 + $0x220] sm:$0xff]   ;;  %v2981_v38 = vld [vmem:[%s3833_s1 + $0x2f0] sm:$0xff]  }
  0x20   :  { %2623 = vmatprep.subr.bf16.mxu0 %v2917_v35  ;;  %v2978_v35 = vld [vmem:[%s3833_s1 + $0x2a8] sm:$0xff]   ;;  %v3010_v5 = vld [vmem:[%s3833_s1 + $0x3a0] sm:$0xff]   ;;  %v3015_v10 = vld [vmem:[%s3833_s1 + $0x370] sm:$0xff]  }
  0x21   :  { %2616 = vmatpush3.bf16.msra.mxu1 %v2916_v34  ;;  %v2977_v34 = vld [vmem:[%s3833_s1 + $0x2e8] sm:$0xff]  }
  0x22   :  { %1739 = vmatmul.mubr.bf16.vlgmr.msra.gmra.mrb[0].mxu0 %v2350_v32  ;;  %2645 = vmatprep.subr.bf16.mxu1 %v2921_v40  ;;  %v2975_v32 = vld [vmem:[%s3833_s1 + $0x268] sm:$0xff]   ;;  %v2983_v40 = vld [vmem:[%s3833_s1 + $0x278] sm:$0xff]  }
  0x23   :  { %2624 = vmatpush3.bf16.msra.mxu0 %v2920_v39  ;;  %1818 = vmatprep.mubr.bf16.mxu0 %v2355_v7  ;;  %v2982_v39 = vld [vmem:[%s3833_s1 + $0x2b0] sm:$0xff]   ;;  %v3012_v7 = vld [vmem:[%s3833_s1 + $0x328] sm:$0xff]  }
  0x24   :  { %1779 = vmatmul.mubr.bf16.vlgmr.msra.gmra.mrb[0].mxu1 %v2352_v37  ;;  %2625 = vmatprep.subr.bf16.mxu0 %v2923_v42  ;;  %v2980_v37 = vld [vmem:[%s3833_s1 + $0x230] sm:$0xff]   ;;  %v2985_v42 = vld [vmem:[%s3833_s1 + $0x2f8] sm:$0xff]  }
  0x25   :  { %2646 = vmatpush3.bf16.msra.mxu1 %v2922_v41  ;;  %1858 = vmatprep.mubr.bf16.mxu1 %v2357_v12  ;;  %v2984_v41 = vld [vmem:[%s3833_s1 + $0x238] sm:$0xff]   ;;  %v3017_v12 = vld [vmem:[%s3833_s1 + $0x3f0] sm:$0xff]  }
  0x26   :  { %2647 = vmatprep.subr.bf16.mxu1 %v2925_v44 }
  0x27   :  { %2626 = vmatpush3.bf16.msra.mxu0 %v2924_v43  ;;  %v31_v43 = vld [vmem:[%s3834_s0 + $0x20] sm:$0xff] }
  0x28   :  { %2627 = vmatprep.subr.bf16.mxu0 %v2927_v46  ;;  %v2358_v44 = vcombine.low %v31_v43, %v31_v43  ;;  %v2988_v46 = vld [vmem:[%s3833_s1 + $0x2b8] sm:$0xff]  }
  0x29   :  { %2648 = vmatpush3.bf16.msra.mxu1 %v2926_v45  ;;  %v2359_v45 = vcombine.high %v31_v43, %v31_v43  ;;  %v3046_v43 = vld [vmem:[%s3833_s1 + $0x4a0] sm:$0xff]  }
  0x2a   :  { %2649 = vmatprep.subr.bf16.mxu1 %v2929_v48  ;;  %v32_v48 = vld [vmem:[%s3834_s0 + $0x28] sm:$0xff] }
  0x2b   :  { %2628 = vmatpush3.bf16.msra.mxu0 %v2928_v47  ;;  %v2989_v47 = vld [vmem:[%s3833_s1 + $0x340] sm:$0xff]  }
  0x2c   :  { %2629 = vmatprep.subr.bf16.mxu0 %v2931_v50  ;;  %v2361_v50 = vcombine.high %v32_v48, %v32_v48 }
  0x2d   :  { %2650 = vmatpush3.bf16.msra.mxu1 %v2930_v49  ;;  %v2360_v49 = vcombine.low %v32_v48, %v32_v48  ;;  %v3051_v48 = vld [vmem:[%s3833_s1 + $0x470] sm:$0xff]  }
  0x2e   :  { %2651 = vmatprep.subr.bf16.mxu1 %v2933_v52  ;;  %v2993_v52 = vld [vmem:[%s3833_s1 + $0x3c0] sm:$0xff]  }
  0x2f   :  { %2630 = vmatpush3.bf16.msra.mxu0 %v2932_v51  ;;  %v2992_v51 = vld [vmem:[%s3833_s1 + $0x300] sm:$0xff]  }
  0x30   :  { %2631 = vmatprep.subr.bf16.mxu0 %v2935_v54  ;;  %v2995_v54 = vld [vmem:[%s3833_s1 + $0x348] sm:$0xff]  }
  0x31   :  { %2652 = vmatpush3.bf16.msra.mxu1 %v2934_v53  ;;  %v2994_v53 = vld [vmem:[%s3833_s1 + $0x380] sm:$0xff]  }
  0x32   :  { %2653 = vmatprep.subr.bf16.mxu1 %v2937_v56  ;;  %v2997_v56 = vld [vmem:[%s3833_s1 + $0x3c8] sm:$0xff]  }
  0x33   :  { %2632 = vmatpush3.bf16.msra.mxu0 %v2936_v55  ;;  %v2996_v55 = vld [vmem:[%s3833_s1 + $0x308] sm:$0xff]  }
  0x34   :  { %2633 = vmatprep.subr.bf16.mxu0 %v2939_v58  ;;  %v2999_v58 = vld [vmem:[%s3833_s1 + $0x350] sm:$0xff]  }
  0x35   :  { %2654 = vmatpush3.bf16.msra.mxu1 %v2938_v57  ;;  %v2998_v57 = vld [vmem:[%s3833_s1 + $0x388] sm:$0xff]  }
  0x36   :  { %2655 = vmatprep.subr.bf16.mxu1 %v2941_v60  ;;  %v3001_v60 = vld [vmem:[%s3833_s1 + $0x3d0] sm:$0xff]  }
  0x37   :  { %2634 = vmatpush3.bf16.msra.mxu0 %v2940_v59  ;;  %v3000_v59 = vld [vmem:[%s3833_s1 + $0x310] sm:$0xff]  }
  0x38   :  { %2635 = vmatprep.subr.bf16.mxu0 %v2943_v62  ;;  %v3003_v62 = vld [vmem:[%s3833_s1 + $0x358] sm:$0xff]  }
  0x39   :  { %2656 = vmatpush3.bf16.msra.mxu1 %v2942_v61  ;;  %v3002_v61 = vld [vmem:[%s3833_s1 + $0x390] sm:$0xff]  }
  0x3a   :  { %2657 = vmatprep.subr.bf16.mxu1 %v2945_v0  ;;  %v3005_v0 = vld [vmem:[%s3833_s1 + $0x3d8] sm:$0xff]  }
  0x3b   :  { %2636 = vmatpush3.bf16.msra.mxu0 %v2944_v63  ;;  %v3004_v63 = vld [vmem:[%s3833_s1 + $0x318] sm:$0xff]  }
  0x3c   :  { %2637 = vmatprep.subr.bf16.mxu0 %v2947_v2  ;;  %v3007_v2 = vld [vmem:[%s3833_s1 + $0x360] sm:$0xff]  }
  0x3d   :  { %2658 = vmatpush3.bf16.msra.mxu1 %v2946_v1  ;;  %v3006_v1 = vld [vmem:[%s3833_s1 + $0x398] sm:$0xff]  }
  0x3e   :  { %2659 = vmatprep.subr.bf16.mxu1 %v2949_v4  ;;  %v3009_v4 = vld [vmem:[%s3833_s1 + $0x3e0] sm:$0xff]  }
  0x3f   :  { %2638 = vmatpush3.bf16.msra.mxu0 %v2948_v3  ;;  %v3008_v3 = vld [vmem:[%s3833_s1 + $0x320] sm:$0xff]  }
  0x40   :  { %2667 = vmatprep.subr.bf16.mxu0 %v2953_v9  ;;  %v3014_v9 = vld [vmem:[%s3833_s1 + $0x3a8] sm:$0xff]  }
  0x41   :  { %2660 = vmatpush3.bf16.msra.mxu1 %v2952_v8  ;;  %v3013_v8 = vld [vmem:[%s3833_s1 + $0x3e8] sm:$0xff]  }
  0x42   :  { %1819 = vmatmul.mubr.bf16.vlgmr.msra.gmra.mrb[4].mxu0 %v2354_v6  ;;  %2689 = vmatprep.subr.bf16.mxu1 %v2957_v14  ;;  %v3011_v6 = vld [vmem:[%s3833_s1 + $0x368] sm:$0xff]   ;;  %v3019_v14 = vld [vmem:[%s3833_s1 + $0x378] sm:$0xff]  }
  0x43   :  { %2668 = vmatpush3.bf16.msra.mxu0 %v2956_v13  ;;  %1898 = vmatprep.mubr.bf16.mxu0 %v2359_v45  ;;  %v3018_v13 = vld [vmem:[%s3833_s1 + $0x3b0] sm:$0xff]   ;;  %v3048_v45 = vld [vmem:[%s3833_s1 + $0x428] sm:$0xff]  }
  0x44   :  { %1859 = vmatmul.mubr.bf16.vlgmr.msra.gmra.mrb[4].mxu1 %v2356_v11  ;;  %2669 = vmatprep.subr.bf16.mxu0 %v2959_v16  ;;  %v3016_v11 = vld [vmem:[%s3833_s1 + $0x330] sm:$0xff]   ;;  %v3021_v16 = vld [vmem:[%s3833_s1 + $0x3f8] sm:$0xff]  }
  0x45   :  { %2690 = vmatpush3.bf16.msra.mxu1 %v2958_v15  ;;  %1938 = vmatprep.mubr.bf16.mxu1 %v2361_v50  ;;  %v3020_v15 = vld [vmem:[%s3833_s1 + $0x338] sm:$0xff]   ;;  %v3053_v50 = vld [vmem:[%s3833_s1 + $0x4f0] sm:$0xff]  }
  0x46   :  { %2691 = vmatprep.subr.bf16.mxu1 %v2961_v18 }
  0x47   :  { %2670 = vmatpush3.bf16.msra.mxu0 %v2960_v17  ;;  %v33_v17 = vld [vmem:[%s3834_s0 + $0x30] sm:$0xff] }
  0x48   :  { %2671 = vmatprep.subr.bf16.mxu0 %v2963_v20  ;;  %v2362_v18 = vcombine.low %v33_v17, %v33_v17  ;;  %v3024_v20 = vld [vmem:[%s3833_s1 + $0x3b8] sm:$0xff]  }
  0x49   :  { %2692 = vmatpush3.bf16.msra.mxu1 %v2962_v19  ;;  %v2363_v19 = vcombine.high %v33_v17, %v33_v17  ;;  %v3082_v17 = vld [vmem:[%s3833_s1 + $0x5a0] sm:$0xff]  }
  0x4a   :  { %2693 = vmatprep.subr.bf16.mxu1 %v2965_v22  ;;  %v34_v22 = vld [vmem:[%s3834_s0 + $0x38] sm:$0xff] }
  0x4b   :  { %2672 = vmatpush3.bf16.msra.mxu0 %v2964_v21  ;;  %v3025_v21 = vld [vmem:[%s3833_s1 + $0x440] sm:$0xff]  }
  0x4c   :  { %2673 = vmatprep.subr.bf16.mxu0 %v2967_v24  ;;  %v2365_v24 = vcombine.high %v34_v22, %v34_v22 }
  0x4d   :  { %2694 = vmatpush3.bf16.msra.mxu1 %v2966_v23  ;;  %v2364_v23 = vcombine.low %v34_v22, %v34_v22  ;;  %v3087_v22 = vld [vmem:[%s3833_s1 + $0x570] sm:$0xff]  }
  0x4e   :  { %2695 = vmatprep.subr.bf16.mxu1 %v2969_v26  ;;  %v3029_v26 = vld [vmem:[%s3833_s1 + $0x4c0] sm:$0xff]  }
  0x4f   :  { %2674 = vmatpush3.bf16.msra.mxu0 %v2968_v25  ;;  %v3028_v25 = vld [vmem:[%s3833_s1 + $0x400] sm:$0xff]  }
  0x50   :  { %2675 = vmatprep.subr.bf16.mxu0 %v2971_v28  ;;  %v3031_v28 = vld [vmem:[%s3833_s1 + $0x448] sm:$0xff]  }
  0x51   :  { %2696 = vmatpush3.bf16.msra.mxu1 %v2970_v27  ;;  %v3030_v27 = vld [vmem:[%s3833_s1 + $0x480] sm:$0xff]  }
  0x52   :  { %2697 = vmatprep.subr.bf16.mxu1 %v2973_v30  ;;  %v3033_v30 = vld [vmem:[%s3833_s1 + $0x4c8] sm:$0xff]  }
  0x53   :  { %2676 = vmatpush3.bf16.msra.mxu0 %v2972_v29  ;;  %v3032_v29 = vld [vmem:[%s3833_s1 + $0x408] sm:$0xff]  }
  0x54   :  { %2677 = vmatprep.subr.bf16.mxu0 %v2975_v32  ;;  %v3035_v32 = vld [vmem:[%s3833_s1 + $0x450] sm:$0xff]  }
  0x55   :  { %2698 = vmatpush3.bf16.msra.mxu1 %v2974_v31  ;;  %v3034_v31 = vld [vmem:[%s3833_s1 + $0x488] sm:$0xff]  }
  0x56   :  { %2699 = vmatprep.subr.bf16.mxu1 %v2977_v34  ;;  %v3037_v34 = vld [vmem:[%s3833_s1 + $0x4d0] sm:$0xff]  }
  0x57   :  { %2678 = vmatpush3.bf16.msra.mxu0 %v2976_v33  ;;  %v3036_v33 = vld [vmem:[%s3833_s1 + $0x410] sm:$0xff]  }
  0x58   :  { %2679 = vmatprep.subr.bf16.mxu0 %v2979_v36  ;;  %v3039_v36 = vld [vmem:[%s3833_s1 + $0x458] sm:$0xff]  }
  0x59   :  { %2700 = vmatpush3.bf16.msra.mxu1 %v2978_v35  ;;  %v3038_v35 = vld [vmem:[%s3833_s1 + $0x490] sm:$0xff]  }
  0x5a   :  { %2701 = vmatprep.subr.bf16.mxu1 %v2981_v38  ;;  %v3041_v38 = vld [vmem:[%s3833_s1 + $0x4d8] sm:$0xff]  }
  0x5b   :  { %2680 = vmatpush3.bf16.msra.mxu0 %v2980_v37  ;;  %v3040_v37 = vld [vmem:[%s3833_s1 + $0x418] sm:$0xff]  }
  0x5c   :  { %2681 = vmatprep.subr.bf16.mxu0 %v2983_v40  ;;  %v3043_v40 = vld [vmem:[%s3833_s1 + $0x460] sm:$0xff]  }
  0x5d   :  { %2702 = vmatpush3.bf16.msra.mxu1 %v2982_v39  ;;  %v3042_v39 = vld [vmem:[%s3833_s1 + $0x498] sm:$0xff]  }
  0x5e   :  { %2703 = vmatprep.subr.bf16.mxu1 %v2985_v42  ;;  %v3045_v42 = vld [vmem:[%s3833_s1 + $0x4e0] sm:$0xff]  }
  0x5f   :  { %2682 = vmatpush3.bf16.msra.mxu0 %v2984_v41  ;;  %v3044_v41 = vld [vmem:[%s3833_s1 + $0x420] sm:$0xff]  }
  0x60   :  { %2711 = vmatprep.subr.bf16.mxu0 %v2989_v47  ;;  %v3050_v47 = vld [vmem:[%s3833_s1 + $0x4a8] sm:$0xff]  }
  0x61   :  { %2704 = vmatpush3.bf16.msra.mxu1 %v2988_v46  ;;  %v3049_v46 = vld [vmem:[%s3833_s1 + $0x4e8] sm:$0xff]  }
  0x62   :  { %1899 = vmatmul.mubr.bf16.vlgmr.msra.gmra.mrb[8].mxu0 %v2358_v44  ;;  %2733 = vmatprep.subr.bf16.mxu1 %v2993_v52  ;;  %v3047_v44 = vld [vmem:[%s3833_s1 + $0x468] sm:$0xff]   ;;  %v3055_v52 = vld [vmem:[%s3833_s1 + $0x478] sm:$0xff]  }
  0x63   :  { %2712 = vmatpush3.bf16.msra.mxu0 %v2992_v51  ;;  %1978 = vmatprep.mubr.bf16.mxu0 %v2363_v19  ;;  %v3054_v51 = vld [vmem:[%s3833_s1 + $0x4b0] sm:$0xff]   ;;  %v3084_v19 = vld [vmem:[%s3833_s1 + $0x528] sm:$0xff]  }
  0x64   :  { %1939 = vmatmul.mubr.bf16.vlgmr.msra.gmra.mrb[8].mxu1 %v2360_v49  ;;  %2713 = vmatprep.subr.bf16.mxu0 %v2995_v54  ;;  %v3052_v49 = vld [vmem:[%s3833_s1 + $0x430] sm:$0xff]   ;;  %v3057_v54 = vld [vmem:[%s3833_s1 + $0x4f8] sm:$0xff]  }
  0x65   :  { %2734 = vmatpush3.bf16.msra.mxu1 %v2994_v53  ;;  %2018 = vmatprep.mubr.bf16.mxu1 %v2365_v24  ;;  %v3056_v53 = vld [vmem:[%s3833_s1 + $0x438] sm:$0xff]   ;;  %v3089_v24 = vld [vmem:[%s3833_s1 + $0x5f0] sm:$0xff]  }
  0x66   :  { %2735 = vmatprep.subr.bf16.mxu1 %v2997_v56 }
  0x67   :  { %2714 = vmatpush3.bf16.msra.mxu0 %v2996_v55  ;;  %v35_v55 = vld [vmem:[%s3834_s0 + $0x40] sm:$0xff] }
  0x68   :  { %2715 = vmatprep.subr.bf16.mxu0 %v2999_v58  ;;  %v2366_v56 = vcombine.low %v35_v55, %v35_v55  ;;  %v3060_v58 = vld [vmem:[%s3833_s1 + $0x4b8] sm:$0xff]  }
  0x69   :  { %2736 = vmatpush3.bf16.msra.mxu1 %v2998_v57  ;;  %v2367_v57 = vcombine.high %v35_v55, %v35_v55 }
  0x6a   :  { %2737 = vmatprep.subr.bf16.mxu1 %v3001_v60  ;;  %v36_v60 = vld [vmem:[%s3834_s0 + $0x48] sm:$0xff] }
  0x6b   :  { %2716 = vmatpush3.bf16.msra.mxu0 %v3000_v59  ;;  %v3061_v59 = vld [vmem:[%s3833_s1 + $0x540] sm:$0xff]  }
  0x6c   :  { %2717 = vmatprep.subr.bf16.mxu0 %v3003_v62  ;;  %v2369_v62 = vcombine.high %v36_v60, %v36_v60 }
  0x6d   :  { %2738 = vmatpush3.bf16.msra.mxu1 %v3002_v61  ;;  %v2368_v61 = vcombine.low %v36_v60, %v36_v60 }
  0x6e   :  { %2739 = vmatprep.subr.bf16.mxu1 %v3005_v0  ;;  %v3065_v0 = vld [vmem:[%s3833_s1 + $0x5c0] sm:$0xff]  }
  0x6f   :  { %2718 = vmatpush3.bf16.msra.mxu0 %v3004_v63  ;;  %v3064_v63 = vld [vmem:[%s3833_s1 + $0x500] sm:$0xff]  }
  0x70   :  { %2719 = vmatprep.subr.bf16.mxu0 %v3007_v2  ;;  %v3067_v2 = vld [vmem:[%s3833_s1 + $0x548] sm:$0xff]  }
  0x71   :  { %2740 = vmatpush3.bf16.msra.mxu1 %v3006_v1  ;;  %v3066_v1 = vld [vmem:[%s3833_s1 + $0x580] sm:$0xff]  }
  0x72   :  { %2741 = vmatprep.subr.bf16.mxu1 %v3009_v4  ;;  %v3069_v4 = vld [vmem:[%s3833_s1 + $0x5c8] sm:$0xff]  }
  0x73   :  { %2720 = vmatpush3.bf16.msra.mxu0 %v3008_v3  ;;  %v3068_v3 = vld [vmem:[%s3833_s1 + $0x508] sm:$0xff]  }
  0x74   :  { %2721 = vmatprep.subr.bf16.mxu0 %v3011_v6  ;;  %v3071_v6 = vld [vmem:[%s3833_s1 + $0x550] sm:$0xff]  }
  0x75   :  { %2742 = vmatpush3.bf16.msra.mxu1 %v3010_v5  ;;  %v3070_v5 = vld [vmem:[%s3833_s1 + $0x588] sm:$0xff]  }
  0x76   :  { %2743 = vmatprep.subr.bf16.mxu1 %v3013_v8  ;;  %v3073_v8 = vld [vmem:[%s3833_s1 + $0x5d0] sm:$0xff]  }
  0x77   :  { %2722 = vmatpush3.bf16.msra.mxu0 %v3012_v7  ;;  %v3072_v7 = vld [vmem:[%s3833_s1 + $0x510] sm:$0xff]  }
  0x78   :  { %2723 = vmatprep.subr.bf16.mxu0 %v3015_v10  ;;  %v3075_v10 = vld [vmem:[%s3833_s1 + $0x558] sm:$0xff]  }
  0x79   :  { %2744 = vmatpush3.bf16.msra.mxu1 %v3014_v9  ;;  %v3074_v9 = vld [vmem:[%s3833_s1 + $0x590] sm:$0xff]  }
  0x7a   :  { %2745 = vmatprep.subr.bf16.mxu1 %v3017_v12  ;;  %v3077_v12 = vld [vmem:[%s3833_s1 + $0x5d8] sm:$0xff]  }
  0x7b   :  { %2724 = vmatpush3.bf16.msra.mxu0 %v3016_v11  ;;  %v3076_v11 = vld [vmem:[%s3833_s1 + $0x518] sm:$0xff]  }
  0x7c   :  { %2725 = vmatprep.subr.bf16.mxu0 %v3019_v14  ;;  %v3079_v14 = vld [vmem:[%s3833_s1 + $0x560] sm:$0xff]  }
  0x7d   :  { %2746 = vmatpush3.bf16.msra.mxu1 %v3018_v13  ;;  %v3078_v13 = vld [vmem:[%s3833_s1 + $0x598] sm:$0xff]  }
  0x7e   :  { %2747 = vmatprep.subr.bf16.mxu1 %v3021_v16  ;;  %v3081_v16 = vld [vmem:[%s3833_s1 + $0x5e0] sm:$0xff]  }
  0x7f   :  { %2726 = vmatpush3.bf16.msra.mxu0 %v3020_v15  ;;  %v3080_v15 = vld [vmem:[%s3833_s1 + $0x520] sm:$0xff]  }
  0x80   :  { %2755 = vmatprep.subr.bf16.mxu0 %v3025_v21  ;;  %v3086_v21 = vld [vmem:[%s3833_s1 + $0x5a8] sm:$0xff]  }
  0x81   :  { %2748 = vmatpush3.bf16.msra.mxu1 %v3024_v20  ;;  %v3085_v20 = vld [vmem:[%s3833_s1 + $0x5e8] sm:$0xff]  }
  0x82   :  { %1979 = vmatmul.mubr.bf16.vlgmr.msra.gmra.mrb[12].mxu0 %v2362_v18  ;;  %2777 = vmatprep.subr.bf16.mxu1 %v3029_v26  ;;  %v3083_v18 = vld [vmem:[%s3833_s1 + $0x568] sm:$0xff]   ;;  %v3091_v26 = vld [vmem:[%s3833_s1 + $0x578] sm:$0xff]  }
  0x83   :  { %2756 = vmatpush3.bf16.msra.mxu0 %v3028_v25  ;;  %2058 = vmatprep.mubr.bf16.mxu0 %v2367_v57  ;;  %v3090_v25 = vld [vmem:[%s3833_s1 + $0x5b0] sm:$0xff]  }
  0x84   :  { %2019 = vmatmul.mubr.bf16.vlgmr.msra.gmra.mrb[12].mxu1 %v2364_v23  ;;  %2757 = vmatprep.subr.bf16.mxu0 %v3031_v28  ;;  %v3088_v23 = vld [vmem:[%s3833_s1 + $0x530] sm:$0xff]   ;;  %v3093_v28 = vld [vmem:[%s3833_s1 + $0x5f8] sm:$0xff]  }
  0x85   :  { %2778 = vmatpush3.bf16.msra.mxu1 %v3030_v27  ;;  %2098 = vmatprep.mubr.bf16.mxu1 %v2369_v62  ;;  %v3092_v27 = vld [vmem:[%s3833_s1 + $0x538] sm:$0xff]  }
  0x86   :  { %2779 = vmatprep.subr.bf16.mxu1 %v3033_v30 }
  0x87   :  { %2758 = vmatpush3.bf16.msra.mxu0 %v3032_v29  ;;  %v37_v29 = vld [vmem:[%s3834_s0 + $0x50] sm:$0xff] }
  0x88   :  { %2759 = vmatprep.subr.bf16.mxu0 %v3035_v32  ;;  %v2370_v30 = vcombine.low %v37_v29, %v37_v29  ;;  %v3096_v32 = vld [vmem:[%s3833_s1 + $0x5b8] sm:$0xff]  }
  0x89   :  { %2780 = vmatpush3.bf16.msra.mxu1 %v3034_v31  ;;  %v2371_v31 = vcombine.high %v37_v29, %v37_v29 }
  0x8a   :  { %2781 = vmatprep.subr.bf16.mxu1 %v3037_v34  ;;  %v3111_v34 = vmov 0.0  }
  0x8b   :  { %2760 = vmatpush3.bf16.msra.mxu0 %v3036_v33  ;;  %v38_v33 = vld [vmem:[%s3834_s0 + $0x58] sm:$0xff] }
  0x8c   :  { %2761 = vmatprep.subr.bf16.mxu0 %v3039_v36  ;;  %v2373_v36 = vcombine.high %v38_v33, %v38_v33 }
  0x8d   :  { %2782 = vmatpush3.bf16.msra.mxu1 %v3038_v35  ;;  %v2372_v35 = vcombine.low %v38_v33, %v38_v33 }
  0x8e   :  { %2783 = vmatprep.subr.bf16.mxu1 %v3041_v38  ;;  %v3100_v38 = vld [vmem:[%s3833_s1 + $0x608] sm:$0xff]  }
  0x8f   :  { %2762 = vmatpush3.bf16.msra.mxu0 %v3040_v37  ;;  %v3099_v37 = vld [vmem:[%s3833_s1 + $0x600] sm:$0xff]  }
  0x90   :  { %2763 = vmatprep.subr.bf16.mxu0 %v3043_v40  ;;  %v3102_v40 = vld [vmem:[%s3833_s1 + $0x618] sm:$0xff]  }
  0x91   :  { %2784 = vmatpush3.bf16.msra.mxu1 %v3042_v39  ;;  %v3101_v39 = vld [vmem:[%s3833_s1 + $0x610] sm:$0xff]  }
  0x92   :  { %2785 = vmatprep.subr.bf16.mxu1 %v3045_v42 }
  0x93   :  { %2764 = vmatpush3.bf16.msra.mxu0 %v3044_v41  ;;  %v3103_v41 = vld [vmem:[%s3834_s0 + $0x60] ss:$0 sps:$4 sm:$0xff]  }
  0x94   :  { %2765 = vmatprep.subr.bf16.mxu0 %v3047_v44 }
  0x95   :  { %2786 = vmatpush3.bf16.msra.mxu1 %v3046_v43  ;;  %v2349_v43 = vld [vmem:[%s3835_s2] ss:$0 sm:$0xff] }
  0x96   :  { %2787 = vmatprep.subr.bf16.mxu1 %v3049_v46 }
  0x97   :  { %2766 = vmatpush3.bf16.msra.mxu0 %v3048_v45 }
  0x98   :  { %2767 = vmatprep.subr.bf16.mxu0 %v3051_v48 }
  0x99   :  { %2788 = vmatpush3.bf16.msra.mxu1 %v3050_v47 }
  0x9a   :  { %2789 = vmatprep.subr.bf16.mxu1 %v3053_v50 }
  0x9b   :  { %2768 = vmatpush3.bf16.msra.mxu0 %v3052_v49 }
  0x9c   :  { %2769 = vmatprep.subr.bf16.mxu0 %v3055_v52 }
  0x9d   :  { %2790 = vmatpush3.bf16.msra.mxu1 %v3054_v51 }
  0x9e   :  { %2791 = vmatprep.subr.bf16.mxu1 %v3057_v54 }
  0x9f   :  { %2770 = vmatpush3.bf16.msra.mxu0 %v3056_v53 }
  0xa0   :  { %2799 = vmatprep.subr.bf16.mxu0 %v3061_v59 }
  0xa1   :  { %2792 = vmatpush3.bf16.msra.mxu1 %v3060_v58 }
  0xa2   :  { %2059 = vmatmul.mubr.bf16.vlgmr.msra.gmra.mrb[16].mxu0 %v2366_v56  ;;  %2821 = vmatprep.subr.bf16.mxu1 %v3065_v0 }
  0xa3   :  { %2800 = vmatpush3.bf16.msra.mxu0 %v3064_v63  ;;  %2138 = vmatprep.mubr.bf16.mxu0 %v2371_v31 }
  0xa4   :  { %2099 = vmatmul.mubr.bf16.vlgmr.msra.gmra.mrb[16].mxu1 %v2368_v61  ;;  %2801 = vmatprep.subr.bf16.mxu0 %v3067_v2 }
  0xa5   :  { %2822 = vmatpush3.bf16.msra.mxu1 %v3066_v1  ;;  %2178 = vmatprep.mubr.bf16.mxu1 %v2373_v36  ;;  %v3104_v1 = vld [vmem:[%s3836_s3] sm:$0xff]  }
  0xa6   :  { %2823 = vmatprep.subr.bf16.mxu1 %v3069_v4  ;;  %v3105_v4 = vld [vmem:[%s3836_s3 + $0x8] sm:$0xff]  }
  0xa7   :  { %2802 = vmatpush3.bf16.msra.mxu0 %v3068_v3 }
  0xa8   :  { %2803 = vmatprep.subr.bf16.mxu0 %v3071_v6  ;;  %v3107_v6 = vld [vmem:[%s3836_s3 + $0x18] sm:$0xff]  }
  0xa9   :  { %2824 = vmatpush3.bf16.msra.mxu1 %v3070_v5  ;;  %v3106_v5 = vld [vmem:[%s3836_s3 + $0x10] sm:$0xff]  }
  0xaa   :  { %2825 = vmatprep.subr.bf16.mxu1 %v3073_v8 }
  0xab   :  { %2804 = vmatpush3.bf16.msra.mxu0 %v3072_v7  ;;  %v3108_v7 = vld [vmem:[%s3836_s3 + $0x20] sm:$0xff]  }
  0xac   :  { %2805 = vmatprep.subr.bf16.mxu0 %v3075_v10 }
  0xad   :  { %2826 = vmatpush3.bf16.msra.mxu1 %v3074_v9 }
  0xae   :  { %2827 = vmatprep.subr.bf16.mxu1 %v3077_v12 }
  0xaf   :  { %2806 = vmatpush3.bf16.msra.mxu0 %v3076_v11 }
  0xb0   :  { %2807 = vmatprep.subr.bf16.mxu0 %v3079_v14 }
  0xb1   :  { %2828 = vmatpush3.bf16.msra.mxu1 %v3078_v13 }
  0xb2   :  { %2829 = vmatprep.subr.bf16.mxu1 %v3081_v16 }
  0xb3   :  { %2808 = vmatpush3.bf16.msra.mxu0 %v3080_v15 }
  0xb4   :  { %2809 = vmatprep.subr.bf16.mxu0 %v3083_v18 }
  0xb5   :  { %2830 = vmatpush3.bf16.msra.mxu1 %v3082_v17 }
  0xb6   :  { %2831 = vmatprep.subr.bf16.mxu1 %v3085_v20 }
  0xb7   :  { %2810 = vmatpush3.bf16.msra.mxu0 %v3084_v19 }
  0xb8   :  { %2811 = vmatprep.subr.bf16.mxu0 %v3087_v22 }
  0xb9   :  { %2832 = vmatpush3.bf16.msra.mxu1 %v3086_v21 }
  0xba   :  { %2833 = vmatprep.subr.bf16.mxu1 %v3089_v24 }
  0xbb   :  { %2812 = vmatpush3.bf16.msra.mxu0 %v3088_v23 }
  0xbc   :  { %2813 = vmatprep.subr.bf16.mxu0 %v3091_v26 }
  0xbd   :  { %2834 = vmatpush3.bf16.msra.mxu1 %v3090_v25 }
  0xbe   :  { %2835 = vmatprep.subr.bf16.mxu1 %v3093_v28 }
  0xbf   :  { %2814 = vmatpush3.bf16.msra.mxu0 %v3092_v27 }
  0xc0   :  { %2854 = vmatprep.subr.bf16.mxu0 %v3111_v34 }
  0xc1   :  { %2836 = vmatpush3.bf16.msra.mxu1 %v3096_v32 }
  0xc2   :  { %2139 = vmatmul.mubr.bf16.vlgmr.msra.gmra.mrb[20].mxu0 %v2370_v30  ;;  %2866 = vmatprep.subr.bf16.mxu1 %v3111_v34 }
  0xc3   :  { %2855 = vmatpush3.bf16.msra.mxu0 %v3099_v37  ;;  %2862 = vmatprep.mubr.msk.bf16.mxu0 %vm3112_vm0, %v3111_v34 }
  0xc4   :  { %2179 = vmatmul.mubr.bf16.vlgmr.msra.gmra.mrb[20].mxu1 %v2372_v35  ;;  %2856 = vmatprep.subr.bf16.mxu0 %v3111_v34 }
  0xc5   :  { %2876 = vmatprep.mubr.msk.bf16.mxu1 %vm3112_vm0, %v3111_v34  ;;  %2867 = vmatpush3.bf16.msra.mxu1 %v3104_v1 }
  0xc6   :  { %2868 = vmatprep.subr.bf16.mxu1 %v3111_v34 }
  0xc7   :  { %2857 = vmatpush3.bf16.msra.mxu0 %v3100_v38 }
  0xc8   :  { %2858 = vmatprep.subr.bf16.mxu0 %v3111_v34 }
  0xc9   :  { %2869 = vmatpush3.bf16.msra.mxu1 %v3105_v4 }
  0xca   :  { %2870 = vmatprep.subr.bf16.mxu1 %v3111_v34 }
  0xcb   :  { %2859 = vmatpush3.bf16.msra.mxu0 %v3101_v39 }
  0xcc   :  { %2860 = vmatprep.subr.bf16.mxu0 %v3111_v34 }
  0xcd   :  { %2871 = vmatpush3.bf16.msra.mxu1 %v3106_v5 }
  0xce   :  { %2872 = vmatprep.subr.bf16.mxu1 %v3111_v34 }
  0xcf   :  { %2861 = vmatpush3.bf16.msra.mxu0 %v3102_v40 }
  0xd1   :  { %2873 = vmatpush3.bf16.msra.mxu1 %v3107_v6 }
  0xd2   :  { %2863 = vmatmul.mubr.msk.bf16.vlgmr.msra.gmra.mrb[24].mxu0 %vm1702_vm1, %v3103_v41  ;;  %2874 = vmatprep.subr.bf16.mxu1 %v3111_v34 }
  0xd5   :  { %2875 = vmatpush3.bf16.msra.mxu1 %v3108_v7 }
  0xf5   :  { %v2595_v42 = vpop.f32.mrb[0].mxu0 }
  0xf6   :  { %v2596_v44 = vpop.f32.mrb[1].mxu0 }
  0xf7   :  { %v2597_v45 = vadd.f32 %v2596_v44, %v2595_v42  ;;  %v2598_v46 = vpop.f32.mrb[2].mxu0  ;;  %v2617_v47 = vpop.f32.mrb[0].mxu1 }
  0xf8   :  { %v2599_v48 = vpop.f32.mrb[3].mxu0  ;;  %v2618_v49 = vpop.f32.mrb[1].mxu1 }
  0xf9   :  { %v1741_v50 = vadd.f32 %v2597_v45, %v2349_v43  ;;  %v2619_v51 = vadd.f32 %v2618_v49, %v2617_v47  ;;  %v2620_v52 = vpop.f32.mrb[2].mxu1 }
  0xfa   :  { %v2621_v53 = vpop.f32.mrb[3].mxu1 }
  0xfb   :  { %v1781_v54 = vadd.f32 %v2619_v51, %v1741_v50 }
 0x115   :  { %v2639_v55 = vpop.f32.mrb[4].mxu0 }
 0x116   :  { %v2640_v56 = vpop.f32.mrb[5].mxu0 }
 0x117   :  { %v2641_v57 = vadd.f32 %v2640_v56, %v2639_v55  ;;  %v2642_v58 = vpop.f32.mrb[6].mxu0  ;;  %v2661_v59 = vpop.f32.mrb[4].mxu1 }
 0x118   :  { %v2643_v60 = vpop.f32.mrb[7].mxu0  ;;  %v2662_v62 = vpop.f32.mrb[5].mxu1 }
 0x119   :  { %v1821_v61 = vadd.f32 %v2641_v57, %v1781_v54  ;;  %v2663_v63 = vadd.f32 %v2662_v62, %v2661_v59  ;;  %v2664_v0 = vpop.f32.mrb[6].mxu1 }
 0x11a   :  { %v2665_v2 = vpop.f32.mrb[7].mxu1 }
 0x11b   :  { %v1861_v3 = vadd.f32 %v2663_v63, %v1821_v61  ;;  %v2572_v63 = vld [vmem:[%s3837_s4] ss:$0 sm:$0xff] }
 0x135   :  { %v2683_v8 = vpop.f32.mrb[8].mxu0 }
 0x136   :  { %v2684_v9 = vpop.f32.mrb[9].mxu0 }
 0x137   :  { %v2685_v10 = vadd.f32 %v2684_v9, %v2683_v8  ;;  %v2686_v11 = vpop.f32.mrb[10].mxu0  ;;  %v2705_v12 = vpop.f32.mrb[8].mxu1  ;;  %v2326_v8 = vld [vmem:[%s3839_s5] sm:$0xff] }
 0x138   :  { %v2687_v13 = vpop.f32.mrb[11].mxu0  ;;  %v2706_v14 = vpop.f32.mrb[9].mxu1 }
 0x139   :  { %v1901_v15 = vadd.f32 %v2685_v10, %v1861_v3  ;;  %v2707_v16 = vadd.f32 %v2706_v14, %v2705_v12  ;;  %v2708_v17 = vpop.f32.mrb[10].mxu1 }
 0x13a   :  { %v2709_v18 = vpop.f32.mrb[11].mxu1 }
 0x13b   :  { %v1941_v19 = vadd.f32 %v2707_v16, %v1901_v15 }
 0x155   :  { %v2727_v20 = vpop.f32.mrb[12].mxu0 }
 0x156   :  { %v2728_v21 = vpop.f32.mrb[13].mxu0 }
 0x157   :  { %v2729_v22 = vadd.f32 %v2728_v21, %v2727_v20  ;;  %v2730_v23 = vpop.f32.mrb[14].mxu0  ;;  %v2749_v24 = vpop.f32.mrb[12].mxu1 }
 0x158   :  { %v2731_v25 = vpop.f32.mrb[15].mxu0  ;;  %v2750_v26 = vpop.f32.mrb[13].mxu1 }
 0x159   :  { %v1981_v27 = vadd.f32 %v2729_v22, %v1941_v19  ;;  %v2751_v28 = vadd.f32 %v2750_v26, %v2749_v24  ;;  %v2752_v29 = vpop.f32.mrb[14].mxu1 }
 0x15a   :  { %v2753_v30 = vpop.f32.mrb[15].mxu1 }
 0x15b   :  { %v2021_v31 = vadd.f32 %v2751_v28, %v1981_v27 }
 0x175   :  { %v2771_v32 = vpop.f32.mrb[16].mxu0 }
 0x176   :  { %v2772_v33 = vpop.f32.mrb[17].mxu0 }
 0x177   :  { %v2773_v34 = vadd.f32 %v2772_v33, %v2771_v32  ;;  %v2774_v35 = vpop.f32.mrb[18].mxu0  ;;  %v2793_v36 = vpop.f32.mrb[16].mxu1 }
 0x178   :  { %v2775_v37 = vpop.f32.mrb[19].mxu0  ;;  %v2794_v39 = vpop.f32.mrb[17].mxu1 }
 0x179   :  { %v2061_v38 = vadd.f32 %v2773_v34, %v2021_v31  ;;  %v2795_v40 = vadd.f32 %v2794_v39, %v2793_v36  ;;  %v2796_v41 = vpop.f32.mrb[18].mxu1 }
 0x17a   :  { %v2797_v42 = vpop.f32.mrb[19].mxu1 }
 0x17b   :  { %v2101_v43 = vadd.f32 %v2795_v40, %v2061_v38 }
 0x195   :  { %v2815_v44 = vpop.f32.mrb[20].mxu0 }
 0x196   :  { %v2816_v45 = vpop.f32.mrb[21].mxu0 }
 0x197   :  { %v2817_v46 = vadd.f32 %v2816_v45, %v2815_v44  ;;  %v2818_v47 = vpop.f32.mrb[22].mxu0  ;;  %v2837_v48 = vpop.f32.mrb[20].mxu1 }
 0x198   :  { %v2819_v49 = vpop.f32.mrb[23].mxu0  ;;  %v2838_v50 = vpop.f32.mrb[21].mxu1 }
 0x199   :  { %v2141_v51 = vadd.f32 %v2817_v46, %v2101_v43  ;;  %v2839_v52 = vadd.f32 %v2838_v50, %v2837_v48  ;;  %v2840_v53 = vpop.f32.mrb[22].mxu1 }
 0x19a   :  { %v2841_v54 = vpop.f32.mrb[23].mxu1 }
 0x19b   :  { %v2181_v55 = vadd.f32 %v2839_v52, %v2141_v51 }
 0x1a5   :  { %v2220_v56 = vpop.f32.mrb[24].mxu0 }
 0x1a6   :  { %v2221_v57 = vadd.f32 %v2220_v56, %v2181_v55  ;;  %v2864_v58 = vpop.f32.mrb[25].mxu0 }
 0x1a7   :  { %v2223_v59 = vpop.f32.mrb[26].mxu0 }
 0x1a8   :  { %v2226_v60 = vmax.f32 %v2221_v57, 0.0  ;;  %v2865_v61 = vpop.f32.mrb[27].mxu0 }
 0x1aa   :  { %v2227_v62 = vpack.c.bf16 %v2226_v60, %v2226_v60 }
 0x1ac   :  { %2877 = vmatmul.mubr.msk.bf16.vlgmr.msra.gmra.mrb[24].mxu1 %vm2275_vm2, %v2227_v62 }
 0x27f   :  { %v2313_v0 = vpop.f32.mrb[24].mxu1 }
 0x280   :  { %v2314_v1 = vadd.f32 %v2572_v63, %v2313_v0  ;;  %v2878_v2 = vpop.f32.mrb[25].mxu1 }
 0x281   :  { %v2316_v3 = vpop.f32.mrb[26].mxu1 }
 0x282   :  { %v2327_v4 = vmul.f32 0.5, %v2314_v1  ;;  %v2879_v5 = vpop.f32.mrb[27].mxu1  ;;  %2320 = vst.msk [vmem:[%s3838_s6] sm:$0xff] %vm2319_vm3, %v2314_v1 }
 0x284   :  { %v2328_v6 = vmul.f32 1.442695, %v2327_v4 }
 0x286   :  { %3109 = vpow2.f32 %v2328_v6 }
 0x290   :  { %v3110_v7 = vpop.eup %3109 }
 0x291   :  { %2331 = vrot.lane.b32.xlu0 %v3110_v7, %s3113_s17 }
 0x295   :  { %2322 = vrot.lane.b32.xlu0 %v2314_v1, %s3113_s17 }
 0x303   :  { %v2332_v9 = vpop.permute.xlu0 %2331 }
 0x304   :  { %v2334_v10 = vmul.f32 %v2332_v9, %v2326_v8 }
 0x306   :  { %v2335_v11 = vadd.f32 %v2334_v10, %v2314_v1 }
 0x307   :  { %v2323_v12 = vpop.permute.xlu0 %2322 }
 0x308   :  { %2336 = vst.msk [vmem:[%s3841_s8] sm:$0xff] %vm2319_vm3, %v2335_v11  ;;  %2325 = vst.msk [vmem:[%s3840_s7] sm:$0xff] %vm2319_vm3, %v2323_v12 }

</bundles_post_ra>
